<compile_context>
chip_gen: v7x
topology: tpu7x:2x2x1
jax: 0.10.0
libtpu: 0.0.40
codegen_flags: <defaults>
</compile_context>

<pallas_src>
import jax
import jax.numpy as jnp
from jax.experimental import pallas as pl
from jax.experimental.pallas import tpu as pltpu

IN_FEATURES = 3 * 64 * 64   # 12288
HIDDEN = 100
HIDDEN_PAD = 128            # lane-dense hidden dim (zero-padded; numerically exact)
OUT_FEATURES = 6

_MIB = 1024 * 1024


def _mlp_kernel(x_ref, w1_ref, b1_ref, w2_ref, b2_ref, o_ref):
    """One batch tile: relu(x @ W1 + b1) @ W2 + b2, f32 accumulation on the MXU."""
    h = jnp.dot(x_ref[...], w1_ref[...], preferred_element_type=jnp.float32)
    h = jnp.maximum(h + b1_ref[...], 0.0)                        # bias + ReLU
    logits = jnp.dot(h, w2_ref[...], preferred_element_type=jnp.float32)
    o_ref[...] = (logits + b2_ref[...]).astype(o_ref.dtype)


def _select_config():
    """Per-generation tile / VMEM-limit / core-parallel choice (safe default)."""
    vmem_bytes = None
    try:
        vmem_bytes = int(pltpu.get_tpu_info().vmem_capacity_bytes)
    except Exception:
        pass
    if vmem_bytes is not None and vmem_bytes >= 100 * _MIB:
        # v5e / v6e: 128 MiB VMEM, slower HBM -> big tiles to sit at the roofline.
        # Footprint @512: 2x24 MiB x double-buffer + 6 MiB resident W1 ~= 54 MiB.
        return dict(batch_tile=512, vmem_limit=80 * _MIB, core_parallel=False)
    # v7x (64 MiB VMEM per TC) or unknown chip: smaller tile, bounded limit.
    # Footprint @256: 2x12 MiB x double-buffer + 6 MiB resident W1 ~= 30 MiB.
    return dict(batch_tile=256, vmem_limit=44 * _MIB,
                core_parallel=vmem_bytes is not None)


def _invariant_spec(shape, single_buffer):
    """BlockSpec for grid-invariant operands (constant index_map); a second
    pipeline buffer is dead weight, so request a single buffer when possible."""
    if single_buffer:
        return pl.BlockSpec(shape, lambda i: (0, 0), pipeline_mode=pl.Buffered(1))
    return pl.BlockSpec(shape, lambda i: (0, 0))


def _build_and_run(x_flat, w1_p, b1_p, w2_p, b2_p, tb, grid_b, *,
                   single_buffer, semantics, vmem_limit):
    B = x_flat.shape[0]
    cost = pl.CostEstimate(
        flops=2 * B * IN_FEATURES * HIDDEN_PAD + 2 * B * HIDDEN_PAD * OUT_FEATURES,
        transcendentals=0,
        bytes_accessed=4 * (x_flat.size + w1_p.size + b1_p.size + w2_p.size
                            + b2_p.size + B * OUT_FEATURES),
    )
    return pl.pallas_call(
        _mlp_kernel,
        out_shape=jax.ShapeDtypeStruct((B, OUT_FEATURES), jnp.float32),
        grid_spec=pltpu.PrefetchScalarGridSpec(
            num_scalar_prefetch=0,
            grid=(grid_b,),
            in_specs=[
                pl.BlockSpec((tb, IN_FEATURES), lambda i: (i, 0)),           # x tile
                _invariant_spec((IN_FEATURES, HIDDEN_PAD), single_buffer),   # W1 (resident)
                _invariant_spec((1, HIDDEN_PAD), single_buffer),             # b1
                _invariant_spec((HIDDEN_PAD, OUT_FEATURES), single_buffer),  # W2
                _invariant_spec((1, OUT_FEATURES), single_buffer),           # b2
            ],
            out_specs=pl.BlockSpec((tb, OUT_FEATURES), lambda i: (i, 0)),
        ),
        compiler_params=pltpu.CompilerParams(
            dimension_semantics=semantics,
            vmem_limit_bytes=vmem_limit,
        ),
        cost_estimate=cost,
    )(x_flat, w1_p, b1_p, w2_p, b2_p)


def mlp_classifier_forward(x, w1, b1, w2, b2):
    """x: (B, 3, 64, 64) float32 -> logits (B, 6) float32."""
    B = x.shape[0]
    x_flat = jnp.reshape(x, (B, IN_FEATURES))       # row-major, same as torch .view

    # Zero-pad hidden 100 -> 128 (lane-dense W1 DMA / VPU work).  In a real
    # deployment the padded params would be prepared once, not per call.
    hp = HIDDEN_PAD - HIDDEN
    w1_p = jnp.pad(w1, ((0, 0), (0, hp)))                              # (12288, 128)
    b1_p = jnp.pad(jnp.reshape(b1, (1, HIDDEN)), ((0, 0), (0, hp)))    # (1, 128)
    w2_p = jnp.pad(w2, ((0, hp), (0, 0)))                              # (128, 6)
    b2_p = jnp.reshape(b2, (1, OUT_FEATURES))                          # (1, 6)

    cfg = _select_config()
    # Batch tiling without padding x: one full-batch block, or a ragged last
    # block (its out-of-range rows are read as padding and never written back).
    if B <= cfg["batch_tile"]:
        tb, grid_b = B, 1
    else:
        tb, grid_b = cfg["batch_tile"], pl.cdiv(B, cfg["batch_tile"])

    semantics_pref = ("parallel",)
    if cfg["core_parallel"]:
        semantics_pref = (getattr(pltpu, "CORE_PARALLEL", "parallel"),)

    attempts = (
        # Preferred: single-buffered invariant weights, chip-tuned semantics.
        dict(single_buffer=True, semantics=semantics_pref,
             vmem_limit=cfg["vmem_limit"]),
        # Fallback: plain, always-supported config.
        dict(single_buffer=False, semantics=("parallel",),
             vmem_limit=max(cfg["vmem_limit"], 48 * _MIB)),
    )
    last_err = None
    for opts in attempts:
        try:
            return _build_and_run(x_flat, w1_p, b1_p, w2_p, b2_p, tb, grid_b, **opts)
        except Exception as e:   # lowering fallback (pipeline_mode / core-parallel)
            last_err = e
    raise last_err


def init_params(key):
    """Deterministic init mirroring torch.nn.Linear default U[-1/sqrt(fan_in), +...]."""
    k1, k2, k3, k4 = jax.random.split(key, 4)
    bound1 = 1.0 / (IN_FEATURES ** 0.5)
    bound2 = 1.0 / (HIDDEN ** 0.5)
    w1 = jax.random.uniform(k1, (IN_FEATURES, HIDDEN), jnp.float32, -bound1, bound1)
    b1 = jax.random.uniform(k2, (HIDDEN,), jnp.float32, -bound1, bound1)
    w2 = jax.random.uniform(k3, (HIDDEN, OUT_FEATURES), jnp.float32, -bound2, bound2)
    b2 = jax.random.uniform(k4, (OUT_FEATURES,), jnp.float32, -bound2, bound2)
    return w1, b1, w2, b2


if __name__ == "__main__":
    key = jax.random.PRNGKey(0)
    kx, kp = jax.random.split(key)

    B = 2
    x = jax.random.normal(kx, (B, 3, 64, 64), jnp.float32)
    w1, b1, w2, b2 = init_params(kp)

    out = mlp_classifier_forward(x, w1, b1, w2, b2)
    out = jax.block_until_ready(out)

    # Reference check in plain JAX (same math as the torch module).
    x_flat = x.reshape(B, -1)
    ref = jnp.maximum(x_flat @ w1 + b1, 0.0) @ w2 + b2
    assert out.shape == (B, OUT_FEATURES)
    assert jnp.allclose(out, ref, atol=1e-4, rtol=1e-4)

    print("KERNEL_OK")
</pallas_src>

<mosaic_0001>
module attributes {stable_mosaic.version = 11 : i64} {
  func.func @_mlp_kernel(%arg0: i32, %arg1: memref<2x12288xf32, #tpu.memory_space<vmem>>, %arg2: memref<12288x128xf32, #tpu.memory_space<vmem>>, %arg3: memref<1x128xf32, #tpu.memory_space<vmem>>, %arg4: memref<128x6xf32, #tpu.memory_space<vmem>>, %arg5: memref<1x6xf32, #tpu.memory_space<vmem>>, %arg6: memref<2x6xf32, #tpu.memory_space<vmem>>) attributes {dimension_semantics = [#tpu.dimension_semantics<parallel>], iteration_bounds = array<i64: 1>, scalar_prefetch = 0 : i64, scratch_operands = 0 : i64, tpu.core_type = #tpu.core_type<tc>, window_params = [{transform_indices = @transform_0, window_bounds = array<i64: 2, 12288>}, {pipeline_mode = #tpu.pipeline_mode<synchronous>, transform_indices = @transform_1, window_bounds = array<i64: 12288, 128>}, {pipeline_mode = #tpu.pipeline_mode<synchronous>, transform_indices = @transform_2, window_bounds = array<i64: 1, 128>}, {pipeline_mode = #tpu.pipeline_mode<synchronous>, transform_indices = @transform_3, window_bounds = array<i64: 128, 6>}, {pipeline_mode = #tpu.pipeline_mode<synchronous>, transform_indices = @transform_4, window_bounds = array<i64: 1, 6>}, {transform_indices = @transform_5, window_bounds = array<i64: 2, 6>}]} {
    %c0 = arith.constant 0 : index
    %c0_0 = arith.constant 0 : index
    %0 = vector.load %arg1[%c0, %c0_0] : memref<2x12288xf32, #tpu.memory_space<vmem>>, vector<2x12288xf32>
    %c0_1 = arith.constant 0 : index
    %c0_2 = arith.constant 0 : index
    %1 = vector.load %arg2[%c0_1, %c0_2] : memref<12288x128xf32, #tpu.memory_space<vmem>>, vector<12288x128xf32>
    %cst = arith.constant dense<0.000000e+00> : vector<2x128xf32>
    %2 = tpu.matmul %0, %1, %cst {dimension_numbers = #tpu.dot_dimension_numbers<[1], [0], [0], [1], [0, 0, 1, 1], [], []>} : vector<2x12288xf32>, vector<12288x128xf32>, vector<2x128xf32> -> vector<2x128xf32>
    %c0_3 = arith.constant 0 : index
    %c0_4 = arith.constant 0 : index
    %3 = vector.load %arg3[%c0_3, %c0_4] : memref<1x128xf32, #tpu.memory_space<vmem>>, vector<1x128xf32>
    %4 = vector.broadcast %3 : vector<1x128xf32> to vector<2x128xf32>
    %5 = arith.addf %2, %4 : vector<2x128xf32>
    %cst_5 = arith.constant 0.000000e+00 : f32
    %6 = vector.broadcast %cst_5 : f32 to vector<2x128xf32>
    %7 = arith.maximumf %5, %6 : vector<2x128xf32>
    %c0_6 = arith.constant 0 : index
    %c0_7 = arith.constant 0 : index
    %8 = vector.load %arg4[%c0_6, %c0_7] : memref<128x6xf32, #tpu.memory_space<vmem>>, vector<128x6xf32>
    %cst_8 = arith.constant dense<0.000000e+00> : vector<2x6xf32>
    %9 = tpu.matmul %7, %8, %cst_8 {dimension_numbers = #tpu.dot_dimension_numbers<[1], [0], [0], [1], [0, 0, 1, 1], [], []>} : vector<2x128xf32>, vector<128x6xf32>, vector<2x6xf32> -> vector<2x6xf32>
    %c0_9 = arith.constant 0 : index
    %c0_10 = arith.constant 0 : index
    %10 = vector.load %arg5[%c0_9, %c0_10] : memref<1x6xf32, #tpu.memory_space<vmem>>, vector<1x6xf32>
    %11 = vector.broadcast %10 : vector<1x6xf32> to vector<2x6xf32>
    %12 = arith.addf %9, %11 : vector<2x6xf32>
    %c0_11 = arith.constant 0 : index
    %c0_12 = arith.constant 0 : index
    %13 = vector.load %arg6[%c0_11, %c0_12] : memref<2x6xf32, #tpu.memory_space<vmem>>, vector<2x6xf32>
    tpu.vector_store %arg6[%c0_11, %c0_12], %12 {strides = array<i32>} : memref<2x6xf32, #tpu.memory_space<vmem>>, vector<2x6xf32>,
    return
  }
  func.func @transform_0(%arg0: i32) -> (i32, i32) {
    %c0_i32 = arith.constant 0 : i32
    %c0_i32_0 = arith.constant 0 : i32
    return %arg0, %c0_i32 : i32, i32
  }
  func.func @transform_1(%arg0: i32) -> (i32, i32) {
    %c0_i32 = arith.constant 0 : i32
    %c0_i32_0 = arith.constant 0 : i32
    %c0_i32_1 = arith.constant 0 : i32
    return %c0_i32, %c0_i32_0 : i32, i32
  }
  func.func @transform_2(%arg0: i32) -> (i32, i32) {
    %c0_i32 = arith.constant 0 : i32
    %c0_i32_0 = arith.constant 0 : i32
    %c0_i32_1 = arith.constant 0 : i32
    return %c0_i32, %c0_i32_0 : i32, i32
  }
  func.func @transform_3(%arg0: i32) -> (i32, i32) {
    %c0_i32 = arith.constant 0 : i32
    %c0_i32_0 = arith.constant 0 : i32
    %c0_i32_1 = arith.constant 0 : i32
    return %c0_i32, %c0_i32_0 : i32, i32
  }
  func.func @transform_4(%arg0: i32) -> (i32, i32) {
    %c0_i32 = arith.constant 0 : i32
    %c0_i32_0 = arith.constant 0 : i32
    %c0_i32_1 = arith.constant 0 : i32
    return %c0_i32, %c0_i32_0 : i32, i32
  }
  func.func @transform_5(%arg0: i32) -> (i32, i32) {
    %c0_i32 = arith.constant 0 : i32
    %c0_i32_0 = arith.constant 0 : i32
    return %arg0, %c0_i32 : i32, i32
  }
}

module attributes {stable_mosaic.version = 11 : i64} {
  func.func @_mlp_kernel(%arg0: i32, %arg1: memref<2x12288xf32, #tpu.memory_space<vmem>>, %arg2: memref<12288x128xf32, #tpu.memory_space<vmem>>, %arg3: memref<1x128xf32, #tpu.memory_space<vmem>>, %arg4: memref<128x6xf32, #tpu.memory_space<vmem>>, %arg5: memref<1x6xf32, #tpu.memory_space<vmem>>, %arg6: memref<2x6xf32, #tpu.memory_space<vmem>>) attributes {dimension_semantics = [#tpu.dimension_semantics<parallel>], iteration_bounds = array<i64: 1>, scalar_prefetch = 0 : i64, scratch_operands = 0 : i64, tpu.core_type = #tpu.core_type<tc>, window_params = [{transform_indices = @transform_0, window_bounds = array<i64: 2, 12288>}, {pipeline_mode = #tpu.pipeline_mode<synchronous>, transform_indices = @transform_1, window_bounds = array<i64: 12288, 128>}, {pipeline_mode = #tpu.pipeline_mode<synchronous>, transform_indices = @transform_2, window_bounds = array<i64: 1, 128>}, {pipeline_mode = #tpu.pipeline_mode<synchronous>, transform_indices = @transform_3, window_bounds = array<i64: 128, 6>}, {pipeline_mode = #tpu.pipeline_mode<synchronous>, transform_indices = @transform_4, window_bounds = array<i64: 1, 6>}, {transform_indices = @transform_5, window_bounds = array<i64: 2, 6>}]} {
    %c0 = arith.constant 0 : index
    %c0_0 = arith.constant 0 : index
    %0 = vector.load %arg1[%c0, %c0_0] : memref<2x12288xf32, #tpu.memory_space<vmem>>, vector<2x12288xf32>
    %c0_1 = arith.constant 0 : index
    %c0_2 = arith.constant 0 : index
    %1 = vector.load %arg2[%c0_1, %c0_2] : memref<12288x128xf32, #tpu.memory_space<vmem>>, vector<12288x128xf32>
    %cst = arith.constant dense<0.000000e+00> : vector<2x128xf32>
    %2 = tpu.matmul %0, %1, %cst {dimension_numbers = #tpu.dot_dimension_numbers<[1], [0], [0], [1], [0, 0, 1, 1], [], []>} : vector<2x12288xf32>, vector<12288x128xf32>, vector<2x128xf32> -> vector<2x128xf32>
    %c0_3 = arith.constant 0 : index
    %c0_4 = arith.constant 0 : index
    %3 = vector.load %arg3[%c0_3, %c0_4] : memref<1x128xf32, #tpu.memory_space<vmem>>, vector<1x128xf32>
    %4 = vector.broadcast %3 : vector<1x128xf32> to vector<2x128xf32>
    %5 = arith.addf %2, %4 : vector<2x128xf32>
    %cst_5 = arith.constant 0.000000e+00 : f32
    %6 = vector.broadcast %cst_5 : f32 to vector<2x128xf32>
    %7 = arith.maximumf %5, %6 : vector<2x128xf32>
    %c0_6 = arith.constant 0 : index
    %c0_7 = arith.constant 0 : index
    %8 = vector.load %arg4[%c0_6, %c0_7] : memref<128x6xf32, #tpu.memory_space<vmem>>, vector<128x6xf32>
    %cst_8 = arith.constant dense<0.000000e+00> : vector<2x6xf32>
    %9 = tpu.matmul %7, %8, %cst_8 {dimension_numbers = #tpu.dot_dimension_numbers<[1], [0], [0], [1], [0, 0, 1, 1], [], []>} : vector<2x128xf32>, vector<128x6xf32>, vector<2x6xf32> -> vector<2x6xf32>
    %c0_9 = arith.constant 0 : index
    %c0_10 = arith.constant 0 : index
    %10 = vector.load %arg5[%c0_9, %c0_10] : memref<1x6xf32, #tpu.memory_space<vmem>>, vector<1x6xf32>
    %11 = vector.broadcast %10 : vector<1x6xf32> to vector<2x6xf32>
    %12 = arith.addf %9, %11 : vector<2x6xf32>
    %c0_11 = arith.constant 0 : index
    %c0_12 = arith.constant 0 : index
    %13 = vector.load %arg6[%c0_11, %c0_12] : memref<2x6xf32, #tpu.memory_space<vmem>>, vector<2x6xf32>
    tpu.vector_store %arg6[%c0_11, %c0_12], %12 {strides = array<i32>} : memref<2x6xf32, #tpu.memory_space<vmem>>, vector<2x6xf32>,
    return
  }
  func.func @transform_0(%arg0: i32) -> (i32, i32) {
    %c0_i32 = arith.constant 0 : i32
    %c0_i32_0 = arith.constant 0 : i32
    return %arg0, %c0_i32 : i32, i32
  }
  func.func @transform_1(%arg0: i32) -> (i32, i32) {
    %c0_i32 = arith.constant 0 : i32
    %c0_i32_0 = arith.constant 0 : i32
    %c0_i32_1 = arith.constant 0 : i32
    return %c0_i32, %c0_i32_0 : i32, i32
  }
  func.func @transform_2(%arg0: i32) -> (i32, i32) {
    %c0_i32 = arith.constant 0 : i32
    %c0_i32_0 = arith.constant 0 : i32
    %c0_i32_1 = arith.constant 0 : i32
    return %c0_i32, %c0_i32_0 : i32, i32
  }
  func.func @transform_3(%arg0: i32) -> (i32, i32) {
    %c0_i32 = arith.constant 0 : i32
    %c0_i32_0 = arith.constant 0 : i32
    %c0_i32_1 = arith.constant 0 : i32
    return %c0_i32, %c0_i32_0 : i32, i32
  }
  func.func @transform_4(%arg0: i32) -> (i32, i32) {
    %c0_i32 = arith.constant 0 : i32
    %c0_i32_0 = arith.constant 0 : i32
    %c0_i32_1 = arith.constant 0 : i32
    return %c0_i32, %c0_i32_0 : i32, i32
  }
  func.func @transform_5(%arg0: i32) -> (i32, i32) {
    %c0_i32 = arith.constant 0 : i32
    %c0_i32_0 = arith.constant 0 : i32
    return %arg0, %c0_i32 : i32, i32
  }
}

</mosaic_0001>

<bundles_post_ra>
// kernel: tpu_custom_call.1
= control target key start
LH: loop header
LB: loop body
LE: loop exit
PB: predicated region body
PF: predicated region fallthrough
CT: control target
= control target key end

     0   :  { %10 = vsyncpa [#allocation3], 0  ;;  %s9562_s0 = inlined_call_operand.hbm [shape: f32[2,12288], index: 0, kind: input, shape index: {}]   ;;  %s9563_s1 = inlined_call_operand.hbm [shape: f32[12288,128], index: 1, kind: input, shape index: {}]   ;;  %s9564_s2 = inlined_call_operand.hbm [shape: f32[1,128], index: 2, kind: input, shape index: {}]   ;;  %s9565_s3 = inlined_call_operand.vmem [shape: f32[128,6], index: 3, kind: input, shape index: {}]   ;;  %s9566_s4 = inlined_call_operand.hbm [shape: f32[1,6], index: 4, kind: input, shape index: {}]   ;;  %s9567_s5 = inlined_call_operand.hbm [shape: f32[2,6], index: 5, kind: output, shape index: {}]  }
   0x1   :  { %11 = vsyncpa [#allocation6], 0 }
   0x2   :  { %12 = vsyncpa [#allocation9], 0 }
   0x3   :  { %13 = vsyncpa [#allocation4], 0  ;;  %s9085_s18 = smov [#allocation5]   ;;  %s8967_s22 = scalar_lea.hbm %s9563_s1, 196608 }
   0x4   :  { %s29_s19 = sshll.u32 %s9085_s18, 4  ;;  %p8968_p0 = scmp.ne.s32.totalorder %s9563_s1, %s8967_s22  ;;  %s30_s19 = int_to_ptr.vmem [resolvable:$true] %s29_s19 }
   0x5   :  { %p8971_p1 = scmp.lt.u32.totalorder %s8967_s22, %s9563_s1 }
   0x7   :  { %p8973_p2 = pnand %p8971_p1, %p8968_p0 }
   0x9   :  { %8976 = shalt.err (!%p8973_p2)
}
   0xa   :  { %s8977_s27 = scalar_lea.vmem %s30_s19, 196608  ;;  %p8982_p4 = scmp.lt.s32.totalorder %s30_s19, %s30_s19 }
   0xb   :  { %p8978_p3 = scmp.ne.s32.totalorder %s30_s19, %s8977_s27  ;;  %p8983_p5 = scmp.lt.s32.totalorder %s8977_s27, %s8977_s27 }
   0xd   :  { %p8984_p6 = por %p8983_p5, %p8982_p4 }
   0xf   :  { %p8985_p7 = pnand %p8984_p6, %p8978_p3 }
  0x11   :  { %8988 = shalt.err (!%p8985_p7)
}
  0x12   :  { %s9086_s28 = smov 128   ;;  %s9087_s29 = smov 8  }
  0x13   :  { %35 = dma.hbm_to_vmem [thread:$0]  %s9563_s1, 196608, %s30_s19, [#allocation6], %s9086_s28, %s9086_s28, %s9087_s29  }
  0x14   :  { %s9088_s7 = smov [#allocation2]   ;;  %s9089_s9 = smov [#allocation7]  }
  0x15   :  { %s20_s8 = sshll.u32 %s9088_s7, 4  ;;  %s42_s10 = sshll.u32 %s9089_s9, 4  ;;  %s21_s8 = int_to_ptr.vmem [resolvable:$true] %s20_s8  ;;  %s43_s10 = int_to_ptr.vmem [resolvable:$true] %s42_s10 }
  0x16   :  { %s8989_s13 = scalar_lea.hbm %s9562_s0, 3072 }
  0x17   :  { %p8990_p8 = scmp.ne.s32.totalorder %s9562_s0, %s8989_s13  ;;  %p8993_p9 = scmp.lt.u32.totalorder %s8989_s13, %s9562_s0 }
  0x19   :  { %p8995_p10 = pnand %p8993_p9, %p8990_p8 }
  0x1b   :  { %8998 = shalt.err (!%p8995_p10)
}
  0x1c   :  { %s8999_s1 = scalar_lea.vmem %s21_s8, 3072  ;;  %p9004_p12 = scmp.lt.s32.totalorder %s21_s8, %s21_s8 }
  0x1d   :  { %p9000_p11 = scmp.ne.s32.totalorder %s21_s8, %s8999_s1  ;;  %p9005_p13 = scmp.lt.s32.totalorder %s8999_s1, %s8999_s1 }
  0x1f   :  { %p9006_p0 = por %p9005_p13, %p9004_p12 }
  0x21   :  { %p9007_p1 = pnand %p9006_p0, %p9000_p11 }
  0x23   :  { %9010 = shalt.err (!%p9007_p1)
}
  0x24   :  { %23 = dma.hbm_to_vmem [thread:$0]  %s9562_s0, 3072, %s21_s8, [#allocation3]  }
  0x25   :  { %s9011_s22 = scalar_lea.hbm %s9564_s2, 16 }
  0x26   :  { %p9012_p2 = scmp.ne.s32.totalorder %s9564_s2, %s9011_s22  ;;  %p9015_p3 = scmp.lt.u32.totalorder %s9011_s22, %s9564_s2 }
  0x28   :  { %p9017_p4 = pnand %p9015_p3, %p9012_p2 }
  0x2a   :  { %9020 = shalt.err (!%p9017_p4)
}
  0x2b   :  { %s9021_s27 = scalar_lea.vmem %s43_s10, 16  ;;  %s9025_s28 = scalar_lea.vmem %s43_s10, 32 }
  0x2c   :  { %p9022_p5 = scmp.ne.s32.totalorder %s43_s10, %s9021_s27  ;;  %p9026_p6 = scmp.lt.s32.totalorder %s43_s10, %s43_s10 }
  0x2d   :  { %p9027_p7 = scmp.lt.s32.totalorder %s9025_s28, %s9021_s27 }
  0x2f   :  { %p9028_p8 = por %p9027_p7, %p9026_p6 }
  0x31   :  { %p9029_p9 = pnand %p9028_p8, %p9022_p5 }
  0x33   :  { %9032 = shalt.err (!%p9029_p9)
}
  0x34   :  { %45 = dma.hbm_to_vmem [thread:$0]  %s9564_s2, 16, %s43_s10, [#allocation6]  }
  0x35   :  { %s9090_s30 = smov [#allocation8]   ;;  %s9033_s9 = scalar_lea.hbm %s9566_s4, 16 }
  0x36   :  { %s54_s6 = sshll.u32 %s9090_s30, 4  ;;  %p9034_p10 = scmp.ne.s32.totalorder %s9566_s4, %s9033_s9  ;;  %s55_s6 = int_to_ptr.vmem [resolvable:$true] %s54_s6 }
  0x37   :  { %p9037_p11 = scmp.lt.u32.totalorder %s9033_s9, %s9566_s4 }
  0x39   :  { %p9039_p12 = pnand %p9037_p11, %p9034_p10 }
  0x3b   :  { %9042 = shalt.err (!%p9039_p12)
}
  0x3c   :  { %s9043_s15 = scalar_lea.vmem %s55_s6, 16  ;;  %s9047_s2 = scalar_lea.vmem %s55_s6, 32 }
  0x3d   :  { %p9044_p13 = scmp.ne.s32.totalorder %s55_s6, %s9043_s15  ;;  %p9048_p0 = scmp.lt.s32.totalorder %s55_s6, %s55_s6 }
  0x3e   :  { %p9049_p1 = scmp.lt.s32.totalorder %s9047_s2, %s9043_s15 }
  0x40   :  { %p9050_p2 = por %p9049_p1, %p9048_p0 }
  0x42   :  { %p9051_p3 = pnand %p9050_p2, %p9044_p13 }
  0x44   :  { %9054 = shalt.err (!%p9051_p3)
}
  0x45   :  { %57 = dma.hbm_to_vmem [thread:$0]  %s9566_s4, 16, %s55_s6, [#allocation9]  }
  0x46   :  { %9077 = dma.done.wait [#allocation3], 3072  }
  0x47   :  { %9078 = vsyncadd [#allocation3], 4294964224 }
  0x48   :  { %9079 = dma.done.wait [#allocation6], 196624  }
  0x49   :  { %9080 = vsyncadd [#allocation6], 4294770672 }
  0x4a   :  { %9081 = dma.done.wait [#allocation9], 16  }
  0x4b   :  { %9082 = vsyncadd [#allocation9], 4294967280  ;;  %v110_v0 = vld [vmem:[#allocation5 + $0x80] sm:$0xff]  ;;  %v111_v1 = vld [vmem:[#allocation5 + $0x88] sm:$0xff]  ;;  %v9091_v47 = vmov 1983009808   ;;  %v1665_v49 = vlaneseq }
  0x4c   :  { %v94_v2 = vld [vmem:[#allocation5] sm:$0xff]  ;;  %v7372_v3 = vpack.c.bf16 %v111_v1, %v110_v0  ;;  %v95_v4 = vld [vmem:[#allocation5 + $0x8] sm:$0xff]  ;;  %v112_v11 = vld [vmem:[#allocation5 + $0x90] sm:$0xff]  ;;  %v1663_v48 = vunpack.c.l.s4 %v9091_v47  ;;  %vm9093_vm0 = vmmov 0   ;;  %vm5619_vm1 = vcmask 41984  }
  0x4d   :  { %v142_v5 = vld [vmem:[#allocation5 + $0x180] sm:$0xff]  ;;  %v143_v6 = vld [vmem:[#allocation5 + $0x188] sm:$0xff]  ;;  %v7374_v7 = vpack.c.bf16 %v95_v4, %v94_v2  ;;  %v113_v13 = vld [vmem:[#allocation5 + $0x98] sm:$0xff]  ;;  %v1666_v0 = vshrl.u32 %v1665_v49, 7 }
  0x4e   :  { %v7404_v8 = vpack.c.bf16 %v143_v6, %v142_v5  ;;  %v126_v9 = vld [vmem:[#allocation5 + $0x100] sm:$0xff]  ;;  %v127_v10 = vld [vmem:[#allocation5 + $0x108] sm:$0xff]  ;;  %7373 = vmatprep.subr.bf16.mxu0 %v7372_v3  ;;  %v96_v14 = vld [vmem:[#allocation5 + $0x10] sm:$0xff]  ;;  %v7376_v16 = vpack.c.bf16 %v113_v13, %v112_v11  ;;  %v1664_v63 = vunpack.c.0.s8 %v1663_v48 }
  0x4f   :  { %v7406_v12 = vpack.c.bf16 %v127_v10, %v126_v9  ;;  %v97_v15 = vld [vmem:[#allocation5 + $0x18] sm:$0xff]  ;;  %7375 = vmatpush3.bf16.msra.mxu0 %v7374_v7  ;;  %v144_v18 = vld [vmem:[#allocation5 + $0x190] sm:$0xff]  ;;  %v114_v23 = vld [vmem:[#allocation5 + $0xa0] sm:$0xff] }
  0x50   :  { %7405 = vmatprep.subr.bf16.mxu1 %v7404_v8  ;;  %v7378_v17 = vpack.c.bf16 %v97_v15, %v96_v14  ;;  %v145_v19 = vld [vmem:[#allocation5 + $0x198] sm:$0xff]  ;;  %v128_v20 = vld [vmem:[#allocation5 + $0x110] sm:$0xff]  ;;  %v115_v24 = vld [vmem:[#allocation5 + $0xa8] sm:$0xff]  ;;  %7377 = vmatprep.subr.bf16.mxu0 %v7376_v16  ;;  %v9174_v13 = vsub.s32 %v1664_v63, %v1666_v0 }
  0x51   :  { %7407 = vmatpush3.bf16.msra.mxu1 %v7406_v12  ;;  %v7408_v21 = vpack.c.bf16 %v145_v19, %v144_v18  ;;  %v129_v22 = vld [vmem:[#allocation5 + $0x118] sm:$0xff]  ;;  %v7380_v26 = vpack.c.bf16 %v115_v24, %v114_v23  ;;  %v98_v27 = vld [vmem:[#allocation5 + $0x20] sm:$0xff]  ;;  %v99_v28 = vld [vmem:[#allocation5 + $0x28] sm:$0xff] }
  0x52   :  { %v7410_v25 = vpack.c.bf16 %v129_v22, %v128_v20  ;;  %v146_v29 = vld [vmem:[#allocation5 + $0x1a0] sm:$0xff]  ;;  %v147_v30 = vld [vmem:[#allocation5 + $0x1a8] sm:$0xff]  ;;  %v7382_v33 = vpack.c.bf16 %v99_v28, %v98_v27  ;;  %v116_v35 = vld [vmem:[#allocation5 + $0xb0] sm:$0xff] }
  0x53   :  { %7409 = vmatprep.subr.bf16.mxu1 %v7408_v21  ;;  %v130_v31 = vld [vmem:[#allocation5 + $0x120] sm:$0xff]  ;;  %v131_v32 = vld [vmem:[#allocation5 + $0x128] sm:$0xff]  ;;  %7379 = vmatpush3.bf16.msra.mxu0 %v7378_v17  ;;  %v7412_v34 = vpack.c.bf16 %v147_v30, %v146_v29  ;;  %v117_v36 = vld [vmem:[#allocation5 + $0xb8] sm:$0xff] }
  0x54   :  { %v100_v37 = vld [vmem:[#allocation5 + $0x30] sm:$0xff]  ;;  %7381 = vmatprep.subr.bf16.mxu0 %v7380_v26  ;;  %v7414_v38 = vpack.c.bf16 %v131_v32, %v130_v31  ;;  %v7384_v39 = vpack.c.bf16 %v117_v36, %v116_v35  ;;  %v101_v40 = vld [vmem:[#allocation5 + $0x38] sm:$0xff]  ;;  %v118_v46 = vld [vmem:[#allocation5 + $0xc0] sm:$0xff] }
  0x55   :  { %7411 = vmatpush3.bf16.msra.mxu1 %v7410_v25  ;;  %v148_v41 = vld [vmem:[#allocation5 + $0x1b0] sm:$0xff]  ;;  %v149_v42 = vld [vmem:[#allocation5 + $0x1b8] sm:$0xff]  ;;  %v119_v50 = vld [vmem:[#allocation5 + $0xc8] sm:$0xff]  ;;  %v7386_v51 = vpack.c.bf16 %v101_v40, %v100_v37 }
  0x56   :  { %7413 = vmatprep.subr.bf16.mxu1 %v7412_v34  ;;  %v7416_v43 = vpack.c.bf16 %v149_v42, %v148_v41  ;;  %v132_v44 = vld [vmem:[#allocation5 + $0x130] sm:$0xff]  ;;  %v133_v45 = vld [vmem:[#allocation5 + $0x138] sm:$0xff]  ;;  %v150_v52 = vld [vmem:[#allocation5 + $0x1c0] sm:$0xff]  ;;  %v7388_v55 = vpack.c.bf16 %v119_v50, %v118_v46 }
  0x57   :  { %7383 = vmatpush3.bf16.msra.mxu0 %v7382_v33  ;;  %v151_v53 = vld [vmem:[#allocation5 + $0x1c8] sm:$0xff]  ;;  %v7418_v54 = vpack.c.bf16 %v133_v45, %v132_v44  ;;  %v102_v56 = vld [vmem:[#allocation5 + $0x40] sm:$0xff]  ;;  %v120_v61 = vld [vmem:[#allocation5 + $0xd0] sm:$0xff] }
  0x58   :  { %7385 = vmatprep.subr.bf16.mxu0 %v7384_v39  ;;  %v103_v57 = vld [vmem:[#allocation5 + $0x48] sm:$0xff]  ;;  %v134_v58 = vld [vmem:[#allocation5 + $0x140] sm:$0xff]  ;;  %v7420_v59 = vpack.c.bf16 %v151_v53, %v150_v52  ;;  %v121_v62 = vld [vmem:[#allocation5 + $0xd8] sm:$0xff] }
  0x59   :  { %7415 = vmatpush3.bf16.msra.mxu1 %v7414_v38  ;;  %v135_v60 = vld [vmem:[#allocation5 + $0x148] sm:$0xff]  ;;  %v152_v1 = vld [vmem:[#allocation5 + $0x1d0] sm:$0xff]  ;;  %v153_v2 = vld [vmem:[#allocation5 + $0x1d8] sm:$0xff]  ;;  %v7390_v3 = vpack.c.bf16 %v103_v57, %v102_v56  ;;  %v7392_v5 = vpack.c.bf16 %v121_v62, %v120_v61 }
  0x5a   :  { %7417 = vmatprep.subr.bf16.mxu1 %v7416_v43  ;;  %v7422_v4 = vpack.c.bf16 %v135_v60, %v134_v58  ;;  %v104_v6 = vld [vmem:[#allocation5 + $0x50] sm:$0xff]  ;;  %v105_v7 = vld [vmem:[#allocation5 + $0x58] sm:$0xff]  ;;  %v7424_v9 = vpack.c.bf16 %v153_v2, %v152_v1  ;;  %v122_v11 = vld [vmem:[#allocation5 + $0xe0] sm:$0xff] }
  0x5b   :  { %7387 = vmatpush3.bf16.msra.mxu0 %v7386_v51  ;;  %v136_v8 = vld [vmem:[#allocation5 + $0x150] sm:$0xff]  ;;  %v137_v10 = vld [vmem:[#allocation5 + $0x158] sm:$0xff]  ;;  %v123_v12 = vld [vmem:[#allocation5 + $0xe8] sm:$0xff]  ;;  %v7394_v16 = vpack.c.bf16 %v105_v7, %v104_v6 }
  0x5c   :  { %7389 = vmatprep.subr.bf16.mxu0 %v7388_v55  ;;  %v154_v14 = vld [vmem:[#allocation5 + $0x1e0] sm:$0xff]  ;;  %v155_v15 = vld [vmem:[#allocation5 + $0x1e8] sm:$0xff]  ;;  %v7426_v18 = vpack.c.bf16 %v137_v10, %v136_v8  ;;  %v7396_v19 = vpack.c.bf16 %v123_v12, %v122_v11  ;;  %v124_v25 = vld [vmem:[#allocation5 + $0xf0] sm:$0xff] }
  0x5d   :  { %7419 = vmatpush3.bf16.msra.mxu1 %v7418_v54  ;;  %v106_v17 = vld [vmem:[#allocation5 + $0x60] sm:$0xff]  ;;  %v107_v20 = vld [vmem:[#allocation5 + $0x68] sm:$0xff]  ;;  %v7428_v23 = vpack.c.bf16 %v155_v15, %v154_v14  ;;  %v125_v26 = vld [vmem:[#allocation5 + $0xf8] sm:$0xff] }
  0x5e   :  { %7421 = vmatprep.subr.bf16.mxu1 %v7420_v59  ;;  %v138_v21 = vld [vmem:[#allocation5 + $0x160] sm:$0xff]  ;;  %v139_v24 = vld [vmem:[#allocation5 + $0x168] sm:$0xff]  ;;  %v156_v29 = vld [vmem:[#allocation5 + $0x1f0] sm:$0xff]  ;;  %v7398_v31 = vpack.c.bf16 %v107_v20, %v106_v17  ;;  %v7400_v35 = vpack.c.bf16 %v125_v26, %v124_v25 }
  0x5f   :  { %7391 = vmatpush3.bf16.msra.mxu0 %v7390_v3  ;;  %v70_v22 = vld [vmem:[#allocation2] sm:$0xff]  ;;  %v157_v30 = vld [vmem:[#allocation5 + $0x1f8] sm:$0xff]  ;;  %v7430_v34 = vpack.c.bf16 %v139_v24, %v138_v21  ;;  %v108_v36 = vld [vmem:[#allocation5 + $0x70] sm:$0xff] }
  0x60   :  { %7393 = vmatprep.subr.bf16.mxu0 %v7392_v5  ;;  %v1668_v27 = vrot.slane %v70_v22, %v9174_v13  ;;  %v1661_v28 = vcombine.high %v70_v22, %v70_v22  ;;  %v109_v37 = vld [vmem:[#allocation5 + $0x78] sm:$0xff]  ;;  %v140_v38 = vld [vmem:[#allocation5 + $0x170] sm:$0xff]  ;;  %v7432_v39 = vpack.c.bf16 %v157_v30, %v156_v29  ;;  %v174_v41 = vld [vmem:[#allocation5 + $0x280] sm:$0xff] }
  0x61   :  { %7423 = vmatpush3.bf16.msra.mxu1 %v7422_v4  ;;  %v141_v40 = vld [vmem:[#allocation5 + $0x178] sm:$0xff]  ;;  %v175_v42 = vld [vmem:[#allocation5 + $0x288] sm:$0xff]  ;;  %v206_v44 = vld [vmem:[#allocation5 + $0x380] sm:$0xff]  ;;  %v7402_v46 = vpack.c.bf16 %v109_v37, %v108_v36 }
  0x62   :  { %7425 = vmatprep.subr.bf16.mxu1 %v7424_v9  ;;  %v1676_v32 = vcombine.high %v1668_v27, %v1668_v27  ;;  %v1675_v33 = vrot.slane %v1661_v28, %v9174_v13  ;;  %v207_v45 = vld [vmem:[#allocation5 + $0x388] sm:$0xff]  ;;  %v7434_v47 = vpack.c.bf16 %v141_v40, %v140_v38  ;;  %v7436_v48 = vpack.c.bf16 %v175_v42, %v174_v41  ;;  %v158_v49 = vld [vmem:[#allocation5 + $0x200] sm:$0xff]  ;;  %v176_v54 = vld [vmem:[#allocation5 + $0x290] sm:$0xff] }
  0x63   :  { %7395 = vmatpush3.bf16.msra.mxu0 %v7394_v16  ;;  %v159_v50 = vld [vmem:[#allocation5 + $0x208] sm:$0xff]  ;;  %v190_v51 = vld [vmem:[#allocation5 + $0x300] sm:$0xff]  ;;  %v7468_v52 = vpack.c.bf16 %v207_v45, %v206_v44  ;;  %v177_v55 = vld [vmem:[#allocation5 + $0x298] sm:$0xff] }
  0x64   :  { %7397 = vmatprep.subr.bf16.mxu0 %v7396_v19  ;;  %2229 = vmatprep.mubr.f32.mxu0 %v1676_v32  ;;  %v1677_v43 = vcombine.high %v1675_v33, %v1675_v33  ;;  %v191_v53 = vld [vmem:[#allocation5 + $0x308] sm:$0xff]  ;;  %v208_v56 = vld [vmem:[#allocation5 + $0x390] sm:$0xff]  ;;  %v209_v57 = vld [vmem:[#allocation5 + $0x398] sm:$0xff]  ;;  %v7438_v58 = vpack.c.bf16 %v159_v50, %v158_v49  ;;  %v7440_v60 = vpack.c.bf16 %v177_v55, %v176_v54 }
  0x65   :  { %7427 = vmatpush3.bf16.msra.mxu1 %v7426_v18  ;;  %v7470_v59 = vpack.c.bf16 %v191_v53, %v190_v51  ;;  %v160_v61 = vld [vmem:[#allocation5 + $0x210] sm:$0xff]  ;;  %v161_v62 = vld [vmem:[#allocation5 + $0x218] sm:$0xff]  ;;  %v7472_v0 = vpack.c.bf16 %v209_v57, %v208_v56  ;;  %v178_v2 = vld [vmem:[#allocation5 + $0x2a0] sm:$0xff] }
  0x66   :  { %7429 = vmatprep.subr.bf16.mxu1 %v7428_v23  ;;  %2299 = vmatprep.mubr.f32.mxu1 %v1677_v43  ;;  %v192_v63 = vld [vmem:[#allocation5 + $0x310] sm:$0xff]  ;;  %v193_v1 = vld [vmem:[#allocation5 + $0x318] sm:$0xff]  ;;  %v179_v3 = vld [vmem:[#allocation5 + $0x2a8] sm:$0xff]  ;;  %v7442_v6 = vpack.c.bf16 %v161_v62, %v160_v61 }
  0x67   :  { %7399 = vmatpush3.bf16.msra.mxu0 %v7398_v31  ;;  %v210_v4 = vld [vmem:[#allocation5 + $0x3a0] sm:$0xff]  ;;  %v211_v5 = vld [vmem:[#allocation5 + $0x3a8] sm:$0xff]  ;;  %v7474_v7 = vpack.c.bf16 %v193_v1, %v192_v63  ;;  %v7444_v8 = vpack.c.bf16 %v179_v3, %v178_v2  ;;  %v180_v15 = vld [vmem:[#allocation5 + $0x2b0] sm:$0xff] }
  0x68   :  { %7401 = vmatprep.subr.bf16.mxu0 %v7400_v35  ;;  %v162_v9 = vld [vmem:[#allocation5 + $0x220] sm:$0xff]  ;;  %v163_v10 = vld [vmem:[#allocation5 + $0x228] sm:$0xff]  ;;  %v7476_v12 = vpack.c.bf16 %v211_v5, %v210_v4  ;;  %v181_v16 = vld [vmem:[#allocation5 + $0x2b8] sm:$0xff] }
  0x69   :  { %7431 = vmatpush3.bf16.msra.mxu1 %v7430_v34  ;;  %v194_v11 = vld [vmem:[#allocation5 + $0x320] sm:$0xff]  ;;  %v195_v14 = vld [vmem:[#allocation5 + $0x328] sm:$0xff]  ;;  %v212_v17 = vld [vmem:[#allocation5 + $0x3b0] sm:$0xff]  ;;  %v7446_v19 = vpack.c.bf16 %v163_v10, %v162_v9  ;;  %v7448_v21 = vpack.c.bf16 %v181_v16, %v180_v15 }
  0x6a   :  { %7433 = vmatprep.subr.bf16.mxu1 %v7432_v39  ;;  %v213_v18 = vld [vmem:[#allocation5 + $0x3b8] sm:$0xff]  ;;  %v7478_v20 = vpack.c.bf16 %v195_v14, %v194_v11  ;;  %v164_v22 = vld [vmem:[#allocation5 + $0x230] sm:$0xff]  ;;  %v183_v28 = vld [vmem:[#allocation5 + $0x2c8] sm:$0xff] }
  0x6b   :  { %7403 = vmatpush3.bf16.msra.mxu0 %v7402_v46  ;;  %v165_v23 = vld [vmem:[#allocation5 + $0x238] sm:$0xff]  ;;  %v196_v24 = vld [vmem:[#allocation5 + $0x330] sm:$0xff]  ;;  %v7480_v25 = vpack.c.bf16 %v213_v18, %v212_v17  ;;  %v214_v29 = vld [vmem:[#allocation5 + $0x3c0] sm:$0xff] }
  0x6c   :  { %7437 = vmatprep.subr.bf16.mxu0 %v7436_v48  ;;  %v197_v26 = vld [vmem:[#allocation5 + $0x338] sm:$0xff]  ;;  %v215_v30 = vld [vmem:[#allocation5 + $0x3c8] sm:$0xff]  ;;  %v7450_v32 = vpack.c.bf16 %v165_v23, %v164_v22  ;;  %v166_v37 = vld [vmem:[#allocation5 + $0x240] sm:$0xff] }
  0x6d   :  { %7435 = vmatpush3.bf16.msra.mxu1 %v7434_v47  ;;  %v71_v31 = vld [vmem:[#allocation2 + $0x8] sm:$0xff]  ;;  %v7482_v35 = vpack.c.bf16 %v197_v26, %v196_v24  ;;  %v198_v39 = vld [vmem:[#allocation5 + $0x340] sm:$0xff]  ;;  %v7484_v40 = vpack.c.bf16 %v215_v30, %v214_v29  ;;  %v184_v42 = vld [vmem:[#allocation5 + $0x2d0] sm:$0xff] }
  0x6e   :  { %7469 = vmatprep.subr.bf16.mxu1 %v7468_v52  ;;  %2230 = vmatmul.mubr.f32.vlgmr.msra.gmra.mrb[0].mxu0 %v1668_v27  ;;  %v182_v27 = vld [vmem:[#allocation5 + $0x2c0] sm:$0xff]  ;;  %v1678_v34 = vcombine.high %v71_v31, %v71_v31  ;;  %v167_v38 = vld [vmem:[#allocation5 + $0x248] sm:$0xff]  ;;  %v185_v43 = vld [vmem:[#allocation5 + $0x2d8] sm:$0xff] }
  0x6f   :  { %7439 = vmatpush3.bf16.msra.mxu0 %v7438_v58  ;;  %v7452_v36 = vpack.c.bf16 %v183_v28, %v182_v27  ;;  %v199_v41 = vld [vmem:[#allocation5 + $0x348] sm:$0xff]  ;;  %v216_v46 = vld [vmem:[#allocation5 + $0x3d0] sm:$0xff]  ;;  %v217_v47 = vld [vmem:[#allocation5 + $0x3d8] sm:$0xff]  ;;  %v7454_v48 = vpack.c.bf16 %v167_v38, %v166_v37  ;;  %v7456_v51 = vpack.c.bf16 %v185_v43, %v184_v42 }
  0x70   :  { %2300 = vmatmul.mubr.f32.vlgmr.msra.gmra.mrb[0].mxu1 %v1675_v33  ;;  %7441 = vmatprep.subr.bf16.mxu0 %v7440_v60  ;;  %v9179_v33 = vrot.slane %v71_v31, %v9174_v13  ;;  %v9184_v45 = vrot.slane %v1678_v34, %v9174_v13  ;;  %v7486_v50 = vpack.c.bf16 %v199_v41, %v198_v39  ;;  %v168_v52 = vld [vmem:[#allocation5 + $0x250] sm:$0xff]  ;;  %v169_v53 = vld [vmem:[#allocation5 + $0x258] sm:$0xff]  ;;  %v186_v57 = vld [vmem:[#allocation5 + $0x2e0] sm:$0xff] }
  0x71   :  { %7471 = vmatpush3.bf16.msra.mxu1 %v7470_v59  ;;  %v200_v54 = vld [vmem:[#allocation5 + $0x350] sm:$0xff]  ;;  %v7488_v55 = vpack.c.bf16 %v217_v47, %v216_v46  ;;  %v201_v56 = vld [vmem:[#allocation5 + $0x358] sm:$0xff]  ;;  %v187_v58 = vld [vmem:[#allocation5 + $0x2e8] sm:$0xff]  ;;  %v7458_v61 = vpack.c.bf16 %v169_v53, %v168_v52 }
  0x72   :  { %7473 = vmatprep.subr.bf16.mxu1 %v7472_v0  ;;  %v1693_v44 = vcombine.high %v9179_v33, %v9179_v33  ;;  %v1694_v49 = vcombine.high %v9184_v45, %v9184_v45  ;;  %v218_v59 = vld [vmem:[#allocation5 + $0x3e0] sm:$0xff]  ;;  %v219_v60 = vld [vmem:[#allocation5 + $0x3e8] sm:$0xff]  ;;  %v7490_v62 = vpack.c.bf16 %v201_v56, %v200_v54  ;;  %v7460_v63 = vpack.c.bf16 %v187_v58, %v186_v57  ;;  %v188_v5 = vld [vmem:[#allocation5 + $0x2f0] sm:$0xff] }
  0x73   :  { %7443 = vmatpush3.bf16.msra.mxu0 %v7442_v6  ;;  %v170_v0 = vld [vmem:[#allocation5 + $0x260] sm:$0xff]  ;;  %v171_v1 = vld [vmem:[#allocation5 + $0x268] sm:$0xff]  ;;  %v7492_v3 = vpack.c.bf16 %v219_v60, %v218_v59  ;;  %v189_v6 = vld [vmem:[#allocation5 + $0x2f8] sm:$0xff] }
  0x74   :  { %7445 = vmatprep.subr.bf16.mxu0 %v7444_v8  ;;  %2369 = vmatprep.mubr.f32.mxu0 %v1693_v44  ;;  %v202_v2 = vld [vmem:[#allocation5 + $0x360] sm:$0xff]  ;;  %v203_v4 = vld [vmem:[#allocation5 + $0x368] sm:$0xff]  ;;  %v221_v8 = vld [vmem:[#allocation5 + $0x3f8] sm:$0xff]  ;;  %v7462_v9 = vpack.c.bf16 %v171_v1, %v170_v0  ;;  %v7464_v11 = vpack.c.bf16 %v189_v6, %v188_v5 }
  0x75   :  { %7475 = vmatpush3.bf16.msra.mxu1 %v7474_v7  ;;  %2439 = vmatprep.mubr.f32.mxu1 %v1694_v49  ;;  %v220_v7 = vld [vmem:[#allocation5 + $0x3f0] sm:$0xff]  ;;  %v7494_v10 = vpack.c.bf16 %v203_v4, %v202_v2  ;;  %v173_v14 = vld [vmem:[#allocation5 + $0x278] sm:$0xff]  ;;  %v238_v18 = vld [vmem:[#allocation5 + $0x480] sm:$0xff] }
  0x76   :  { %7477 = vmatprep.subr.bf16.mxu1 %v7476_v12  ;;  %v172_v12 = vld [vmem:[#allocation5 + $0x270] sm:$0xff]  ;;  %v7496_v16 = vpack.c.bf16 %v221_v8, %v220_v7  ;;  %v205_v17 = vld [vmem:[#allocation5 + $0x378] sm:$0xff]  ;;  %v222_v23 = vld [vmem:[#allocation5 + $0x400] sm:$0xff] }
  0x77   :  { %7447 = vmatpush3.bf16.msra.mxu0 %v7446_v19  ;;  %v204_v15 = vld [vmem:[#allocation5 + $0x370] sm:$0xff]  ;;  %v239_v19 = vld [vmem:[#allocation5 + $0x488] sm:$0xff]  ;;  %v7466_v22 = vpack.c.bf16 %v173_v14, %v172_v12  ;;  %v254_v27 = vld [vmem:[#allocation5 + $0x500] sm:$0xff] }
  0x78   :  { %7449 = vmatprep.subr.bf16.mxu0 %v7448_v21  ;;  %v271_v21 = vld [vmem:[#allocation5 + $0x588] sm:$0xff]  ;;  %v7498_v24 = vpack.c.bf16 %v205_v17, %v204_v15  ;;  %v240_v30 = vld [vmem:[#allocation5 + $0x490] sm:$0xff]  ;;  %v241_v31 = vld [vmem:[#allocation5 + $0x498] sm:$0xff] }
  0x79   :  { %7479 = vmatpush3.bf16.msra.mxu1 %v7478_v20  ;;  %v270_v20 = vld [vmem:[#allocation5 + $0x580] sm:$0xff]  ;;  %v223_v26 = vld [vmem:[#allocation5 + $0x408] sm:$0xff]  ;;  %v273_v34 = vld [vmem:[#allocation5 + $0x598] sm:$0xff]  ;;  %v7504_v38 = vpack.c.bf16 %v241_v31, %v240_v30 }
  0x7a   :  { %7481 = vmatprep.subr.bf16.mxu1 %v7480_v25  ;;  %v7500_v25 = vpack.c.bf16 %v239_v19, %v238_v18  ;;  %v255_v28 = vld [vmem:[#allocation5 + $0x508] sm:$0xff]  ;;  %v7532_v29 = vpack.c.bf16 %v271_v21, %v270_v20  ;;  %v72_v37 = vld [vmem:[#allocation2 + $0x10] sm:$0xff]  ;;  %v257_v46 = vld [vmem:[#allocation5 + $0x518] sm:$0xff] }
  0x7b   :  { %7451 = vmatpush3.bf16.msra.mxu0 %v7450_v32  ;;  %v272_v32 = vld [vmem:[#allocation5 + $0x590] sm:$0xff]  ;;  %v9189_v42 = vrot.slane %v72_v37, %v9174_v13  ;;  %v1695_v43 = vcombine.high %v72_v37, %v72_v37  ;;  %v242_v47 = vld [vmem:[#allocation5 + $0x4a0] sm:$0xff]  ;;  %v227_v57 = vld [vmem:[#allocation5 + $0x428] sm:$0xff] }
  0x7c   :  { %7453 = vmatprep.subr.bf16.mxu0 %v7452_v36  ;;  %v7534_v36 = vpack.c.bf16 %v255_v28, %v254_v27  ;;  %v224_v39 = vld [vmem:[#allocation5 + $0x410] sm:$0xff]  ;;  %v7536_v44 = vpack.c.bf16 %v273_v34, %v272_v32  ;;  %v274_v49 = vld [vmem:[#allocation5 + $0x5a0] sm:$0xff]  ;;  %v259_v60 = vld [vmem:[#allocation5 + $0x528] sm:$0xff] }
  0x7d   :  { %7483 = vmatpush3.bf16.msra.mxu1 %v7482_v35  ;;  %v7502_v35 = vpack.c.bf16 %v223_v26, %v222_v23  ;;  %v256_v41 = vld [vmem:[#allocation5 + $0x510] sm:$0xff]  ;;  %v9195_v52 = vrot.slane %v1695_v43, %v9174_v13  ;;  %v226_v56 = vld [vmem:[#allocation5 + $0x420] sm:$0xff]  ;;  %v277_v0 = vld [vmem:[#allocation5 + $0x5b8] sm:$0xff] }
  0x7e   :  { %7485 = vmatprep.subr.bf16.mxu1 %v7484_v40  ;;  %v225_v40 = vld [vmem:[#allocation5 + $0x418] sm:$0xff]  ;;  %v7538_v54 = vpack.c.bf16 %v257_v46, %v256_v41  ;;  %v258_v58 = vld [vmem:[#allocation5 + $0x520] sm:$0xff]  ;;  %v260_v5 = vld [vmem:[#allocation5 + $0x530] sm:$0xff] }
  0x7f   :  { %7455 = vmatpush3.bf16.msra.mxu0 %v7454_v48  ;;  %v243_v48 = vld [vmem:[#allocation5 + $0x4a8] sm:$0xff]  ;;  %v7506_v53 = vpack.c.bf16 %v225_v40, %v224_v39  ;;  %v7542_v1 = vpack.c.bf16 %v259_v60, %v258_v58  ;;  %v229_v4 = vld [vmem:[#allocation5 + $0x438] sm:$0xff]  ;;  %v246_v8 = vld [vmem:[#allocation5 + $0x4c0] sm:$0xff] }
  0x80   :  { %7457 = vmatprep.subr.bf16.mxu0 %v7456_v51  ;;  %v1710_v51 = vcombine.high %v9189_v42, %v9189_v42  ;;  %v261_v7 = vld [vmem:[#allocation5 + $0x538] sm:$0xff]  ;;  %v231_v17 = vld [vmem:[#allocation5 + $0x448] sm:$0xff]  ;;  %v262_v18 = vld [vmem:[#allocation5 + $0x540] sm:$0xff] }
  0x81   :  { %7487 = vmatpush3.bf16.msra.mxu1 %v7486_v50  ;;  %v275_v50 = vld [vmem:[#allocation5 + $0x5a8] sm:$0xff]  ;;  %v7546_v14 = vpack.c.bf16 %v261_v7, %v260_v5  ;;  %v248_v21 = vld [vmem:[#allocation5 + $0x4d0] sm:$0xff]  ;;  %v265_v32 = vld [vmem:[#allocation5 + $0x558] sm:$0xff] }
  0x82   :  { %7489 = vmatprep.subr.bf16.mxu1 %v7488_v55  ;;  %v7508_v55 = vpack.c.bf16 %v243_v48, %v242_v47  ;;  %v7540_v59 = vpack.c.bf16 %v275_v50, %v274_v49  ;;  %v263_v20 = vld [vmem:[#allocation5 + $0x548] sm:$0xff]  ;;  %v280_v23 = vld [vmem:[#allocation5 + $0x5d0] sm:$0xff]  ;;  %v250_v34 = vld [vmem:[#allocation5 + $0x4e0] sm:$0xff] }
  0x83   :  { %7459 = vmatpush3.bf16.msra.mxu0 %v7458_v61  ;;  %v244_v61 = vld [vmem:[#allocation5 + $0x4b0] sm:$0xff]  ;;  %v7550_v26 = vpack.c.bf16 %v263_v20, %v262_v18  ;;  %v283_v37 = vld [vmem:[#allocation5 + $0x5e8] sm:$0xff]  ;;  %v234_v41 = vld [vmem:[#allocation5 + $0x460] sm:$0xff] }
  0x84   :  { %7461 = vmatprep.subr.bf16.mxu0 %v7460_v63  ;;  %v276_v63 = vld [vmem:[#allocation5 + $0x5b0] sm:$0xff]  ;;  %v235_v43 = vld [vmem:[#allocation5 + $0x468] sm:$0xff]  ;;  %v253_v49 = vld [vmem:[#allocation5 + $0x4f8] sm:$0xff] }
  0x85   :  { %7491 = vmatpush3.bf16.msra.mxu1 %v7490_v62  ;;  %v245_v62 = vld [vmem:[#allocation5 + $0x4b8] sm:$0xff]  ;;  %v7544_v6 = vpack.c.bf16 %v277_v0, %v276_v63  ;;  %v232_v28 = vld [vmem:[#allocation5 + $0x450] sm:$0xff]  ;;  %v267_v47 = vld [vmem:[#allocation5 + $0x568] sm:$0xff] }
  0x86   :  { %7493 = vmatprep.subr.bf16.mxu1 %v7492_v3  ;;  %v7512_v2 = vpack.c.bf16 %v245_v62, %v244_v61  ;;  %v228_v3 = vld [vmem:[#allocation5 + $0x430] sm:$0xff]  ;;  %v237_v58 = vld [vmem:[#allocation5 + $0x478] sm:$0xff]  ;;  %v302_v61 = vld [vmem:[#allocation5 + $0x680] sm:$0xff] }
  0x87   :  { %7463 = vmatpush3.bf16.msra.mxu0 %v7462_v9  ;;  %v247_v9 = vld [vmem:[#allocation5 + $0x4c8] sm:$0xff]  ;;  %v7514_v12 = vpack.c.bf16 %v229_v4, %v228_v3  ;;  %v264_v30 = vld [vmem:[#allocation5 + $0x550] sm:$0xff]  ;;  %v269_v60 = vld [vmem:[#allocation5 + $0x578] sm:$0xff] }
  0x88   :  { %7465 = vmatprep.subr.bf16.mxu0 %v7464_v11  ;;  %v279_v11 = vld [vmem:[#allocation5 + $0x5c8] sm:$0xff]  ;;  %v7516_v15 = vpack.c.bf16 %v247_v9, %v246_v8  ;;  %v7554_v39 = vpack.c.bf16 %v265_v32, %v264_v30  ;;  %v252_v48 = vld [vmem:[#allocation5 + $0x4f0] sm:$0xff]  ;;  %v334_v63 = vld [vmem:[#allocation5 + $0x780] sm:$0xff] }
  0x89   :  { %7495 = vmatpush3.bf16.msra.mxu1 %v7494_v10  ;;  %v278_v10 = vld [vmem:[#allocation5 + $0x5c0] sm:$0xff]  ;;  %v284_v50 = vld [vmem:[#allocation5 + $0x5f0] sm:$0xff]  ;;  %v303_v62 = vld [vmem:[#allocation5 + $0x688] sm:$0xff] }
  0x8a   :  { %7497 = vmatprep.subr.bf16.mxu1 %v7496_v16  ;;  %v230_v16 = vld [vmem:[#allocation5 + $0x440] sm:$0xff]  ;;  %v7548_v19 = vpack.c.bf16 %v279_v11, %v278_v10  ;;  %v335_v0 = vld [vmem:[#allocation5 + $0x788] sm:$0xff]  ;;  %v7564_v3 = vpack.c.bf16 %v303_v62, %v302_v61  ;;  %v304_v9 = vld [vmem:[#allocation5 + $0x690] sm:$0xff] }
  0x8b   :  { %7467 = vmatpush3.bf16.msra.mxu0 %v7466_v22  ;;  %v249_v22 = vld [vmem:[#allocation5 + $0x4d8] sm:$0xff]  ;;  %v286_v4 = vld [vmem:[#allocation5 + $0x600] sm:$0xff]  ;;  %v287_v5 = vld [vmem:[#allocation5 + $0x608] sm:$0xff]  ;;  %v7596_v7 = vpack.c.bf16 %v335_v0, %v334_v63 }
  0x8c   :  { %7501 = vmatprep.subr.bf16.mxu0 %v7500_v25  ;;  %v7518_v25 = vpack.c.bf16 %v231_v17, %v230_v16  ;;  %v7520_v27 = vpack.c.bf16 %v249_v22, %v248_v21  ;;  %v319_v8 = vld [vmem:[#allocation5 + $0x708] sm:$0xff]  ;;  %v305_v10 = vld [vmem:[#allocation5 + $0x698] sm:$0xff]  ;;  %v7566_v16 = vpack.c.bf16 %v287_v5, %v286_v4  ;;  %v320_v21 = vld [vmem:[#allocation5 + $0x710] sm:$0xff] }
  0x8d   :  { %7499 = vmatpush3.bf16.msra.mxu1 %v7498_v24  ;;  %v281_v24 = vld [vmem:[#allocation5 + $0x5d8] sm:$0xff]  ;;  %v7568_v18 = vpack.c.bf16 %v305_v10, %v304_v9  ;;  %v327_v62 = vld [vmem:[#allocation5 + $0x748] sm:$0xff]  ;;  %v312_v63 = vld [vmem:[#allocation5 + $0x6d0] sm:$0xff] }
  0x8e   :  { %7533 = vmatprep.subr.bf16.mxu1 %v7532_v29  ;;  %2370 = vmatmul.mubr.f32.vlgmr.msra.gmra.mrb[2].mxu0 %v9179_v33  ;;  %v1711_v33 = vcombine.high %v9195_v52, %v9195_v52  ;;  %v233_v29 = vld [vmem:[#allocation5 + $0x458] sm:$0xff]  ;;  %v7552_v31 = vpack.c.bf16 %v281_v24, %v280_v23  ;;  %v306_v24 = vld [vmem:[#allocation5 + $0x6a0] sm:$0xff]  ;;  %v296_v5 = vld [vmem:[#allocation5 + $0x650] sm:$0xff] }
  0x8f   :  { %7503 = vmatpush3.bf16.msra.mxu0 %v7502_v35  ;;  %2509 = vmatprep.mubr.f32.mxu0 %v1710_v51  ;;  %v251_v35 = vld [vmem:[#allocation5 + $0x4e8] sm:$0xff]  ;;  %v285_v51 = vld [vmem:[#allocation5 + $0x5f8] sm:$0xff]  ;;  %v314_v10 = vld [vmem:[#allocation5 + $0x6e0] sm:$0xff] }
  0x90   :  { %2440 = vmatmul.mubr.f32.vlgmr.msra.gmra.mrb[2].mxu1 %v9184_v45  ;;  %7505 = vmatprep.subr.bf16.mxu0 %v7504_v38  ;;  %v7510_v45 = vpack.c.bf16 %v227_v57, %v226_v56  ;;  %v7522_v38 = vpack.c.bf16 %v233_v29, %v232_v28  ;;  %v7524_v40 = vpack.c.bf16 %v251_v35, %v250_v34  ;;  %v236_v57 = vld [vmem:[#allocation5 + $0x470] sm:$0xff]  ;;  %v289_v20 = vld [vmem:[#allocation5 + $0x618] sm:$0xff]  ;;  %v339_v28 = vld [vmem:[#allocation5 + $0x7a8] sm:$0xff] }
  0x91   :  { %7535 = vmatpush3.bf16.msra.mxu1 %v7534_v36  ;;  %2579 = vmatprep.mubr.f32.mxu1 %v1711_v33  ;;  %v282_v36 = vld [vmem:[#allocation5 + $0x5e0] sm:$0xff]  ;;  %v7528_v56 = vpack.c.bf16 %v253_v49, %v252_v48  ;;  %v268_v33 = vld [vmem:[#allocation5 + $0x570] sm:$0xff]  ;;  %v321_v23 = vld [vmem:[#allocation5 + $0x718] sm:$0xff] }
  0x92   :  { %7537 = vmatprep.subr.bf16.mxu1 %v7536_v44  ;;  %v266_v44 = vld [vmem:[#allocation5 + $0x560] sm:$0xff]  ;;  %v7556_v46 = vpack.c.bf16 %v283_v37, %v282_v36  ;;  %v291_v35 = vld [vmem:[#allocation5 + $0x628] sm:$0xff]  ;;  %v324_v48 = vld [vmem:[#allocation5 + $0x730] sm:$0xff] }
  0x93   :  { %7507 = vmatpush3.bf16.msra.mxu0 %v7506_v53  ;;  %v7526_v53 = vpack.c.bf16 %v235_v43, %v234_v41  ;;  %v290_v34 = vld [vmem:[#allocation5 + $0x620] sm:$0xff]  ;;  %v341_v41 = vld [vmem:[#allocation5 + $0x7b8] sm:$0xff] }
  0x94   :  { %7509 = vmatprep.subr.bf16.mxu0 %v7508_v55  ;;  %v7558_v55 = vpack.c.bf16 %v267_v47, %v266_v44  ;;  %v322_v36 = vld [vmem:[#allocation5 + $0x720] sm:$0xff]  ;;  %v7574_v43 = vpack.c.bf16 %v291_v35, %v290_v34  ;;  %v293_v47 = vld [vmem:[#allocation5 + $0x638] sm:$0xff]  ;;  %v300_v34 = vld [vmem:[#allocation5 + $0x670] sm:$0xff] }
  0x95   :  { %7539 = vmatpush3.bf16.msra.mxu1 %v7538_v54  ;;  %v73_v54 = vld [vmem:[#allocation2 + $0x18] sm:$0xff] }
  0x96   :  { %7541 = vmatprep.subr.bf16.mxu1 %v7540_v59  ;;  %v7560_v59 = vpack.c.bf16 %v285_v51, %v284_v50  ;;  %v9201_v11 = vrot.slane %v73_v54, %v9174_v13  ;;  %v325_v50 = vld [vmem:[#allocation5 + $0x738] sm:$0xff]  ;;  %v310_v51 = vld [vmem:[#allocation5 + $0x6c0] sm:$0xff] }
  0x97   :  { %7511 = vmatpush3.bf16.msra.mxu0 %v7510_v45  ;;  %v1712_v45 = vcombine.high %v73_v54, %v73_v54  ;;  %v342_v54 = vld [vmem:[#allocation5 + $0x7c0] sm:$0xff]  ;;  %v313_v0 = vld [vmem:[#allocation5 + $0x6d8] sm:$0xff] }
  0x98   :  { %7513 = vmatprep.subr.bf16.mxu0 %v7512_v2  ;;  %v7562_v2 = vpack.c.bf16 %v269_v60, %v268_v33  ;;  %v294_v33 = vld [vmem:[#allocation5 + $0x640] sm:$0xff]  ;;  %v7584_v4 = vpack.c.bf16 %v313_v0, %v312_v63  ;;  %v329_v9 = vld [vmem:[#allocation5 + $0x758] sm:$0xff]  ;;  %v384_v63 = vld [vmem:[#allocation5 + $0x910] sm:$0xff] }
  0x99   :  { %7543 = vmatpush3.bf16.msra.mxu1 %v7542_v1  ;;  %v7530_v1 = vpack.c.bf16 %v237_v58, %v236_v57  ;;  %v7610_v57 = vpack.c.bf16 %v325_v50, %v324_v48  ;;  %v326_v60 = vld [vmem:[#allocation5 + $0x740] sm:$0xff]  ;;  %v301_v35 = vld [vmem:[#allocation5 + $0x678] sm:$0xff]  ;;  %v351_v48 = vld [vmem:[#allocation5 + $0x808] sm:$0xff] }
  0x9a   :  { %7545 = vmatprep.subr.bf16.mxu1 %v7544_v6  ;;  %v318_v6 = vld [vmem:[#allocation5 + $0x700] sm:$0xff] }
  0x9b   :  { %7515 = vmatpush3.bf16.msra.mxu0 %v7514_v12  ;;  %v336_v12 = vld [vmem:[#allocation5 + $0x790] sm:$0xff]  ;;  %v7598_v17 = vpack.c.bf16 %v319_v8, %v318_v6  ;;  %v297_v6 = vld [vmem:[#allocation5 + $0x658] sm:$0xff] }
  0x9c   :  { %7517 = vmatprep.subr.bf16.mxu0 %v7516_v15  ;;  %v9204_v15 = vrot.slane %v1712_v45, %v9174_v13  ;;  %v344_v45 = vld [vmem:[#allocation5 + $0x7d0] sm:$0xff] }
  0x9d   :  { %7547 = vmatpush3.bf16.msra.mxu1 %v7546_v14  ;;  %v337_v14 = vld [vmem:[#allocation5 + $0x798] sm:$0xff] }
  0x9e   :  { %7549 = vmatprep.subr.bf16.mxu1 %v7548_v19  ;;  %v288_v19 = vld [vmem:[#allocation5 + $0x610] sm:$0xff]  ;;  %v7600_v22 = vpack.c.bf16 %v337_v14, %v336_v12  ;;  %v1728_v29 = vcombine.high %v9204_v15, %v9204_v15  ;;  %v315_v12 = vld [vmem:[#allocation5 + $0x6e8] sm:$0xff]  ;;  %v346_v14 = vld [vmem:[#allocation5 + $0x7e0] sm:$0xff] }
  0x9f   :  { %7519 = vmatpush3.bf16.msra.mxu0 %v7518_v25  ;;  %v307_v25 = vld [vmem:[#allocation5 + $0x6a8] sm:$0xff]  ;;  %v7570_v30 = vpack.c.bf16 %v289_v20, %v288_v19  ;;  %v7588_v19 = vpack.c.bf16 %v315_v12, %v314_v10  ;;  %v298_v20 = vld [vmem:[#allocation5 + $0x660] sm:$0xff] }
  0xa0   :  { %7521 = vmatprep.subr.bf16.mxu0 %v7520_v27  ;;  %v338_v27 = vld [vmem:[#allocation5 + $0x7a0] sm:$0xff]  ;;  %v7572_v32 = vpack.c.bf16 %v307_v25, %v306_v24  ;;  %v331_v24 = vld [vmem:[#allocation5 + $0x768] sm:$0xff]  ;;  %v316_v25 = vld [vmem:[#allocation5 + $0x6f0] sm:$0xff] }
  0xa1   :  { %7551 = vmatpush3.bf16.msra.mxu1 %v7550_v26  ;;  %v1727_v26 = vcombine.high %v9201_v11, %v9201_v11  ;;  %v7604_v37 = vpack.c.bf16 %v339_v28, %v338_v27  ;;  %v348_v27 = vld [vmem:[#allocation5 + $0x7f0] sm:$0xff]  ;;  %v349_v28 = vld [vmem:[#allocation5 + $0x7f8] sm:$0xff]  ;;  %v354_v10 = vld [vmem:[#allocation5 + $0x820] sm:$0xff] }
  0xa2   :  { %7553 = vmatprep.subr.bf16.mxu1 %v7552_v31  ;;  %v7602_v31 = vpack.c.bf16 %v321_v23, %v320_v21  ;;  %v299_v21 = vld [vmem:[#allocation5 + $0x668] sm:$0xff] }
  0xa3   :  { %7523 = vmatpush3.bf16.msra.mxu0 %v7522_v38  ;;  %v323_v38 = vld [vmem:[#allocation5 + $0x728] sm:$0xff] }
  0xa4   :  { %7525 = vmatprep.subr.bf16.mxu0 %v7524_v40  ;;  %v340_v40 = vld [vmem:[#allocation5 + $0x7b0] sm:$0xff]  ;;  %v355_v12 = vld [vmem:[#allocation5 + $0x828] sm:$0xff] }
  0xa5   :  { %7555 = vmatpush3.bf16.msra.mxu1 %v7554_v39  ;;  %v309_v39 = vld [vmem:[#allocation5 + $0x6b8] sm:$0xff]  ;;  %v7608_v49 = vpack.c.bf16 %v341_v41, %v340_v40  ;;  %v398_v40 = vld [vmem:[#allocation5 + $0x980] sm:$0xff]  ;;  %v399_v41 = vld [vmem:[#allocation5 + $0x988] sm:$0xff] }
  0xa6   :  { %7557 = vmatprep.subr.bf16.mxu1 %v7556_v46  ;;  %v292_v46 = vld [vmem:[#allocation5 + $0x630] sm:$0xff]  ;;  %v7660_v50 = vpack.c.bf16 %v399_v41, %v398_v40  ;;  %v377_v41 = vld [vmem:[#allocation5 + $0x8d8] sm:$0xff] }
  0xa7   :  { %7527 = vmatpush3.bf16.msra.mxu0 %v7526_v53  ;;  %v311_v53 = vld [vmem:[#allocation5 + $0x6c8] sm:$0xff]  ;;  %v376_v40 = vld [vmem:[#allocation5 + $0x8d0] sm:$0xff] }
  0xa8   :  { %7529 = vmatprep.subr.bf16.mxu0 %v7528_v56  ;;  %v7578_v56 = vpack.c.bf16 %v293_v47, %v292_v46  ;;  %v7580_v58 = vpack.c.bf16 %v311_v53, %v310_v51  ;;  %v350_v47 = vld [vmem:[#allocation5 + $0x800] sm:$0xff]  ;;  %v383_v51 = vld [vmem:[#allocation5 + $0x908] sm:$0xff]  ;;  %v368_v53 = vld [vmem:[#allocation5 + $0x890] sm:$0xff] }
  0xa9   :  { %7559 = vmatpush3.bf16.msra.mxu1 %v7558_v55  ;;  %v343_v55 = vld [vmem:[#allocation5 + $0x7c8] sm:$0xff] }
  0xaa   :  { %7561 = vmatprep.subr.bf16.mxu1 %v7560_v59  ;;  %v295_v59 = vld [vmem:[#allocation5 + $0x648] sm:$0xff]  ;;  %v7612_v61 = vpack.c.bf16 %v343_v55, %v342_v54  ;;  %v369_v54 = vld [vmem:[#allocation5 + $0x898] sm:$0xff] }
  0xab   :  { %7531 = vmatpush3.bf16.msra.mxu0 %v7530_v1  ;;  %v345_v1 = vld [vmem:[#allocation5 + $0x7d8] sm:$0xff] }
  0xac   :  { %7565 = vmatprep.subr.bf16.mxu0 %v7564_v3  ;;  %v7614_v3 = vpack.c.bf16 %v327_v62, %v326_v60  ;;  %v7616_v8 = vpack.c.bf16 %v345_v1, %v344_v45  ;;  %v7632_v60 = vpack.c.bf16 %v369_v54, %v368_v53  ;;  %v353_v62 = vld [vmem:[#allocation5 + $0x818] sm:$0xff]  ;;  %v370_v1 = vld [vmem:[#allocation5 + $0x8a0] sm:$0xff] }
  0xad   :  { %7563 = vmatpush3.bf16.msra.mxu1 %v7562_v2  ;;  %v7582_v2 = vpack.c.bf16 %v295_v59, %v294_v33  ;;  %v7630_v33 = vpack.c.bf16 %v351_v48, %v350_v47  ;;  %v385_v45 = vld [vmem:[#allocation5 + $0x918] sm:$0xff]  ;;  %v7648_v47 = vpack.c.bf16 %v377_v41, %v376_v40  ;;  %v360_v48 = vld [vmem:[#allocation5 + $0x850] sm:$0xff]  ;;  %v378_v54 = vld [vmem:[#allocation5 + $0x8e0] sm:$0xff] }
  0xae   :  { %7597 = vmatprep.subr.bf16.mxu1 %v7596_v7  ;;  %2510 = vmatmul.mubr.f32.vlgmr.msra.gmra.mrb[4].mxu0 %v9189_v42  ;;  %v308_v42 = vld [vmem:[#allocation5 + $0x6b0] sm:$0xff]  ;;  %v393_v53 = vld [vmem:[#allocation5 + $0x958] sm:$0xff] }
  0xaf   :  { %7567 = vmatpush3.bf16.msra.mxu0 %v7566_v16  ;;  %2649 = vmatprep.mubr.f32.mxu0 %v1727_v26  ;;  %v7576_v44 = vpack.c.bf16 %v309_v39, %v308_v42  ;;  %v328_v7 = vld [vmem:[#allocation5 + $0x750] sm:$0xff]  ;;  %v347_v16 = vld [vmem:[#allocation5 + $0x7e8] sm:$0xff]  ;;  %v317_v26 = vld [vmem:[#allocation5 + $0x6f8] sm:$0xff] }
  0xb0   :  { %2580 = vmatmul.mubr.f32.vlgmr.msra.gmra.mrb[4].mxu1 %v9195_v52  ;;  %7569 = vmatprep.subr.bf16.mxu0 %v7568_v18  ;;  %v7606_v52 = vpack.c.bf16 %v323_v38, %v322_v36  ;;  %v7618_v18 = vpack.c.bf16 %v329_v9, %v328_v7  ;;  %v7620_v23 = vpack.c.bf16 %v347_v16, %v346_v14  ;;  %v332_v36 = vld [vmem:[#allocation5 + $0x770] sm:$0xff]  ;;  %v333_v38 = vld [vmem:[#allocation5 + $0x778] sm:$0xff]  ;;  %v366_v42 = vld [vmem:[#allocation5 + $0x880] sm:$0xff] }
  0xb1   :  { %7599 = vmatpush3.bf16.msra.mxu1 %v7598_v17  ;;  %2719 = vmatprep.mubr.f32.mxu1 %v1728_v29  ;;  %v7586_v17 = vpack.c.bf16 %v297_v6, %v296_v5  ;;  %v7590_v29 = vpack.c.bf16 %v299_v21, %v298_v20  ;;  %v367_v39 = vld [vmem:[#allocation5 + $0x888] sm:$0xff]  ;;  %v386_v14 = vld [vmem:[#allocation5 + $0x920] sm:$0xff]  ;;  %v405_v20 = vld [vmem:[#allocation5 + $0x9b8] sm:$0xff]  ;;  %v7638_v21 = vpack.c.bf16 %v355_v12, %v354_v10 }
  0xb2   :  { %7601 = vmatprep.subr.bf16.mxu1 %v7600_v22  ;;  %v330_v22 = vld [vmem:[#allocation5 + $0x760] sm:$0xff]  ;;  %v7628_v46 = vpack.c.bf16 %v367_v39, %v366_v42  ;;  %v403_v5 = vld [vmem:[#allocation5 + $0x9a8] sm:$0xff]  ;;  %v364_v10 = vld [vmem:[#allocation5 + $0x870] sm:$0xff] }
  0xb3   :  { %7571 = vmatpush3.bf16.msra.mxu0 %v7570_v30  ;;  %v74_v30 = vld [vmem:[#allocation2 + $0x20] sm:$0xff]  ;;  %v391_v39 = vld [vmem:[#allocation5 + $0x948] sm:$0xff]  ;;  %v365_v12 = vld [vmem:[#allocation5 + $0x878] sm:$0xff] }
  0xb4   :  { %7573 = vmatprep.subr.bf16.mxu0 %v7572_v32  ;;  %v7592_v32 = vpack.c.bf16 %v317_v26, %v316_v25  ;;  %v9213_v55 = vrot.slane %v74_v30, %v9174_v13  ;;  %v388_v25 = vld [vmem:[#allocation5 + $0x930] sm:$0xff] }
  0xb5   :  { %7603 = vmatpush3.bf16.msra.mxu1 %v7602_v31  ;;  %v7622_v31 = vpack.c.bf16 %v331_v24, %v330_v22  ;;  %v357_v24 = vld [vmem:[#allocation5 + $0x838] sm:$0xff]  ;;  %v448_v40 = vld [vmem:[#allocation5 + $0xb10] sm:$0xff] }
  0xb6   :  { %7605 = vmatprep.subr.bf16.mxu1 %v7604_v37  ;;  %v7624_v37 = vpack.c.bf16 %v349_v28, %v348_v27  ;;  %v389_v27 = vld [vmem:[#allocation5 + $0x938] sm:$0xff]  ;;  %v374_v28 = vld [vmem:[#allocation5 + $0x8c0] sm:$0xff] }
  0xb7   :  { %7575 = vmatpush3.bf16.msra.mxu0 %v7574_v43  ;;  %v1729_v43 = vcombine.high %v74_v30, %v74_v30  ;;  %v406_v30 = vld [vmem:[#allocation5 + $0x9c0] sm:$0xff] }
  0xb8   :  { %7577 = vmatprep.subr.bf16.mxu0 %v7576_v44  ;;  %v7626_v44 = vpack.c.bf16 %v333_v38, %v332_v36  ;;  %v358_v36 = vld [vmem:[#allocation5 + $0x840] sm:$0xff] }
  0xb9   :  { %7607 = vmatpush3.bf16.msra.mxu1 %v7606_v52  ;;  %v7594_v52 = vpack.c.bf16 %v301_v35, %v300_v34  ;;  %v7674_v34 = vpack.c.bf16 %v389_v27, %v388_v25  ;;  %v390_v38 = vld [vmem:[#allocation5 + $0x940] sm:$0xff]  ;;  %v415_v25 = vld [vmem:[#allocation5 + $0xa08] sm:$0xff] }
  0xba   :  { %7609 = vmatprep.subr.bf16.mxu1 %v7608_v49  ;;  %v382_v49 = vld [vmem:[#allocation5 + $0x900] sm:$0xff] }
  0xbb   :  { %7579 = vmatpush3.bf16.msra.mxu0 %v7578_v56  ;;  %v400_v56 = vld [vmem:[#allocation5 + $0x990] sm:$0xff]  ;;  %v7662_v59 = vpack.c.bf16 %v383_v51, %v382_v49  ;;  %v361_v49 = vld [vmem:[#allocation5 + $0x858] sm:$0xff] }
  0xbc   :  { %7581 = vmatprep.subr.bf16.mxu0 %v7580_v58  ;;  %v9216_v58 = vrot.slane %v1729_v43, %v9174_v13  ;;  %v408_v43 = vld [vmem:[#allocation5 + $0x9d0] sm:$0xff] }
  0xbd   :  { %7611 = vmatpush3.bf16.msra.mxu1 %v7610_v57  ;;  %v401_v57 = vld [vmem:[#allocation5 + $0x998] sm:$0xff] }
  0xbe   :  { %7613 = vmatprep.subr.bf16.mxu1 %v7612_v61  ;;  %v352_v61 = vld [vmem:[#allocation5 + $0x810] sm:$0xff]  ;;  %v7664_v0 = vpack.c.bf16 %v401_v57, %v400_v56  ;;  %v1745_v6 = vcombine.high %v9216_v58, %v9216_v58  ;;  %v379_v56 = vld [vmem:[#allocation5 + $0x8e8] sm:$0xff]  ;;  %v410_v57 = vld [vmem:[#allocation5 + $0x9e0] sm:$0xff] }
  0xbf   :  { %7583 = vmatpush3.bf16.msra.mxu0 %v7582_v2  ;;  %v371_v2 = vld [vmem:[#allocation5 + $0x8a8] sm:$0xff]  ;;  %v7634_v7 = vpack.c.bf16 %v353_v62, %v352_v61  ;;  %v7652_v61 = vpack.c.bf16 %v379_v56, %v378_v54  ;;  %v362_v62 = vld [vmem:[#allocation5 + $0x860] sm:$0xff] }
  0xc0   :  { %7585 = vmatprep.subr.bf16.mxu0 %v7584_v4  ;;  %v402_v4 = vld [vmem:[#allocation5 + $0x9a0] sm:$0xff]  ;;  %v7636_v9 = vpack.c.bf16 %v371_v2, %v370_v1  ;;  %v395_v1 = vld [vmem:[#allocation5 + $0x968] sm:$0xff]  ;;  %v380_v2 = vld [vmem:[#allocation5 + $0x8f0] sm:$0xff] }
  0xc1   :  { %7615 = vmatpush3.bf16.msra.mxu1 %v7614_v3  ;;  %v1744_v3 = vcombine.high %v9213_v55, %v9213_v55  ;;  %v7668_v16 = vpack.c.bf16 %v403_v5, %v402_v4  ;;  %v412_v4 = vld [vmem:[#allocation5 + $0x9f0] sm:$0xff]  ;;  %v413_v5 = vld [vmem:[#allocation5 + $0x9f8] sm:$0xff]  ;;  %v418_v54 = vld [vmem:[#allocation5 + $0xa20] sm:$0xff] }
  0xc2   :  { %7617 = vmatprep.subr.bf16.mxu1 %v7616_v8  ;;  %v7666_v8 = vpack.c.bf16 %v385_v45, %v384_v63  ;;  %v363_v63 = vld [vmem:[#allocation5 + $0x868] sm:$0xff] }
  0xc3   :  { %7587 = vmatpush3.bf16.msra.mxu0 %v7586_v17  ;;  %v387_v17 = vld [vmem:[#allocation5 + $0x928] sm:$0xff] }
  0xc4   :  { %7589 = vmatprep.subr.bf16.mxu0 %v7588_v19  ;;  %v404_v19 = vld [vmem:[#allocation5 + $0x9b0] sm:$0xff]  ;;  %v419_v56 = vld [vmem:[#allocation5 + $0xa28] sm:$0xff] }
  0xc5   :  { %7619 = vmatpush3.bf16.msra.mxu1 %v7618_v18  ;;  %v373_v18 = vld [vmem:[#allocation5 + $0x8b8] sm:$0xff]  ;;  %v7672_v26 = vpack.c.bf16 %v405_v20, %v404_v19  ;;  %v462_v19 = vld [vmem:[#allocation5 + $0xb80] sm:$0xff]  ;;  %v463_v20 = vld [vmem:[#allocation5 + $0xb88] sm:$0xff] }
  0xc6   :  { %7621 = vmatprep.subr.bf16.mxu1 %v7620_v23  ;;  %v356_v23 = vld [vmem:[#allocation5 + $0x830] sm:$0xff]  ;;  %v7724_v27 = vpack.c.bf16 %v463_v20, %v462_v19  ;;  %v441_v20 = vld [vmem:[#allocation5 + $0xad8] sm:$0xff] }
  0xc7   :  { %7591 = vmatpush3.bf16.msra.mxu0 %v7590_v29  ;;  %v375_v29 = vld [vmem:[#allocation5 + $0x8c8] sm:$0xff]  ;;  %v440_v19 = vld [vmem:[#allocation5 + $0xad0] sm:$0xff] }
  0xc8   :  { %7593 = vmatprep.subr.bf16.mxu0 %v7592_v32  ;;  %v7642_v32 = vpack.c.bf16 %v357_v24, %v356_v23  ;;  %v7644_v35 = vpack.c.bf16 %v375_v29, %v374_v28  ;;  %v414_v24 = vld [vmem:[#allocation5 + $0xa00] sm:$0xff]  ;;  %v447_v28 = vld [vmem:[#allocation5 + $0xb08] sm:$0xff]  ;;  %v432_v29 = vld [vmem:[#allocation5 + $0xa90] sm:$0xff] }
  0xc9   :  { %7623 = vmatpush3.bf16.msra.mxu1 %v7622_v31  ;;  %v407_v31 = vld [vmem:[#allocation5 + $0x9c8] sm:$0xff] }
  0xca   :  { %7625 = vmatprep.subr.bf16.mxu1 %v7624_v37  ;;  %v359_v37 = vld [vmem:[#allocation5 + $0x848] sm:$0xff]  ;;  %v7676_v42 = vpack.c.bf16 %v407_v31, %v406_v30  ;;  %v433_v30 = vld [vmem:[#allocation5 + $0xa98] sm:$0xff] }
  0xcb   :  { %7595 = vmatpush3.bf16.msra.mxu0 %v7594_v52  ;;  %v409_v52 = vld [vmem:[#allocation5 + $0x9d8] sm:$0xff] }
  0xcc   :  { %7629 = vmatprep.subr.bf16.mxu0 %v7628_v46  ;;  %v7678_v46 = vpack.c.bf16 %v391_v39, %v390_v38  ;;  %v7680_v51 = vpack.c.bf16 %v409_v52, %v408_v43  ;;  %v7696_v38 = vpack.c.bf16 %v433_v30, %v432_v29  ;;  %v417_v39 = vld [vmem:[#allocation5 + $0xa18] sm:$0xff]  ;;  %v434_v52 = vld [vmem:[#allocation5 + $0xaa0] sm:$0xff] }
  0xcd   :  { %7627 = vmatpush3.bf16.msra.mxu1 %v7626_v44  ;;  %v7646_v44 = vpack.c.bf16 %v359_v37, %v358_v36  ;;  %v7694_v36 = vpack.c.bf16 %v415_v25, %v414_v24  ;;  %v449_v43 = vld [vmem:[#allocation5 + $0xb18] sm:$0xff]  ;;  %v7712_v24 = vpack.c.bf16 %v441_v20, %v440_v19  ;;  %v424_v25 = vld [vmem:[#allocation5 + $0xa50] sm:$0xff]  ;;  %v442_v30 = vld [vmem:[#allocation5 + $0xae0] sm:$0xff] }
  0xce   :  { %7661 = vmatprep.subr.bf16.mxu1 %v7660_v50  ;;  %2650 = vmatmul.mubr.f32.vlgmr.msra.gmra.mrb[6].mxu0 %v9201_v11  ;;  %v372_v11 = vld [vmem:[#allocation5 + $0x8b0] sm:$0xff]  ;;  %v457_v29 = vld [vmem:[#allocation5 + $0xb58] sm:$0xff] }
  0xcf   :  { %7631 = vmatpush3.bf16.msra.mxu0 %v7630_v33  ;;  %2789 = vmatprep.mubr.f32.mxu0 %v1744_v3  ;;  %v7640_v22 = vpack.c.bf16 %v373_v18, %v372_v11  ;;  %v392_v50 = vld [vmem:[#allocation5 + $0x950] sm:$0xff]  ;;  %v411_v33 = vld [vmem:[#allocation5 + $0x9e8] sm:$0xff]  ;;  %v381_v3 = vld [vmem:[#allocation5 + $0x8f8] sm:$0xff] }
  0xd0   :  { %2720 = vmatmul.mubr.f32.vlgmr.msra.gmra.mrb[6].mxu1 %v9204_v15  ;;  %7633 = vmatprep.subr.bf16.mxu0 %v7632_v60  ;;  %v7670_v15 = vpack.c.bf16 %v387_v17, %v386_v14  ;;  %v7682_v60 = vpack.c.bf16 %v393_v53, %v392_v50  ;;  %v7684_v45 = vpack.c.bf16 %v411_v33, %v410_v57  ;;  %v396_v14 = vld [vmem:[#allocation5 + $0x970] sm:$0xff]  ;;  %v397_v17 = vld [vmem:[#allocation5 + $0x978] sm:$0xff]  ;;  %v430_v11 = vld [vmem:[#allocation5 + $0xa80] sm:$0xff] }
  0xd1   :  { %7663 = vmatpush3.bf16.msra.mxu1 %v7662_v59  ;;  %2859 = vmatprep.mubr.f32.mxu1 %v1745_v6  ;;  %v7650_v59 = vpack.c.bf16 %v361_v49, %v360_v48  ;;  %v7654_v6 = vpack.c.bf16 %v363_v63, %v362_v62  ;;  %v431_v18 = vld [vmem:[#allocation5 + $0xa88] sm:$0xff]  ;;  %v450_v57 = vld [vmem:[#allocation5 + $0xb20] sm:$0xff]  ;;  %v469_v62 = vld [vmem:[#allocation5 + $0xbb8] sm:$0xff]  ;;  %v7702_v63 = vpack.c.bf16 %v419_v56, %v418_v54 }
  0xd2   :  { %7665 = vmatprep.subr.bf16.mxu1 %v7664_v0  ;;  %v394_v0 = vld [vmem:[#allocation5 + $0x960] sm:$0xff]  ;;  %v7692_v23 = vpack.c.bf16 %v431_v18, %v430_v11  ;;  %v467_v48 = vld [vmem:[#allocation5 + $0xba8] sm:$0xff]  ;;  %v428_v54 = vld [vmem:[#allocation5 + $0xa70] sm:$0xff] }
  0xd3   :  { %7635 = vmatpush3.bf16.msra.mxu0 %v7634_v7  ;;  %v75_v7 = vld [vmem:[#allocation2 + $0x28] sm:$0xff]  ;;  %v429_v56 = vld [vmem:[#allocation5 + $0xa78] sm:$0xff]  ;;  %v512_v19 = vld [vmem:[#allocation5 + $0xd10] sm:$0xff] }
  0xd4   :  { %7637 = vmatprep.subr.bf16.mxu0 %v7636_v9  ;;  %v7656_v9 = vpack.c.bf16 %v381_v3, %v380_v2  ;;  %v9225_v31 = vrot.slane %v75_v7, %v9174_v13  ;;  %v452_v2 = vld [vmem:[#allocation5 + $0xb30] sm:$0xff]  ;;  %v455_v18 = vld [vmem:[#allocation5 + $0xb48] sm:$0xff] }
  0xd5   :  { %7667 = vmatpush3.bf16.msra.mxu1 %v7666_v8  ;;  %v7686_v8 = vpack.c.bf16 %v395_v1, %v394_v0  ;;  %v421_v1 = vld [vmem:[#allocation5 + $0xa38] sm:$0xff] }
  0xd6   :  { %7669 = vmatprep.subr.bf16.mxu1 %v7668_v16  ;;  %v7688_v16 = vpack.c.bf16 %v413_v5, %v412_v4  ;;  %v453_v4 = vld [vmem:[#allocation5 + $0xb38] sm:$0xff]  ;;  %v438_v5 = vld [vmem:[#allocation5 + $0xac0] sm:$0xff] }
  0xd7   :  { %7639 = vmatpush3.bf16.msra.mxu0 %v7638_v21  ;;  %v1746_v21 = vcombine.high %v75_v7, %v75_v7  ;;  %v470_v7 = vld [vmem:[#allocation5 + $0xbc0] sm:$0xff] }
  0xd8   :  { %7641 = vmatprep.subr.bf16.mxu0 %v7640_v22  ;;  %v7690_v22 = vpack.c.bf16 %v397_v17, %v396_v14  ;;  %v422_v14 = vld [vmem:[#allocation5 + $0xa40] sm:$0xff] }
  0xd9   :  { %7671 = vmatpush3.bf16.msra.mxu1 %v7670_v15  ;;  %v7658_v15 = vpack.c.bf16 %v365_v12, %v364_v10  ;;  %v7738_v10 = vpack.c.bf16 %v453_v4, %v452_v2  ;;  %v454_v17 = vld [vmem:[#allocation5 + $0xb40] sm:$0xff]  ;;  %v479_v2 = vld [vmem:[#allocation5 + $0xc08] sm:$0xff] }
  0xda   :  { %7673 = vmatprep.subr.bf16.mxu1 %v7672_v26  ;;  %v446_v26 = vld [vmem:[#allocation5 + $0xb00] sm:$0xff] }
  0xdb   :  { %7643 = vmatpush3.bf16.msra.mxu0 %v7642_v32  ;;  %v464_v32 = vld [vmem:[#allocation5 + $0xb90] sm:$0xff]  ;;  %v7726_v37 = vpack.c.bf16 %v447_v28, %v446_v26  ;;  %v425_v26 = vld [vmem:[#allocation5 + $0xa58] sm:$0xff] }
  0xdc   :  { %7645 = vmatprep.subr.bf16.mxu0 %v7644_v35  ;;  %v9228_v35 = vrot.slane %v1746_v21, %v9174_v13  ;;  %v472_v21 = vld [vmem:[#allocation5 + $0xbd0] sm:$0xff] }
  0xdd   :  { %7675 = vmatpush3.bf16.msra.mxu1 %v7674_v34  ;;  %v465_v34 = vld [vmem:[#allocation5 + $0xb98] sm:$0xff] }
  0xde   :  { %7677 = vmatprep.subr.bf16.mxu1 %v7676_v42  ;;  %v416_v42 = vld [vmem:[#allocation5 + $0xa10] sm:$0xff]  ;;  %v7728_v41 = vpack.c.bf16 %v465_v34, %v464_v32  ;;  %v1762_v49 = vcombine.high %v9228_v35, %v9228_v35  ;;  %v443_v32 = vld [vmem:[#allocation5 + $0xae8] sm:$0xff]  ;;  %v474_v34 = vld [vmem:[#allocation5 + $0xbe0] sm:$0xff] }
  0xdf   :  { %7647 = vmatpush3.bf16.msra.mxu0 %v7646_v44  ;;  %v435_v44 = vld [vmem:[#allocation5 + $0xaa8] sm:$0xff]  ;;  %v7698_v50 = vpack.c.bf16 %v417_v39, %v416_v42  ;;  %v7716_v42 = vpack.c.bf16 %v443_v32, %v442_v30  ;;  %v426_v39 = vld [vmem:[#allocation5 + $0xa60] sm:$0xff] }
  0xe0   :  { %7649 = vmatprep.subr.bf16.mxu0 %v7648_v47  ;;  %v466_v47 = vld [vmem:[#allocation5 + $0xba0] sm:$0xff]  ;;  %v7700_v53 = vpack.c.bf16 %v435_v44, %v434_v52  ;;  %v459_v52 = vld [vmem:[#allocation5 + $0xb68] sm:$0xff]  ;;  %v444_v44 = vld [vmem:[#allocation5 + $0xaf0] sm:$0xff] }
  0xe1   :  { %7679 = vmatpush3.bf16.msra.mxu1 %v7678_v46  ;;  %v1761_v46 = vcombine.high %v9225_v31, %v9225_v31  ;;  %v7732_v33 = vpack.c.bf16 %v467_v48, %v466_v47  ;;  %v476_v47 = vld [vmem:[#allocation5 + $0xbf0] sm:$0xff]  ;;  %v477_v48 = vld [vmem:[#allocation5 + $0xbf8] sm:$0xff]  ;;  %v482_v30 = vld [vmem:[#allocation5 + $0xc20] sm:$0xff] }
  0xe2   :  { %7681 = vmatprep.subr.bf16.mxu1 %v7680_v51  ;;  %v7730_v51 = vpack.c.bf16 %v449_v43, %v448_v40  ;;  %v427_v40 = vld [vmem:[#allocation5 + $0xa68] sm:$0xff] }
  0xe3   :  { %7651 = vmatpush3.bf16.msra.mxu0 %v7650_v59  ;;  %v451_v59 = vld [vmem:[#allocation5 + $0xb28] sm:$0xff] }
  0xe4   :  { %7653 = vmatprep.subr.bf16.mxu0 %v7652_v61  ;;  %v468_v61 = vld [vmem:[#allocation5 + $0xbb0] sm:$0xff]  ;;  %v483_v32 = vld [vmem:[#allocation5 + $0xc28] sm:$0xff] }
  0xe5   :  { %7683 = vmatpush3.bf16.msra.mxu1 %v7682_v60  ;;  %v437_v60 = vld [vmem:[#allocation5 + $0xab8] sm:$0xff]  ;;  %v7736_v3 = vpack.c.bf16 %v469_v62, %v468_v61  ;;  %v526_v61 = vld [vmem:[#allocation5 + $0xd80] sm:$0xff]  ;;  %v527_v62 = vld [vmem:[#allocation5 + $0xd88] sm:$0xff] }
  0xe6   :  { %7685 = vmatprep.subr.bf16.mxu1 %v7684_v45  ;;  %v420_v45 = vld [vmem:[#allocation5 + $0xa30] sm:$0xff]  ;;  %v7788_v4 = vpack.c.bf16 %v527_v62, %v526_v61  ;;  %v505_v62 = vld [vmem:[#allocation5 + $0xcd8] sm:$0xff] }
  0xe7   :  { %7655 = vmatpush3.bf16.msra.mxu0 %v7654_v6  ;;  %v439_v6 = vld [vmem:[#allocation5 + $0xac8] sm:$0xff]  ;;  %v504_v61 = vld [vmem:[#allocation5 + $0xcd0] sm:$0xff] }
  0xe8   :  { %7657 = vmatprep.subr.bf16.mxu0 %v7656_v9  ;;  %v7706_v9 = vpack.c.bf16 %v421_v1, %v420_v45  ;;  %v7708_v12 = vpack.c.bf16 %v439_v6, %v438_v5  ;;  %v478_v1 = vld [vmem:[#allocation5 + $0xc00] sm:$0xff]  ;;  %v511_v5 = vld [vmem:[#allocation5 + $0xd08] sm:$0xff]  ;;  %v496_v6 = vld [vmem:[#allocation5 + $0xc90] sm:$0xff] }
  0xe9   :  { %7687 = vmatpush3.bf16.msra.mxu1 %v7686_v8  ;;  %v471_v8 = vld [vmem:[#allocation5 + $0xbc8] sm:$0xff] }
  0xea   :  { %7689 = vmatprep.subr.bf16.mxu1 %v7688_v16  ;;  %v423_v16 = vld [vmem:[#allocation5 + $0xa48] sm:$0xff]  ;;  %v7740_v11 = vpack.c.bf16 %v471_v8, %v470_v7  ;;  %v497_v7 = vld [vmem:[#allocation5 + $0xc98] sm:$0xff] }
  0xeb   :  { %7659 = vmatpush3.bf16.msra.mxu0 %v7658_v15  ;;  %v473_v15 = vld [vmem:[#allocation5 + $0xbd8] sm:$0xff] }
  0xec   :  { %7693 = vmatprep.subr.bf16.mxu0 %v7692_v23  ;;  %v7742_v23 = vpack.c.bf16 %v455_v18, %v454_v17  ;;  %v7744_v28 = vpack.c.bf16 %v473_v15, %v472_v21  ;;  %v7760_v17 = vpack.c.bf16 %v497_v7, %v496_v6  ;;  %v481_v18 = vld [vmem:[#allocation5 + $0xc18] sm:$0xff]  ;;  %v498_v15 = vld [vmem:[#allocation5 + $0xca0] sm:$0xff] }
  0xed   :  { %7691 = vmatpush3.bf16.msra.mxu1 %v7690_v22  ;;  %v7710_v22 = vpack.c.bf16 %v423_v16, %v422_v14  ;;  %v7758_v14 = vpack.c.bf16 %v479_v2, %v478_v1  ;;  %v513_v21 = vld [vmem:[#allocation5 + $0xd18] sm:$0xff]  ;;  %v7776_v1 = vpack.c.bf16 %v505_v62, %v504_v61  ;;  %v488_v2 = vld [vmem:[#allocation5 + $0xc50] sm:$0xff]  ;;  %v506_v7 = vld [vmem:[#allocation5 + $0xce0] sm:$0xff] }
  0xee   :  { %7725 = vmatprep.subr.bf16.mxu1 %v7724_v27  ;;  %2790 = vmatmul.mubr.f32.vlgmr.msra.gmra.mrb[8].mxu0 %v9213_v55  ;;  %v436_v55 = vld [vmem:[#allocation5 + $0xab0] sm:$0xff]  ;;  %v521_v6 = vld [vmem:[#allocation5 + $0xd58] sm:$0xff] }
  0xef   :  { %7695 = vmatpush3.bf16.msra.mxu0 %v7694_v36  ;;  %2929 = vmatprep.mubr.f32.mxu0 %v1761_v46  ;;  %v7704_v0 = vpack.c.bf16 %v437_v60, %v436_v55  ;;  %v456_v27 = vld [vmem:[#allocation5 + $0xb50] sm:$0xff]  ;;  %v475_v36 = vld [vmem:[#allocation5 + $0xbe8] sm:$0xff]  ;;  %v445_v46 = vld [vmem:[#allocation5 + $0xaf8] sm:$0xff] }
  0xf0   :  { %2860 = vmatmul.mubr.f32.vlgmr.msra.gmra.mrb[8].mxu1 %v9216_v58  ;;  %7697 = vmatprep.subr.bf16.mxu0 %v7696_v38  ;;  %v7734_v58 = vpack.c.bf16 %v451_v59, %v450_v57  ;;  %v7746_v38 = vpack.c.bf16 %v457_v29, %v456_v27  ;;  %v7748_v43 = vpack.c.bf16 %v475_v36, %v474_v34  ;;  %v460_v57 = vld [vmem:[#allocation5 + $0xb70] sm:$0xff]  ;;  %v461_v59 = vld [vmem:[#allocation5 + $0xb78] sm:$0xff]  ;;  %v494_v55 = vld [vmem:[#allocation5 + $0xc80] sm:$0xff] }
  0xf1   :  { %7727 = vmatpush3.bf16.msra.mxu1 %v7726_v37  ;;  %2999 = vmatprep.mubr.f32.mxu1 %v1762_v49  ;;  %v7714_v37 = vpack.c.bf16 %v425_v26, %v424_v25  ;;  %v7718_v49 = vpack.c.bf16 %v427_v40, %v426_v39  ;;  %v495_v60 = vld [vmem:[#allocation5 + $0xc88] sm:$0xff]  ;;  %v514_v34 = vld [vmem:[#allocation5 + $0xd20] sm:$0xff]  ;;  %v533_v39 = vld [vmem:[#allocation5 + $0xdb8] sm:$0xff]  ;;  %v7766_v40 = vpack.c.bf16 %v483_v32, %v482_v30 }
  0xf2   :  { %7729 = vmatprep.subr.bf16.mxu1 %v7728_v41  ;;  %v458_v41 = vld [vmem:[#allocation5 + $0xb60] sm:$0xff]  ;;  %v7756_v45 = vpack.c.bf16 %v495_v60, %v494_v55  ;;  %v531_v25 = vld [vmem:[#allocation5 + $0xda8] sm:$0xff]  ;;  %v492_v30 = vld [vmem:[#allocation5 + $0xc70] sm:$0xff] }
  0xf3   :  { %7699 = vmatpush3.bf16.msra.mxu0 %v7698_v50  ;;  %v76_v50 = vld [vmem:[#allocation2 + $0x30] sm:$0xff]  ;;  %v519_v60 = vld [vmem:[#allocation5 + $0xd48] sm:$0xff]  ;;  %v493_v32 = vld [vmem:[#allocation5 + $0xc78] sm:$0xff] }
  0xf4   :  { %7701 = vmatprep.subr.bf16.mxu0 %v7700_v53  ;;  %v7720_v53 = vpack.c.bf16 %v445_v46, %v444_v44  ;;  %v9237_v8 = vrot.slane %v76_v50, %v9174_v13  ;;  %v516_v44 = vld [vmem:[#allocation5 + $0xd30] sm:$0xff] }
  0xf5   :  { %7731 = vmatpush3.bf16.msra.mxu1 %v7730_v51  ;;  %v7750_v51 = vpack.c.bf16 %v459_v52, %v458_v41  ;;  %v485_v52 = vld [vmem:[#allocation5 + $0xc38] sm:$0xff]  ;;  %v576_v61 = vld [vmem:[#allocation5 + $0xf10] sm:$0xff] }
  0xf6   :  { %7733 = vmatprep.subr.bf16.mxu1 %v7732_v33  ;;  %v7752_v33 = vpack.c.bf16 %v477_v48, %v476_v47  ;;  %v517_v47 = vld [vmem:[#allocation5 + $0xd38] sm:$0xff]  ;;  %v502_v48 = vld [vmem:[#allocation5 + $0xcc0] sm:$0xff] }
  0xf7   :  { %7703 = vmatpush3.bf16.msra.mxu0 %v7702_v63  ;;  %v1763_v63 = vcombine.high %v76_v50, %v76_v50  ;;  %v534_v50 = vld [vmem:[#allocation5 + $0xdc0] sm:$0xff] }
  0xf8   :  { %7705 = vmatprep.subr.bf16.mxu0 %v7704_v0  ;;  %v7754_v0 = vpack.c.bf16 %v461_v59, %v460_v57  ;;  %v486_v57 = vld [vmem:[#allocation5 + $0xc40] sm:$0xff] }
  0xf9   :  { %7735 = vmatpush3.bf16.msra.mxu1 %v7734_v58  ;;  %v7722_v58 = vpack.c.bf16 %v429_v56, %v428_v54  ;;  %v7802_v54 = vpack.c.bf16 %v517_v47, %v516_v44  ;;  %v518_v59 = vld [vmem:[#allocation5 + $0xd40] sm:$0xff]  ;;  %v543_v44 = vld [vmem:[#allocation5 + $0xe08] sm:$0xff] }
  0xfa   :  { %7737 = vmatprep.subr.bf16.mxu1 %v7736_v3  ;;  %v510_v3 = vld [vmem:[#allocation5 + $0xd00] sm:$0xff] }
  0xfb   :  { %7707 = vmatpush3.bf16.msra.mxu0 %v7706_v9  ;;  %v528_v9 = vld [vmem:[#allocation5 + $0xd90] sm:$0xff]  ;;  %v7790_v16 = vpack.c.bf16 %v511_v5, %v510_v3  ;;  %v489_v3 = vld [vmem:[#allocation5 + $0xc58] sm:$0xff] }
  0xfc   :  { %7709 = vmatprep.subr.bf16.mxu0 %v7708_v12  ;;  %v9240_v12 = vrot.slane %v1763_v63, %v9174_v13  ;;  %v536_v63 = vld [vmem:[#allocation5 + $0xdd0] sm:$0xff] }
  0xfd   :  { %7739 = vmatpush3.bf16.msra.mxu1 %v7738_v10  ;;  %v529_v10 = vld [vmem:[#allocation5 + $0xd98] sm:$0xff] }
  0xfe   :  { %7741 = vmatprep.subr.bf16.mxu1 %v7740_v11  ;;  %v480_v11 = vld [vmem:[#allocation5 + $0xc10] sm:$0xff]  ;;  %v7792_v20 = vpack.c.bf16 %v529_v10, %v528_v9  ;;  %v1779_v26 = vcombine.high %v9240_v12, %v9240_v12  ;;  %v507_v9 = vld [vmem:[#allocation5 + $0xce8] sm:$0xff]  ;;  %v538_v10 = vld [vmem:[#allocation5 + $0xde0] sm:$0xff] }
  0xff   :  { %7711 = vmatpush3.bf16.msra.mxu0 %v7710_v22  ;;  %v499_v22 = vld [vmem:[#allocation5 + $0xca8] sm:$0xff]  ;;  %v7762_v27 = vpack.c.bf16 %v481_v18, %v480_v11  ;;  %v7780_v11 = vpack.c.bf16 %v507_v9, %v506_v7  ;;  %v490_v18 = vld [vmem:[#allocation5 + $0xc60] sm:$0xff] }
 0x100   :  { %7713 = vmatprep.subr.bf16.mxu0 %v7712_v24  ;;  %v530_v24 = vld [vmem:[#allocation5 + $0xda0] sm:$0xff]  ;;  %v7764_v29 = vpack.c.bf16 %v499_v22, %v498_v15  ;;  %v523_v15 = vld [vmem:[#allocation5 + $0xd68] sm:$0xff]  ;;  %v508_v22 = vld [vmem:[#allocation5 + $0xcf0] sm:$0xff] }
 0x101   :  { %7743 = vmatpush3.bf16.msra.mxu1 %v7742_v23  ;;  %v1778_v23 = vcombine.high %v9237_v8, %v9237_v8  ;;  %v7796_v36 = vpack.c.bf16 %v531_v25, %v530_v24  ;;  %v540_v24 = vld [vmem:[#allocation5 + $0xdf0] sm:$0xff]  ;;  %v541_v25 = vld [vmem:[#allocation5 + $0xdf8] sm:$0xff]  ;;  %v546_v7 = vld [vmem:[#allocation5 + $0xe20] sm:$0xff] }
 0x102   :  { %7745 = vmatprep.subr.bf16.mxu1 %v7744_v28  ;;  %v7794_v28 = vpack.c.bf16 %v513_v21, %v512_v19  ;;  %v491_v19 = vld [vmem:[#allocation5 + $0xc68] sm:$0xff] }
 0x103   :  { %7715 = vmatpush3.bf16.msra.mxu0 %v7714_v37  ;;  %v515_v37 = vld [vmem:[#allocation5 + $0xd28] sm:$0xff] }
 0x104   :  { %7717 = vmatprep.subr.bf16.mxu0 %v7716_v42  ;;  %v532_v42 = vld [vmem:[#allocation5 + $0xdb0] sm:$0xff]  ;;  %v547_v9 = vld [vmem:[#allocation5 + $0xe28] sm:$0xff] }
 0x105   :  { %7747 = vmatpush3.bf16.msra.mxu1 %v7746_v38  ;;  %v501_v38 = vld [vmem:[#allocation5 + $0xcb8] sm:$0xff]  ;;  %v7800_v46 = vpack.c.bf16 %v533_v39, %v532_v42  ;;  %v590_v42 = vld [vmem:[#allocation5 + $0xf80] sm:$0xff]  ;;  %v591_v39 = vld [vmem:[#allocation5 + $0xf88] sm:$0xff] }
 0x106   :  { %7749 = vmatprep.subr.bf16.mxu1 %v7748_v43  ;;  %v484_v43 = vld [vmem:[#allocation5 + $0xc30] sm:$0xff]  ;;  %v7852_v47 = vpack.c.bf16 %v591_v39, %v590_v42  ;;  %v569_v39 = vld [vmem:[#allocation5 + $0xed8] sm:$0xff] }
 0x107   :  { %7719 = vmatpush3.bf16.msra.mxu0 %v7718_v49  ;;  %v503_v49 = vld [vmem:[#allocation5 + $0xcc8] sm:$0xff]  ;;  %v568_v42 = vld [vmem:[#allocation5 + $0xed0] sm:$0xff] }
 0x108   :  { %7721 = vmatprep.subr.bf16.mxu0 %v7720_v53  ;;  %v7770_v53 = vpack.c.bf16 %v485_v52, %v484_v43  ;;  %v7772_v56 = vpack.c.bf16 %v503_v49, %v502_v48  ;;  %v542_v52 = vld [vmem:[#allocation5 + $0xe00] sm:$0xff]  ;;  %v575_v48 = vld [vmem:[#allocation5 + $0xf08] sm:$0xff]  ;;  %v560_v49 = vld [vmem:[#allocation5 + $0xe90] sm:$0xff] }
 0x109   :  { %7751 = vmatpush3.bf16.msra.mxu1 %v7750_v51  ;;  %v535_v51 = vld [vmem:[#allocation5 + $0xdc8] sm:$0xff] }
 0x10a   :  { %7753 = vmatprep.subr.bf16.mxu1 %v7752_v33  ;;  %v487_v33 = vld [vmem:[#allocation5 + $0xc48] sm:$0xff]  ;;  %v7804_v55 = vpack.c.bf16 %v535_v51, %v534_v50  ;;  %v561_v50 = vld [vmem:[#allocation5 + $0xe98] sm:$0xff] }
 0x10b   :  { %7723 = vmatpush3.bf16.msra.mxu0 %v7722_v58  ;;  %v537_v58 = vld [vmem:[#allocation5 + $0xdd8] sm:$0xff] }
 0x10c   :  { %7757 = vmatprep.subr.bf16.mxu0 %v7756_v45  ;;  %v7806_v45 = vpack.c.bf16 %v519_v60, %v518_v59  ;;  %v7808_v5 = vpack.c.bf16 %v537_v58, %v536_v63  ;;  %v7824_v59 = vpack.c.bf16 %v561_v50, %v560_v49  ;;  %v545_v60 = vld [vmem:[#allocation5 + $0xe18] sm:$0xff]  ;;  %v562_v58 = vld [vmem:[#allocation5 + $0xea0] sm:$0xff] }
 0x10d   :  { %7755 = vmatpush3.bf16.msra.mxu1 %v7754_v0  ;;  %v7774_v0 = vpack.c.bf16 %v487_v33, %v486_v57  ;;  %v7822_v57 = vpack.c.bf16 %v543_v44, %v542_v52  ;;  %v577_v63 = vld [vmem:[#allocation5 + $0xf18] sm:$0xff]  ;;  %v7840_v52 = vpack.c.bf16 %v569_v39, %v568_v42  ;;  %v552_v44 = vld [vmem:[#allocation5 + $0xe50] sm:$0xff]  ;;  %v570_v50 = vld [vmem:[#allocation5 + $0xee0] sm:$0xff] }
 0x10e   :  { %7789 = vmatprep.subr.bf16.mxu1 %v7788_v4  ;;  %2930 = vmatmul.mubr.f32.vlgmr.msra.gmra.mrb[10].mxu0 %v9225_v31  ;;  %v500_v31 = vld [vmem:[#allocation5 + $0xcb0] sm:$0xff]  ;;  %v585_v49 = vld [vmem:[#allocation5 + $0xf58] sm:$0xff] }
 0x10f   :  { %7759 = vmatpush3.bf16.msra.mxu0 %v7758_v14  ;;  %3069 = vmatprep.mubr.f32.mxu0 %v1778_v23  ;;  %v7768_v41 = vpack.c.bf16 %v501_v38, %v500_v31  ;;  %v520_v4 = vld [vmem:[#allocation5 + $0xd50] sm:$0xff]  ;;  %v539_v14 = vld [vmem:[#allocation5 + $0xde8] sm:$0xff]  ;;  %v509_v23 = vld [vmem:[#allocation5 + $0xcf8] sm:$0xff] }
 0x110   :  { %3000 = vmatmul.mubr.f32.vlgmr.msra.gmra.mrb[10].mxu1 %v9228_v35  ;;  %7761 = vmatprep.subr.bf16.mxu0 %v7760_v17  ;;  %v7798_v35 = vpack.c.bf16 %v515_v37, %v514_v34  ;;  %v7810_v17 = vpack.c.bf16 %v521_v6, %v520_v4  ;;  %v7812_v21 = vpack.c.bf16 %v539_v14, %v538_v10  ;;  %v524_v34 = vld [vmem:[#allocation5 + $0xd70] sm:$0xff]  ;;  %v525_v37 = vld [vmem:[#allocation5 + $0xd78] sm:$0xff]  ;;  %v558_v31 = vld [vmem:[#allocation5 + $0xe80] sm:$0xff] }
 0x111   :  { %7791 = vmatpush3.bf16.msra.mxu1 %v7790_v16  ;;  %3139 = vmatprep.mubr.f32.mxu1 %v1779_v26  ;;  %v7778_v16 = vpack.c.bf16 %v489_v3, %v488_v2  ;;  %v7782_v26 = vpack.c.bf16 %v491_v19, %v490_v18  ;;  %v559_v38 = vld [vmem:[#allocation5 + $0xe88] sm:$0xff]  ;;  %v578_v10 = vld [vmem:[#allocation5 + $0xf20] sm:$0xff]  ;;  %v597_v18 = vld [vmem:[#allocation5 + $0xfb8] sm:$0xff]  ;;  %v7830_v19 = vpack.c.bf16 %v547_v9, %v546_v7 }
 0x112   :  { %7793 = vmatprep.subr.bf16.mxu1 %v7792_v20  ;;  %v522_v20 = vld [vmem:[#allocation5 + $0xd60] sm:$0xff]  ;;  %v7820_v43 = vpack.c.bf16 %v559_v38, %v558_v31  ;;  %v595_v2 = vld [vmem:[#allocation5 + $0xfa8] sm:$0xff]  ;;  %v656_v39 = vld [vmem:[#allocation5 + $0x1190] sm:$0xff] }
 0x113   :  { %7763 = vmatpush3.bf16.msra.mxu0 %v7762_v27  ;;  %v77_v27 = vld [vmem:[#allocation2 + $0x38] sm:$0xff]  ;;  %v583_v38 = vld [vmem:[#allocation5 + $0xf48] sm:$0xff] }
 0x114   :  { %7765 = vmatprep.subr.bf16.mxu0 %v7764_v29  ;;  %v7784_v29 = vpack.c.bf16 %v509_v23, %v508_v22  ;;  %v9249_v51 = vrot.slane %v77_v27, %v9174_v13  ;;  %v580_v22 = vld [vmem:[#allocation5 + $0xf30] sm:$0xff] }
 0x115   :  { %7795 = vmatpush3.bf16.msra.mxu1 %v7794_v28  ;;  %v7814_v28 = vpack.c.bf16 %v523_v15, %v522_v20  ;;  %v549_v15 = vld [vmem:[#allocation5 + $0xe38] sm:$0xff] }
 0x116   :  { %7797 = vmatprep.subr.bf16.mxu1 %v7796_v36  ;;  %v7816_v36 = vpack.c.bf16 %v541_v25, %v540_v24  ;;  %v581_v24 = vld [vmem:[#allocation5 + $0xf38] sm:$0xff]  ;;  %v566_v25 = vld [vmem:[#allocation5 + $0xec0] sm:$0xff] }
 0x117   :  { %7767 = vmatpush3.bf16.msra.mxu0 %v7766_v40  ;;  %v1780_v40 = vcombine.high %v77_v27, %v77_v27  ;;  %v598_v27 = vld [vmem:[#allocation5 + $0xfc0] sm:$0xff] }
 0x118   :  { %7769 = vmatprep.subr.bf16.mxu0 %v7768_v41  ;;  %v7818_v41 = vpack.c.bf16 %v525_v37, %v524_v34  ;;  %v550_v34 = vld [vmem:[#allocation5 + $0xe40] sm:$0xff] }
 0x119   :  { %7799 = vmatpush3.bf16.msra.mxu1 %v7798_v35  ;;  %v7786_v35 = vpack.c.bf16 %v493_v32, %v492_v30  ;;  %v7866_v30 = vpack.c.bf16 %v581_v24, %v580_v22  ;;  %v582_v37 = vld [vmem:[#allocation5 + $0xf40] sm:$0xff]  ;;  %v623_v22 = vld [vmem:[#allocation5 + $0x1088] sm:$0xff] }
 0x11a   :  { %7801 = vmatprep.subr.bf16.mxu1 %v7800_v46  ;;  %v574_v46 = vld [vmem:[#allocation5 + $0xf00] sm:$0xff]  ;;  %v655_v24 = vld [vmem:[#allocation5 + $0x1188] sm:$0xff] }
 0x11b   :  { %7771 = vmatpush3.bf16.msra.mxu0 %v7770_v53  ;;  %v592_v53 = vld [vmem:[#allocation5 + $0xf90] sm:$0xff]  ;;  %v7854_v33 = vpack.c.bf16 %v575_v48, %v574_v46  ;;  %v553_v46 = vld [vmem:[#allocation5 + $0xe58] sm:$0xff] }
 0x11c   :  { %7773 = vmatprep.subr.bf16.mxu0 %v7772_v56  ;;  %v9252_v56 = vrot.slane %v1780_v40, %v9174_v13  ;;  %v600_v40 = vld [vmem:[#allocation5 + $0xfd0] sm:$0xff] }
 0x11d   :  { %7803 = vmatpush3.bf16.msra.mxu1 %v7802_v54  ;;  %v593_v54 = vld [vmem:[#allocation5 + $0xf98] sm:$0xff] }
 0x11e   :  { %7805 = vmatprep.subr.bf16.mxu1 %v7804_v55  ;;  %v544_v55 = vld [vmem:[#allocation5 + $0xe10] sm:$0xff]  ;;  %v7856_v62 = vpack.c.bf16 %v593_v54, %v592_v53  ;;  %v1796_v3 = vcombine.high %v9252_v56, %v9252_v56  ;;  %v571_v53 = vld [vmem:[#allocation5 + $0xee8] sm:$0xff]  ;;  %v602_v54 = vld [vmem:[#allocation5 + $0xfe0] sm:$0xff] }
 0x11f   :  { %7775 = vmatpush3.bf16.msra.mxu0 %v7774_v0  ;;  %v563_v0 = vld [vmem:[#allocation5 + $0xea8] sm:$0xff]  ;;  %v7826_v4 = vpack.c.bf16 %v545_v60, %v544_v55  ;;  %v7844_v55 = vpack.c.bf16 %v571_v53, %v570_v50  ;;  %v554_v60 = vld [vmem:[#allocation5 + $0xe60] sm:$0xff] }
 0x120   :  { %7777 = vmatprep.subr.bf16.mxu0 %v7776_v1  ;;  %v594_v1 = vld [vmem:[#allocation5 + $0xfa0] sm:$0xff]  ;;  %v7828_v6 = vpack.c.bf16 %v563_v0, %v562_v58  ;;  %v587_v0 = vld [vmem:[#allocation5 + $0xf68] sm:$0xff] }
 0x121   :  { %7807 = vmatpush3.bf16.msra.mxu1 %v7806_v45  ;;  %v1795_v45 = vcombine.high %v9249_v51, %v9249_v51  ;;  %v7860_v14 = vpack.c.bf16 %v595_v2, %v594_v1  ;;  %v573_v1 = vld [vmem:[#allocation5 + $0xef8] sm:$0xff]  ;;  %v5638_v2 = vld [vmem:[#allocation7] ss:$0 sm:$0xff]  ;;  %v627_v53 = vld [vmem:[#allocation5 + $0x10a8] sm:$0xff] }
 0x122   :  { %7809 = vmatprep.subr.bf16.mxu1 %v7808_v5  ;;  %v7858_v5 = vpack.c.bf16 %v577_v63, %v576_v61  ;;  %v555_v61 = vld [vmem:[#allocation5 + $0xe68] sm:$0xff]  ;;  %v626_v50 = vld [vmem:[#allocation5 + $0x10a0] sm:$0xff] }
 0x123   :  { %7779 = vmatpush3.bf16.msra.mxu0 %v7778_v16  ;;  %v579_v16 = vld [vmem:[#allocation5 + $0xf28] sm:$0xff] }
 0x124   :  { %7781 = vmatprep.subr.bf16.mxu0 %v7780_v11  ;;  %v596_v11 = vld [vmem:[#allocation5 + $0xfb0] sm:$0xff] }
 0x125   :  { %7811 = vmatpush3.bf16.msra.mxu1 %v7810_v17  ;;  %v565_v17 = vld [vmem:[#allocation5 + $0xeb8] sm:$0xff]  ;;  %v7864_v23 = vpack.c.bf16 %v597_v18, %v596_v11  ;;  %v556_v11 = vld [vmem:[#allocation5 + $0xe70] sm:$0xff] }
 0x126   :  { %7813 = vmatprep.subr.bf16.mxu1 %v7812_v21  ;;  %v548_v21 = vld [vmem:[#allocation5 + $0xe30] sm:$0xff]  ;;  %v557_v18 = vld [vmem:[#allocation5 + $0xe78] sm:$0xff] }
 0x127   :  { %7783 = vmatpush3.bf16.msra.mxu0 %v7782_v26  ;;  %v567_v26 = vld [vmem:[#allocation5 + $0xec8] sm:$0xff] }
 0x128   :  { %7785 = vmatprep.subr.bf16.mxu0 %v7784_v29  ;;  %v7834_v29 = vpack.c.bf16 %v549_v15, %v548_v21  ;;  %v7836_v32 = vpack.c.bf16 %v567_v26, %v566_v25  ;;  %v589_v21 = vld [vmem:[#allocation5 + $0xf78] sm:$0xff]  ;;  %v622_v15 = vld [vmem:[#allocation5 + $0x1080] sm:$0xff] }
 0x129   :  { %7815 = vmatpush3.bf16.msra.mxu1 %v7814_v28  ;;  %v599_v28 = vld [vmem:[#allocation5 + $0xfc8] sm:$0xff] }
 0x12a   :  { %7817 = vmatprep.subr.bf16.mxu1 %v7816_v36  ;;  %v551_v36 = vld [vmem:[#allocation5 + $0xe48] sm:$0xff]  ;;  %v7868_v31 = vpack.c.bf16 %v599_v28, %v598_v27  ;;  %v7850_v27 = vpack.c.bf16 %v557_v18, %v556_v11 }
 0x12b   :  { %7787 = vmatpush3.bf16.msra.mxu0 %v7786_v35  ;;  %v601_v35 = vld [vmem:[#allocation5 + $0xfd8] sm:$0xff]  ;;  %v663_v11 = vld [vmem:[#allocation5 + $0x11c8] sm:$0xff] }
 0x12c   :  { %7821 = vmatprep.subr.bf16.mxu0 %v7820_v43  ;;  %v7870_v43 = vpack.c.bf16 %v583_v38, %v582_v37  ;;  %v7872_v48 = vpack.c.bf16 %v601_v35, %v600_v40  ;;  %v639_v37 = vld [vmem:[#allocation5 + $0x1108] sm:$0xff]  ;;  %v625_v38 = vld [vmem:[#allocation5 + $0x1098] sm:$0xff] }
 0x12d   :  { %7819 = vmatpush3.bf16.msra.mxu1 %v7818_v41  ;;  %v7838_v41 = vpack.c.bf16 %v551_v36, %v550_v34  ;;  %v638_v34 = vld [vmem:[#allocation5 + $0x1100] sm:$0xff]  ;;  %v657_v40 = vld [vmem:[#allocation5 + $0x1198] sm:$0xff] }
 0x12e   :  { %7853 = vmatprep.subr.bf16.mxu1 %v7852_v47  ;;  %3070 = vmatmul.mubr.f32.vlgmr.msra.gmra.mrb[12].mxu0 %v9237_v8  ;;  %v564_v8 = vld [vmem:[#allocation5 + $0xeb0] sm:$0xff] }
 0x12f   :  { %7823 = vmatpush3.bf16.msra.mxu0 %v7822_v57  ;;  %3209 = vmatprep.mubr.f32.mxu0 %v1795_v45  ;;  %v7832_v20 = vpack.c.bf16 %v565_v17, %v564_v8  ;;  %v584_v47 = vld [vmem:[#allocation5 + $0xf50] sm:$0xff]  ;;  %v603_v57 = vld [vmem:[#allocation5 + $0xfe8] sm:$0xff] }
 0x130   :  { %3140 = vmatmul.mubr.f32.vlgmr.msra.gmra.mrb[12].mxu1 %v9240_v12  ;;  %7825 = vmatprep.subr.bf16.mxu0 %v7824_v59  ;;  %v7862_v12 = vpack.c.bf16 %v579_v16, %v578_v10  ;;  %v7874_v59 = vpack.c.bf16 %v585_v49, %v584_v47  ;;  %v7876_v58 = vpack.c.bf16 %v603_v57, %v602_v54  ;;  %v572_v45 = vld [vmem:[#allocation5 + $0xef0] sm:$0xff]  ;;  %v641_v49 = vld [vmem:[#allocation5 + $0x1118] sm:$0xff]  ;;  %v658_v57 = vld [vmem:[#allocation5 + $0x11a0] sm:$0xff] }
 0x131   :  { %7855 = vmatpush3.bf16.msra.mxu1 %v7854_v33  ;;  %3279 = vmatprep.mubr.f32.mxu1 %v1796_v3  ;;  %v7842_v33 = vpack.c.bf16 %v553_v46, %v552_v44  ;;  %v7846_v10 = vpack.c.bf16 %v555_v61, %v554_v60  ;;  %v7848_v17 = vpack.c.bf16 %v573_v1, %v572_v45  ;;  %v608_v44 = vld [vmem:[#allocation5 + $0x1010] sm:$0xff]  ;;  %v609_v46 = vld [vmem:[#allocation5 + $0x1018] sm:$0xff]  ;;  %v643_v45 = vld [vmem:[#allocation5 + $0x1128] sm:$0xff] }
 0x132   :  { %7857 = vmatprep.subr.bf16.mxu1 %v7856_v62  ;;  %v586_v62 = vld [vmem:[#allocation5 + $0xf60] sm:$0xff]  ;;  %v640_v47 = vld [vmem:[#allocation5 + $0x1110] sm:$0xff]  ;;  %v7892_v61 = vpack.c.bf16 %v627_v53, %v626_v50  ;;  %v629_v1 = vld [vmem:[#allocation5 + $0x10b8] sm:$0xff] }
 0x133   :  { %7827 = vmatpush3.bf16.msra.mxu0 %v7826_v4  ;;  %v7878_v8 = vpack.c.bf16 %v587_v0, %v586_v62  ;;  %v7922_v60 = vpack.c.bf16 %v641_v49, %v640_v47  ;;  %v610_v62 = vld [vmem:[#allocation5 + $0x1020] sm:$0xff] }
 0x134   :  { %7829 = vmatprep.subr.bf16.mxu0 %v7828_v6  ;;  %v605_v6 = vld [vmem:[#allocation5 + $0xff8] sm:$0xff]  ;;  %v618_v47 = vld [vmem:[#allocation5 + $0x1060] sm:$0xff] }
 0x135   :  { %7859 = vmatpush3.bf16.msra.mxu1 %v7858_v5  ;;  %v604_v5 = vld [vmem:[#allocation5 + $0xff0] sm:$0xff]  ;;  %v650_v49 = vld [vmem:[#allocation5 + $0x1160] sm:$0xff] }
 0x136   :  { %7861 = vmatprep.subr.bf16.mxu1 %v7860_v14  ;;  %v78_v14 = vld [vmem:[#allocation2 + $0x40] sm:$0xff] }
 0x137   :  { %7831 = vmatpush3.bf16.msra.mxu0 %v7830_v19  ;;  %v588_v19 = vld [vmem:[#allocation5 + $0xf70] sm:$0xff]  ;;  %v1797_v25 = vcombine.high %v78_v14, %v78_v14  ;;  %v9263_v42 = vrot.slane %v78_v14, %v9174_v13  ;;  %v645_v14 = vld [vmem:[#allocation5 + $0x1138] sm:$0xff] }
 0x138   :  { %7833 = vmatprep.subr.bf16.mxu0 %v7832_v20  ;;  %v7880_v20 = vpack.c.bf16 %v605_v6, %v604_v5  ;;  %v7882_v28 = vpack.c.bf16 %v589_v21, %v588_v19  ;;  %v612_v6 = vld [vmem:[#allocation5 + $0x1030] sm:$0xff]  ;;  %v615_v21 = vld [vmem:[#allocation5 + $0x1048] sm:$0xff] }
 0x139   :  { %7863 = vmatpush3.bf16.msra.mxu1 %v7862_v12  ;;  %v9266_v35 = vrot.slane %v1797_v25, %v9174_v13  ;;  %v1812_v54 = vcombine.high %v9263_v42, %v9263_v42  ;;  %v633_v25 = vld [vmem:[#allocation5 + $0x10d8] sm:$0xff] }
 0x13a   :  { %7865 = vmatprep.subr.bf16.mxu1 %v7864_v23  ;;  %v654_v23 = vld [vmem:[#allocation5 + $0x1180] sm:$0xff] }
 0x13b   :  { %7835 = vmatpush3.bf16.msra.mxu0 %v7834_v29  ;;  %v7884_v29 = vpack.c.bf16 %v623_v22, %v622_v15  ;;  %v7916_v36 = vpack.c.bf16 %v655_v24, %v654_v23  ;;  %v646_v15 = vld [vmem:[#allocation5 + $0x1140] sm:$0xff]  ;;  %v647_v23 = vld [vmem:[#allocation5 + $0x1148] sm:$0xff]  ;;  %v632_v24 = vld [vmem:[#allocation5 + $0x10d0] sm:$0xff] }
 0x13c   :  { %7837 = vmatprep.subr.bf16.mxu0 %v7836_v32  ;;  %v607_v32 = vld [vmem:[#allocation5 + $0x1008] sm:$0xff] }
 0x13d   :  { %7867 = vmatpush3.bf16.msra.mxu1 %v7866_v30  ;;  %v606_v30 = vld [vmem:[#allocation5 + $0x1000] sm:$0xff] }
 0x13e   :  { %7869 = vmatprep.subr.bf16.mxu1 %v7868_v31  ;;  %v624_v31 = vld [vmem:[#allocation5 + $0x1090] sm:$0xff] }
 0x13f   :  { %7839 = vmatpush3.bf16.msra.mxu0 %v7838_v41  ;;  %v7886_v41 = vpack.c.bf16 %v607_v32, %v606_v30  ;;  %v7934_v30 = vpack.c.bf16 %v647_v23, %v646_v15  ;;  %v7904_v32 = vpack.c.bf16 %v633_v25, %v632_v24  ;;  %v688_v15 = vld [vmem:[#allocation5 + $0x1290] sm:$0xff]  ;;  %v721_v25 = vld [vmem:[#allocation5 + $0x1398] sm:$0xff] }
 0x140   :  { %7841 = vmatprep.subr.bf16.mxu0 %v7840_v52  ;;  %v7888_v52 = vpack.c.bf16 %v625_v38, %v624_v31  ;;  %v649_v38 = vld [vmem:[#allocation5 + $0x1158] sm:$0xff]  ;;  %v720_v24 = vld [vmem:[#allocation5 + $0x1390] sm:$0xff] }
 0x141   :  { %7871 = vmatpush3.bf16.msra.mxu1 %v7870_v43  ;;  %v5672_v63 = vpop.f32.mrb[0].mxu0  ;;  %v7918_v43 = vpack.c.bf16 %v639_v37, %v638_v34  ;;  %v616_v34 = vld [vmem:[#allocation5 + $0x1050] sm:$0xff] }
 0x142   :  { %7873 = vmatprep.subr.bf16.mxu1 %v7872_v48  ;;  %v5673_v3 = vpop.f32.mrb[1].mxu0  ;;  %v7920_v48 = vpack.c.bf16 %v657_v40, %v656_v39  ;;  %v648_v37 = vld [vmem:[#allocation5 + $0x1150] sm:$0xff]  ;;  %v634_v39 = vld [vmem:[#allocation5 + $0x10e0] sm:$0xff]  ;;  %v635_v40 = vld [vmem:[#allocation5 + $0x10e8] sm:$0xff] }
 0x143   :  { %v5707_v4 = vpop.f32.mrb[0].mxu1  ;;  %v5674_v7 = vadd.f32 %v5673_v3, %v5672_v63  ;;  %7843 = vmatpush3.bf16.msra.mxu0 %v7842_v33  ;;  %v659_v33 = vld [vmem:[#allocation5 + $0x11a8] sm:$0xff]  ;;  %v661_v3 = vld [vmem:[#allocation5 + $0x11b8] sm:$0xff] }
 0x144   :  { %v5708_v9 = vpop.f32.mrb[1].mxu1  ;;  %7845 = vmatprep.subr.bf16.mxu0 %v7844_v55  ;;  %v7890_v55 = vpack.c.bf16 %v609_v46, %v608_v44  ;;  %v611_v63 = vld [vmem:[#allocation5 + $0x1028] sm:$0xff]  ;;  %v7924_v0 = vpack.c.bf16 %v659_v33, %v658_v57  ;;  %v7938_v44 = vpack.c.bf16 %v649_v38, %v648_v37  ;;  %v7908_v46 = vpack.c.bf16 %v635_v40, %v634_v39  ;;  %v636_v57 = vld [vmem:[#allocation5 + $0x10f0] sm:$0xff]  ;;  %v637_v33 = vld [vmem:[#allocation5 + $0x10f8] sm:$0xff] }
 0x145   :  { %v5709_v16 = vadd.f32 %v5708_v9, %v5707_v4  ;;  %7875 = vmatpush3.bf16.msra.mxu1 %v7874_v59  ;;  %v2232_v12 = vadd.f32 %v5674_v7, %v5638_v2  ;;  %v1813_v59 = vcombine.high %v9266_v35, %v9266_v35  ;;  %v660_v2 = vld [vmem:[#allocation5 + $0x11b0] sm:$0xff]  ;;  %v7894_v4 = vpack.c.bf16 %v611_v63, %v610_v62  ;;  %v613_v7 = vld [vmem:[#allocation5 + $0x1038] sm:$0xff]  ;;  %v690_v38 = vld [vmem:[#allocation5 + $0x12a0] sm:$0xff] }
 0x146   :  { %7877 = vmatprep.subr.bf16.mxu1 %v7876_v58  ;;  %v642_v58 = vld [vmem:[#allocation5 + $0x1120] sm:$0xff]  ;;  %v644_v9 = vld [vmem:[#allocation5 + $0x1130] sm:$0xff]  ;;  %v7898_v18 = vpack.c.bf16 %v613_v7, %v612_v6  ;;  %v653_v6 = vld [vmem:[#allocation5 + $0x1178] sm:$0xff]  ;;  %v7984_v37 = vpack.c.bf16 %v721_v25, %v720_v24 }
 0x147   :  { %v9260_v26 = vadd.f32 %v5709_v16, %v2232_v12  ;;  %7847 = vmatpush3.bf16.msra.mxu0 %v7846_v10  ;;  %v7928_v10 = vpack.c.bf16 %v661_v3, %v660_v2  ;;  %v630_v16 = vld [vmem:[#allocation5 + $0x10c0] sm:$0xff]  ;;  %v7930_v19 = vpack.c.bf16 %v645_v14, %v644_v9  ;;  %v620_v2 = vld [vmem:[#allocation5 + $0x1070] sm:$0xff]  ;;  %v621_v3 = vld [vmem:[#allocation5 + $0x1078] sm:$0xff] }
 0x148   :  { %7849 = vmatprep.subr.bf16.mxu0 %v7848_v17  ;;  %v662_v17 = vld [vmem:[#allocation5 + $0x11c0] sm:$0xff]  ;;  %v687_v9 = vld [vmem:[#allocation5 + $0x1288] sm:$0xff] }
 0x149   :  { %7879 = vmatpush3.bf16.msra.mxu1 %v7878_v8  ;;  %v631_v8 = vld [vmem:[#allocation5 + $0x10c8] sm:$0xff]  ;;  %v7932_v22 = vpack.c.bf16 %v663_v11, %v662_v17  ;;  %v686_v7 = vld [vmem:[#allocation5 + $0x1280] sm:$0xff]  ;;  %v7914_v17 = vpack.c.bf16 %v621_v3, %v620_v2 }
 0x14a   :  { %7881 = vmatprep.subr.bf16.mxu1 %v7880_v20  ;;  %v7900_v12 = vpack.c.bf16 %v631_v8, %v630_v16  ;;  %v614_v20 = vld [vmem:[#allocation5 + $0x1040] sm:$0xff]  ;;  %v719_v14 = vld [vmem:[#allocation5 + $0x1388] sm:$0xff] }
 0x14b   :  { %7851 = vmatpush3.bf16.msra.mxu0 %v7850_v27  ;;  %v664_v27 = vld [vmem:[#allocation5 + $0x11d0] sm:$0xff]  ;;  %v691_v39 = vld [vmem:[#allocation5 + $0x12a8] sm:$0xff]  ;;  %v698_v24 = vld [vmem:[#allocation5 + $0x12e0] sm:$0xff] }
 0x14c   :  { %7885 = vmatprep.subr.bf16.mxu0 %v7884_v29  ;;  %v7902_v29 = vpack.c.bf16 %v615_v21, %v614_v20  ;;  %v702_v20 = vld [vmem:[#allocation5 + $0x1300] sm:$0xff]  ;;  %v703_v21 = vld [vmem:[#allocation5 + $0x1308] sm:$0xff] }
 0x14d   :  { %7883 = vmatpush3.bf16.msra.mxu1 %v7882_v28  ;;  %v665_v28 = vld [vmem:[#allocation5 + $0x11d8] sm:$0xff]  ;;  %v727_v2 = vld [vmem:[#allocation5 + $0x13c8] sm:$0xff] }
 0x14e   :  { %7917 = vmatprep.subr.bf16.mxu1 %v7916_v36  ;;  %3210 = vmatmul.mubr.f32.vlgmr.msra.gmra.mrb[14].mxu0 %v9249_v51  ;;  %v628_v51 = vld [vmem:[#allocation5 + $0x10b0] sm:$0xff]  ;;  %v617_v36 = vld [vmem:[#allocation5 + $0x1058] sm:$0xff]  ;;  %v7936_v31 = vpack.c.bf16 %v665_v28, %v664_v27  ;;  %v699_v25 = vld [vmem:[#allocation5 + $0x12e8] sm:$0xff] }
 0x14f   :  { %7887 = vmatpush3.bf16.msra.mxu0 %v7886_v41  ;;  %3349 = vmatprep.mubr.f32.mxu0 %v1812_v54  ;;  %v7896_v5 = vpack.c.bf16 %v629_v1, %v628_v51  ;;  %v666_v41 = vld [vmem:[#allocation5 + $0x11e0] sm:$0xff]  ;;  %v651_v54 = vld [vmem:[#allocation5 + $0x1168] sm:$0xff]  ;;  %v7912_v1 = vpack.c.bf16 %v637_v33, %v636_v57  ;;  %v693_v57 = vld [vmem:[#allocation5 + $0x12b8] sm:$0xff] }
 0x150   :  { %3280 = vmatmul.mubr.f32.vlgmr.msra.gmra.mrb[14].mxu1 %v9252_v56  ;;  %7889 = vmatprep.subr.bf16.mxu0 %v7888_v52  ;;  %v7926_v56 = vpack.c.bf16 %v643_v45, %v642_v58  ;;  %v7906_v52 = vpack.c.bf16 %v617_v36, %v616_v34  ;;  %v7942_v51 = vpack.c.bf16 %v651_v54, %v650_v49  ;;  %v673_v34 = vld [vmem:[#allocation5 + $0x1218] sm:$0xff]  ;;  %v704_v36 = vld [vmem:[#allocation5 + $0x1310] sm:$0xff]  ;;  %v675_v49 = vld [vmem:[#allocation5 + $0x1228] sm:$0xff] }
 0x151   :  { %7919 = vmatpush3.bf16.msra.mxu1 %v7918_v43  ;;  %3419 = vmatprep.mubr.f32.mxu1 %v1813_v59  ;;  %v667_v43 = vld [vmem:[#allocation5 + $0x11e8] sm:$0xff]  ;;  %v724_v33 = vld [vmem:[#allocation5 + $0x13b0] sm:$0xff] }
 0x152   :  { %7921 = vmatprep.subr.bf16.mxu1 %v7920_v48  ;;  %v619_v48 = vld [vmem:[#allocation5 + $0x1068] sm:$0xff]  ;;  %v7940_v53 = vpack.c.bf16 %v667_v43, %v666_v41  ;;  %v722_v41 = vld [vmem:[#allocation5 + $0x13a0] sm:$0xff] }
 0x153   :  { %7891 = vmatpush3.bf16.msra.mxu0 %v7890_v55  ;;  %v7910_v58 = vpack.c.bf16 %v619_v48, %v618_v47  ;;  %v723_v43 = vld [vmem:[#allocation5 + $0x13a8] sm:$0xff]  ;;  %v7956_v47 = vpack.c.bf16 %v691_v39, %v690_v38  ;;  %v674_v48 = vld [vmem:[#allocation5 + $0x1220] sm:$0xff] }
 0x154   :  { %7893 = vmatprep.subr.bf16.mxu0 %v7892_v61  ;;  %v669_v61 = vld [vmem:[#allocation5 + $0x11f8] sm:$0xff]  ;;  %v707_v54 = vld [vmem:[#allocation5 + $0x1328] sm:$0xff] }
 0x155   :  { %7923 = vmatpush3.bf16.msra.mxu1 %v7922_v60  ;;  %v668_v60 = vld [vmem:[#allocation5 + $0x11f0] sm:$0xff] }
 0x156   :  { %7925 = vmatprep.subr.bf16.mxu1 %v7924_v0  ;;  %v79_v0 = vld [vmem:[#allocation2 + $0x48] sm:$0xff] }
 0x157   :  { %7895 = vmatpush3.bf16.msra.mxu0 %v7894_v4  ;;  %v652_v4 = vld [vmem:[#allocation5 + $0x1170] sm:$0xff]  ;;  %v1814_v16 = vcombine.high %v79_v0, %v79_v0  ;;  %v9278_v23 = vrot.slane %v79_v0, %v9174_v13  ;;  %v709_v0 = vld [vmem:[#allocation5 + $0x1338] sm:$0xff] }
 0x158   :  { %7897 = vmatprep.subr.bf16.mxu0 %v7896_v5  ;;  %v7944_v5 = vpack.c.bf16 %v669_v61, %v668_v60  ;;  %v7946_v11 = vpack.c.bf16 %v653_v6, %v652_v4  ;;  %v676_v61 = vld [vmem:[#allocation5 + $0x1230] sm:$0xff]  ;;  %v679_v6 = vld [vmem:[#allocation5 + $0x1248] sm:$0xff] }
 0x159   :  { %7927 = vmatpush3.bf16.msra.mxu1 %v7926_v56  ;;  %v9281_v27 = vrot.slane %v1814_v16, %v9174_v13  ;;  %v1829_v40 = vcombine.high %v9278_v23, %v9278_v23  ;;  %v697_v16 = vld [vmem:[#allocation5 + $0x12d8] sm:$0xff] }
 0x15a   :  { %7929 = vmatprep.subr.bf16.mxu1 %v7928_v10  ;;  %v718_v10 = vld [vmem:[#allocation5 + $0x1380] sm:$0xff] }
 0x15b   :  { %7899 = vmatpush3.bf16.msra.mxu0 %v7898_v18  ;;  %v7948_v18 = vpack.c.bf16 %v687_v9, %v686_v7  ;;  %v710_v7 = vld [vmem:[#allocation5 + $0x1340] sm:$0xff] }
 0x15c   :  { %7901 = vmatprep.subr.bf16.mxu0 %v7900_v12  ;;  %v671_v12 = vld [vmem:[#allocation5 + $0x1208] sm:$0xff] }
 0x15d   :  { %7931 = vmatpush3.bf16.msra.mxu1 %v7930_v19  ;;  %v670_v19 = vld [vmem:[#allocation5 + $0x1200] sm:$0xff] }
 0x15e   :  { %7933 = vmatprep.subr.bf16.mxu1 %v7932_v22  ;;  %v689_v22 = vld [vmem:[#allocation5 + $0x1298] sm:$0xff]  ;;  %v7950_v28 = vpack.c.bf16 %v671_v12, %v670_v19 }
 0x15f   :  { %7903 = vmatpush3.bf16.msra.mxu0 %v7902_v29  ;;  %v7982_v29 = vpack.c.bf16 %v703_v21, %v702_v20  ;;  %v680_v20 = vld [vmem:[#allocation5 + $0x1250] sm:$0xff] }
 0x160   :  { %7905 = vmatprep.subr.bf16.mxu0 %v7904_v32  ;;  %v672_v32 = vld [vmem:[#allocation5 + $0x1210] sm:$0xff] }
 0x161   :  { %7935 = vmatpush3.bf16.msra.mxu1 %v7934_v30  ;;  %v5742_v50 = vpop.f32.mrb[2].mxu0  ;;  %v7952_v30 = vpack.c.bf16 %v689_v22, %v688_v15  ;;  %v712_v21 = vld [vmem:[#allocation5 + $0x1350] sm:$0xff]  ;;  %v713_v22 = vld [vmem:[#allocation5 + $0x1358] sm:$0xff] }
 0x162   :  { %7937 = vmatprep.subr.bf16.mxu1 %v7936_v31  ;;  %v5743_v59 = vpop.f32.mrb[3].mxu0  ;;  %v705_v31 = vld [vmem:[#allocation5 + $0x1318] sm:$0xff] }
 0x163   :  { %v5777_v55 = vpop.f32.mrb[2].mxu1  ;;  %v5744_v62 = vadd.f32 %v5743_v59, %v5742_v50  ;;  %7907 = vmatpush3.bf16.msra.mxu0 %v7906_v52  ;;  %v1830_v52 = vcombine.high %v9281_v27, %v9281_v27  ;;  %v706_v50 = vld [vmem:[#allocation5 + $0x1320] sm:$0xff]  ;;  %v725_v59 = vld [vmem:[#allocation5 + $0x13b8] sm:$0xff] }
 0x164   :  { %v5778_v63 = vpop.f32.mrb[3].mxu1  ;;  %7909 = vmatprep.subr.bf16.mxu0 %v7908_v46  ;;  %v7986_v46 = vpack.c.bf16 %v705_v31, %v704_v36  ;;  %v682_v36 = vld [vmem:[#allocation5 + $0x1260] sm:$0xff] }
 0x165   :  { %v5779_v45 = vadd.f32 %v5778_v63, %v5777_v55  ;;  %7939 = vmatpush3.bf16.msra.mxu1 %v7938_v44  ;;  %v2372_v56 = vadd.f32 %v5744_v62, %v9260_v26  ;;  %v7980_v26 = vpack.c.bf16 %v719_v14, %v718_v10  ;;  %v7954_v44 = vpack.c.bf16 %v673_v34, %v672_v32  ;;  %v677_v62 = vld [vmem:[#allocation5 + $0x1238] sm:$0xff]  ;;  %v708_v63 = vld [vmem:[#allocation5 + $0x1330] sm:$0xff]  ;;  %v711_v10 = vld [vmem:[#allocation5 + $0x1348] sm:$0xff] }
 0x166   :  { %7941 = vmatprep.subr.bf16.mxu1 %v7940_v53  ;;  %v7988_v53 = vpack.c.bf16 %v723_v43, %v722_v41  ;;  %v7958_v55 = vpack.c.bf16 %v675_v49, %v674_v48  ;;  %v7962_v3 = vpack.c.bf16 %v677_v62, %v676_v61  ;;  %v7994_v4 = vpack.c.bf16 %v709_v0, %v708_v63  ;;  %v696_v14 = vld [vmem:[#allocation5 + $0x12d0] sm:$0xff]  ;;  %v714_v31 = vld [vmem:[#allocation5 + $0x1360] sm:$0xff]  ;;  %v701_v43 = vld [vmem:[#allocation5 + $0x12f8] sm:$0xff] }
 0x167   :  { %v9275_v8 = vadd.f32 %v5779_v45, %v2372_v56  ;;  %7911 = vmatpush3.bf16.msra.mxu0 %v7910_v58  ;;  %v7992_v58 = vpack.c.bf16 %v725_v59, %v724_v33  ;;  %v694_v45 = vld [vmem:[#allocation5 + $0x12c0] sm:$0xff]  ;;  %v7998_v19 = vpack.c.bf16 %v711_v10, %v710_v7  ;;  %v7968_v12 = vpack.c.bf16 %v697_v16, %v696_v14  ;;  %v700_v41 = vld [vmem:[#allocation5 + $0x12f0] sm:$0xff]  ;;  %v685_v59 = vld [vmem:[#allocation5 + $0x1278] sm:$0xff] }
 0x168   :  { %7913 = vmatprep.subr.bf16.mxu0 %v7912_v1  ;;  %v726_v1 = vld [vmem:[#allocation5 + $0x13c0] sm:$0xff]  ;;  %v8002_v32 = vpack.c.bf16 %v713_v22, %v712_v21  ;;  %v7972_v34 = vpack.c.bf16 %v699_v25, %v698_v24  ;;  %v684_v33 = vld [vmem:[#allocation5 + $0x1270] sm:$0xff]  ;;  %v717_v61 = vld [vmem:[#allocation5 + $0x1378] sm:$0xff] }
 0x169   :  { %7943 = vmatpush3.bf16.msra.mxu1 %v7942_v51  ;;  %v695_v51 = vld [vmem:[#allocation5 + $0x12c8] sm:$0xff]  ;;  %v7996_v9 = vpack.c.bf16 %v727_v2, %v726_v1  ;;  %v750_v62 = vld [vmem:[#allocation5 + $0x1480] sm:$0xff]  ;;  %v7978_v1 = vpack.c.bf16 %v685_v59, %v684_v33  ;;  %v752_v7 = vld [vmem:[#allocation5 + $0x1490] sm:$0xff] }
 0x16a   :  { %7945 = vmatprep.subr.bf16.mxu1 %v7944_v5  ;;  %v7964_v56 = vpack.c.bf16 %v695_v51, %v694_v45  ;;  %v678_v5 = vld [vmem:[#allocation5 + $0x1240] sm:$0xff]  ;;  %v751_v63 = vld [vmem:[#allocation5 + $0x1488] sm:$0xff]  ;;  %v784_v14 = vld [vmem:[#allocation5 + $0x1590] sm:$0xff] }
 0x16b   :  { %7915 = vmatpush3.bf16.msra.mxu0 %v7914_v17  ;;  %v728_v17 = vld [vmem:[#allocation5 + $0x13d0] sm:$0xff]  ;;  %v783_v0 = vld [vmem:[#allocation5 + $0x1588] sm:$0xff]  ;;  %v785_v16 = vld [vmem:[#allocation5 + $0x1598] sm:$0xff] }
 0x16c   :  { %7949 = vmatprep.subr.bf16.mxu0 %v7948_v18  ;;  %v7966_v18 = vpack.c.bf16 %v679_v6, %v678_v5  ;;  %v766_v5 = vld [vmem:[#allocation5 + $0x1500] sm:$0xff]  ;;  %v767_v6 = vld [vmem:[#allocation5 + $0x1508] sm:$0xff]  ;;  %v8048_v21 = vpack.c.bf16 %v785_v16, %v784_v14 }
 0x16d   :  { %7947 = vmatpush3.bf16.msra.mxu1 %v7946_v11  ;;  %v729_v11 = vld [vmem:[#allocation5 + $0x13d8] sm:$0xff]  ;;  %v754_v22 = vld [vmem:[#allocation5 + $0x14a0] sm:$0xff]  ;;  %v755_v24 = vld [vmem:[#allocation5 + $0x14a8] sm:$0xff] }
 0x16e   :  { %7981 = vmatprep.subr.bf16.mxu1 %v7980_v26  ;;  %3350 = vmatmul.mubr.f32.vlgmr.msra.gmra.mrb[16].mxu0 %v9263_v42  ;;  %v692_v42 = vld [vmem:[#allocation5 + $0x12b0] sm:$0xff]  ;;  %v681_v26 = vld [vmem:[#allocation5 + $0x1258] sm:$0xff]  ;;  %v8000_v15 = vpack.c.bf16 %v729_v11, %v728_v17  ;;  %v791_v33 = vld [vmem:[#allocation5 + $0x15c8] sm:$0xff] }
 0x16f   :  { %7951 = vmatpush3.bf16.msra.mxu0 %v7950_v28  ;;  %3489 = vmatprep.mubr.f32.mxu0 %v1829_v40  ;;  %v7960_v60 = vpack.c.bf16 %v693_v57, %v692_v42  ;;  %v730_v28 = vld [vmem:[#allocation5 + $0x13e0] sm:$0xff]  ;;  %v715_v40 = vld [vmem:[#allocation5 + $0x1368] sm:$0xff]  ;;  %v7976_v57 = vpack.c.bf16 %v701_v43, %v700_v41  ;;  %v757_v41 = vld [vmem:[#allocation5 + $0x14b8] sm:$0xff] }
 0x170   :  { %3420 = vmatmul.mubr.f32.vlgmr.msra.gmra.mrb[16].mxu1 %v9266_v35  ;;  %7953 = vmatprep.subr.bf16.mxu0 %v7952_v30  ;;  %v7990_v35 = vpack.c.bf16 %v707_v54, %v706_v50  ;;  %v7970_v30 = vpack.c.bf16 %v681_v26, %v680_v20  ;;  %v8006_v42 = vpack.c.bf16 %v715_v40, %v714_v31  ;;  %v737_v20 = vld [vmem:[#allocation5 + $0x1418] sm:$0xff]  ;;  %v768_v26 = vld [vmem:[#allocation5 + $0x1510] sm:$0xff]  ;;  %v739_v31 = vld [vmem:[#allocation5 + $0x1428] sm:$0xff] }
 0x171   :  { %7983 = vmatpush3.bf16.msra.mxu1 %v7982_v29  ;;  %3559 = vmatprep.mubr.f32.mxu1 %v1830_v52  ;;  %v731_v29 = vld [vmem:[#allocation5 + $0x13e8] sm:$0xff]  ;;  %v788_v43 = vld [vmem:[#allocation5 + $0x15b0] sm:$0xff]  ;;  %v762_v14 = vld [vmem:[#allocation5 + $0x14e0] sm:$0xff] }
 0x172   :  { %7985 = vmatprep.subr.bf16.mxu1 %v7984_v37  ;;  %v683_v37 = vld [vmem:[#allocation5 + $0x1268] sm:$0xff]  ;;  %v8004_v39 = vpack.c.bf16 %v731_v29, %v730_v28  ;;  %v786_v28 = vld [vmem:[#allocation5 + $0x15a0] sm:$0xff] }
 0x173   :  { %7955 = vmatpush3.bf16.msra.mxu0 %v7954_v44  ;;  %v7974_v50 = vpack.c.bf16 %v683_v37, %v682_v36  ;;  %v787_v29 = vld [vmem:[#allocation5 + $0x15a8] sm:$0xff]  ;;  %v8020_v36 = vpack.c.bf16 %v755_v24, %v754_v22  ;;  %v738_v37 = vld [vmem:[#allocation5 + $0x1420] sm:$0xff] }
 0x174   :  { %7957 = vmatprep.subr.bf16.mxu0 %v7956_v47  ;;  %v733_v47 = vld [vmem:[#allocation5 + $0x13f8] sm:$0xff]  ;;  %v771_v40 = vld [vmem:[#allocation5 + $0x1528] sm:$0xff] }
 0x175   :  { %7987 = vmatpush3.bf16.msra.mxu1 %v7986_v46  ;;  %v732_v46 = vld [vmem:[#allocation5 + $0x13f0] sm:$0xff]  ;;  %v763_v16 = vld [vmem:[#allocation5 + $0x14e8] sm:$0xff] }
 0x176   :  { %7989 = vmatprep.subr.bf16.mxu1 %v7988_v53  ;;  %v80_v53 = vld [vmem:[#allocation2 + $0x50] sm:$0xff] }
 0x177   :  { %7959 = vmatpush3.bf16.msra.mxu0 %v7958_v55  ;;  %v716_v55 = vld [vmem:[#allocation5 + $0x1370] sm:$0xff]  ;;  %v1831_v45 = vcombine.high %v80_v53, %v80_v53  ;;  %v9293_v10 = vrot.slane %v80_v53, %v9174_v13  ;;  %v773_v53 = vld [vmem:[#allocation5 + $0x1538] sm:$0xff] }
 0x178   :  { %7961 = vmatprep.subr.bf16.mxu0 %v7960_v60  ;;  %v8008_v60 = vpack.c.bf16 %v733_v47, %v732_v46  ;;  %v8010_v2 = vpack.c.bf16 %v717_v61, %v716_v55  ;;  %v740_v47 = vld [vmem:[#allocation5 + $0x1430] sm:$0xff]  ;;  %v743_v61 = vld [vmem:[#allocation5 + $0x1448] sm:$0xff] }
 0x179   :  { %7991 = vmatpush3.bf16.msra.mxu1 %v7990_v35  ;;  %v9296_v17 = vrot.slane %v1831_v45, %v9174_v13  ;;  %v1846_v25 = vcombine.high %v9293_v10, %v9293_v10  ;;  %v761_v45 = vld [vmem:[#allocation5 + $0x14d8] sm:$0xff] }
 0x17a   :  { %7993 = vmatprep.subr.bf16.mxu1 %v7992_v58  ;;  %v782_v58 = vld [vmem:[#allocation5 + $0x1580] sm:$0xff] }
 0x17b   :  { %7963 = vmatpush3.bf16.msra.mxu0 %v7962_v3  ;;  %v8012_v3 = vpack.c.bf16 %v751_v63, %v750_v62  ;;  %v774_v62 = vld [vmem:[#allocation5 + $0x1540] sm:$0xff] }
 0x17c   :  { %7965 = vmatprep.subr.bf16.mxu0 %v7964_v56  ;;  %v735_v56 = vld [vmem:[#allocation5 + $0x1408] sm:$0xff] }
 0x17d   :  { %7995 = vmatpush3.bf16.msra.mxu1 %v7994_v4  ;;  %v734_v4 = vld [vmem:[#allocation5 + $0x1400] sm:$0xff] }
 0x17e   :  { %7997 = vmatprep.subr.bf16.mxu1 %v7996_v9  ;;  %v753_v9 = vld [vmem:[#allocation5 + $0x1498] sm:$0xff]  ;;  %v8014_v11 = vpack.c.bf16 %v735_v56, %v734_v4 }
 0x17f   :  { %7967 = vmatpush3.bf16.msra.mxu0 %v7966_v18  ;;  %v8046_v18 = vpack.c.bf16 %v767_v6, %v766_v5  ;;  %v744_v5 = vld [vmem:[#allocation5 + $0x1450] sm:$0xff] }
 0x180   :  { %7969 = vmatprep.subr.bf16.mxu0 %v7968_v12  ;;  %v736_v12 = vld [vmem:[#allocation5 + $0x1410] sm:$0xff] }
 0x181   :  { %7999 = vmatpush3.bf16.msra.mxu1 %v7998_v19  ;;  %v5812_v38 = vpop.f32.mrb[4].mxu0  ;;  %v8016_v19 = vpack.c.bf16 %v753_v9, %v752_v7  ;;  %v776_v6 = vld [vmem:[#allocation5 + $0x1550] sm:$0xff]  ;;  %v777_v9 = vld [vmem:[#allocation5 + $0x1558] sm:$0xff] }
 0x182   :  { %8001 = vmatprep.subr.bf16.mxu1 %v8000_v15  ;;  %v5813_v52 = vpop.f32.mrb[5].mxu0  ;;  %v769_v15 = vld [vmem:[#allocation5 + $0x1518] sm:$0xff] }
 0x183   :  { %v5847_v44 = vpop.f32.mrb[4].mxu1  ;;  %v5814_v48 = vadd.f32 %v5813_v52, %v5812_v38  ;;  %7971 = vmatpush3.bf16.msra.mxu0 %v7970_v30  ;;  %v1847_v30 = vcombine.high %v9296_v17, %v9296_v17  ;;  %v770_v38 = vld [vmem:[#allocation5 + $0x1520] sm:$0xff]  ;;  %v789_v52 = vld [vmem:[#allocation5 + $0x15b8] sm:$0xff] }
 0x184   :  { %v5848_v49 = vpop.f32.mrb[5].mxu1  ;;  %7973 = vmatprep.subr.bf16.mxu0 %v7972_v34  ;;  %v8050_v34 = vpack.c.bf16 %v769_v15, %v768_v26  ;;  %v746_v26 = vld [vmem:[#allocation5 + $0x1460] sm:$0xff] }
 0x185   :  { %v5849_v54 = vadd.f32 %v5848_v49, %v5847_v44  ;;  %8003 = vmatpush3.bf16.msra.mxu1 %v8002_v32  ;;  %v2512_v35 = vadd.f32 %v5814_v48, %v9275_v8  ;;  %v8044_v8 = vpack.c.bf16 %v783_v0, %v782_v58  ;;  %v8018_v32 = vpack.c.bf16 %v737_v20, %v736_v12  ;;  %v741_v48 = vld [vmem:[#allocation5 + $0x1438] sm:$0xff]  ;;  %v772_v49 = vld [vmem:[#allocation5 + $0x1530] sm:$0xff]  ;;  %v775_v58 = vld [vmem:[#allocation5 + $0x1548] sm:$0xff] }
 0x186   :  { %8005 = vmatprep.subr.bf16.mxu1 %v8004_v39  ;;  %v8052_v39 = vpack.c.bf16 %v787_v29, %v786_v28  ;;  %v8022_v44 = vpack.c.bf16 %v739_v31, %v738_v37  ;;  %v8026_v59 = vpack.c.bf16 %v741_v48, %v740_v47  ;;  %v8058_v55 = vpack.c.bf16 %v773_v53, %v772_v49  ;;  %v760_v0 = vld [vmem:[#allocation5 + $0x14d0] sm:$0xff]  ;;  %v778_v15 = vld [vmem:[#allocation5 + $0x1560] sm:$0xff]  ;;  %v765_v29 = vld [vmem:[#allocation5 + $0x14f8] sm:$0xff] }
 0x187   :  { %v9290_v51 = vadd.f32 %v5849_v54, %v2512_v35  ;;  %7975 = vmatpush3.bf16.msra.mxu0 %v7974_v50  ;;  %v8056_v50 = vpack.c.bf16 %v789_v52, %v788_v43  ;;  %v758_v54 = vld [vmem:[#allocation5 + $0x14c0] sm:$0xff]  ;;  %v8062_v4 = vpack.c.bf16 %v775_v58, %v774_v62  ;;  %v8032_v56 = vpack.c.bf16 %v761_v45, %v760_v0  ;;  %v764_v28 = vld [vmem:[#allocation5 + $0x14f0] sm:$0xff]  ;;  %v749_v52 = vld [vmem:[#allocation5 + $0x1478] sm:$0xff] }
 0x188   :  { %7977 = vmatprep.subr.bf16.mxu0 %v7976_v57  ;;  %v790_v57 = vld [vmem:[#allocation5 + $0x15c0] sm:$0xff]  ;;  %v8066_v12 = vpack.c.bf16 %v777_v9, %v776_v6  ;;  %v8036_v20 = vpack.c.bf16 %v763_v16, %v762_v14  ;;  %v748_v43 = vld [vmem:[#allocation5 + $0x1470] sm:$0xff]  ;;  %v781_v47 = vld [vmem:[#allocation5 + $0x1578] sm:$0xff] }
 0x189   :  { %8007 = vmatpush3.bf16.msra.mxu1 %v8006_v42  ;;  %v759_v42 = vld [vmem:[#allocation5 + $0x14c8] sm:$0xff]  ;;  %v8060_v63 = vpack.c.bf16 %v791_v33, %v790_v57  ;;  %v814_v48 = vld [vmem:[#allocation5 + $0x1680] sm:$0xff]  ;;  %v8042_v57 = vpack.c.bf16 %v749_v52, %v748_v43  ;;  %v816_v62 = vld [vmem:[#allocation5 + $0x1690] sm:$0xff] }
 0x18a   :  { %8009 = vmatprep.subr.bf16.mxu1 %v8008_v60  ;;  %v8028_v35 = vpack.c.bf16 %v759_v42, %v758_v54  ;;  %v742_v60 = vld [vmem:[#allocation5 + $0x1440] sm:$0xff]  ;;  %v815_v49 = vld [vmem:[#allocation5 + $0x1688] sm:$0xff]  ;;  %v848_v0 = vld [vmem:[#allocation5 + $0x1790] sm:$0xff] }
 0x18b   :  { %7979 = vmatpush3.bf16.msra.mxu0 %v7978_v1  ;;  %v792_v1 = vld [vmem:[#allocation5 + $0x15d0] sm:$0xff]  ;;  %v847_v53 = vld [vmem:[#allocation5 + $0x1788] sm:$0xff]  ;;  %v849_v45 = vld [vmem:[#allocation5 + $0x1798] sm:$0xff] }
 0x18c   :  { %8013 = vmatprep.subr.bf16.mxu0 %v8012_v3  ;;  %v8030_v3 = vpack.c.bf16 %v743_v61, %v742_v60  ;;  %v830_v60 = vld [vmem:[#allocation5 + $0x1700] sm:$0xff]  ;;  %v831_v61 = vld [vmem:[#allocation5 + $0x1708] sm:$0xff]  ;;  %v8112_v6 = vpack.c.bf16 %v849_v45, %v848_v0 }
 0x18d   :  { %8011 = vmatpush3.bf16.msra.mxu1 %v8010_v2  ;;  %v793_v2 = vld [vmem:[#allocation5 + $0x15d8] sm:$0xff]  ;;  %v818_v9 = vld [vmem:[#allocation5 + $0x16a0] sm:$0xff]  ;;  %v819_v14 = vld [vmem:[#allocation5 + $0x16a8] sm:$0xff] }
 0x18e   :  { %8045 = vmatprep.subr.bf16.mxu1 %v8044_v8  ;;  %3490 = vmatmul.mubr.f32.vlgmr.msra.gmra.mrb[18].mxu0 %v9278_v23  ;;  %v756_v23 = vld [vmem:[#allocation5 + $0x14b0] sm:$0xff]  ;;  %v745_v8 = vld [vmem:[#allocation5 + $0x1458] sm:$0xff]  ;;  %v8064_v7 = vpack.c.bf16 %v793_v2, %v792_v1  ;;  %v855_v43 = vld [vmem:[#allocation5 + $0x17c8] sm:$0xff] }
 0x18f   :  { %8015 = vmatpush3.bf16.msra.mxu0 %v8014_v11  ;;  %3629 = vmatprep.mubr.f32.mxu0 %v1846_v25  ;;  %v8024_v46 = vpack.c.bf16 %v757_v41, %v756_v23  ;;  %v794_v11 = vld [vmem:[#allocation5 + $0x15e0] sm:$0xff]  ;;  %v779_v25 = vld [vmem:[#allocation5 + $0x1568] sm:$0xff]  ;;  %v8040_v41 = vpack.c.bf16 %v765_v29, %v764_v28  ;;  %v821_v28 = vld [vmem:[#allocation5 + $0x16b8] sm:$0xff] }
 0x190   :  { %3560 = vmatmul.mubr.f32.vlgmr.msra.gmra.mrb[18].mxu1 %v9281_v27  ;;  %8017 = vmatprep.subr.bf16.mxu0 %v8016_v19  ;;  %v8054_v27 = vpack.c.bf16 %v771_v40, %v770_v38  ;;  %v8034_v19 = vpack.c.bf16 %v745_v8, %v744_v5  ;;  %v8070_v23 = vpack.c.bf16 %v779_v25, %v778_v15  ;;  %v801_v5 = vld [vmem:[#allocation5 + $0x1618] sm:$0xff]  ;;  %v832_v8 = vld [vmem:[#allocation5 + $0x1710] sm:$0xff]  ;;  %v803_v15 = vld [vmem:[#allocation5 + $0x1628] sm:$0xff] }
 0x191   :  { %8047 = vmatpush3.bf16.msra.mxu1 %v8046_v18  ;;  %3699 = vmatprep.mubr.f32.mxu1 %v1847_v30  ;;  %v795_v18 = vld [vmem:[#allocation5 + $0x15e8] sm:$0xff]  ;;  %v852_v29 = vld [vmem:[#allocation5 + $0x17b0] sm:$0xff]  ;;  %v826_v0 = vld [vmem:[#allocation5 + $0x16e0] sm:$0xff] }
 0x192   :  { %8049 = vmatprep.subr.bf16.mxu1 %v8048_v21  ;;  %v747_v21 = vld [vmem:[#allocation5 + $0x1468] sm:$0xff]  ;;  %v8068_v24 = vpack.c.bf16 %v795_v18, %v794_v11  ;;  %v850_v11 = vld [vmem:[#allocation5 + $0x17a0] sm:$0xff] }
 0x193   :  { %8019 = vmatpush3.bf16.msra.mxu0 %v8018_v32  ;;  %v8038_v38 = vpack.c.bf16 %v747_v21, %v746_v26  ;;  %v851_v18 = vld [vmem:[#allocation5 + $0x17a8] sm:$0xff]  ;;  %v8084_v26 = vpack.c.bf16 %v819_v14, %v818_v9  ;;  %v802_v21 = vld [vmem:[#allocation5 + $0x1620] sm:$0xff] }
 0x194   :  { %8021 = vmatprep.subr.bf16.mxu0 %v8020_v36  ;;  %v797_v36 = vld [vmem:[#allocation5 + $0x15f8] sm:$0xff]  ;;  %v835_v25 = vld [vmem:[#allocation5 + $0x1728] sm:$0xff] }
 0x195   :  { %8051 = vmatpush3.bf16.msra.mxu1 %v8050_v34  ;;  %v796_v34 = vld [vmem:[#allocation5 + $0x15f0] sm:$0xff]  ;;  %v827_v45 = vld [vmem:[#allocation5 + $0x16e8] sm:$0xff] }
 0x196   :  { %8053 = vmatprep.subr.bf16.mxu1 %v8052_v39  ;;  %v81_v39 = vld [vmem:[#allocation2 + $0x58] sm:$0xff] }
 0x197   :  { %8023 = vmatpush3.bf16.msra.mxu0 %v8022_v44  ;;  %v780_v44 = vld [vmem:[#allocation5 + $0x1570] sm:$0xff]  ;;  %v1848_v54 = vcombine.high %v81_v39, %v81_v39  ;;  %v9308_v58 = vrot.slane %v81_v39, %v9174_v13  ;;  %v837_v39 = vld [vmem:[#allocation5 + $0x1738] sm:$0xff] }
 0x198   :  { %8025 = vmatprep.subr.bf16.mxu0 %v8024_v46  ;;  %v8072_v46 = vpack.c.bf16 %v797_v36, %v796_v34  ;;  %v8074_v33 = vpack.c.bf16 %v781_v47, %v780_v44  ;;  %v804_v36 = vld [vmem:[#allocation5 + $0x1630] sm:$0xff]  ;;  %v807_v47 = vld [vmem:[#allocation5 + $0x1648] sm:$0xff] }
 0x199   :  { %8055 = vmatpush3.bf16.msra.mxu1 %v8054_v27  ;;  %v9311_v1 = vrot.slane %v1848_v54, %v9174_v13  ;;  %v1863_v16 = vcombine.high %v9308_v58, %v9308_v58  ;;  %v825_v54 = vld [vmem:[#allocation5 + $0x16d8] sm:$0xff] }
 0x19a   :  { %8057 = vmatprep.subr.bf16.mxu1 %v8056_v50  ;;  %v846_v50 = vld [vmem:[#allocation5 + $0x1780] sm:$0xff] }
 0x19b   :  { %8027 = vmatpush3.bf16.msra.mxu0 %v8026_v59  ;;  %v8076_v59 = vpack.c.bf16 %v815_v49, %v814_v48  ;;  %v838_v48 = vld [vmem:[#allocation5 + $0x1740] sm:$0xff] }
 0x19c   :  { %8029 = vmatprep.subr.bf16.mxu0 %v8028_v35  ;;  %v799_v35 = vld [vmem:[#allocation5 + $0x1608] sm:$0xff] }
 0x19d   :  { %8059 = vmatpush3.bf16.msra.mxu1 %v8058_v55  ;;  %v798_v55 = vld [vmem:[#allocation5 + $0x1600] sm:$0xff] }
 0x19e   :  { %8061 = vmatprep.subr.bf16.mxu1 %v8060_v63  ;;  %v817_v63 = vld [vmem:[#allocation5 + $0x1698] sm:$0xff]  ;;  %v8078_v2 = vpack.c.bf16 %v799_v35, %v798_v55 }
 0x19f   :  { %8031 = vmatpush3.bf16.msra.mxu0 %v8030_v3  ;;  %v8110_v3 = vpack.c.bf16 %v831_v61, %v830_v60  ;;  %v808_v60 = vld [vmem:[#allocation5 + $0x1650] sm:$0xff] }
 0x1a0   :  { %8033 = vmatprep.subr.bf16.mxu0 %v8032_v56  ;;  %v800_v56 = vld [vmem:[#allocation5 + $0x1610] sm:$0xff] }
 0x1a1   :  { %8063 = vmatpush3.bf16.msra.mxu1 %v8062_v4  ;;  %v5882_v22 = vpop.f32.mrb[6].mxu0  ;;  %v8080_v4 = vpack.c.bf16 %v817_v63, %v816_v62  ;;  %v840_v61 = vld [vmem:[#allocation5 + $0x1750] sm:$0xff]  ;;  %v841_v63 = vld [vmem:[#allocation5 + $0x1758] sm:$0xff] }
 0x1a2   :  { %8065 = vmatprep.subr.bf16.mxu1 %v8064_v7  ;;  %v5883_v30 = vpop.f32.mrb[7].mxu0  ;;  %v833_v7 = vld [vmem:[#allocation5 + $0x1718] sm:$0xff] }
 0x1a3   :  { %v5917_v32 = vpop.f32.mrb[6].mxu1  ;;  %v5884_v37 = vadd.f32 %v5883_v30, %v5882_v22  ;;  %8035 = vmatpush3.bf16.msra.mxu0 %v8034_v19  ;;  %v1864_v19 = vcombine.high %v9311_v1, %v9311_v1  ;;  %v834_v22 = vld [vmem:[#allocation5 + $0x1720] sm:$0xff]  ;;  %v853_v30 = vld [vmem:[#allocation5 + $0x17b8] sm:$0xff] }
 0x1a4   :  { %v5918_v31 = vpop.f32.mrb[7].mxu1  ;;  %8037 = vmatprep.subr.bf16.mxu0 %v8036_v20  ;;  %v8114_v20 = vpack.c.bf16 %v833_v7, %v832_v8  ;;  %v810_v8 = vld [vmem:[#allocation5 + $0x1660] sm:$0xff] }
 0x1a5   :  { %v5919_v40 = vadd.f32 %v5918_v31, %v5917_v32  ;;  %8067 = vmatpush3.bf16.msra.mxu1 %v8066_v12  ;;  %v2652_v27 = vadd.f32 %v5884_v37, %v9290_v51  ;;  %v8108_v51 = vpack.c.bf16 %v847_v53, %v846_v50  ;;  %v8082_v12 = vpack.c.bf16 %v801_v5, %v800_v56  ;;  %v805_v37 = vld [vmem:[#allocation5 + $0x1638] sm:$0xff]  ;;  %v836_v31 = vld [vmem:[#allocation5 + $0x1730] sm:$0xff]  ;;  %v839_v50 = vld [vmem:[#allocation5 + $0x1748] sm:$0xff] }
 0x1a6   :  { %8069 = vmatprep.subr.bf16.mxu1 %v8068_v24  ;;  %v8116_v24 = vpack.c.bf16 %v851_v18, %v850_v11  ;;  %v8086_v32 = vpack.c.bf16 %v803_v15, %v802_v21  ;;  %v8090_v52 = vpack.c.bf16 %v805_v37, %v804_v36  ;;  %v8122_v44 = vpack.c.bf16 %v837_v39, %v836_v31  ;;  %v824_v53 = vld [vmem:[#allocation5 + $0x16d0] sm:$0xff]  ;;  %v842_v7 = vld [vmem:[#allocation5 + $0x1760] sm:$0xff]  ;;  %v829_v18 = vld [vmem:[#allocation5 + $0x16f8] sm:$0xff] }
 0x1a7   :  { %v9305_v42 = vadd.f32 %v5919_v40, %v2652_v27  ;;  %8039 = vmatpush3.bf16.msra.mxu0 %v8038_v38  ;;  %v8120_v38 = vpack.c.bf16 %v853_v30, %v852_v29  ;;  %v822_v40 = vld [vmem:[#allocation5 + $0x16c0] sm:$0xff]  ;;  %v8126_v55 = vpack.c.bf16 %v839_v50, %v838_v48  ;;  %v8096_v35 = vpack.c.bf16 %v825_v54, %v824_v53  ;;  %v828_v11 = vld [vmem:[#allocation5 + $0x16f0] sm:$0xff]  ;;  %v813_v30 = vld [vmem:[#allocation5 + $0x1678] sm:$0xff] }
 0x1a8   :  { %8041 = vmatprep.subr.bf16.mxu0 %v8040_v41  ;;  %v854_v41 = vld [vmem:[#allocation5 + $0x17c0] sm:$0xff]  ;;  %v8130_v56 = vpack.c.bf16 %v841_v63, %v840_v61  ;;  %v8100_v5 = vpack.c.bf16 %v827_v45, %v826_v0  ;;  %v812_v29 = vld [vmem:[#allocation5 + $0x1670] sm:$0xff]  ;;  %v845_v36 = vld [vmem:[#allocation5 + $0x1778] sm:$0xff] }
 0x1a9   :  { %8071 = vmatpush3.bf16.msra.mxu1 %v8070_v23  ;;  %v823_v23 = vld [vmem:[#allocation5 + $0x16c8] sm:$0xff]  ;;  %v8124_v49 = vpack.c.bf16 %v855_v43, %v854_v41  ;;  %v878_v37 = vld [vmem:[#allocation5 + $0x1880] sm:$0xff]  ;;  %v8106_v41 = vpack.c.bf16 %v813_v30, %v812_v29  ;;  %v880_v48 = vld [vmem:[#allocation5 + $0x1890] sm:$0xff] }
 0x1aa   :  { %8073 = vmatprep.subr.bf16.mxu1 %v8072_v46  ;;  %v8092_v27 = vpack.c.bf16 %v823_v23, %v822_v40  ;;  %v806_v46 = vld [vmem:[#allocation5 + $0x1640] sm:$0xff]  ;;  %v879_v31 = vld [vmem:[#allocation5 + $0x1888] sm:$0xff]  ;;  %v912_v53 = vld [vmem:[#allocation5 + $0x1990] sm:$0xff] }
 0x1ab   :  { %8043 = vmatpush3.bf16.msra.mxu0 %v8042_v57  ;;  %v856_v57 = vld [vmem:[#allocation5 + $0x17d0] sm:$0xff]  ;;  %v911_v39 = vld [vmem:[#allocation5 + $0x1988] sm:$0xff]  ;;  %v913_v54 = vld [vmem:[#allocation5 + $0x1998] sm:$0xff] }
 0x1ac   :  { %8077 = vmatprep.subr.bf16.mxu0 %v8076_v59  ;;  %v8094_v59 = vpack.c.bf16 %v807_v47, %v806_v46  ;;  %v894_v46 = vld [vmem:[#allocation5 + $0x1900] sm:$0xff]  ;;  %v895_v47 = vld [vmem:[#allocation5 + $0x1908] sm:$0xff]  ;;  %v8176_v61 = vpack.c.bf16 %v913_v54, %v912_v53 }
 0x1ad   :  { %8075 = vmatpush3.bf16.msra.mxu1 %v8074_v33  ;;  %v857_v33 = vld [vmem:[#allocation5 + $0x17d8] sm:$0xff]  ;;  %v882_v63 = vld [vmem:[#allocation5 + $0x18a0] sm:$0xff]  ;;  %v883_v0 = vld [vmem:[#allocation5 + $0x18a8] sm:$0xff] }
 0x1ae   :  { %8109 = vmatprep.subr.bf16.mxu1 %v8108_v51  ;;  %3630 = vmatmul.mubr.f32.vlgmr.msra.gmra.mrb[20].mxu0 %v9293_v10  ;;  %v820_v10 = vld [vmem:[#allocation5 + $0x16b0] sm:$0xff]  ;;  %v809_v51 = vld [vmem:[#allocation5 + $0x1658] sm:$0xff]  ;;  %v8128_v62 = vpack.c.bf16 %v857_v33, %v856_v57  ;;  %v919_v29 = vld [vmem:[#allocation5 + $0x19c8] sm:$0xff] }
 0x1af   :  { %8079 = vmatpush3.bf16.msra.mxu0 %v8078_v2  ;;  %3769 = vmatprep.mubr.f32.mxu0 %v1863_v16  ;;  %v8088_v34 = vpack.c.bf16 %v821_v28, %v820_v10  ;;  %v858_v2 = vld [vmem:[#allocation5 + $0x17e0] sm:$0xff]  ;;  %v843_v16 = vld [vmem:[#allocation5 + $0x1768] sm:$0xff]  ;;  %v8104_v28 = vpack.c.bf16 %v829_v18, %v828_v11  ;;  %v885_v11 = vld [vmem:[#allocation5 + $0x18b8] sm:$0xff] }
 0x1b0   :  { %3700 = vmatmul.mubr.f32.vlgmr.msra.gmra.mrb[20].mxu1 %v9296_v17  ;;  %8081 = vmatprep.subr.bf16.mxu0 %v8080_v4  ;;  %v8118_v17 = vpack.c.bf16 %v835_v25, %v834_v22  ;;  %v8098_v4 = vpack.c.bf16 %v809_v51, %v808_v60  ;;  %v8134_v10 = vpack.c.bf16 %v843_v16, %v842_v7  ;;  %v865_v60 = vld [vmem:[#allocation5 + $0x1818] sm:$0xff]  ;;  %v896_v51 = vld [vmem:[#allocation5 + $0x1910] sm:$0xff]  ;;  %v867_v7 = vld [vmem:[#allocation5 + $0x1828] sm:$0xff] }
 0x1b1   :  { %8111 = vmatpush3.bf16.msra.mxu1 %v8110_v3  ;;  %3839 = vmatprep.mubr.f32.mxu1 %v1864_v19  ;;  %v859_v3 = vld [vmem:[#allocation5 + $0x17e8] sm:$0xff]  ;;  %v916_v18 = vld [vmem:[#allocation5 + $0x19b0] sm:$0xff]  ;;  %v890_v53 = vld [vmem:[#allocation5 + $0x18e0] sm:$0xff] }
 0x1b2   :  { %8113 = vmatprep.subr.bf16.mxu1 %v8112_v6  ;;  %v811_v6 = vld [vmem:[#allocation5 + $0x1668] sm:$0xff]  ;;  %v8132_v14 = vpack.c.bf16 %v859_v3, %v858_v2  ;;  %v914_v2 = vld [vmem:[#allocation5 + $0x19a0] sm:$0xff] }
 0x1b3   :  { %8083 = vmatpush3.bf16.msra.mxu0 %v8082_v12  ;;  %v8102_v22 = vpack.c.bf16 %v811_v6, %v810_v8  ;;  %v915_v3 = vld [vmem:[#allocation5 + $0x19a8] sm:$0xff]  ;;  %v8148_v8 = vpack.c.bf16 %v883_v0, %v882_v63  ;;  %v866_v6 = vld [vmem:[#allocation5 + $0x1820] sm:$0xff] }
 0x1b4   :  { %8085 = vmatprep.subr.bf16.mxu0 %v8084_v26  ;;  %v861_v26 = vld [vmem:[#allocation5 + $0x17f8] sm:$0xff]  ;;  %v899_v16 = vld [vmem:[#allocation5 + $0x1928] sm:$0xff] }
 0x1b5   :  { %8115 = vmatpush3.bf16.msra.mxu1 %v8114_v20  ;;  %v860_v20 = vld [vmem:[#allocation5 + $0x17f0] sm:$0xff]  ;;  %v891_v54 = vld [vmem:[#allocation5 + $0x18e8] sm:$0xff] }
 0x1b6   :  { %8117 = vmatprep.subr.bf16.mxu1 %v8116_v24  ;;  %v82_v24 = vld [vmem:[#allocation2 + $0x60] sm:$0xff] }
 0x1b7   :  { %8087 = vmatpush3.bf16.msra.mxu0 %v8086_v32  ;;  %v844_v32 = vld [vmem:[#allocation5 + $0x1770] sm:$0xff]  ;;  %v1865_v40 = vcombine.high %v82_v24, %v82_v24  ;;  %v9323_v50 = vrot.slane %v82_v24, %v9174_v13  ;;  %v901_v24 = vld [vmem:[#allocation5 + $0x1938] sm:$0xff] }
 0x1b8   :  { %8089 = vmatprep.subr.bf16.mxu0 %v8088_v34  ;;  %v8136_v34 = vpack.c.bf16 %v861_v26, %v860_v20  ;;  %v8138_v43 = vpack.c.bf16 %v845_v36, %v844_v32  ;;  %v868_v26 = vld [vmem:[#allocation5 + $0x1830] sm:$0xff]  ;;  %v871_v36 = vld [vmem:[#allocation5 + $0x1848] sm:$0xff] }
 0x1b9   :  { %8119 = vmatpush3.bf16.msra.mxu1 %v8118_v17  ;;  %v9326_v57 = vrot.slane %v1865_v40, %v9174_v13  ;;  %v1880_v45 = vcombine.high %v9323_v50, %v9323_v50  ;;  %v889_v40 = vld [vmem:[#allocation5 + $0x18d8] sm:$0xff] }
 0x1ba   :  { %8121 = vmatprep.subr.bf16.mxu1 %v8120_v38  ;;  %v910_v38 = vld [vmem:[#allocation5 + $0x1980] sm:$0xff] }
 0x1bb   :  { %8091 = vmatpush3.bf16.msra.mxu0 %v8090_v52  ;;  %v8140_v52 = vpack.c.bf16 %v879_v31, %v878_v37  ;;  %v902_v37 = vld [vmem:[#allocation5 + $0x1940] sm:$0xff] }
 0x1bc   :  { %8093 = vmatprep.subr.bf16.mxu0 %v8092_v27  ;;  %v863_v27 = vld [vmem:[#allocation5 + $0x1808] sm:$0xff] }
 0x1bd   :  { %8123 = vmatpush3.bf16.msra.mxu1 %v8122_v44  ;;  %v862_v44 = vld [vmem:[#allocation5 + $0x1800] sm:$0xff] }
 0x1be   :  { %8125 = vmatprep.subr.bf16.mxu1 %v8124_v49  ;;  %v881_v49 = vld [vmem:[#allocation5 + $0x1898] sm:$0xff]  ;;  %v8142_v33 = vpack.c.bf16 %v863_v27, %v862_v44 }
 0x1bf   :  { %8095 = vmatpush3.bf16.msra.mxu0 %v8094_v59  ;;  %v8174_v59 = vpack.c.bf16 %v895_v47, %v894_v46  ;;  %v872_v46 = vld [vmem:[#allocation5 + $0x1850] sm:$0xff] }
 0x1c0   :  { %8097 = vmatprep.subr.bf16.mxu0 %v8096_v35  ;;  %v864_v35 = vld [vmem:[#allocation5 + $0x1810] sm:$0xff] }
 0x1c1   :  { %8127 = vmatpush3.bf16.msra.mxu1 %v8126_v55  ;;  %v5952_v9 = vpop.f32.mrb[8].mxu0  ;;  %v8144_v55 = vpack.c.bf16 %v881_v49, %v880_v48  ;;  %v904_v47 = vld [vmem:[#allocation5 + $0x1950] sm:$0xff]  ;;  %v905_v49 = vld [vmem:[#allocation5 + $0x1958] sm:$0xff] }
 0x1c2   :  { %8129 = vmatprep.subr.bf16.mxu1 %v8128_v62  ;;  %v5953_v19 = vpop.f32.mrb[9].mxu0  ;;  %v897_v62 = vld [vmem:[#allocation5 + $0x1918] sm:$0xff] }
 0x1c3   :  { %v5987_v12 = vpop.f32.mrb[8].mxu1  ;;  %v5954_v21 = vadd.f32 %v5953_v19, %v5952_v9  ;;  %8099 = vmatpush3.bf16.msra.mxu0 %v8098_v4  ;;  %v1881_v4 = vcombine.high %v9326_v57, %v9326_v57  ;;  %v898_v9 = vld [vmem:[#allocation5 + $0x1920] sm:$0xff]  ;;  %v917_v19 = vld [vmem:[#allocation5 + $0x19b8] sm:$0xff] }
 0x1c4   :  { %v5988_v15 = vpop.f32.mrb[9].mxu1  ;;  %8101 = vmatprep.subr.bf16.mxu0 %v8100_v5  ;;  %v8178_v5 = vpack.c.bf16 %v897_v62, %v896_v51  ;;  %v874_v51 = vld [vmem:[#allocation5 + $0x1860] sm:$0xff] }
 0x1c5   :  { %v5989_v25 = vadd.f32 %v5988_v15, %v5987_v12  ;;  %8131 = vmatpush3.bf16.msra.mxu1 %v8130_v56  ;;  %v2792_v17 = vadd.f32 %v5954_v21, %v9305_v42  ;;  %v8172_v42 = vpack.c.bf16 %v911_v39, %v910_v38  ;;  %v8146_v56 = vpack.c.bf16 %v865_v60, %v864_v35  ;;  %v869_v21 = vld [vmem:[#allocation5 + $0x1838] sm:$0xff]  ;;  %v900_v15 = vld [vmem:[#allocation5 + $0x1930] sm:$0xff]  ;;  %v903_v38 = vld [vmem:[#allocation5 + $0x1948] sm:$0xff] }
 0x1c6   :  { %8133 = vmatprep.subr.bf16.mxu1 %v8132_v14  ;;  %v8180_v14 = vpack.c.bf16 %v915_v3, %v914_v2  ;;  %v8150_v12 = vpack.c.bf16 %v867_v7, %v866_v6  ;;  %v8154_v30 = vpack.c.bf16 %v869_v21, %v868_v26  ;;  %v8186_v32 = vpack.c.bf16 %v901_v24, %v900_v15  ;;  %v888_v39 = vld [vmem:[#allocation5 + $0x18d0] sm:$0xff]  ;;  %v906_v62 = vld [vmem:[#allocation5 + $0x1960] sm:$0xff]  ;;  %v893_v3 = vld [vmem:[#allocation5 + $0x18f8] sm:$0xff] }
 0x1c7   :  { %v9320_v23 = vadd.f32 %v5989_v25, %v2792_v17  ;;  %8103 = vmatpush3.bf16.msra.mxu0 %v8102_v22  ;;  %v8184_v22 = vpack.c.bf16 %v917_v19, %v916_v18  ;;  %v886_v25 = vld [vmem:[#allocation5 + $0x18c0] sm:$0xff]  ;;  %v8190_v44 = vpack.c.bf16 %v903_v38, %v902_v37  ;;  %v8160_v27 = vpack.c.bf16 %v889_v40, %v888_v39  ;;  %v892_v2 = vld [vmem:[#allocation5 + $0x18f0] sm:$0xff]  ;;  %v877_v19 = vld [vmem:[#allocation5 + $0x1878] sm:$0xff] }
 0x1c8   :  { %8105 = vmatprep.subr.bf16.mxu0 %v8104_v28  ;;  %v918_v28 = vld [vmem:[#allocation5 + $0x19c0] sm:$0xff]  ;;  %v8194_v35 = vpack.c.bf16 %v905_v49, %v904_v47  ;;  %v8164_v60 = vpack.c.bf16 %v891_v54, %v890_v53  ;;  %v876_v18 = vld [vmem:[#allocation5 + $0x1870] sm:$0xff]  ;;  %v909_v26 = vld [vmem:[#allocation5 + $0x1978] sm:$0xff] }
 0x1c9   :  { %8135 = vmatpush3.bf16.msra.mxu1 %v8134_v10  ;;  %v887_v10 = vld [vmem:[#allocation5 + $0x18c8] sm:$0xff]  ;;  %v8188_v31 = vpack.c.bf16 %v919_v29, %v918_v28  ;;  %v942_v21 = vld [vmem:[#allocation5 + $0x1a80] sm:$0xff]  ;;  %v8170_v28 = vpack.c.bf16 %v877_v19, %v876_v18  ;;  %v944_v37 = vld [vmem:[#allocation5 + $0x1a90] sm:$0xff] }
 0x1ca   :  { %8137 = vmatprep.subr.bf16.mxu1 %v8136_v34  ;;  %v8156_v17 = vpack.c.bf16 %v887_v10, %v886_v25  ;;  %v870_v34 = vld [vmem:[#allocation5 + $0x1840] sm:$0xff]  ;;  %v943_v15 = vld [vmem:[#allocation5 + $0x1a88] sm:$0xff]  ;;  %v976_v39 = vld [vmem:[#allocation5 + $0x1b90] sm:$0xff] }
 0x1cb   :  { %8107 = vmatpush3.bf16.msra.mxu0 %v8106_v41  ;;  %v920_v41 = vld [vmem:[#allocation5 + $0x19d0] sm:$0xff]  ;;  %v975_v24 = vld [vmem:[#allocation5 + $0x1b88] sm:$0xff]  ;;  %v977_v40 = vld [vmem:[#allocation5 + $0x1b98] sm:$0xff] }
 0x1cc   :  { %8141 = vmatprep.subr.bf16.mxu0 %v8140_v52  ;;  %v8158_v52 = vpack.c.bf16 %v871_v36, %v870_v34  ;;  %v958_v34 = vld [vmem:[#allocation5 + $0x1b00] sm:$0xff]  ;;  %v959_v36 = vld [vmem:[#allocation5 + $0x1b08] sm:$0xff]  ;;  %v8240_v47 = vpack.c.bf16 %v977_v40, %v976_v39 }
 0x1cd   :  { %8139 = vmatpush3.bf16.msra.mxu1 %v8138_v43  ;;  %v921_v43 = vld [vmem:[#allocation5 + $0x19d8] sm:$0xff]  ;;  %v946_v49 = vld [vmem:[#allocation5 + $0x1aa0] sm:$0xff]  ;;  %v947_v53 = vld [vmem:[#allocation5 + $0x1aa8] sm:$0xff] }
 0x1ce   :  { %8173 = vmatprep.subr.bf16.mxu1 %v8172_v42  ;;  %3770 = vmatmul.mubr.f32.vlgmr.msra.gmra.mrb[22].mxu0 %v9308_v58  ;;  %v884_v58 = vld [vmem:[#allocation5 + $0x18b0] sm:$0xff]  ;;  %v873_v42 = vld [vmem:[#allocation5 + $0x1858] sm:$0xff]  ;;  %v8192_v48 = vpack.c.bf16 %v921_v43, %v920_v41  ;;  %v983_v18 = vld [vmem:[#allocation5 + $0x1bc8] sm:$0xff] }
 0x1cf   :  { %8143 = vmatpush3.bf16.msra.mxu0 %v8142_v33  ;;  %3909 = vmatprep.mubr.f32.mxu0 %v1880_v45  ;;  %v8152_v20 = vpack.c.bf16 %v885_v11, %v884_v58  ;;  %v922_v33 = vld [vmem:[#allocation5 + $0x19e0] sm:$0xff]  ;;  %v907_v45 = vld [vmem:[#allocation5 + $0x1968] sm:$0xff]  ;;  %v8168_v11 = vpack.c.bf16 %v893_v3, %v892_v2  ;;  %v949_v2 = vld [vmem:[#allocation5 + $0x1ab8] sm:$0xff] }
 0x1d0   :  { %3840 = vmatmul.mubr.f32.vlgmr.msra.gmra.mrb[22].mxu1 %v9311_v1  ;;  %8145 = vmatprep.subr.bf16.mxu0 %v8144_v55  ;;  %v8182_v1 = vpack.c.bf16 %v899_v16, %v898_v9  ;;  %v8162_v55 = vpack.c.bf16 %v873_v42, %v872_v46  ;;  %v8198_v58 = vpack.c.bf16 %v907_v45, %v906_v62  ;;  %v929_v46 = vld [vmem:[#allocation5 + $0x1a18] sm:$0xff]  ;;  %v960_v42 = vld [vmem:[#allocation5 + $0x1b10] sm:$0xff]  ;;  %v931_v62 = vld [vmem:[#allocation5 + $0x1a28] sm:$0xff] }
 0x1d1   :  { %8175 = vmatpush3.bf16.msra.mxu1 %v8174_v59  ;;  %3979 = vmatprep.mubr.f32.mxu1 %v1881_v4  ;;  %v923_v59 = vld [vmem:[#allocation5 + $0x19e8] sm:$0xff]  ;;  %v980_v3 = vld [vmem:[#allocation5 + $0x1bb0] sm:$0xff]  ;;  %v954_v39 = vld [vmem:[#allocation5 + $0x1ae0] sm:$0xff] }
 0x1d2   :  { %8177 = vmatprep.subr.bf16.mxu1 %v8176_v61  ;;  %v875_v61 = vld [vmem:[#allocation5 + $0x1868] sm:$0xff]  ;;  %v8196_v0 = vpack.c.bf16 %v923_v59, %v922_v33  ;;  %v978_v33 = vld [vmem:[#allocation5 + $0x1ba0] sm:$0xff] }
 0x1d3   :  { %8147 = vmatpush3.bf16.msra.mxu0 %v8146_v56  ;;  %v8166_v9 = vpack.c.bf16 %v875_v61, %v874_v51  ;;  %v979_v59 = vld [vmem:[#allocation5 + $0x1ba8] sm:$0xff]  ;;  %v8212_v51 = vpack.c.bf16 %v947_v53, %v946_v49  ;;  %v930_v61 = vld [vmem:[#allocation5 + $0x1a20] sm:$0xff] }
 0x1d4   :  { %8149 = vmatprep.subr.bf16.mxu0 %v8148_v8  ;;  %v925_v8 = vld [vmem:[#allocation5 + $0x19f8] sm:$0xff]  ;;  %v963_v45 = vld [vmem:[#allocation5 + $0x1b28] sm:$0xff] }
 0x1d5   :  { %8179 = vmatpush3.bf16.msra.mxu1 %v8178_v5  ;;  %v924_v5 = vld [vmem:[#allocation5 + $0x19f0] sm:$0xff]  ;;  %v955_v40 = vld [vmem:[#allocation5 + $0x1ae8] sm:$0xff] }
 0x1d6   :  { %8181 = vmatprep.subr.bf16.mxu1 %v8180_v14  ;;  %v83_v14 = vld [vmem:[#allocation2 + $0x68] sm:$0xff] }
 0x1d7   :  { %8151 = vmatpush3.bf16.msra.mxu0 %v8150_v12  ;;  %v908_v12 = vld [vmem:[#allocation5 + $0x1970] sm:$0xff]  ;;  %v1882_v25 = vcombine.high %v83_v14, %v83_v14  ;;  %v9338_v38 = vrot.slane %v83_v14, %v9174_v13  ;;  %v965_v14 = vld [vmem:[#allocation5 + $0x1b38] sm:$0xff] }
 0x1d8   :  { %8153 = vmatprep.subr.bf16.mxu0 %v8152_v20  ;;  %v8200_v20 = vpack.c.bf16 %v925_v8, %v924_v5  ;;  %v8202_v29 = vpack.c.bf16 %v909_v26, %v908_v12  ;;  %v932_v8 = vld [vmem:[#allocation5 + $0x1a30] sm:$0xff]  ;;  %v935_v26 = vld [vmem:[#allocation5 + $0x1a48] sm:$0xff] }
 0x1d9   :  { %8183 = vmatpush3.bf16.msra.mxu1 %v8182_v1  ;;  %v9341_v41 = vrot.slane %v1882_v25, %v9174_v13  ;;  %v1897_v54 = vcombine.high %v9338_v38, %v9338_v38  ;;  %v953_v25 = vld [vmem:[#allocation5 + $0x1ad8] sm:$0xff] }
 0x1da   :  { %8185 = vmatprep.subr.bf16.mxu1 %v8184_v22  ;;  %v974_v22 = vld [vmem:[#allocation5 + $0x1b80] sm:$0xff] }
 0x1db   :  { %8155 = vmatpush3.bf16.msra.mxu0 %v8154_v30  ;;  %v8204_v30 = vpack.c.bf16 %v943_v15, %v942_v21  ;;  %v966_v21 = vld [vmem:[#allocation5 + $0x1b40] sm:$0xff] }
 0x1dc   :  { %8157 = vmatprep.subr.bf16.mxu0 %v8156_v17  ;;  %v927_v17 = vld [vmem:[#allocation5 + $0x1a08] sm:$0xff] }
 0x1dd   :  { %8187 = vmatpush3.bf16.msra.mxu1 %v8186_v32  ;;  %v926_v32 = vld [vmem:[#allocation5 + $0x1a00] sm:$0xff] }
 0x1de   :  { %8189 = vmatprep.subr.bf16.mxu1 %v8188_v31  ;;  %v945_v31 = vld [vmem:[#allocation5 + $0x1a98] sm:$0xff]  ;;  %v8206_v43 = vpack.c.bf16 %v927_v17, %v926_v32 }
 0x1df   :  { %8159 = vmatpush3.bf16.msra.mxu0 %v8158_v52  ;;  %v8238_v52 = vpack.c.bf16 %v959_v36, %v958_v34  ;;  %v936_v34 = vld [vmem:[#allocation5 + $0x1a50] sm:$0xff] }
 0x1e0   :  { %8161 = vmatprep.subr.bf16.mxu0 %v8160_v27  ;;  %v928_v27 = vld [vmem:[#allocation5 + $0x1a10] sm:$0xff] }
 0x1e1   :  { %8191 = vmatpush3.bf16.msra.mxu1 %v8190_v44  ;;  %v6022_v63 = vpop.f32.mrb[10].mxu0  ;;  %v8208_v44 = vpack.c.bf16 %v945_v31, %v944_v37  ;;  %v968_v36 = vld [vmem:[#allocation5 + $0x1b50] sm:$0xff]  ;;  %v969_v31 = vld [vmem:[#allocation5 + $0x1b58] sm:$0xff] }
 0x1e2   :  { %8193 = vmatprep.subr.bf16.mxu1 %v8192_v48  ;;  %v6023_v4 = vpop.f32.mrb[11].mxu0  ;;  %v961_v48 = vld [vmem:[#allocation5 + $0x1b18] sm:$0xff] }
 0x1e3   :  { %v6057_v56 = vpop.f32.mrb[10].mxu1  ;;  %v6024_v6 = vadd.f32 %v6023_v4, %v6022_v63  ;;  %8163 = vmatpush3.bf16.msra.mxu0 %v8162_v55  ;;  %v1898_v55 = vcombine.high %v9341_v41, %v9341_v41  ;;  %v962_v63 = vld [vmem:[#allocation5 + $0x1b20] sm:$0xff]  ;;  %v981_v4 = vld [vmem:[#allocation5 + $0x1bb8] sm:$0xff] }
 0x1e4   :  { %v6058_v7 = vpop.f32.mrb[11].mxu1  ;;  %8165 = vmatprep.subr.bf16.mxu0 %v8164_v60  ;;  %v8242_v60 = vpack.c.bf16 %v961_v48, %v960_v42  ;;  %v938_v42 = vld [vmem:[#allocation5 + $0x1a60] sm:$0xff] }
 0x1e5   :  { %v6059_v16 = vadd.f32 %v6058_v7, %v6057_v56  ;;  %8195 = vmatpush3.bf16.msra.mxu1 %v8194_v35  ;;  %v2932_v1 = vadd.f32 %v6024_v6, %v9320_v23  ;;  %v8236_v23 = vpack.c.bf16 %v975_v24, %v974_v22  ;;  %v8210_v35 = vpack.c.bf16 %v929_v46, %v928_v27  ;;  %v933_v6 = vld [vmem:[#allocation5 + $0x1a38] sm:$0xff]  ;;  %v964_v7 = vld [vmem:[#allocation5 + $0x1b30] sm:$0xff]  ;;  %v967_v22 = vld [vmem:[#allocation5 + $0x1b48] sm:$0xff] }
 0x1e6   :  { %8197 = vmatprep.subr.bf16.mxu1 %v8196_v0  ;;  %v8244_v0 = vpack.c.bf16 %v979_v59, %v978_v33  ;;  %v8214_v56 = vpack.c.bf16 %v931_v62, %v930_v61  ;;  %v8218_v19 = vpack.c.bf16 %v933_v6, %v932_v8  ;;  %v8250_v12 = vpack.c.bf16 %v965_v14, %v964_v7  ;;  %v952_v24 = vld [vmem:[#allocation5 + $0x1ad0] sm:$0xff]  ;;  %v970_v48 = vld [vmem:[#allocation5 + $0x1b60] sm:$0xff]  ;;  %v957_v59 = vld [vmem:[#allocation5 + $0x1af8] sm:$0xff] }
 0x1e7   :  { %v9335_v10 = vadd.f32 %v6059_v16, %v2932_v1  ;;  %8167 = vmatpush3.bf16.msra.mxu0 %v8166_v9  ;;  %v8248_v9 = vpack.c.bf16 %v981_v4, %v980_v3  ;;  %v950_v16 = vld [vmem:[#allocation5 + $0x1ac0] sm:$0xff]  ;;  %v8254_v32 = vpack.c.bf16 %v967_v22, %v966_v21  ;;  %v8224_v17 = vpack.c.bf16 %v953_v25, %v952_v24  ;;  %v956_v33 = vld [vmem:[#allocation5 + $0x1af0] sm:$0xff]  ;;  %v941_v4 = vld [vmem:[#allocation5 + $0x1a78] sm:$0xff] }
 0x1e8   :  { %8169 = vmatprep.subr.bf16.mxu0 %v8168_v11  ;;  %v982_v11 = vld [vmem:[#allocation5 + $0x1bc0] sm:$0xff]  ;;  %v8258_v27 = vpack.c.bf16 %v969_v31, %v968_v36  ;;  %v8228_v46 = vpack.c.bf16 %v955_v40, %v954_v39  ;;  %v940_v3 = vld [vmem:[#allocation5 + $0x1a70] sm:$0xff]  ;;  %v973_v8 = vld [vmem:[#allocation5 + $0x1b78] sm:$0xff] }
 0x1e9   :  { %8199 = vmatpush3.bf16.msra.mxu1 %v8198_v58  ;;  %v951_v58 = vld [vmem:[#allocation5 + $0x1ac8] sm:$0xff]  ;;  %v8252_v15 = vpack.c.bf16 %v983_v18, %v982_v11  ;;  %v1006_v6 = vld [vmem:[#allocation5 + $0x1c80] sm:$0xff]  ;;  %v8234_v11 = vpack.c.bf16 %v941_v4, %v940_v3  ;;  %v1008_v21 = vld [vmem:[#allocation5 + $0x1c90] sm:$0xff] }
 0x1ea   :  { %8201 = vmatprep.subr.bf16.mxu1 %v8200_v20  ;;  %v8220_v1 = vpack.c.bf16 %v951_v58, %v950_v16  ;;  %v934_v20 = vld [vmem:[#allocation5 + $0x1a40] sm:$0xff]  ;;  %v1007_v7 = vld [vmem:[#allocation5 + $0x1c88] sm:$0xff]  ;;  %v1040_v24 = vld [vmem:[#allocation5 + $0x1d90] sm:$0xff] }
 0x1eb   :  { %8171 = vmatpush3.bf16.msra.mxu0 %v8170_v28  ;;  %v984_v28 = vld [vmem:[#allocation5 + $0x1bd0] sm:$0xff]  ;;  %v1039_v14 = vld [vmem:[#allocation5 + $0x1d88] sm:$0xff]  ;;  %v1041_v25 = vld [vmem:[#allocation5 + $0x1d98] sm:$0xff] }
 0x1ec   :  { %8205 = vmatprep.subr.bf16.mxu0 %v8204_v30  ;;  %v8222_v30 = vpack.c.bf16 %v935_v26, %v934_v20  ;;  %v1022_v20 = vld [vmem:[#allocation5 + $0x1d00] sm:$0xff]  ;;  %v1023_v26 = vld [vmem:[#allocation5 + $0x1d08] sm:$0xff]  ;;  %v8304_v36 = vpack.c.bf16 %v1041_v25, %v1040_v24 }
 0x1ed   :  { %8203 = vmatpush3.bf16.msra.mxu1 %v8202_v29  ;;  %v985_v29 = vld [vmem:[#allocation5 + $0x1bd8] sm:$0xff]  ;;  %v1010_v31 = vld [vmem:[#allocation5 + $0x1ca0] sm:$0xff]  ;;  %v1011_v39 = vld [vmem:[#allocation5 + $0x1ca8] sm:$0xff] }
 0x1ee   :  { %8237 = vmatprep.subr.bf16.mxu1 %v8236_v23  ;;  %3910 = vmatmul.mubr.f32.vlgmr.msra.gmra.mrb[24].mxu0 %v9323_v50  ;;  %v948_v50 = vld [vmem:[#allocation5 + $0x1ab0] sm:$0xff]  ;;  %v937_v23 = vld [vmem:[#allocation5 + $0x1a58] sm:$0xff]  ;;  %v8256_v37 = vpack.c.bf16 %v985_v29, %v984_v28  ;;  %v1047_v3 = vld [vmem:[#allocation5 + $0x1dc8] sm:$0xff] }
 0x1ef   :  { %8207 = vmatpush3.bf16.msra.mxu0 %v8206_v43  ;;  %4049 = vmatprep.mubr.f32.mxu0 %v1897_v54  ;;  %v8216_v5 = vpack.c.bf16 %v949_v2, %v948_v50  ;;  %v986_v43 = vld [vmem:[#allocation5 + $0x1be0] sm:$0xff]  ;;  %v971_v54 = vld [vmem:[#allocation5 + $0x1b68] sm:$0xff]  ;;  %v8232_v2 = vpack.c.bf16 %v957_v59, %v956_v33  ;;  %v1013_v33 = vld [vmem:[#allocation5 + $0x1cb8] sm:$0xff] }
 0x1f0   :  { %3980 = vmatmul.mubr.f32.vlgmr.msra.gmra.mrb[24].mxu1 %v9326_v57  ;;  %8209 = vmatprep.subr.bf16.mxu0 %v8208_v44  ;;  %v8246_v57 = vpack.c.bf16 %v963_v45, %v962_v63  ;;  %v8226_v44 = vpack.c.bf16 %v937_v23, %v936_v34  ;;  %v8262_v50 = vpack.c.bf16 %v971_v54, %v970_v48  ;;  %v993_v34 = vld [vmem:[#allocation5 + $0x1c18] sm:$0xff]  ;;  %v1024_v23 = vld [vmem:[#allocation5 + $0x1d10] sm:$0xff]  ;;  %v995_v48 = vld [vmem:[#allocation5 + $0x1c28] sm:$0xff] }
 0x1f1   :  { %8239 = vmatpush3.bf16.msra.mxu1 %v8238_v52  ;;  %4119 = vmatprep.mubr.f32.mxu1 %v1898_v55  ;;  %v987_v52 = vld [vmem:[#allocation5 + $0x1be8] sm:$0xff]  ;;  %v1044_v59 = vld [vmem:[#allocation5 + $0x1db0] sm:$0xff]  ;;  %v1018_v24 = vld [vmem:[#allocation5 + $0x1ce0] sm:$0xff] }
 0x1f2   :  { %8241 = vmatprep.subr.bf16.mxu1 %v8240_v47  ;;  %v939_v47 = vld [vmem:[#allocation5 + $0x1a68] sm:$0xff]  ;;  %v8260_v53 = vpack.c.bf16 %v987_v52, %v986_v43  ;;  %v1042_v43 = vld [vmem:[#allocation5 + $0x1da0] sm:$0xff] }
 0x1f3   :  { %8211 = vmatpush3.bf16.msra.mxu0 %v8210_v35  ;;  %v8230_v63 = vpack.c.bf16 %v939_v47, %v938_v42  ;;  %v1043_v52 = vld [vmem:[#allocation5 + $0x1da8] sm:$0xff]  ;;  %v8276_v42 = vpack.c.bf16 %v1011_v39, %v1010_v31  ;;  %v994_v47 = vld [vmem:[#allocation5 + $0x1c20] sm:$0xff] }
 0x1f4   :  { %8213 = vmatprep.subr.bf16.mxu0 %v8212_v51  ;;  %v989_v51 = vld [vmem:[#allocation5 + $0x1bf8] sm:$0xff]  ;;  %v1027_v54 = vld [vmem:[#allocation5 + $0x1d28] sm:$0xff] }
 0x1f5   :  { %8243 = vmatpush3.bf16.msra.mxu1 %v8242_v60  ;;  %v988_v60 = vld [vmem:[#allocation5 + $0x1bf0] sm:$0xff]  ;;  %v1019_v25 = vld [vmem:[#allocation5 + $0x1ce8] sm:$0xff] }
 0x1f6   :  { %8245 = vmatprep.subr.bf16.mxu1 %v8244_v0  ;;  %v84_v0 = vld [vmem:[#allocation2 + $0x70] sm:$0xff] }
 0x1f7   :  { %8215 = vmatpush3.bf16.msra.mxu0 %v8214_v56  ;;  %v972_v56 = vld [vmem:[#allocation5 + $0x1b70] sm:$0xff]  ;;  %v1899_v16 = vcombine.high %v84_v0, %v84_v0  ;;  %v9353_v22 = vrot.slane %v84_v0, %v9174_v13  ;;  %v1029_v0 = vld [vmem:[#allocation5 + $0x1d38] sm:$0xff] }
 0x1f8   :  { %8217 = vmatprep.subr.bf16.mxu0 %v8216_v5  ;;  %v8264_v5 = vpack.c.bf16 %v989_v51, %v988_v60  ;;  %v8266_v18 = vpack.c.bf16 %v973_v8, %v972_v56  ;;  %v996_v51 = vld [vmem:[#allocation5 + $0x1c30] sm:$0xff]  ;;  %v999_v8 = vld [vmem:[#allocation5 + $0x1c48] sm:$0xff] }
 0x1f9   :  { %8247 = vmatpush3.bf16.msra.mxu1 %v8246_v57  ;;  %v9356_v28 = vrot.slane %v1899_v16, %v9174_v13  ;;  %v1914_v40 = vcombine.high %v9353_v22, %v9353_v22  ;;  %v1017_v16 = vld [vmem:[#allocation5 + $0x1cd8] sm:$0xff] }
 0x1fa   :  { %8249 = vmatprep.subr.bf16.mxu1 %v8248_v9  ;;  %v1038_v9 = vld [vmem:[#allocation5 + $0x1d80] sm:$0xff] }
 0x1fb   :  { %8219 = vmatpush3.bf16.msra.mxu0 %v8218_v19  ;;  %v8268_v19 = vpack.c.bf16 %v1007_v7, %v1006_v6  ;;  %v1030_v6 = vld [vmem:[#allocation5 + $0x1d40] sm:$0xff] }
 0x1fc   :  { %8221 = vmatprep.subr.bf16.mxu0 %v8220_v1  ;;  %v991_v1 = vld [vmem:[#allocation5 + $0x1c08] sm:$0xff] }
 0x1fd   :  { %8251 = vmatpush3.bf16.msra.mxu1 %v8250_v12  ;;  %v990_v12 = vld [vmem:[#allocation5 + $0x1c00] sm:$0xff] }
 0x1fe   :  { %8253 = vmatprep.subr.bf16.mxu1 %v8252_v15  ;;  %v1009_v15 = vld [vmem:[#allocation5 + $0x1c98] sm:$0xff]  ;;  %v8270_v29 = vpack.c.bf16 %v991_v1, %v990_v12 }
 0x1ff   :  { %8223 = vmatpush3.bf16.msra.mxu0 %v8222_v30  ;;  %v8302_v30 = vpack.c.bf16 %v1023_v26, %v1022_v20  ;;  %v1000_v20 = vld [vmem:[#allocation5 + $0x1c50] sm:$0xff] }
 0x200   :  { %8225 = vmatprep.subr.bf16.mxu0 %v8224_v17  ;;  %v992_v17 = vld [vmem:[#allocation5 + $0x1c10] sm:$0xff] }
 0x201   :  { %8255 = vmatpush3.bf16.msra.mxu1 %v8254_v32  ;;  %v6092_v49 = vpop.f32.mrb[12].mxu0  ;;  %v8272_v32 = vpack.c.bf16 %v1009_v15, %v1008_v21  ;;  %v1032_v26 = vld [vmem:[#allocation5 + $0x1d50] sm:$0xff]  ;;  %v1033_v15 = vld [vmem:[#allocation5 + $0x1d58] sm:$0xff] }
 0x202   :  { %8257 = vmatprep.subr.bf16.mxu1 %v8256_v37  ;;  %v6093_v55 = vpop.f32.mrb[13].mxu0  ;;  %v1025_v37 = vld [vmem:[#allocation5 + $0x1d18] sm:$0xff] }
 0x203   :  { %v6127_v35 = vpop.f32.mrb[12].mxu1  ;;  %v6094_v61 = vadd.f32 %v6093_v55, %v6092_v49  ;;  %8227 = vmatpush3.bf16.msra.mxu0 %v8226_v44  ;;  %v1915_v44 = vcombine.high %v9356_v28, %v9356_v28  ;;  %v1026_v49 = vld [vmem:[#allocation5 + $0x1d20] sm:$0xff]  ;;  %v1045_v55 = vld [vmem:[#allocation5 + $0x1db8] sm:$0xff] }
 0x204   :  { %v6128_v62 = vpop.f32.mrb[13].mxu1  ;;  %8229 = vmatprep.subr.bf16.mxu0 %v8228_v46  ;;  %v8306_v46 = vpack.c.bf16 %v1025_v37, %v1024_v23  ;;  %v1002_v23 = vld [vmem:[#allocation5 + $0x1c60] sm:$0xff] }
 0x205   :  { %v6129_v45 = vadd.f32 %v6128_v62, %v6127_v35  ;;  %8259 = vmatpush3.bf16.msra.mxu1 %v8258_v27  ;;  %v3072_v57 = vadd.f32 %v6094_v61, %v9335_v10  ;;  %v8300_v10 = vpack.c.bf16 %v1039_v14, %v1038_v9  ;;  %v8274_v27 = vpack.c.bf16 %v993_v34, %v992_v17  ;;  %v997_v61 = vld [vmem:[#allocation5 + $0x1c38] sm:$0xff]  ;;  %v1028_v62 = vld [vmem:[#allocation5 + $0x1d30] sm:$0xff]  ;;  %v1031_v9 = vld [vmem:[#allocation5 + $0x1d48] sm:$0xff] }
 0x206   :  { %8261 = vmatprep.subr.bf16.mxu1 %v8260_v53  ;;  %v8308_v53 = vpack.c.bf16 %v1043_v52, %v1042_v43  ;;  %v8278_v35 = vpack.c.bf16 %v995_v48, %v994_v47  ;;  %v8282_v4 = vpack.c.bf16 %v997_v61, %v996_v51  ;;  %v8314_v56 = vpack.c.bf16 %v1029_v0, %v1028_v62  ;;  %v1016_v14 = vld [vmem:[#allocation5 + $0x1cd0] sm:$0xff]  ;;  %v1034_v37 = vld [vmem:[#allocation5 + $0x1d60] sm:$0xff]  ;;  %v1021_v52 = vld [vmem:[#allocation5 + $0x1cf8] sm:$0xff] }
 0x207   :  { %v9350_v58 = vadd.f32 %v6129_v45, %v3072_v57  ;;  %8231 = vmatpush3.bf16.msra.mxu0 %v8230_v63  ;;  %v8312_v63 = vpack.c.bf16 %v1045_v55, %v1044_v59  ;;  %v1014_v45 = vld [vmem:[#allocation5 + $0x1cc0] sm:$0xff]  ;;  %v8318_v12 = vpack.c.bf16 %v1031_v9, %v1030_v6  ;;  %v8288_v1 = vpack.c.bf16 %v1017_v16, %v1016_v14  ;;  %v1020_v43 = vld [vmem:[#allocation5 + $0x1cf0] sm:$0xff]  ;;  %v1005_v55 = vld [vmem:[#allocation5 + $0x1c78] sm:$0xff] }
 0x208   :  { %8233 = vmatprep.subr.bf16.mxu0 %v8232_v2  ;;  %v1046_v2 = vld [vmem:[#allocation5 + $0x1dc0] sm:$0xff]  ;;  %v8322_v17 = vpack.c.bf16 %v1033_v15, %v1032_v26  ;;  %v8292_v34 = vpack.c.bf16 %v1019_v25, %v1018_v24  ;;  %v1004_v59 = vld [vmem:[#allocation5 + $0x1c70] sm:$0xff]  ;;  %v1037_v51 = vld [vmem:[#allocation5 + $0x1d78] sm:$0xff] }
 0x209   :  { %8263 = vmatpush3.bf16.msra.mxu1 %v8262_v50  ;;  %v1015_v50 = vld [vmem:[#allocation5 + $0x1cc8] sm:$0xff]  ;;  %v8316_v7 = vpack.c.bf16 %v1047_v3, %v1046_v2  ;;  %v1070_v61 = vld [vmem:[#allocation5 + $0x1e80] sm:$0xff]  ;;  %v8298_v2 = vpack.c.bf16 %v1005_v55, %v1004_v59  ;;  %v1072_v6 = vld [vmem:[#allocation5 + $0x1e90] sm:$0xff] }
 0x20a   :  { %8265 = vmatprep.subr.bf16.mxu1 %v8264_v5  ;;  %v8284_v57 = vpack.c.bf16 %v1015_v50, %v1014_v45  ;;  %v998_v5 = vld [vmem:[#allocation5 + $0x1c40] sm:$0xff]  ;;  %v1071_v62 = vld [vmem:[#allocation5 + $0x1e88] sm:$0xff]  ;;  %v1104_v14 = vld [vmem:[#allocation5 + $0x1f90] sm:$0xff] }
 0x20b   :  { %8235 = vmatpush3.bf16.msra.mxu0 %v8234_v11  ;;  %v1048_v11 = vld [vmem:[#allocation5 + $0x1dd0] sm:$0xff]  ;;  %v1103_v0 = vld [vmem:[#allocation5 + $0x1f88] sm:$0xff]  ;;  %v1105_v16 = vld [vmem:[#allocation5 + $0x1f98] sm:$0xff] }
 0x20c   :  { %8269 = vmatprep.subr.bf16.mxu0 %v8268_v19  ;;  %v8286_v19 = vpack.c.bf16 %v999_v8, %v998_v5  ;;  %v1086_v5 = vld [vmem:[#allocation5 + $0x1f00] sm:$0xff]  ;;  %v1087_v8 = vld [vmem:[#allocation5 + $0x1f08] sm:$0xff]  ;;  %v8368_v26 = vpack.c.bf16 %v1105_v16, %v1104_v14 }
 0x20d   :  { %8267 = vmatpush3.bf16.msra.mxu1 %v8266_v18  ;;  %v1049_v18 = vld [vmem:[#allocation5 + $0x1dd8] sm:$0xff]  ;;  %v1074_v15 = vld [vmem:[#allocation5 + $0x1ea0] sm:$0xff]  ;;  %v1075_v24 = vld [vmem:[#allocation5 + $0x1ea8] sm:$0xff] }
 0x20e   :  { %8301 = vmatprep.subr.bf16.mxu1 %v8300_v10  ;;  %4050 = vmatmul.mubr.f32.vlgmr.msra.gmra.mrb[26].mxu0 %v9338_v38  ;;  %v1012_v38 = vld [vmem:[#allocation5 + $0x1cb0] sm:$0xff]  ;;  %v1001_v10 = vld [vmem:[#allocation5 + $0x1c58] sm:$0xff]  ;;  %v8320_v21 = vpack.c.bf16 %v1049_v18, %v1048_v11  ;;  %v1111_v59 = vld [vmem:[#allocation5 + $0x1fc8] sm:$0xff] }
 0x20f   :  { %8271 = vmatpush3.bf16.msra.mxu0 %v8270_v29  ;;  %4189 = vmatprep.mubr.f32.mxu0 %v1914_v40  ;;  %v8280_v60 = vpack.c.bf16 %v1013_v33, %v1012_v38  ;;  %v1050_v29 = vld [vmem:[#allocation5 + $0x1de0] sm:$0xff]  ;;  %v1035_v40 = vld [vmem:[#allocation5 + $0x1d68] sm:$0xff]  ;;  %v8296_v33 = vpack.c.bf16 %v1021_v52, %v1020_v43  ;;  %v1077_v43 = vld [vmem:[#allocation5 + $0x1eb8] sm:$0xff] }
 0x210   :  { %4120 = vmatmul.mubr.f32.vlgmr.msra.gmra.mrb[26].mxu1 %v9341_v41  ;;  %8273 = vmatprep.subr.bf16.mxu0 %v8272_v32  ;;  %v8310_v41 = vpack.c.bf16 %v1027_v54, %v1026_v49  ;;  %v8290_v32 = vpack.c.bf16 %v1001_v10, %v1000_v20  ;;  %v8326_v38 = vpack.c.bf16 %v1035_v40, %v1034_v37  ;;  %v1057_v20 = vld [vmem:[#allocation5 + $0x1e18] sm:$0xff]  ;;  %v1088_v10 = vld [vmem:[#allocation5 + $0x1f10] sm:$0xff]  ;;  %v1059_v37 = vld [vmem:[#allocation5 + $0x1e28] sm:$0xff] }
 0x211   :  { %8303 = vmatpush3.bf16.msra.mxu1 %v8302_v30  ;;  %4259 = vmatprep.mubr.f32.mxu1 %v1915_v44  ;;  %v1051_v30 = vld [vmem:[#allocation5 + $0x1de8] sm:$0xff]  ;;  %v1108_v52 = vld [vmem:[#allocation5 + $0x1fb0] sm:$0xff]  ;;  %v1082_v14 = vld [vmem:[#allocation5 + $0x1ee0] sm:$0xff] }
 0x212   :  { %8305 = vmatprep.subr.bf16.mxu1 %v8304_v36  ;;  %v1003_v36 = vld [vmem:[#allocation5 + $0x1c68] sm:$0xff]  ;;  %v8324_v39 = vpack.c.bf16 %v1051_v30, %v1050_v29  ;;  %v1106_v29 = vld [vmem:[#allocation5 + $0x1fa0] sm:$0xff] }
 0x213   :  { %8275 = vmatpush3.bf16.msra.mxu0 %v8274_v27  ;;  %v8294_v49 = vpack.c.bf16 %v1003_v36, %v1002_v23  ;;  %v1107_v30 = vld [vmem:[#allocation5 + $0x1fa8] sm:$0xff]  ;;  %v8340_v23 = vpack.c.bf16 %v1075_v24, %v1074_v15  ;;  %v1058_v36 = vld [vmem:[#allocation5 + $0x1e20] sm:$0xff] }
 0x214   :  { %8277 = vmatprep.subr.bf16.mxu0 %v8276_v42  ;;  %v1053_v42 = vld [vmem:[#allocation5 + $0x1df8] sm:$0xff]  ;;  %v1091_v40 = vld [vmem:[#allocation5 + $0x1f28] sm:$0xff] }
 0x215   :  { %8307 = vmatpush3.bf16.msra.mxu1 %v8306_v46  ;;  %v1052_v46 = vld [vmem:[#allocation5 + $0x1df0] sm:$0xff]  ;;  %v1083_v16 = vld [vmem:[#allocation5 + $0x1ee8] sm:$0xff] }
 0x216   :  { %8309 = vmatprep.subr.bf16.mxu1 %v8308_v53  ;;  %v85_v53 = vld [vmem:[#allocation2 + $0x78] sm:$0xff] }
 0x217   :  { %8279 = vmatpush3.bf16.msra.mxu0 %v8278_v35  ;;  %v1036_v35 = vld [vmem:[#allocation5 + $0x1d70] sm:$0xff]  ;;  %v1916_v45 = vcombine.high %v85_v53, %v85_v53  ;;  %v9368_v9 = vrot.slane %v85_v53, %v9174_v13  ;;  %v1093_v53 = vld [vmem:[#allocation5 + $0x1f38] sm:$0xff] }
 0x218   :  { %8281 = vmatprep.subr.bf16.mxu0 %v8280_v60  ;;  %v8328_v60 = vpack.c.bf16 %v1053_v42, %v1052_v46  ;;  %v8330_v3 = vpack.c.bf16 %v1037_v51, %v1036_v35  ;;  %v1060_v42 = vld [vmem:[#allocation5 + $0x1e30] sm:$0xff]  ;;  %v1063_v51 = vld [vmem:[#allocation5 + $0x1e48] sm:$0xff] }
 0x219   :  { %8311 = vmatpush3.bf16.msra.mxu1 %v8310_v41  ;;  %v9371_v11 = vrot.slane %v1916_v45, %v9174_v13  ;;  %v1931_v25 = vcombine.high %v9368_v9, %v9368_v9  ;;  %v1081_v45 = vld [vmem:[#allocation5 + $0x1ed8] sm:$0xff] }
 0x21a   :  { %8313 = vmatprep.subr.bf16.mxu1 %v8312_v63  ;;  %v1102_v63 = vld [vmem:[#allocation5 + $0x1f80] sm:$0xff] }
 0x21b   :  { %8283 = vmatpush3.bf16.msra.mxu0 %v8282_v4  ;;  %v8332_v4 = vpack.c.bf16 %v1071_v62, %v1070_v61  ;;  %v1094_v61 = vld [vmem:[#allocation5 + $0x1f40] sm:$0xff] }
 0x21c   :  { %8285 = vmatprep.subr.bf16.mxu0 %v8284_v57  ;;  %v1055_v57 = vld [vmem:[#allocation5 + $0x1e08] sm:$0xff] }
 0x21d   :  { %8315 = vmatpush3.bf16.msra.mxu1 %v8314_v56  ;;  %v1054_v56 = vld [vmem:[#allocation5 + $0x1e00] sm:$0xff] }
 0x21e   :  { %8317 = vmatprep.subr.bf16.mxu1 %v8316_v7  ;;  %v1073_v7 = vld [vmem:[#allocation5 + $0x1e98] sm:$0xff]  ;;  %v8334_v18 = vpack.c.bf16 %v1055_v57, %v1054_v56 }
 0x21f   :  { %8287 = vmatpush3.bf16.msra.mxu0 %v8286_v19  ;;  %v8366_v19 = vpack.c.bf16 %v1087_v8, %v1086_v5  ;;  %v1064_v5 = vld [vmem:[#allocation5 + $0x1e50] sm:$0xff] }
 0x220   :  { %8289 = vmatprep.subr.bf16.mxu0 %v8288_v1  ;;  %v1056_v1 = vld [vmem:[#allocation5 + $0x1e10] sm:$0xff] }
 0x221   :  { %8319 = vmatpush3.bf16.msra.mxu1 %v8318_v12  ;;  %v6162_v31 = vpop.f32.mrb[14].mxu0  ;;  %v8336_v12 = vpack.c.bf16 %v1073_v7, %v1072_v6  ;;  %v1096_v8 = vld [vmem:[#allocation5 + $0x1f50] sm:$0xff]  ;;  %v1097_v7 = vld [vmem:[#allocation5 + $0x1f58] sm:$0xff] }
 0x222   :  { %8321 = vmatprep.subr.bf16.mxu1 %v8320_v21  ;;  %v6163_v44 = vpop.f32.mrb[15].mxu0  ;;  %v1089_v21 = vld [vmem:[#allocation5 + $0x1f18] sm:$0xff] }
 0x223   :  { %v6197_v27 = vpop.f32.mrb[14].mxu1  ;;  %v6164_v47 = vadd.f32 %v6163_v44, %v6162_v31  ;;  %8291 = vmatpush3.bf16.msra.mxu0 %v8290_v32  ;;  %v1932_v32 = vcombine.high %v9371_v11, %v9371_v11  ;;  %v1090_v31 = vld [vmem:[#allocation5 + $0x1f20] sm:$0xff]  ;;  %v1109_v44 = vld [vmem:[#allocation5 + $0x1fb8] sm:$0xff] }
 0x224   :  { %v6198_v48 = vpop.f32.mrb[15].mxu1  ;;  %8293 = vmatprep.subr.bf16.mxu0 %v8292_v34  ;;  %v8370_v34 = vpack.c.bf16 %v1089_v21, %v1088_v10  ;;  %v1066_v10 = vld [vmem:[#allocation5 + $0x1e60] sm:$0xff] }
 0x225   :  { %v6199_v54 = vadd.f32 %v6198_v48, %v6197_v27  ;;  %8323 = vmatpush3.bf16.msra.mxu1 %v8322_v17  ;;  %v3212_v41 = vadd.f32 %v6164_v47, %v9350_v58  ;;  %v8364_v58 = vpack.c.bf16 %v1103_v0, %v1102_v63  ;;  %v8338_v17 = vpack.c.bf16 %v1057_v20, %v1056_v1  ;;  %v1061_v47 = vld [vmem:[#allocation5 + $0x1e38] sm:$0xff]  ;;  %v1092_v48 = vld [vmem:[#allocation5 + $0x1f30] sm:$0xff]  ;;  %v1095_v63 = vld [vmem:[#allocation5 + $0x1f48] sm:$0xff] }
 0x226   :  { %8325 = vmatprep.subr.bf16.mxu1 %v8324_v39  ;;  %v8372_v39 = vpack.c.bf16 %v1107_v30, %v1106_v29  ;;  %v8342_v27 = vpack.c.bf16 %v1059_v37, %v1058_v36  ;;  %v8346_v55 = vpack.c.bf16 %v1061_v47, %v1060_v42  ;;  %v8378_v35 = vpack.c.bf16 %v1093_v53, %v1092_v48  ;;  %v1080_v0 = vld [vmem:[#allocation5 + $0x1ed0] sm:$0xff]  ;;  %v1098_v21 = vld [vmem:[#allocation5 + $0x1f60] sm:$0xff]  ;;  %v1085_v30 = vld [vmem:[#allocation5 + $0x1ef8] sm:$0xff] }
 0x227   :  { %v9365_v50 = vadd.f32 %v6199_v54, %v3212_v41  ;;  %8295 = vmatpush3.bf16.msra.mxu0 %v8294_v49  ;;  %v8376_v49 = vpack.c.bf16 %v1109_v44, %v1108_v52  ;;  %v1078_v54 = vld [vmem:[#allocation5 + $0x1ec0] sm:$0xff]  ;;  %v8382_v56 = vpack.c.bf16 %v1095_v63, %v1094_v61  ;;  %v8352_v57 = vpack.c.bf16 %v1081_v45, %v1080_v0  ;;  %v1084_v29 = vld [vmem:[#allocation5 + $0x1ef0] sm:$0xff]  ;;  %v1069_v44 = vld [vmem:[#allocation5 + $0x1e78] sm:$0xff] }
 0x228   :  { %8297 = vmatprep.subr.bf16.mxu0 %v8296_v33  ;;  %v1110_v33 = vld [vmem:[#allocation5 + $0x1fc0] sm:$0xff]  ;;  %v8386_v1 = vpack.c.bf16 %v1097_v7, %v1096_v8  ;;  %v8356_v20 = vpack.c.bf16 %v1083_v16, %v1082_v14  ;;  %v1068_v52 = vld [vmem:[#allocation5 + $0x1e70] sm:$0xff]  ;;  %v1101_v42 = vld [vmem:[#allocation5 + $0x1f78] sm:$0xff] }
 0x229   :  { %8327 = vmatpush3.bf16.msra.mxu1 %v8326_v38  ;;  %v1079_v38 = vld [vmem:[#allocation5 + $0x1ec8] sm:$0xff]  ;;  %v8380_v62 = vpack.c.bf16 %v1111_v59, %v1110_v33  ;;  %v1134_v47 = vld [vmem:[#allocation5 + $0x2080] sm:$0xff]  ;;  %v8362_v33 = vpack.c.bf16 %v1069_v44, %v1068_v52  ;;  %v1136_v61 = vld [vmem:[#allocation5 + $0x2090] sm:$0xff] }
 0x22a   :  { %8329 = vmatprep.subr.bf16.mxu1 %v8328_v60  ;;  %v8348_v41 = vpack.c.bf16 %v1079_v38, %v1078_v54  ;;  %v1062_v60 = vld [vmem:[#allocation5 + $0x1e40] sm:$0xff]  ;;  %v1135_v48 = vld [vmem:[#allocation5 + $0x2088] sm:$0xff]  ;;  %v1168_v0 = vld [vmem:[#allocation5 + $0x2190] sm:$0xff] }
 0x22b   :  { %8299 = vmatpush3.bf16.msra.mxu0 %v8298_v2  ;;  %v1112_v2 = vld [vmem:[#allocation5 + $0x1fd0] sm:$0xff]  ;;  %v1167_v53 = vld [vmem:[#allocation5 + $0x2188] sm:$0xff]  ;;  %v1169_v45 = vld [vmem:[#allocation5 + $0x2198] sm:$0xff] }
 0x22c   :  { %8333 = vmatprep.subr.bf16.mxu0 %v8332_v4  ;;  %v8350_v4 = vpack.c.bf16 %v1063_v51, %v1062_v60  ;;  %v1150_v60 = vld [vmem:[#allocation5 + $0x2100] sm:$0xff]  ;;  %v1151_v51 = vld [vmem:[#allocation5 + $0x2108] sm:$0xff]  ;;  %v8432_v8 = vpack.c.bf16 %v1169_v45, %v1168_v0 }
 0x22d   :  { %8331 = vmatpush3.bf16.msra.mxu1 %v8330_v3  ;;  %v1113_v3 = vld [vmem:[#allocation5 + $0x1fd8] sm:$0xff]  ;;  %v1138_v7 = vld [vmem:[#allocation5 + $0x20a0] sm:$0xff]  ;;  %v1139_v14 = vld [vmem:[#allocation5 + $0x20a8] sm:$0xff] }
 0x22e   :  { %8365 = vmatprep.subr.bf16.mxu1 %v8364_v58  ;;  %4190 = vmatmul.mubr.f32.vlgmr.msra.gmra.mrb[28].mxu0 %v9353_v22  ;;  %v1076_v22 = vld [vmem:[#allocation5 + $0x1eb0] sm:$0xff]  ;;  %v1065_v58 = vld [vmem:[#allocation5 + $0x1e58] sm:$0xff]  ;;  %v8384_v6 = vpack.c.bf16 %v1113_v3, %v1112_v2  ;;  %v1175_v52 = vld [vmem:[#allocation5 + $0x21c8] sm:$0xff] }
 0x22f   :  { %8335 = vmatpush3.bf16.msra.mxu0 %v8334_v18  ;;  %4329 = vmatprep.mubr.f32.mxu0 %v1931_v25  ;;  %v8344_v46 = vpack.c.bf16 %v1077_v43, %v1076_v22  ;;  %v1114_v18 = vld [vmem:[#allocation5 + $0x1fe0] sm:$0xff]  ;;  %v1099_v25 = vld [vmem:[#allocation5 + $0x1f68] sm:$0xff]  ;;  %v8360_v43 = vpack.c.bf16 %v1085_v30, %v1084_v29  ;;  %v1141_v29 = vld [vmem:[#allocation5 + $0x20b8] sm:$0xff] }
 0x230   :  { %4260 = vmatmul.mubr.f32.vlgmr.msra.gmra.mrb[28].mxu1 %v9356_v28  ;;  %8337 = vmatprep.subr.bf16.mxu0 %v8336_v12  ;;  %v8374_v28 = vpack.c.bf16 %v1091_v40, %v1090_v31  ;;  %v8354_v12 = vpack.c.bf16 %v1065_v58, %v1064_v5  ;;  %v8390_v22 = vpack.c.bf16 %v1099_v25, %v1098_v21  ;;  %v1121_v5 = vld [vmem:[#allocation5 + $0x2018] sm:$0xff]  ;;  %v1152_v58 = vld [vmem:[#allocation5 + $0x2110] sm:$0xff]  ;;  %v1123_v21 = vld [vmem:[#allocation5 + $0x2028] sm:$0xff] }
 0x231   :  { %8367 = vmatpush3.bf16.msra.mxu1 %v8366_v19  ;;  %4399 = vmatprep.mubr.f32.mxu1 %v1932_v32  ;;  %v1115_v19 = vld [vmem:[#allocation5 + $0x1fe8] sm:$0xff]  ;;  %v1172_v30 = vld [vmem:[#allocation5 + $0x21b0] sm:$0xff]  ;;  %v1146_v0 = vld [vmem:[#allocation5 + $0x20e0] sm:$0xff] }
 0x232   :  { %8369 = vmatprep.subr.bf16.mxu1 %v8368_v26  ;;  %v1067_v26 = vld [vmem:[#allocation5 + $0x1e68] sm:$0xff]  ;;  %v8388_v24 = vpack.c.bf16 %v1115_v19, %v1114_v18  ;;  %v1170_v18 = vld [vmem:[#allocation5 + $0x21a0] sm:$0xff] }
 0x233   :  { %8339 = vmatpush3.bf16.msra.mxu0 %v8338_v17  ;;  %v8358_v31 = vpack.c.bf16 %v1067_v26, %v1066_v10  ;;  %v1171_v19 = vld [vmem:[#allocation5 + $0x21a8] sm:$0xff]  ;;  %v8404_v10 = vpack.c.bf16 %v1139_v14, %v1138_v7  ;;  %v1122_v26 = vld [vmem:[#allocation5 + $0x2020] sm:$0xff] }
 0x234   :  { %8341 = vmatprep.subr.bf16.mxu0 %v8340_v23  ;;  %v1117_v23 = vld [vmem:[#allocation5 + $0x1ff8] sm:$0xff]  ;;  %v1155_v25 = vld [vmem:[#allocation5 + $0x2128] sm:$0xff] }
 0x235   :  { %8371 = vmatpush3.bf16.msra.mxu1 %v8370_v34  ;;  %v1116_v34 = vld [vmem:[#allocation5 + $0x1ff0] sm:$0xff]  ;;  %v1147_v45 = vld [vmem:[#allocation5 + $0x20e8] sm:$0xff] }
 0x236   :  { %8373 = vmatprep.subr.bf16.mxu1 %v8372_v39  ;;  %v86_v39 = vld [vmem:[#allocation2 + $0x80] sm:$0xff] }
 0x237   :  { %8343 = vmatpush3.bf16.msra.mxu0 %v8342_v27  ;;  %v1100_v27 = vld [vmem:[#allocation5 + $0x1f70] sm:$0xff]  ;;  %v1933_v54 = vcombine.high %v86_v39, %v86_v39  ;;  %v9383_v63 = vrot.slane %v86_v39, %v9174_v13  ;;  %v1157_v39 = vld [vmem:[#allocation5 + $0x2138] sm:$0xff] }
 0x238   :  { %8345 = vmatprep.subr.bf16.mxu0 %v8344_v46  ;;  %v8392_v46 = vpack.c.bf16 %v1117_v23, %v1116_v34  ;;  %v8394_v59 = vpack.c.bf16 %v1101_v42, %v1100_v27  ;;  %v1124_v23 = vld [vmem:[#allocation5 + $0x2030] sm:$0xff]  ;;  %v1127_v42 = vld [vmem:[#allocation5 + $0x2048] sm:$0xff] }
 0x239   :  { %8375 = vmatpush3.bf16.msra.mxu1 %v8374_v28  ;;  %v9386_v2 = vrot.slane %v1933_v54, %v9174_v13  ;;  %v1948_v16 = vcombine.high %v9383_v63, %v9383_v63  ;;  %v1145_v54 = vld [vmem:[#allocation5 + $0x20d8] sm:$0xff] }
 0x23a   :  { %8377 = vmatprep.subr.bf16.mxu1 %v8376_v49  ;;  %v1166_v49 = vld [vmem:[#allocation5 + $0x2180] sm:$0xff] }
 0x23b   :  { %8347 = vmatpush3.bf16.msra.mxu0 %v8346_v55  ;;  %v8396_v55 = vpack.c.bf16 %v1135_v48, %v1134_v47  ;;  %v1158_v47 = vld [vmem:[#allocation5 + $0x2140] sm:$0xff] }
 0x23c   :  { %8349 = vmatprep.subr.bf16.mxu0 %v8348_v41  ;;  %v1119_v41 = vld [vmem:[#allocation5 + $0x2008] sm:$0xff] }
 0x23d   :  { %8379 = vmatpush3.bf16.msra.mxu1 %v8378_v35  ;;  %v1118_v35 = vld [vmem:[#allocation5 + $0x2000] sm:$0xff] }
 0x23e   :  { %8381 = vmatprep.subr.bf16.mxu1 %v8380_v62  ;;  %v1137_v62 = vld [vmem:[#allocation5 + $0x2098] sm:$0xff]  ;;  %v8398_v3 = vpack.c.bf16 %v1119_v41, %v1118_v35 }
 0x23f   :  { %8351 = vmatpush3.bf16.msra.mxu0 %v8350_v4  ;;  %v8430_v4 = vpack.c.bf16 %v1151_v51, %v1150_v60  ;;  %v1128_v60 = vld [vmem:[#allocation5 + $0x2050] sm:$0xff] }
 0x240   :  { %8353 = vmatprep.subr.bf16.mxu0 %v8352_v57  ;;  %v1120_v57 = vld [vmem:[#allocation5 + $0x2010] sm:$0xff] }
 0x241   :  { %8383 = vmatpush3.bf16.msra.mxu1 %v8382_v56  ;;  %v6232_v15 = vpop.f32.mrb[16].mxu0  ;;  %v8400_v56 = vpack.c.bf16 %v1137_v62, %v1136_v61  ;;  %v1160_v51 = vld [vmem:[#allocation5 + $0x2150] sm:$0xff]  ;;  %v1161_v62 = vld [vmem:[#allocation5 + $0x2158] sm:$0xff] }
 0x242   :  { %8385 = vmatprep.subr.bf16.mxu1 %v8384_v6  ;;  %v6233_v32 = vpop.f32.mrb[17].mxu0  ;;  %v1153_v6 = vld [vmem:[#allocation5 + $0x2118] sm:$0xff] }
 0x243   :  { %v6267_v17 = vpop.f32.mrb[16].mxu1  ;;  %v6234_v36 = vadd.f32 %v6233_v32, %v6232_v15  ;;  %8355 = vmatpush3.bf16.msra.mxu0 %v8354_v12  ;;  %v1949_v12 = vcombine.high %v9386_v2, %v9386_v2  ;;  %v1154_v15 = vld [vmem:[#allocation5 + $0x2120] sm:$0xff]  ;;  %v1173_v32 = vld [vmem:[#allocation5 + $0x21b8] sm:$0xff] }
 0x244   :  { %v6268_v37 = vpop.f32.mrb[17].mxu1  ;;  %8357 = vmatprep.subr.bf16.mxu0 %v8356_v20  ;;  %v8434_v20 = vpack.c.bf16 %v1153_v6, %v1152_v58  ;;  %v1130_v58 = vld [vmem:[#allocation5 + $0x2060] sm:$0xff] }
 0x245   :  { %v6269_v40 = vadd.f32 %v6268_v37, %v6267_v17  ;;  %8387 = vmatpush3.bf16.msra.mxu1 %v8386_v1  ;;  %v3352_v28 = vadd.f32 %v6234_v36, %v9365_v50  ;;  %v8428_v50 = vpack.c.bf16 %v1167_v53, %v1166_v49  ;;  %v8402_v1 = vpack.c.bf16 %v1121_v5, %v1120_v57  ;;  %v1125_v36 = vld [vmem:[#allocation5 + $0x2038] sm:$0xff]  ;;  %v1156_v37 = vld [vmem:[#allocation5 + $0x2130] sm:$0xff]  ;;  %v1159_v49 = vld [vmem:[#allocation5 + $0x2148] sm:$0xff] }
 0x246   :  { %8389 = vmatprep.subr.bf16.mxu1 %v8388_v24  ;;  %v8436_v24 = vpack.c.bf16 %v1171_v19, %v1170_v18  ;;  %v8406_v17 = vpack.c.bf16 %v1123_v21, %v1122_v26  ;;  %v8410_v44 = vpack.c.bf16 %v1125_v36, %v1124_v23  ;;  %v8442_v27 = vpack.c.bf16 %v1157_v39, %v1156_v37  ;;  %v1144_v53 = vld [vmem:[#allocation5 + $0x20d0] sm:$0xff]  ;;  %v1162_v6 = vld [vmem:[#allocation5 + $0x2160] sm:$0xff]  ;;  %v1149_v19 = vld [vmem:[#allocation5 + $0x20f8] sm:$0xff] }
 0x247   :  { %v9380_v38 = vadd.f32 %v6269_v40, %v3352_v28  ;;  %8359 = vmatpush3.bf16.msra.mxu0 %v8358_v31  ;;  %v8440_v31 = vpack.c.bf16 %v1173_v32, %v1172_v30  ;;  %v1142_v40 = vld [vmem:[#allocation5 + $0x20c0] sm:$0xff]  ;;  %v8446_v35 = vpack.c.bf16 %v1159_v49, %v1158_v47  ;;  %v8416_v41 = vpack.c.bf16 %v1145_v54, %v1144_v53  ;;  %v1148_v18 = vld [vmem:[#allocation5 + $0x20f0] sm:$0xff]  ;;  %v1133_v32 = vld [vmem:[#allocation5 + $0x2078] sm:$0xff] }
 0x248   :  { %8361 = vmatprep.subr.bf16.mxu0 %v8360_v43  ;;  %v1174_v43 = vld [vmem:[#allocation5 + $0x21c0] sm:$0xff]  ;;  %v8450_v57 = vpack.c.bf16 %v1161_v62, %v1160_v51  ;;  %v8420_v5 = vpack.c.bf16 %v1147_v45, %v1146_v0  ;;  %v1132_v30 = vld [vmem:[#allocation5 + $0x2070] sm:$0xff]  ;;  %v1165_v23 = vld [vmem:[#allocation5 + $0x2178] sm:$0xff] }
 0x249   :  { %8391 = vmatpush3.bf16.msra.mxu1 %v8390_v22  ;;  %v1143_v22 = vld [vmem:[#allocation5 + $0x20c8] sm:$0xff]  ;;  %v8444_v48 = vpack.c.bf16 %v1175_v52, %v1174_v43  ;;  %v1198_v36 = vld [vmem:[#allocation5 + $0x2280] sm:$0xff]  ;;  %v8426_v43 = vpack.c.bf16 %v1133_v32, %v1132_v30  ;;  %v1200_v47 = vld [vmem:[#allocation5 + $0x2290] sm:$0xff] }
 0x24a   :  { %8393 = vmatprep.subr.bf16.mxu1 %v8392_v46  ;;  %v8412_v28 = vpack.c.bf16 %v1143_v22, %v1142_v40  ;;  %v1126_v46 = vld [vmem:[#allocation5 + $0x2040] sm:$0xff]  ;;  %v1199_v37 = vld [vmem:[#allocation5 + $0x2288] sm:$0xff]  ;;  %v1232_v53 = vld [vmem:[#allocation5 + $0x2390] sm:$0xff] }
 0x24b   :  { %8363 = vmatpush3.bf16.msra.mxu0 %v8362_v33  ;;  %v1176_v33 = vld [vmem:[#allocation5 + $0x21d0] sm:$0xff]  ;;  %v1231_v39 = vld [vmem:[#allocation5 + $0x2388] sm:$0xff]  ;;  %v1233_v54 = vld [vmem:[#allocation5 + $0x2398] sm:$0xff] }
 0x24c   :  { %8397 = vmatprep.subr.bf16.mxu0 %v8396_v55  ;;  %v8414_v55 = vpack.c.bf16 %v1127_v42, %v1126_v46  ;;  %v1214_v46 = vld [vmem:[#allocation5 + $0x2300] sm:$0xff]  ;;  %v1215_v42 = vld [vmem:[#allocation5 + $0x2308] sm:$0xff]  ;;  %v8496_v51 = vpack.c.bf16 %v1233_v54, %v1232_v53 }
 0x24d   :  { %8395 = vmatpush3.bf16.msra.mxu1 %v8394_v59  ;;  %v1177_v59 = vld [vmem:[#allocation5 + $0x21d8] sm:$0xff]  ;;  %v1202_v62 = vld [vmem:[#allocation5 + $0x22a0] sm:$0xff]  ;;  %v1203_v0 = vld [vmem:[#allocation5 + $0x22a8] sm:$0xff] }
 0x24e   :  { %8429 = vmatprep.subr.bf16.mxu1 %v8428_v50  ;;  %4330 = vmatmul.mubr.f32.vlgmr.msra.gmra.mrb[30].mxu0 %v9368_v9  ;;  %v1140_v9 = vld [vmem:[#allocation5 + $0x20b0] sm:$0xff]  ;;  %v1129_v50 = vld [vmem:[#allocation5 + $0x2058] sm:$0xff]  ;;  %v8448_v61 = vpack.c.bf16 %v1177_v59, %v1176_v33  ;;  %v1239_v30 = vld [vmem:[#allocation5 + $0x23c8] sm:$0xff] }
 0x24f   :  { %8399 = vmatpush3.bf16.msra.mxu0 %v8398_v3  ;;  %4469 = vmatprep.mubr.f32.mxu0 %v1948_v16  ;;  %v8408_v34 = vpack.c.bf16 %v1141_v29, %v1140_v9  ;;  %v1178_v3 = vld [vmem:[#allocation5 + $0x21e0] sm:$0xff]  ;;  %v1163_v16 = vld [vmem:[#allocation5 + $0x2168] sm:$0xff]  ;;  %v8424_v29 = vpack.c.bf16 %v1149_v19, %v1148_v18  ;;  %v1205_v18 = vld [vmem:[#allocation5 + $0x22b8] sm:$0xff] }
 0x250   :  { %4400 = vmatmul.mubr.f32.vlgmr.msra.gmra.mrb[30].mxu1 %v9371_v11  ;;  %8401 = vmatprep.subr.bf16.mxu0 %v8400_v56  ;;  %v8438_v11 = vpack.c.bf16 %v1155_v25, %v1154_v15  ;;  %v8418_v56 = vpack.c.bf16 %v1129_v50, %v1128_v60  ;;  %v8454_v9 = vpack.c.bf16 %v1163_v16, %v1162_v6  ;;  %v1185_v60 = vld [vmem:[#allocation5 + $0x2218] sm:$0xff]  ;;  %v1216_v50 = vld [vmem:[#allocation5 + $0x2310] sm:$0xff]  ;;  %v1187_v6 = vld [vmem:[#allocation5 + $0x2228] sm:$0xff] }
 0x251   :  { %8431 = vmatpush3.bf16.msra.mxu1 %v8430_v4  ;;  %4539 = vmatprep.mubr.f32.mxu1 %v1949_v12  ;;  %v1179_v4 = vld [vmem:[#allocation5 + $0x21e8] sm:$0xff]  ;;  %v1236_v19 = vld [vmem:[#allocation5 + $0x23b0] sm:$0xff]  ;;  %v1210_v53 = vld [vmem:[#allocation5 + $0x22e0] sm:$0xff] }
 0x252   :  { %8433 = vmatprep.subr.bf16.mxu1 %v8432_v8  ;;  %v1131_v8 = vld [vmem:[#allocation5 + $0x2068] sm:$0xff]  ;;  %v8452_v14 = vpack.c.bf16 %v1179_v4, %v1178_v3  ;;  %v1234_v3 = vld [vmem:[#allocation5 + $0x23a0] sm:$0xff] }
 0x253   :  { %8403 = vmatpush3.bf16.msra.mxu0 %v8402_v1  ;;  %v8422_v15 = vpack.c.bf16 %v1131_v8, %v1130_v58  ;;  %v1235_v4 = vld [vmem:[#allocation5 + $0x23a8] sm:$0xff]  ;;  %v8468_v58 = vpack.c.bf16 %v1203_v0, %v1202_v62  ;;  %v1186_v8 = vld [vmem:[#allocation5 + $0x2220] sm:$0xff] }
 0x254   :  { %8405 = vmatprep.subr.bf16.mxu0 %v8404_v10  ;;  %v1181_v10 = vld [vmem:[#allocation5 + $0x21f8] sm:$0xff]  ;;  %v1219_v16 = vld [vmem:[#allocation5 + $0x2328] sm:$0xff] }
 0x255   :  { %8435 = vmatpush3.bf16.msra.mxu1 %v8434_v20  ;;  %v1180_v20 = vld [vmem:[#allocation5 + $0x21f0] sm:$0xff]  ;;  %v1211_v54 = vld [vmem:[#allocation5 + $0x22e8] sm:$0xff] }
 0x256   :  { %8437 = vmatprep.subr.bf16.mxu1 %v8436_v24  ;;  %v87_v24 = vld [vmem:[#allocation2 + $0x88] sm:$0xff] }
 0x257   :  { %8407 = vmatpush3.bf16.msra.mxu0 %v8406_v17  ;;  %v1164_v17 = vld [vmem:[#allocation5 + $0x2170] sm:$0xff]  ;;  %v1950_v40 = vcombine.high %v87_v24, %v87_v24  ;;  %v9398_v49 = vrot.slane %v87_v24, %v9174_v13  ;;  %v1221_v24 = vld [vmem:[#allocation5 + $0x2338] sm:$0xff] }
 0x258   :  { %8409 = vmatprep.subr.bf16.mxu0 %v8408_v34  ;;  %v8456_v34 = vpack.c.bf16 %v1181_v10, %v1180_v20  ;;  %v8458_v52 = vpack.c.bf16 %v1165_v23, %v1164_v17  ;;  %v1188_v10 = vld [vmem:[#allocation5 + $0x2230] sm:$0xff]  ;;  %v1191_v23 = vld [vmem:[#allocation5 + $0x2248] sm:$0xff] }
 0x259   :  { %8439 = vmatpush3.bf16.msra.mxu1 %v8438_v11  ;;  %v9401_v33 = vrot.slane %v1950_v40, %v9174_v13  ;;  %v1965_v45 = vcombine.high %v9398_v49, %v9398_v49  ;;  %v1209_v40 = vld [vmem:[#allocation5 + $0x22d8] sm:$0xff] }
 0x25a   :  { %8441 = vmatprep.subr.bf16.mxu1 %v8440_v31  ;;  %v1230_v31 = vld [vmem:[#allocation5 + $0x2380] sm:$0xff] }
 0x25b   :  { %8411 = vmatpush3.bf16.msra.mxu0 %v8410_v44  ;;  %v8460_v44 = vpack.c.bf16 %v1199_v37, %v1198_v36  ;;  %v1222_v36 = vld [vmem:[#allocation5 + $0x2340] sm:$0xff] }
 0x25c   :  { %8413 = vmatprep.subr.bf16.mxu0 %v8412_v28  ;;  %v1183_v28 = vld [vmem:[#allocation5 + $0x2208] sm:$0xff] }
 0x25d   :  { %8443 = vmatpush3.bf16.msra.mxu1 %v8442_v27  ;;  %v1182_v27 = vld [vmem:[#allocation5 + $0x2200] sm:$0xff] }
 0x25e   :  { %8445 = vmatprep.subr.bf16.mxu1 %v8444_v48  ;;  %v1201_v48 = vld [vmem:[#allocation5 + $0x2298] sm:$0xff]  ;;  %v8462_v59 = vpack.c.bf16 %v1183_v28, %v1182_v27 }
 0x25f   :  { %8415 = vmatpush3.bf16.msra.mxu0 %v8414_v55  ;;  %v8494_v55 = vpack.c.bf16 %v1215_v42, %v1214_v46  ;;  %v1192_v46 = vld [vmem:[#allocation5 + $0x2250] sm:$0xff] }
 0x260   :  { %8417 = vmatprep.subr.bf16.mxu0 %v8416_v41  ;;  %v1184_v41 = vld [vmem:[#allocation5 + $0x2210] sm:$0xff] }
 0x261   :  { %8447 = vmatpush3.bf16.msra.mxu1 %v8446_v35  ;;  %v6302_v7 = vpop.f32.mrb[18].mxu0  ;;  %v8464_v35 = vpack.c.bf16 %v1201_v48, %v1200_v47  ;;  %v1224_v42 = vld [vmem:[#allocation5 + $0x2350] sm:$0xff]  ;;  %v1225_v48 = vld [vmem:[#allocation5 + $0x2358] sm:$0xff] }
 0x262   :  { %8449 = vmatprep.subr.bf16.mxu1 %v8448_v61  ;;  %v6303_v12 = vpop.f32.mrb[19].mxu0  ;;  %v1217_v61 = vld [vmem:[#allocation5 + $0x2318] sm:$0xff] }
 0x263   :  { %v6337_v1 = vpop.f32.mrb[18].mxu1  ;;  %v6304_v26 = vadd.f32 %v6303_v12, %v6302_v7  ;;  %8419 = vmatpush3.bf16.msra.mxu0 %v8418_v56  ;;  %v1966_v56 = vcombine.high %v9401_v33, %v9401_v33  ;;  %v1218_v7 = vld [vmem:[#allocation5 + $0x2320] sm:$0xff]  ;;  %v1237_v12 = vld [vmem:[#allocation5 + $0x23b8] sm:$0xff] }
 0x264   :  { %v6338_v21 = vpop.f32.mrb[19].mxu1  ;;  %8421 = vmatprep.subr.bf16.mxu0 %v8420_v5  ;;  %v8498_v5 = vpack.c.bf16 %v1217_v61, %v1216_v50  ;;  %v1194_v50 = vld [vmem:[#allocation5 + $0x2260] sm:$0xff] }
 0x265   :  { %v6339_v25 = vadd.f32 %v6338_v21, %v6337_v1  ;;  %8451 = vmatpush3.bf16.msra.mxu1 %v8450_v57  ;;  %v3492_v11 = vadd.f32 %v6304_v26, %v9380_v38  ;;  %v8492_v38 = vpack.c.bf16 %v1231_v39, %v1230_v31  ;;  %v8466_v57 = vpack.c.bf16 %v1185_v60, %v1184_v41  ;;  %v1189_v26 = vld [vmem:[#allocation5 + $0x2238] sm:$0xff]  ;;  %v1220_v21 = vld [vmem:[#allocation5 + $0x2330] sm:$0xff]  ;;  %v1223_v31 = vld [vmem:[#allocation5 + $0x2348] sm:$0xff] }
 0x266   :  { %8453 = vmatprep.subr.bf16.mxu1 %v8452_v14  ;;  %v8500_v14 = vpack.c.bf16 %v1235_v4, %v1234_v3  ;;  %v8470_v1 = vpack.c.bf16 %v1187_v6, %v1186_v8  ;;  %v8474_v32 = vpack.c.bf16 %v1189_v26, %v1188_v10  ;;  %v8506_v17 = vpack.c.bf16 %v1221_v24, %v1220_v21  ;;  %v1208_v39 = vld [vmem:[#allocation5 + $0x22d0] sm:$0xff]  ;;  %v1226_v61 = vld [vmem:[#allocation5 + $0x2360] sm:$0xff]  ;;  %v1213_v4 = vld [vmem:[#allocation5 + $0x22f8] sm:$0xff] }
 0x267   :  { %v9395_v22 = vadd.f32 %v6339_v25, %v3492_v11  ;;  %8423 = vmatpush3.bf16.msra.mxu0 %v8422_v15  ;;  %v8504_v15 = vpack.c.bf16 %v1237_v12, %v1236_v19  ;;  %v1206_v25 = vld [vmem:[#allocation5 + $0x22c0] sm:$0xff]  ;;  %v8510_v27 = vpack.c.bf16 %v1223_v31, %v1222_v36  ;;  %v8480_v28 = vpack.c.bf16 %v1209_v40, %v1208_v39  ;;  %v1212_v3 = vld [vmem:[#allocation5 + $0x22f0] sm:$0xff]  ;;  %v1197_v12 = vld [vmem:[#allocation5 + $0x2278] sm:$0xff] }
 0x268   :  { %8425 = vmatprep.subr.bf16.mxu0 %v8424_v29  ;;  %v1238_v29 = vld [vmem:[#allocation5 + $0x23c0] sm:$0xff]  ;;  %v8514_v41 = vpack.c.bf16 %v1225_v48, %v1224_v42  ;;  %v8484_v60 = vpack.c.bf16 %v1211_v54, %v1210_v53  ;;  %v1196_v19 = vld [vmem:[#allocation5 + $0x2270] sm:$0xff]  ;;  %v1229_v10 = vld [vmem:[#allocation5 + $0x2378] sm:$0xff] }
 0x269   :  { %8455 = vmatpush3.bf16.msra.mxu1 %v8454_v9  ;;  %v1207_v9 = vld [vmem:[#allocation5 + $0x22c8] sm:$0xff]  ;;  %v8508_v37 = vpack.c.bf16 %v1239_v30, %v1238_v29  ;;  %v1262_v26 = vld [vmem:[#allocation5 + $0x2480] sm:$0xff]  ;;  %v8490_v29 = vpack.c.bf16 %v1197_v12, %v1196_v19  ;;  %v1264_v36 = vld [vmem:[#allocation5 + $0x2490] sm:$0xff] }
 0x26a   :  { %8457 = vmatprep.subr.bf16.mxu1 %v8456_v34  ;;  %v8476_v11 = vpack.c.bf16 %v1207_v9, %v1206_v25  ;;  %v1190_v34 = vld [vmem:[#allocation5 + $0x2240] sm:$0xff]  ;;  %v1263_v21 = vld [vmem:[#allocation5 + $0x2488] sm:$0xff]  ;;  %v1296_v39 = vld [vmem:[#allocation5 + $0x2590] sm:$0xff] }
 0x26b   :  { %8427 = vmatpush3.bf16.msra.mxu0 %v8426_v43  ;;  %v1240_v43 = vld [vmem:[#allocation5 + $0x23d0] sm:$0xff]  ;;  %v1295_v24 = vld [vmem:[#allocation5 + $0x2588] sm:$0xff]  ;;  %v1297_v40 = vld [vmem:[#allocation5 + $0x2598] sm:$0xff] }
 0x26c   :  { %8461 = vmatprep.subr.bf16.mxu0 %v8460_v44  ;;  %v8478_v44 = vpack.c.bf16 %v1191_v23, %v1190_v34  ;;  %v1278_v34 = vld [vmem:[#allocation5 + $0x2500] sm:$0xff]  ;;  %v1279_v23 = vld [vmem:[#allocation5 + $0x2508] sm:$0xff]  ;;  %v8560_v42 = vpack.c.bf16 %v1297_v40, %v1296_v39 }
 0x26d   :  { %8459 = vmatpush3.bf16.msra.mxu1 %v8458_v52  ;;  %v1241_v52 = vld [vmem:[#allocation5 + $0x23d8] sm:$0xff]  ;;  %v1266_v48 = vld [vmem:[#allocation5 + $0x24a0] sm:$0xff]  ;;  %v1267_v53 = vld [vmem:[#allocation5 + $0x24a8] sm:$0xff] }
 0x26e   :  { %8493 = vmatprep.subr.bf16.mxu1 %v8492_v38  ;;  %4470 = vmatmul.mubr.f32.vlgmr.msra.gmra.mrb[32].mxu0 %v9383_v63  ;;  %v1204_v63 = vld [vmem:[#allocation5 + $0x22b0] sm:$0xff]  ;;  %v1193_v38 = vld [vmem:[#allocation5 + $0x2258] sm:$0xff]  ;;  %v8512_v47 = vpack.c.bf16 %v1241_v52, %v1240_v43  ;;  %v1303_v19 = vld [vmem:[#allocation5 + $0x25c8] sm:$0xff] }
 0x26f   :  { %8463 = vmatpush3.bf16.msra.mxu0 %v8462_v59  ;;  %4609 = vmatprep.mubr.f32.mxu0 %v1965_v45  ;;  %v8472_v20 = vpack.c.bf16 %v1205_v18, %v1204_v63  ;;  %v1242_v59 = vld [vmem:[#allocation5 + $0x23e0] sm:$0xff]  ;;  %v1227_v45 = vld [vmem:[#allocation5 + $0x2368] sm:$0xff]  ;;  %v8488_v18 = vpack.c.bf16 %v1213_v4, %v1212_v3  ;;  %v1269_v3 = vld [vmem:[#allocation5 + $0x24b8] sm:$0xff] }
 0x270   :  { %4540 = vmatmul.mubr.f32.vlgmr.msra.gmra.mrb[32].mxu1 %v9386_v2  ;;  %8465 = vmatprep.subr.bf16.mxu0 %v8464_v35  ;;  %v8502_v2 = vpack.c.bf16 %v1219_v16, %v1218_v7  ;;  %v8482_v35 = vpack.c.bf16 %v1193_v38, %v1192_v46  ;;  %v8518_v63 = vpack.c.bf16 %v1227_v45, %v1226_v61  ;;  %v1249_v46 = vld [vmem:[#allocation5 + $0x2418] sm:$0xff]  ;;  %v1280_v38 = vld [vmem:[#allocation5 + $0x2510] sm:$0xff]  ;;  %v1251_v61 = vld [vmem:[#allocation5 + $0x2428] sm:$0xff] }
 0x271   :  { %8495 = vmatpush3.bf16.msra.mxu1 %v8494_v55  ;;  %4679 = vmatprep.mubr.f32.mxu1 %v1966_v56  ;;  %v1243_v55 = vld [vmem:[#allocation5 + $0x23e8] sm:$0xff]  ;;  %v1300_v4 = vld [vmem:[#allocation5 + $0x25b0] sm:$0xff]  ;;  %v1274_v39 = vld [vmem:[#allocation5 + $0x24e0] sm:$0xff] }
 0x272   :  { %8497 = vmatprep.subr.bf16.mxu1 %v8496_v51  ;;  %v1195_v51 = vld [vmem:[#allocation5 + $0x2268] sm:$0xff]  ;;  %v8516_v0 = vpack.c.bf16 %v1243_v55, %v1242_v59  ;;  %v1298_v59 = vld [vmem:[#allocation5 + $0x25a0] sm:$0xff] }
 0x273   :  { %8467 = vmatpush3.bf16.msra.mxu0 %v8466_v57  ;;  %v8486_v7 = vpack.c.bf16 %v1195_v51, %v1194_v50  ;;  %v1299_v55 = vld [vmem:[#allocation5 + $0x25a8] sm:$0xff]  ;;  %v8532_v50 = vpack.c.bf16 %v1267_v53, %v1266_v48  ;;  %v1250_v51 = vld [vmem:[#allocation5 + $0x2420] sm:$0xff] }
 0x274   :  { %8469 = vmatprep.subr.bf16.mxu0 %v8468_v58  ;;  %v1245_v58 = vld [vmem:[#allocation5 + $0x23f8] sm:$0xff]  ;;  %v1283_v45 = vld [vmem:[#allocation5 + $0x2528] sm:$0xff] }
 0x275   :  { %8499 = vmatpush3.bf16.msra.mxu1 %v8498_v5  ;;  %v1244_v5 = vld [vmem:[#allocation5 + $0x23f0] sm:$0xff]  ;;  %v1275_v40 = vld [vmem:[#allocation5 + $0x24e8] sm:$0xff] }
 0x276   :  { %8501 = vmatprep.subr.bf16.mxu1 %v8500_v14  ;;  %v88_v14 = vld [vmem:[#allocation2 + $0x90] sm:$0xff] }
 0x277   :  { %8471 = vmatpush3.bf16.msra.mxu0 %v8470_v1  ;;  %v1228_v1 = vld [vmem:[#allocation5 + $0x2370] sm:$0xff]  ;;  %v1967_v25 = vcombine.high %v88_v14, %v88_v14  ;;  %v9413_v31 = vrot.slane %v88_v14, %v9174_v13  ;;  %v1285_v14 = vld [vmem:[#allocation5 + $0x2538] sm:$0xff] }
 0x278   :  { %8473 = vmatprep.subr.bf16.mxu0 %v8472_v20  ;;  %v8520_v20 = vpack.c.bf16 %v1245_v58, %v1244_v5  ;;  %v8522_v30 = vpack.c.bf16 %v1229_v10, %v1228_v1  ;;  %v1252_v58 = vld [vmem:[#allocation5 + $0x2430] sm:$0xff]  ;;  %v1255_v10 = vld [vmem:[#allocation5 + $0x2448] sm:$0xff] }
 0x279   :  { %8503 = vmatpush3.bf16.msra.mxu1 %v8502_v2  ;;  %v9416_v43 = vrot.slane %v1967_v25, %v9174_v13  ;;  %v1982_v54 = vcombine.high %v9413_v31, %v9413_v31  ;;  %v1273_v25 = vld [vmem:[#allocation5 + $0x24d8] sm:$0xff] }
 0x27a   :  { %8505 = vmatprep.subr.bf16.mxu1 %v8504_v15  ;;  %v1294_v15 = vld [vmem:[#allocation5 + $0x2580] sm:$0xff] }
 0x27b   :  { %8475 = vmatpush3.bf16.msra.mxu0 %v8474_v32  ;;  %v8524_v32 = vpack.c.bf16 %v1263_v21, %v1262_v26  ;;  %v1286_v26 = vld [vmem:[#allocation5 + $0x2540] sm:$0xff] }
 0x27c   :  { %8477 = vmatprep.subr.bf16.mxu0 %v8476_v11  ;;  %v1247_v11 = vld [vmem:[#allocation5 + $0x2408] sm:$0xff] }
 0x27d   :  { %8507 = vmatpush3.bf16.msra.mxu1 %v8506_v17  ;;  %v1246_v17 = vld [vmem:[#allocation5 + $0x2400] sm:$0xff] }
 0x27e   :  { %8509 = vmatprep.subr.bf16.mxu1 %v8508_v37  ;;  %v1265_v37 = vld [vmem:[#allocation5 + $0x2498] sm:$0xff]  ;;  %v8526_v52 = vpack.c.bf16 %v1247_v11, %v1246_v17 }
 0x27f   :  { %8479 = vmatpush3.bf16.msra.mxu0 %v8478_v44  ;;  %v8558_v44 = vpack.c.bf16 %v1279_v23, %v1278_v34  ;;  %v1256_v34 = vld [vmem:[#allocation5 + $0x2450] sm:$0xff] }
 0x280   :  { %8481 = vmatprep.subr.bf16.mxu0 %v8480_v28  ;;  %v1248_v28 = vld [vmem:[#allocation5 + $0x2410] sm:$0xff] }
 0x281   :  { %8511 = vmatpush3.bf16.msra.mxu1 %v8510_v27  ;;  %v6372_v62 = vpop.f32.mrb[20].mxu0  ;;  %v8528_v27 = vpack.c.bf16 %v1265_v37, %v1264_v36  ;;  %v1288_v23 = vld [vmem:[#allocation5 + $0x2550] sm:$0xff]  ;;  %v1289_v37 = vld [vmem:[#allocation5 + $0x2558] sm:$0xff] }
 0x282   :  { %8513 = vmatprep.subr.bf16.mxu1 %v8512_v47  ;;  %v6373_v56 = vpop.f32.mrb[21].mxu0  ;;  %v1281_v47 = vld [vmem:[#allocation5 + $0x2518] sm:$0xff] }
 0x283   :  { %v6407_v57 = vpop.f32.mrb[20].mxu1  ;;  %v6374_v8 = vadd.f32 %v6373_v56, %v6372_v62  ;;  %8483 = vmatpush3.bf16.msra.mxu0 %v8482_v35  ;;  %v1983_v35 = vcombine.high %v9416_v43, %v9416_v43  ;;  %v1282_v62 = vld [vmem:[#allocation5 + $0x2520] sm:$0xff]  ;;  %v1301_v56 = vld [vmem:[#allocation5 + $0x25b8] sm:$0xff] }
 0x284   :  { %v6408_v6 = vpop.f32.mrb[21].mxu1  ;;  %8485 = vmatprep.subr.bf16.mxu0 %v8484_v60  ;;  %v8562_v60 = vpack.c.bf16 %v1281_v47, %v1280_v38  ;;  %v1258_v38 = vld [vmem:[#allocation5 + $0x2460] sm:$0xff] }
 0x285   :  { %v6409_v16 = vadd.f32 %v6408_v6, %v6407_v57  ;;  %8515 = vmatpush3.bf16.msra.mxu1 %v8514_v41  ;;  %v3632_v2 = vadd.f32 %v6374_v8, %v9395_v22  ;;  %v8556_v22 = vpack.c.bf16 %v1295_v24, %v1294_v15  ;;  %v8530_v41 = vpack.c.bf16 %v1249_v46, %v1248_v28  ;;  %v1253_v8 = vld [vmem:[#allocation5 + $0x2438] sm:$0xff]  ;;  %v1284_v6 = vld [vmem:[#allocation5 + $0x2530] sm:$0xff]  ;;  %v1287_v15 = vld [vmem:[#allocation5 + $0x2548] sm:$0xff] }
 0x286   :  { %8517 = vmatprep.subr.bf16.mxu1 %v8516_v0  ;;  %v8564_v0 = vpack.c.bf16 %v1299_v55, %v1298_v59  ;;  %v8534_v57 = vpack.c.bf16 %v1251_v61, %v1250_v51  ;;  %v8538_v12 = vpack.c.bf16 %v1253_v8, %v1252_v58  ;;  %v8570_v1 = vpack.c.bf16 %v1285_v14, %v1284_v6  ;;  %v1272_v24 = vld [vmem:[#allocation5 + $0x24d0] sm:$0xff]  ;;  %v1290_v47 = vld [vmem:[#allocation5 + $0x2560] sm:$0xff]  ;;  %v1277_v55 = vld [vmem:[#allocation5 + $0x24f8] sm:$0xff] }
 0x287   :  { %v9410_v9 = vadd.f32 %v6409_v16, %v3632_v2  ;;  %8487 = vmatpush3.bf16.msra.mxu0 %v8486_v7  ;;  %v8568_v7 = vpack.c.bf16 %v1301_v56, %v1300_v4  ;;  %v1270_v16 = vld [vmem:[#allocation5 + $0x24c0] sm:$0xff]  ;;  %v8574_v17 = vpack.c.bf16 %v1287_v15, %v1286_v26  ;;  %v8544_v11 = vpack.c.bf16 %v1273_v25, %v1272_v24  ;;  %v1276_v59 = vld [vmem:[#allocation5 + $0x24f0] sm:$0xff]  ;;  %v1261_v56 = vld [vmem:[#allocation5 + $0x2478] sm:$0xff] }
 0x288   :  { %8489 = vmatprep.subr.bf16.mxu0 %v8488_v18  ;;  %v1302_v18 = vld [vmem:[#allocation5 + $0x25c0] sm:$0xff]  ;;  %v8578_v28 = vpack.c.bf16 %v1289_v37, %v1288_v23  ;;  %v8548_v46 = vpack.c.bf16 %v1275_v40, %v1274_v39  ;;  %v1260_v4 = vld [vmem:[#allocation5 + $0x2470] sm:$0xff]  ;;  %v1293_v58 = vld [vmem:[#allocation5 + $0x2578] sm:$0xff] }
 0x289   :  { %8519 = vmatpush3.bf16.msra.mxu1 %v8518_v63  ;;  %v1271_v63 = vld [vmem:[#allocation5 + $0x24c8] sm:$0xff]  ;;  %v8572_v21 = vpack.c.bf16 %v1303_v19, %v1302_v18  ;;  %v1326_v8 = vld [vmem:[#allocation5 + $0x2680] sm:$0xff]  ;;  %v8554_v18 = vpack.c.bf16 %v1261_v56, %v1260_v4  ;;  %v1328_v26 = vld [vmem:[#allocation5 + $0x2690] sm:$0xff] }
 0x28a   :  { %8521 = vmatprep.subr.bf16.mxu1 %v8520_v20  ;;  %v8540_v2 = vpack.c.bf16 %v1271_v63, %v1270_v16  ;;  %v1254_v20 = vld [vmem:[#allocation5 + $0x2440] sm:$0xff]  ;;  %v1327_v6 = vld [vmem:[#allocation5 + $0x2688] sm:$0xff]  ;;  %v1360_v24 = vld [vmem:[#allocation5 + $0x2790] sm:$0xff] }
 0x28b   :  { %8491 = vmatpush3.bf16.msra.mxu0 %v8490_v29  ;;  %v1304_v29 = vld [vmem:[#allocation5 + $0x25d0] sm:$0xff]  ;;  %v1359_v14 = vld [vmem:[#allocation5 + $0x2788] sm:$0xff]  ;;  %v1361_v25 = vld [vmem:[#allocation5 + $0x2798] sm:$0xff] }
 0x28c   :  { %8525 = vmatprep.subr.bf16.mxu0 %v8524_v32  ;;  %v8542_v32 = vpack.c.bf16 %v1255_v10, %v1254_v20  ;;  %v1342_v20 = vld [vmem:[#allocation5 + $0x2700] sm:$0xff]  ;;  %v1343_v10 = vld [vmem:[#allocation5 + $0x2708] sm:$0xff]  ;;  %v8624_v23 = vpack.c.bf16 %v1361_v25, %v1360_v24 }
 0x28d   :  { %8523 = vmatpush3.bf16.msra.mxu1 %v8522_v30  ;;  %v1305_v30 = vld [vmem:[#allocation5 + $0x25d8] sm:$0xff]  ;;  %v1330_v37 = vld [vmem:[#allocation5 + $0x26a0] sm:$0xff]  ;;  %v1331_v39 = vld [vmem:[#allocation5 + $0x26a8] sm:$0xff] }
 0x28e   :  { %8557 = vmatprep.subr.bf16.mxu1 %v8556_v22  ;;  %4610 = vmatmul.mubr.f32.vlgmr.msra.gmra.mrb[34].mxu0 %v9398_v49  ;;  %v1268_v49 = vld [vmem:[#allocation5 + $0x24b0] sm:$0xff]  ;;  %v1257_v22 = vld [vmem:[#allocation5 + $0x2458] sm:$0xff]  ;;  %v8576_v36 = vpack.c.bf16 %v1305_v30, %v1304_v29  ;;  %v1367_v4 = vld [vmem:[#allocation5 + $0x27c8] sm:$0xff] }
 0x28f   :  { %8527 = vmatpush3.bf16.msra.mxu0 %v8526_v52  ;;  %4749 = vmatprep.mubr.f32.mxu0 %v1982_v54  ;;  %v8536_v5 = vpack.c.bf16 %v1269_v3, %v1268_v49  ;;  %v1306_v52 = vld [vmem:[#allocation5 + $0x25e0] sm:$0xff]  ;;  %v1291_v54 = vld [vmem:[#allocation5 + $0x2568] sm:$0xff]  ;;  %v8552_v3 = vpack.c.bf16 %v1277_v55, %v1276_v59  ;;  %v1333_v59 = vld [vmem:[#allocation5 + $0x26b8] sm:$0xff] }
 0x290   :  { %4680 = vmatmul.mubr.f32.vlgmr.msra.gmra.mrb[34].mxu1 %v9401_v33  ;;  %8529 = vmatprep.subr.bf16.mxu0 %v8528_v27  ;;  %v8566_v33 = vpack.c.bf16 %v1283_v45, %v1282_v62  ;;  %v8546_v27 = vpack.c.bf16 %v1257_v22, %v1256_v34  ;;  %v8582_v49 = vpack.c.bf16 %v1291_v54, %v1290_v47  ;;  %v1313_v34 = vld [vmem:[#allocation5 + $0x2618] sm:$0xff]  ;;  %v1344_v22 = vld [vmem:[#allocation5 + $0x2710] sm:$0xff]  ;;  %v1315_v47 = vld [vmem:[#allocation5 + $0x2628] sm:$0xff] }
 0x291   :  { %8559 = vmatpush3.bf16.msra.mxu1 %v8558_v44  ;;  %4819 = vmatprep.mubr.f32.mxu1 %v1983_v35  ;;  %v1307_v44 = vld [vmem:[#allocation5 + $0x25e8] sm:$0xff]  ;;  %v1364_v55 = vld [vmem:[#allocation5 + $0x27b0] sm:$0xff]  ;;  %v1338_v24 = vld [vmem:[#allocation5 + $0x26e0] sm:$0xff] }
 0x292   :  { %8561 = vmatprep.subr.bf16.mxu1 %v8560_v42  ;;  %v1259_v42 = vld [vmem:[#allocation5 + $0x2468] sm:$0xff]  ;;  %v8580_v53 = vpack.c.bf16 %v1307_v44, %v1306_v52  ;;  %v1362_v52 = vld [vmem:[#allocation5 + $0x27a0] sm:$0xff] }
 0x293   :  { %8531 = vmatpush3.bf16.msra.mxu0 %v8530_v41  ;;  %v8550_v62 = vpack.c.bf16 %v1259_v42, %v1258_v38  ;;  %v1363_v44 = vld [vmem:[#allocation5 + $0x27a8] sm:$0xff]  ;;  %v8596_v38 = vpack.c.bf16 %v1331_v39, %v1330_v37  ;;  %v1314_v42 = vld [vmem:[#allocation5 + $0x2620] sm:$0xff] }
 0x294   :  { %8533 = vmatprep.subr.bf16.mxu0 %v8532_v50  ;;  %v1309_v50 = vld [vmem:[#allocation5 + $0x25f8] sm:$0xff]  ;;  %v1347_v54 = vld [vmem:[#allocation5 + $0x2728] sm:$0xff] }
 0x295   :  { %8563 = vmatpush3.bf16.msra.mxu1 %v8562_v60  ;;  %v1308_v60 = vld [vmem:[#allocation5 + $0x25f0] sm:$0xff]  ;;  %v1339_v25 = vld [vmem:[#allocation5 + $0x26e8] sm:$0xff] }
 0x296   :  { %8565 = vmatprep.subr.bf16.mxu1 %v8564_v0  ;;  %v89_v0 = vld [vmem:[#allocation2 + $0x98] sm:$0xff] }
 0x297   :  { %8535 = vmatpush3.bf16.msra.mxu0 %v8534_v57  ;;  %v1292_v57 = vld [vmem:[#allocation5 + $0x2570] sm:$0xff]  ;;  %v1984_v16 = vcombine.high %v89_v0, %v89_v0  ;;  %v9428_v15 = vrot.slane %v89_v0, %v9174_v13  ;;  %v1349_v0 = vld [vmem:[#allocation5 + $0x2738] sm:$0xff] }
 0x298   :  { %8537 = vmatprep.subr.bf16.mxu0 %v8536_v5  ;;  %v8584_v5 = vpack.c.bf16 %v1309_v50, %v1308_v60  ;;  %v8586_v19 = vpack.c.bf16 %v1293_v58, %v1292_v57  ;;  %v1316_v50 = vld [vmem:[#allocation5 + $0x2630] sm:$0xff]  ;;  %v1319_v58 = vld [vmem:[#allocation5 + $0x2648] sm:$0xff] }
 0x299   :  { %8567 = vmatpush3.bf16.msra.mxu1 %v8566_v33  ;;  %v9431_v29 = vrot.slane %v1984_v16, %v9174_v13  ;;  %v1999_v40 = vcombine.high %v9428_v15, %v9428_v15  ;;  %v1337_v16 = vld [vmem:[#allocation5 + $0x26d8] sm:$0xff] }
 0x29a   :  { %8569 = vmatprep.subr.bf16.mxu1 %v8568_v7  ;;  %v1358_v7 = vld [vmem:[#allocation5 + $0x2780] sm:$0xff] }
 0x29b   :  { %8539 = vmatpush3.bf16.msra.mxu0 %v8538_v12  ;;  %v8588_v12 = vpack.c.bf16 %v1327_v6, %v1326_v8  ;;  %v1350_v8 = vld [vmem:[#allocation5 + $0x2740] sm:$0xff] }
 0x29c   :  { %8541 = vmatprep.subr.bf16.mxu0 %v8540_v2  ;;  %v1311_v2 = vld [vmem:[#allocation5 + $0x2608] sm:$0xff] }
 0x29d   :  { %8571 = vmatpush3.bf16.msra.mxu1 %v8570_v1  ;;  %v1310_v1 = vld [vmem:[#allocation5 + $0x2600] sm:$0xff] }
 0x29e   :  { %8573 = vmatprep.subr.bf16.mxu1 %v8572_v21  ;;  %v1329_v21 = vld [vmem:[#allocation5 + $0x2698] sm:$0xff]  ;;  %v8590_v30 = vpack.c.bf16 %v1311_v2, %v1310_v1 }
 0x29f   :  { %8543 = vmatpush3.bf16.msra.mxu0 %v8542_v32  ;;  %v8622_v32 = vpack.c.bf16 %v1343_v10, %v1342_v20  ;;  %v1320_v20 = vld [vmem:[#allocation5 + $0x2650] sm:$0xff] }
 0x2a0   :  { %8545 = vmatprep.subr.bf16.mxu0 %v8544_v11  ;;  %v1312_v11 = vld [vmem:[#allocation5 + $0x2610] sm:$0xff] }
 0x2a1   :  { %8575 = vmatpush3.bf16.msra.mxu1 %v8574_v17  ;;  %v6442_v48 = vpop.f32.mrb[22].mxu0  ;;  %v8592_v17 = vpack.c.bf16 %v1329_v21, %v1328_v26  ;;  %v1352_v10 = vld [vmem:[#allocation5 + $0x2750] sm:$0xff]  ;;  %v1353_v21 = vld [vmem:[#allocation5 + $0x2758] sm:$0xff] }
 0x2a2   :  { %8577 = vmatprep.subr.bf16.mxu1 %v8576_v36  ;;  %v6443_v35 = vpop.f32.mrb[23].mxu0  ;;  %v1345_v36 = vld [vmem:[#allocation5 + $0x2718] sm:$0xff] }
 0x2a3   :  { %v6477_v41 = vpop.f32.mrb[22].mxu1  ;;  %v6444_v51 = vadd.f32 %v6443_v35, %v6442_v48  ;;  %8547 = vmatpush3.bf16.msra.mxu0 %v8546_v27  ;;  %v2000_v27 = vcombine.high %v9431_v29, %v9431_v29  ;;  %v1346_v48 = vld [vmem:[#allocation5 + $0x2720] sm:$0xff]  ;;  %v1365_v35 = vld [vmem:[#allocation5 + $0x27b8] sm:$0xff] }
 0x2a4   :  { %v6478_v61 = vpop.f32.mrb[23].mxu1  ;;  %8549 = vmatprep.subr.bf16.mxu0 %v8548_v46  ;;  %v8626_v46 = vpack.c.bf16 %v1345_v36, %v1344_v22  ;;  %v1322_v22 = vld [vmem:[#allocation5 + $0x2660] sm:$0xff] }
 0x2a5   :  { %v6479_v45 = vadd.f32 %v6478_v61, %v6477_v41  ;;  %8579 = vmatpush3.bf16.msra.mxu1 %v8578_v28  ;;  %v3772_v33 = vadd.f32 %v6444_v51, %v9410_v9  ;;  %v8620_v9 = vpack.c.bf16 %v1359_v14, %v1358_v7  ;;  %v8594_v28 = vpack.c.bf16 %v1313_v34, %v1312_v11  ;;  %v1317_v51 = vld [vmem:[#allocation5 + $0x2638] sm:$0xff]  ;;  %v1348_v61 = vld [vmem:[#allocation5 + $0x2730] sm:$0xff]  ;;  %v1351_v7 = vld [vmem:[#allocation5 + $0x2748] sm:$0xff] }
 0x2a6   :  { %8581 = vmatprep.subr.bf16.mxu1 %v8580_v53  ;;  %v8628_v53 = vpack.c.bf16 %v1363_v44, %v1362_v52  ;;  %v8598_v41 = vpack.c.bf16 %v1315_v47, %v1314_v42  ;;  %v8602_v56 = vpack.c.bf16 %v1317_v51, %v1316_v50  ;;  %v8634_v57 = vpack.c.bf16 %v1349_v0, %v1348_v61  ;;  %v1336_v14 = vld [vmem:[#allocation5 + $0x26d0] sm:$0xff]  ;;  %v1354_v36 = vld [vmem:[#allocation5 + $0x2760] sm:$0xff]  ;;  %v1341_v44 = vld [vmem:[#allocation5 + $0x26f8] sm:$0xff] }
 0x2a7   :  { %v9425_v63 = vadd.f32 %v6479_v45, %v3772_v33  ;;  %8551 = vmatpush3.bf16.msra.mxu0 %v8550_v62  ;;  %v8632_v62 = vpack.c.bf16 %v1365_v35, %v1364_v55  ;;  %v1334_v45 = vld [vmem:[#allocation5 + $0x26c0] sm:$0xff]  ;;  %v8638_v1 = vpack.c.bf16 %v1351_v7, %v1350_v8  ;;  %v8608_v2 = vpack.c.bf16 %v1337_v16, %v1336_v14  ;;  %v1340_v52 = vld [vmem:[#allocation5 + $0x26f0] sm:$0xff]  ;;  %v1325_v35 = vld [vmem:[#allocation5 + $0x2678] sm:$0xff] }
 0x2a8   :  { %8553 = vmatprep.subr.bf16.mxu0 %v8552_v3  ;;  %v1366_v3 = vld [vmem:[#allocation5 + $0x27c0] sm:$0xff]  ;;  %v8642_v11 = vpack.c.bf16 %v1353_v21, %v1352_v10  ;;  %v8612_v34 = vpack.c.bf16 %v1339_v25, %v1338_v24  ;;  %v1324_v55 = vld [vmem:[#allocation5 + $0x2670] sm:$0xff]  ;;  %v1357_v50 = vld [vmem:[#allocation5 + $0x2778] sm:$0xff] }
 0x2a9   :  { %8583 = vmatpush3.bf16.msra.mxu1 %v8582_v49  ;;  %v1335_v49 = vld [vmem:[#allocation5 + $0x26c8] sm:$0xff]  ;;  %v8636_v6 = vpack.c.bf16 %v1367_v4, %v1366_v3  ;;  %v1390_v51 = vld [vmem:[#allocation5 + $0x2880] sm:$0xff]  ;;  %v8618_v3 = vpack.c.bf16 %v1325_v35, %v1324_v55  ;;  %v1392_v8 = vld [vmem:[#allocation5 + $0x2890] sm:$0xff] }
 0x2aa   :  { %8585 = vmatprep.subr.bf16.mxu1 %v8584_v5  ;;  %v8604_v33 = vpack.c.bf16 %v1335_v49, %v1334_v45  ;;  %v1318_v5 = vld [vmem:[#allocation5 + $0x2640] sm:$0xff]  ;;  %v1391_v61 = vld [vmem:[#allocation5 + $0x2888] sm:$0xff]  ;;  %v1424_v14 = vld [vmem:[#allocation5 + $0x2990] sm:$0xff] }
 0x2ab   :  { %8555 = vmatpush3.bf16.msra.mxu0 %v8554_v18  ;;  %v1368_v18 = vld [vmem:[#allocation5 + $0x27d0] sm:$0xff]  ;;  %v1423_v0 = vld [vmem:[#allocation5 + $0x2988] sm:$0xff]  ;;  %v1425_v16 = vld [vmem:[#allocation5 + $0x2998] sm:$0xff] }
 0x2ac   :  { %8589 = vmatprep.subr.bf16.mxu0 %v8588_v12  ;;  %v8606_v12 = vpack.c.bf16 %v1319_v58, %v1318_v5  ;;  %v1406_v5 = vld [vmem:[#allocation5 + $0x2900] sm:$0xff]  ;;  %v1407_v58 = vld [vmem:[#allocation5 + $0x2908] sm:$0xff]  ;;  %v8688_v10 = vpack.c.bf16 %v1425_v16, %v1424_v14 }
 0x2ad   :  { %8587 = vmatpush3.bf16.msra.mxu1 %v8586_v19  ;;  %v1369_v19 = vld [vmem:[#allocation5 + $0x27d8] sm:$0xff]  ;;  %v1394_v21 = vld [vmem:[#allocation5 + $0x28a0] sm:$0xff]  ;;  %v1395_v24 = vld [vmem:[#allocation5 + $0x28a8] sm:$0xff] }
 0x2ae   :  { %8621 = vmatprep.subr.bf16.mxu1 %v8620_v9  ;;  %4750 = vmatmul.mubr.f32.vlgmr.msra.gmra.mrb[36].mxu0 %v9413_v31  ;;  %v1332_v31 = vld [vmem:[#allocation5 + $0x26b0] sm:$0xff]  ;;  %v1321_v9 = vld [vmem:[#allocation5 + $0x2658] sm:$0xff]  ;;  %v8640_v26 = vpack.c.bf16 %v1369_v19, %v1368_v18  ;;  %v1431_v55 = vld [vmem:[#allocation5 + $0x29c8] sm:$0xff] }
 0x2af   :  { %8591 = vmatpush3.bf16.msra.mxu0 %v8590_v30  ;;  %4889 = vmatprep.mubr.f32.mxu0 %v1999_v40  ;;  %v8600_v60 = vpack.c.bf16 %v1333_v59, %v1332_v31  ;;  %v1370_v30 = vld [vmem:[#allocation5 + $0x27e0] sm:$0xff]  ;;  %v1355_v40 = vld [vmem:[#allocation5 + $0x2768] sm:$0xff]  ;;  %v8616_v59 = vpack.c.bf16 %v1341_v44, %v1340_v52  ;;  %v1397_v52 = vld [vmem:[#allocation5 + $0x28b8] sm:$0xff] }
 0x2b0   :  { %4820 = vmatmul.mubr.f32.vlgmr.msra.gmra.mrb[36].mxu1 %v9416_v43  ;;  %8593 = vmatprep.subr.bf16.mxu0 %v8592_v17  ;;  %v8630_v43 = vpack.c.bf16 %v1347_v54, %v1346_v48  ;;  %v8610_v17 = vpack.c.bf16 %v1321_v9, %v1320_v20  ;;  %v8646_v31 = vpack.c.bf16 %v1355_v40, %v1354_v36  ;;  %v1377_v20 = vld [vmem:[#allocation5 + $0x2818] sm:$0xff]  ;;  %v1408_v9 = vld [vmem:[#allocation5 + $0x2910] sm:$0xff]  ;;  %v1379_v36 = vld [vmem:[#allocation5 + $0x2828] sm:$0xff] }
 0x2b1   :  { %8623 = vmatpush3.bf16.msra.mxu1 %v8622_v32  ;;  %4959 = vmatprep.mubr.f32.mxu1 %v2000_v27  ;;  %v1371_v32 = vld [vmem:[#allocation5 + $0x27e8] sm:$0xff]  ;;  %v1428_v44 = vld [vmem:[#allocation5 + $0x29b0] sm:$0xff]  ;;  %v1402_v14 = vld [vmem:[#allocation5 + $0x28e0] sm:$0xff] }
 0x2b2   :  { %8625 = vmatprep.subr.bf16.mxu1 %v8624_v23  ;;  %v1323_v23 = vld [vmem:[#allocation5 + $0x2668] sm:$0xff]  ;;  %v8644_v39 = vpack.c.bf16 %v1371_v32, %v1370_v30  ;;  %v1426_v30 = vld [vmem:[#allocation5 + $0x29a0] sm:$0xff] }
 0x2b3   :  { %8595 = vmatpush3.bf16.msra.mxu0 %v8594_v28  ;;  %v8614_v48 = vpack.c.bf16 %v1323_v23, %v1322_v22  ;;  %v1427_v32 = vld [vmem:[#allocation5 + $0x29a8] sm:$0xff]  ;;  %v8660_v22 = vpack.c.bf16 %v1395_v24, %v1394_v21  ;;  %v1378_v23 = vld [vmem:[#allocation5 + $0x2820] sm:$0xff] }
 0x2b4   :  { %8597 = vmatprep.subr.bf16.mxu0 %v8596_v38  ;;  %v1373_v38 = vld [vmem:[#allocation5 + $0x27f8] sm:$0xff]  ;;  %v1411_v40 = vld [vmem:[#allocation5 + $0x2928] sm:$0xff] }
 0x2b5   :  { %8627 = vmatpush3.bf16.msra.mxu1 %v8626_v46  ;;  %v1372_v46 = vld [vmem:[#allocation5 + $0x27f0] sm:$0xff]  ;;  %v1403_v16 = vld [vmem:[#allocation5 + $0x28e8] sm:$0xff] }
 0x2b6   :  { %8629 = vmatprep.subr.bf16.mxu1 %v8628_v53  ;;  %v90_v53 = vld [vmem:[#allocation2 + $0xa0] sm:$0xff] }
 0x2b7   :  { %8599 = vmatpush3.bf16.msra.mxu0 %v8598_v41  ;;  %v1356_v41 = vld [vmem:[#allocation5 + $0x2770] sm:$0xff]  ;;  %v2001_v45 = vcombine.high %v90_v53, %v90_v53  ;;  %v9443_v7 = vrot.slane %v90_v53, %v9174_v13  ;;  %v1413_v53 = vld [vmem:[#allocation5 + $0x2938] sm:$0xff] }
 0x2b8   :  { %8601 = vmatprep.subr.bf16.mxu0 %v8600_v60  ;;  %v8648_v60 = vpack.c.bf16 %v1373_v38, %v1372_v46  ;;  %v8650_v4 = vpack.c.bf16 %v1357_v50, %v1356_v41  ;;  %v1380_v38 = vld [vmem:[#allocation5 + $0x2830] sm:$0xff]  ;;  %v1383_v50 = vld [vmem:[#allocation5 + $0x2848] sm:$0xff] }
 0x2b9   :  { %8631 = vmatpush3.bf16.msra.mxu1 %v8630_v43  ;;  %v9446_v18 = vrot.slane %v2001_v45, %v9174_v13  ;;  %v2016_v25 = vcombine.high %v9443_v7, %v9443_v7  ;;  %v1401_v45 = vld [vmem:[#allocation5 + $0x28d8] sm:$0xff] }
 0x2ba   :  { %8633 = vmatprep.subr.bf16.mxu1 %v8632_v62  ;;  %v1422_v62 = vld [vmem:[#allocation5 + $0x2980] sm:$0xff] }
 0x2bb   :  { %8603 = vmatpush3.bf16.msra.mxu0 %v8602_v56  ;;  %v8652_v56 = vpack.c.bf16 %v1391_v61, %v1390_v51  ;;  %v1414_v51 = vld [vmem:[#allocation5 + $0x2940] sm:$0xff] }
 0x2bc   :  { %8605 = vmatprep.subr.bf16.mxu0 %v8604_v33  ;;  %v1375_v33 = vld [vmem:[#allocation5 + $0x2808] sm:$0xff] }
 0x2bd   :  { %8635 = vmatpush3.bf16.msra.mxu1 %v8634_v57  ;;  %v1374_v57 = vld [vmem:[#allocation5 + $0x2800] sm:$0xff] }
 0x2be   :  { %8637 = vmatprep.subr.bf16.mxu1 %v8636_v6  ;;  %v1393_v6 = vld [vmem:[#allocation5 + $0x2898] sm:$0xff]  ;;  %v8654_v19 = vpack.c.bf16 %v1375_v33, %v1374_v57 }
 0x2bf   :  { %8607 = vmatpush3.bf16.msra.mxu0 %v8606_v12  ;;  %v8686_v12 = vpack.c.bf16 %v1407_v58, %v1406_v5  ;;  %v1384_v5 = vld [vmem:[#allocation5 + $0x2850] sm:$0xff] }
 0x2c0   :  { %8609 = vmatprep.subr.bf16.mxu0 %v8608_v2  ;;  %v1376_v2 = vld [vmem:[#allocation5 + $0x2810] sm:$0xff] }
 0x2c1   :  { %8639 = vmatpush3.bf16.msra.mxu1 %v8638_v1  ;;  %v6512_v37 = vpop.f32.mrb[24].mxu0  ;;  %v8656_v1 = vpack.c.bf16 %v1393_v6, %v1392_v8  ;;  %v1416_v58 = vld [vmem:[#allocation5 + $0x2950] sm:$0xff]  ;;  %v1417_v6 = vld [vmem:[#allocation5 + $0x2958] sm:$0xff] }
 0x2c2   :  { %8641 = vmatprep.subr.bf16.mxu1 %v8640_v26  ;;  %v6513_v27 = vpop.f32.mrb[25].mxu0  ;;  %v1409_v26 = vld [vmem:[#allocation5 + $0x2918] sm:$0xff] }
 0x2c3   :  { %v6547_v28 = vpop.f32.mrb[24].mxu1  ;;  %v6514_v42 = vadd.f32 %v6513_v27, %v6512_v37  ;;  %8611 = vmatpush3.bf16.msra.mxu0 %v8610_v17  ;;  %v2017_v17 = vcombine.high %v9446_v18, %v9446_v18  ;;  %v1410_v37 = vld [vmem:[#allocation5 + $0x2920] sm:$0xff]  ;;  %v1429_v27 = vld [vmem:[#allocation5 + $0x29b8] sm:$0xff] }
 0x2c4   :  { %v6548_v47 = vpop.f32.mrb[25].mxu1  ;;  %8613 = vmatprep.subr.bf16.mxu0 %v8612_v34  ;;  %v8690_v34 = vpack.c.bf16 %v1409_v26, %v1408_v9  ;;  %v1386_v9 = vld [vmem:[#allocation5 + $0x2860] sm:$0xff] }
 0x2c5   :  { %v6549_v54 = vadd.f32 %v6548_v47, %v6547_v28  ;;  %8643 = vmatpush3.bf16.msra.mxu1 %v8642_v11  ;;  %v3912_v43 = vadd.f32 %v6514_v42, %v9425_v63  ;;  %v8684_v63 = vpack.c.bf16 %v1423_v0, %v1422_v62  ;;  %v8658_v11 = vpack.c.bf16 %v1377_v20, %v1376_v2  ;;  %v1381_v42 = vld [vmem:[#allocation5 + $0x2838] sm:$0xff]  ;;  %v1412_v47 = vld [vmem:[#allocation5 + $0x2930] sm:$0xff]  ;;  %v1415_v62 = vld [vmem:[#allocation5 + $0x2948] sm:$0xff] }
 0x2c6   :  { %8645 = vmatprep.subr.bf16.mxu1 %v8644_v39  ;;  %v8692_v39 = vpack.c.bf16 %v1427_v32, %v1426_v30  ;;  %v8662_v28 = vpack.c.bf16 %v1379_v36, %v1378_v23  ;;  %v8666_v35 = vpack.c.bf16 %v1381_v42, %v1380_v38  ;;  %v8698_v41 = vpack.c.bf16 %v1413_v53, %v1412_v47  ;;  %v1400_v0 = vld [vmem:[#allocation5 + $0x28d0] sm:$0xff]  ;;  %v1418_v26 = vld [vmem:[#allocation5 + $0x2960] sm:$0xff]  ;;  %v1405_v32 = vld [vmem:[#allocation5 + $0x28f8] sm:$0xff] }
 0x2c7   :  { %v9440_v49 = vadd.f32 %v6549_v54, %v3912_v43  ;;  %8615 = vmatpush3.bf16.msra.mxu0 %v8614_v48  ;;  %v8696_v48 = vpack.c.bf16 %v1429_v27, %v1428_v44  ;;  %v1398_v54 = vld [vmem:[#allocation5 + $0x28c0] sm:$0xff]  ;;  %v8702_v57 = vpack.c.bf16 %v1415_v62, %v1414_v51  ;;  %v8672_v33 = vpack.c.bf16 %v1401_v45, %v1400_v0  ;;  %v1404_v30 = vld [vmem:[#allocation5 + $0x28f0] sm:$0xff]  ;;  %v1389_v27 = vld [vmem:[#allocation5 + $0x2878] sm:$0xff] }
 0x2c8   :  { %8617 = vmatprep.subr.bf16.mxu0 %v8616_v59  ;;  %v1430_v59 = vld [vmem:[#allocation5 + $0x29c0] sm:$0xff]  ;;  %v8706_v2 = vpack.c.bf16 %v1417_v6, %v1416_v58  ;;  %v8676_v20 = vpack.c.bf16 %v1403_v16, %v1402_v14  ;;  %v1388_v44 = vld [vmem:[#allocation5 + $0x2870] sm:$0xff]  ;;  %v1421_v38 = vld [vmem:[#allocation5 + $0x2978] sm:$0xff] }
 0x2c9   :  { %8647 = vmatpush3.bf16.msra.mxu1 %v8646_v31  ;;  %v1399_v31 = vld [vmem:[#allocation5 + $0x28c8] sm:$0xff]  ;;  %v8700_v61 = vpack.c.bf16 %v1431_v55, %v1430_v59  ;;  %v1454_v42 = vld [vmem:[#allocation5 + $0x2a80] sm:$0xff]  ;;  %v8682_v59 = vpack.c.bf16 %v1389_v27, %v1388_v44  ;;  %v1456_v51 = vld [vmem:[#allocation5 + $0x2a90] sm:$0xff] }
 0x2ca   :  { %8649 = vmatprep.subr.bf16.mxu1 %v8648_v60  ;;  %v8668_v43 = vpack.c.bf16 %v1399_v31, %v1398_v54  ;;  %v1382_v60 = vld [vmem:[#allocation5 + $0x2840] sm:$0xff]  ;;  %v1455_v47 = vld [vmem:[#allocation5 + $0x2a88] sm:$0xff]  ;;  %v1488_v0 = vld [vmem:[#allocation5 + $0x2b90] sm:$0xff] }
 0x2cb   :  { %8619 = vmatpush3.bf16.msra.mxu0 %v8618_v3  ;;  %v1432_v3 = vld [vmem:[#allocation5 + $0x29d0] sm:$0xff]  ;;  %v1487_v53 = vld [vmem:[#allocation5 + $0x2b88] sm:$0xff]  ;;  %v1489_v45 = vld [vmem:[#allocation5 + $0x2b98] sm:$0xff] }
 0x2cc   :  { %8653 = vmatprep.subr.bf16.mxu0 %v8652_v56  ;;  %v8670_v56 = vpack.c.bf16 %v1383_v50, %v1382_v60  ;;  %v1470_v60 = vld [vmem:[#allocation5 + $0x2b00] sm:$0xff]  ;;  %v1471_v50 = vld [vmem:[#allocation5 + $0x2b08] sm:$0xff]  ;;  %v8752_v58 = vpack.c.bf16 %v1489_v45, %v1488_v0 }
 0x2cd   :  { %8651 = vmatpush3.bf16.msra.mxu1 %v8650_v4  ;;  %v1433_v4 = vld [vmem:[#allocation5 + $0x29d8] sm:$0xff]  ;;  %v1458_v6 = vld [vmem:[#allocation5 + $0x2aa0] sm:$0xff]  ;;  %v1459_v14 = vld [vmem:[#allocation5 + $0x2aa8] sm:$0xff] }
 0x2ce   :  { %8685 = vmatprep.subr.bf16.mxu1 %v8684_v63  ;;  %4890 = vmatmul.mubr.f32.vlgmr.msra.gmra.mrb[38].mxu0 %v9428_v15  ;;  %v1396_v15 = vld [vmem:[#allocation5 + $0x28b0] sm:$0xff]  ;;  %v1385_v63 = vld [vmem:[#allocation5 + $0x2858] sm:$0xff]  ;;  %v8704_v8 = vpack.c.bf16 %v1433_v4, %v1432_v3  ;;  %v1495_v44 = vld [vmem:[#allocation5 + $0x2bc8] sm:$0xff] }
 0x2cf   :  { %8655 = vmatpush3.bf16.msra.mxu0 %v8654_v19  ;;  %5029 = vmatprep.mubr.f32.mxu0 %v2016_v25  ;;  %v8664_v46 = vpack.c.bf16 %v1397_v52, %v1396_v15  ;;  %v1434_v19 = vld [vmem:[#allocation5 + $0x29e0] sm:$0xff]  ;;  %v1419_v25 = vld [vmem:[#allocation5 + $0x2968] sm:$0xff]  ;;  %v8680_v52 = vpack.c.bf16 %v1405_v32, %v1404_v30  ;;  %v1461_v30 = vld [vmem:[#allocation5 + $0x2ab8] sm:$0xff] }
 0x2d0   :  { %4960 = vmatmul.mubr.f32.vlgmr.msra.gmra.mrb[38].mxu1 %v9431_v29  ;;  %8657 = vmatprep.subr.bf16.mxu0 %v8656_v1  ;;  %v8694_v29 = vpack.c.bf16 %v1411_v40, %v1410_v37  ;;  %v8674_v1 = vpack.c.bf16 %v1385_v63, %v1384_v5  ;;  %v8710_v15 = vpack.c.bf16 %v1419_v25, %v1418_v26  ;;  %v1441_v5 = vld [vmem:[#allocation5 + $0x2a18] sm:$0xff]  ;;  %v1472_v63 = vld [vmem:[#allocation5 + $0x2b10] sm:$0xff]  ;;  %v1443_v26 = vld [vmem:[#allocation5 + $0x2a28] sm:$0xff] }
 0x2d1   :  { %8687 = vmatpush3.bf16.msra.mxu1 %v8686_v12  ;;  %5099 = vmatprep.mubr.f32.mxu1 %v2017_v17  ;;  %v1435_v12 = vld [vmem:[#allocation5 + $0x29e8] sm:$0xff]  ;;  %v1492_v32 = vld [vmem:[#allocation5 + $0x2bb0] sm:$0xff]  ;;  %v1466_v0 = vld [vmem:[#allocation5 + $0x2ae0] sm:$0xff] }
 0x2d2   :  { %8689 = vmatprep.subr.bf16.mxu1 %v8688_v10  ;;  %v1387_v10 = vld [vmem:[#allocation5 + $0x2868] sm:$0xff]  ;;  %v8708_v24 = vpack.c.bf16 %v1435_v12, %v1434_v19  ;;  %v1490_v19 = vld [vmem:[#allocation5 + $0x2ba0] sm:$0xff] }
 0x2d3   :  { %8659 = vmatpush3.bf16.msra.mxu0 %v8658_v11  ;;  %v8678_v37 = vpack.c.bf16 %v1387_v10, %v1386_v9  ;;  %v1491_v12 = vld [vmem:[#allocation5 + $0x2ba8] sm:$0xff]  ;;  %v8724_v9 = vpack.c.bf16 %v1459_v14, %v1458_v6  ;;  %v1442_v10 = vld [vmem:[#allocation5 + $0x2a20] sm:$0xff] }
 0x2d4   :  { %8661 = vmatprep.subr.bf16.mxu0 %v8660_v22  ;;  %v1437_v22 = vld [vmem:[#allocation5 + $0x29f8] sm:$0xff]  ;;  %v1475_v25 = vld [vmem:[#allocation5 + $0x2b28] sm:$0xff] }
 0x2d5   :  { %8691 = vmatpush3.bf16.msra.mxu1 %v8690_v34  ;;  %v1436_v34 = vld [vmem:[#allocation5 + $0x29f0] sm:$0xff]  ;;  %v1467_v45 = vld [vmem:[#allocation5 + $0x2ae8] sm:$0xff] }
 0x2d6   :  { %8693 = vmatprep.subr.bf16.mxu1 %v8692_v39  ;;  %v91_v39 = vld [vmem:[#allocation2 + $0xa8] sm:$0xff] }
 0x2d7   :  { %8663 = vmatpush3.bf16.msra.mxu0 %v8662_v28  ;;  %v1420_v28 = vld [vmem:[#allocation5 + $0x2970] sm:$0xff]  ;;  %v2018_v54 = vcombine.high %v91_v39, %v91_v39  ;;  %v9458_v62 = vrot.slane %v91_v39, %v9174_v13  ;;  %v1477_v39 = vld [vmem:[#allocation5 + $0x2b38] sm:$0xff] }
 0x2d8   :  { %8665 = vmatprep.subr.bf16.mxu0 %v8664_v46  ;;  %v8712_v46 = vpack.c.bf16 %v1437_v22, %v1436_v34  ;;  %v8714_v55 = vpack.c.bf16 %v1421_v38, %v1420_v28  ;;  %v1444_v22 = vld [vmem:[#allocation5 + $0x2a30] sm:$0xff]  ;;  %v1447_v38 = vld [vmem:[#allocation5 + $0x2a48] sm:$0xff] }
 0x2d9   :  { %8695 = vmatpush3.bf16.msra.mxu1 %v8694_v29  ;;  %v9461_v3 = vrot.slane %v2018_v54, %v9174_v13  ;;  %v2033_v16 = vcombine.high %v9458_v62, %v9458_v62  ;;  %v1465_v54 = vld [vmem:[#allocation5 + $0x2ad8] sm:$0xff] }
 0x2da   :  { %8697 = vmatprep.subr.bf16.mxu1 %v8696_v48  ;;  %v1486_v48 = vld [vmem:[#allocation5 + $0x2b80] sm:$0xff] }
 0x2db   :  { %8667 = vmatpush3.bf16.msra.mxu0 %v8666_v35  ;;  %v8716_v35 = vpack.c.bf16 %v1455_v47, %v1454_v42  ;;  %v1478_v42 = vld [vmem:[#allocation5 + $0x2b40] sm:$0xff] }
 0x2dc   :  { %8669 = vmatprep.subr.bf16.mxu0 %v8668_v43  ;;  %v1439_v43 = vld [vmem:[#allocation5 + $0x2a08] sm:$0xff] }
 0x2dd   :  { %8699 = vmatpush3.bf16.msra.mxu1 %v8698_v41  ;;  %v1438_v41 = vld [vmem:[#allocation5 + $0x2a00] sm:$0xff] }
 0x2de   :  { %8701 = vmatprep.subr.bf16.mxu1 %v8700_v61  ;;  %v1457_v61 = vld [vmem:[#allocation5 + $0x2a98] sm:$0xff]  ;;  %v8718_v4 = vpack.c.bf16 %v1439_v43, %v1438_v41 }
 0x2df   :  { %8671 = vmatpush3.bf16.msra.mxu0 %v8670_v56  ;;  %v8750_v56 = vpack.c.bf16 %v1471_v50, %v1470_v60  ;;  %v1448_v60 = vld [vmem:[#allocation5 + $0x2a50] sm:$0xff] }
 0x2e0   :  { %8673 = vmatprep.subr.bf16.mxu0 %v8672_v33  ;;  %v1440_v33 = vld [vmem:[#allocation5 + $0x2a10] sm:$0xff] }
 0x2e1   :  { %8703 = vmatpush3.bf16.msra.mxu1 %v8702_v57  ;;  %v6582_v21 = vpop.f32.mrb[26].mxu0  ;;  %v8720_v57 = vpack.c.bf16 %v1457_v61, %v1456_v51  ;;  %v1480_v50 = vld [vmem:[#allocation5 + $0x2b50] sm:$0xff]  ;;  %v1481_v61 = vld [vmem:[#allocation5 + $0x2b58] sm:$0xff] }
 0x2e2   :  { %8705 = vmatprep.subr.bf16.mxu1 %v8704_v8  ;;  %v6583_v17 = vpop.f32.mrb[27].mxu0  ;;  %v1473_v8 = vld [vmem:[#allocation5 + $0x2b18] sm:$0xff] }
 0x2e3   :  { %v6617_v11 = vpop.f32.mrb[26].mxu1  ;;  %v6584_v23 = vadd.f32 %v6583_v17, %v6582_v21  ;;  %8675 = vmatpush3.bf16.msra.mxu0 %v8674_v1  ;;  %v2034_v1 = vcombine.high %v9461_v3, %v9461_v3  ;;  %v1474_v21 = vld [vmem:[#allocation5 + $0x2b20] sm:$0xff]  ;;  %v1493_v17 = vld [vmem:[#allocation5 + $0x2bb8] sm:$0xff] }
 0x2e4   :  { %v6618_v36 = vpop.f32.mrb[27].mxu1  ;;  %8677 = vmatprep.subr.bf16.mxu0 %v8676_v20  ;;  %v8754_v20 = vpack.c.bf16 %v1473_v8, %v1472_v63  ;;  %v1450_v63 = vld [vmem:[#allocation5 + $0x2a60] sm:$0xff] }
 0x2e5   :  { %v6619_v40 = vadd.f32 %v6618_v36, %v6617_v11  ;;  %8707 = vmatpush3.bf16.msra.mxu1 %v8706_v2  ;;  %v4052_v29 = vadd.f32 %v6584_v23, %v9440_v49  ;;  %v8748_v49 = vpack.c.bf16 %v1487_v53, %v1486_v48  ;;  %v8722_v2 = vpack.c.bf16 %v1441_v5, %v1440_v33  ;;  %v1445_v23 = vld [vmem:[#allocation5 + $0x2a38] sm:$0xff]  ;;  %v1476_v36 = vld [vmem:[#allocation5 + $0x2b30] sm:$0xff]  ;;  %v1479_v48 = vld [vmem:[#allocation5 + $0x2b48] sm:$0xff] }
 0x2e6   :  { %8709 = vmatprep.subr.bf16.mxu1 %v8708_v24  ;;  %v8756_v24 = vpack.c.bf16 %v1491_v12, %v1490_v19  ;;  %v8726_v11 = vpack.c.bf16 %v1443_v26, %v1442_v10  ;;  %v8730_v27 = vpack.c.bf16 %v1445_v23, %v1444_v22  ;;  %v8762_v28 = vpack.c.bf16 %v1477_v39, %v1476_v36  ;;  %v1464_v53 = vld [vmem:[#allocation5 + $0x2ad0] sm:$0xff]  ;;  %v1482_v8 = vld [vmem:[#allocation5 + $0x2b60] sm:$0xff]  ;;  %v1469_v12 = vld [vmem:[#allocation5 + $0x2af8] sm:$0xff] }
 0x2e7   :  { %v9455_v31 = vadd.f32 %v6619_v40, %v4052_v29  ;;  %8679 = vmatpush3.bf16.msra.mxu0 %v8678_v37  ;;  %v8760_v37 = vpack.c.bf16 %v1493_v17, %v1492_v32  ;;  %v1462_v40 = vld [vmem:[#allocation5 + $0x2ac0] sm:$0xff]  ;;  %v8766_v41 = vpack.c.bf16 %v1479_v48, %v1478_v42  ;;  %v8736_v43 = vpack.c.bf16 %v1465_v54, %v1464_v53  ;;  %v1468_v19 = vld [vmem:[#allocation5 + $0x2af0] sm:$0xff]  ;;  %v1453_v17 = vld [vmem:[#allocation5 + $0x2a78] sm:$0xff] }
 0x2e8   :  { %8681 = vmatprep.subr.bf16.mxu0 %v8680_v52  ;;  %v1494_v52 = vld [vmem:[#allocation5 + $0x2bc0] sm:$0xff]  ;;  %v8770_v33 = vpack.c.bf16 %v1481_v61, %v1480_v50  ;;  %v8740_v5 = vpack.c.bf16 %v1467_v45, %v1466_v0  ;;  %v1452_v32 = vld [vmem:[#allocation5 + $0x2a70] sm:$0xff]  ;;  %v1485_v22 = vld [vmem:[#allocation5 + $0x2b78] sm:$0xff] }
 0x2e9   :  { %8711 = vmatpush3.bf16.msra.mxu1 %v8710_v15  ;;  %v1463_v15 = vld [vmem:[#allocation5 + $0x2ac8] sm:$0xff]  ;;  %v8764_v47 = vpack.c.bf16 %v1495_v44, %v1494_v52  ;;  %v1518_v23 = vld [vmem:[#allocation5 + $0x2c80] sm:$0xff]  ;;  %v8746_v52 = vpack.c.bf16 %v1453_v17, %v1452_v32  ;;  %v1520_v42 = vld [vmem:[#allocation5 + $0x2c90] sm:$0xff] }
 0x2ea   :  { %8713 = vmatprep.subr.bf16.mxu1 %v8712_v46  ;;  %v8732_v29 = vpack.c.bf16 %v1463_v15, %v1462_v40  ;;  %v1446_v46 = vld [vmem:[#allocation5 + $0x2a40] sm:$0xff]  ;;  %v1519_v36 = vld [vmem:[#allocation5 + $0x2c88] sm:$0xff]  ;;  %v1552_v53 = vld [vmem:[#allocation5 + $0x2d90] sm:$0xff] }
 0x2eb   :  { %8683 = vmatpush3.bf16.msra.mxu0 %v8682_v59  ;;  %v1496_v59 = vld [vmem:[#allocation5 + $0x2bd0] sm:$0xff]  ;;  %v1551_v39 = vld [vmem:[#allocation5 + $0x2d88] sm:$0xff]  ;;  %v1553_v54 = vld [vmem:[#allocation5 + $0x2d98] sm:$0xff] }
 0x2ec   :  { %8717 = vmatprep.subr.bf16.mxu0 %v8716_v35  ;;  %v8734_v35 = vpack.c.bf16 %v1447_v38, %v1446_v46  ;;  %v1534_v46 = vld [vmem:[#allocation5 + $0x2d00] sm:$0xff]  ;;  %v1535_v38 = vld [vmem:[#allocation5 + $0x2d08] sm:$0xff]  ;;  %v8816_v50 = vpack.c.bf16 %v1553_v54, %v1552_v53 }
 0x2ed   :  { %8715 = vmatpush3.bf16.msra.mxu1 %v8714_v55  ;;  %v1497_v55 = vld [vmem:[#allocation5 + $0x2bd8] sm:$0xff]  ;;  %v1522_v61 = vld [vmem:[#allocation5 + $0x2ca0] sm:$0xff]  ;;  %v1523_v0 = vld [vmem:[#allocation5 + $0x2ca8] sm:$0xff] }
 0x2ee   :  { %8749 = vmatprep.subr.bf16.mxu1 %v8748_v49  ;;  %5030 = vmatmul.mubr.f32.vlgmr.msra.gmra.mrb[40].mxu0 %v9443_v7  ;;  %v1460_v7 = vld [vmem:[#allocation5 + $0x2ab0] sm:$0xff]  ;;  %v1449_v49 = vld [vmem:[#allocation5 + $0x2a58] sm:$0xff]  ;;  %v8768_v51 = vpack.c.bf16 %v1497_v55, %v1496_v59  ;;  %v1559_v32 = vld [vmem:[#allocation5 + $0x2dc8] sm:$0xff] }
 0x2ef   :  { %8719 = vmatpush3.bf16.msra.mxu0 %v8718_v4  ;;  %5169 = vmatprep.mubr.f32.mxu0 %v2033_v16  ;;  %v8728_v34 = vpack.c.bf16 %v1461_v30, %v1460_v7  ;;  %v1498_v4 = vld [vmem:[#allocation5 + $0x2be0] sm:$0xff]  ;;  %v1483_v16 = vld [vmem:[#allocation5 + $0x2b68] sm:$0xff]  ;;  %v8744_v30 = vpack.c.bf16 %v1469_v12, %v1468_v19  ;;  %v1525_v19 = vld [vmem:[#allocation5 + $0x2cb8] sm:$0xff] }
 0x2f0   :  { %5100 = vmatmul.mubr.f32.vlgmr.msra.gmra.mrb[40].mxu1 %v9446_v18  ;;  %8721 = vmatprep.subr.bf16.mxu0 %v8720_v57  ;;  %v8758_v18 = vpack.c.bf16 %v1475_v25, %v1474_v21  ;;  %v8738_v57 = vpack.c.bf16 %v1449_v49, %v1448_v60  ;;  %v8774_v7 = vpack.c.bf16 %v1483_v16, %v1482_v8  ;;  %v1505_v60 = vld [vmem:[#allocation5 + $0x2c18] sm:$0xff]  ;;  %v1536_v49 = vld [vmem:[#allocation5 + $0x2d10] sm:$0xff]  ;;  %v1507_v8 = vld [vmem:[#allocation5 + $0x2c28] sm:$0xff] }
 0x2f1   :  { %8751 = vmatpush3.bf16.msra.mxu1 %v8750_v56  ;;  %5239 = vmatprep.mubr.f32.mxu1 %v2034_v1  ;;  %v1499_v56 = vld [vmem:[#allocation5 + $0x2be8] sm:$0xff]  ;;  %v1556_v12 = vld [vmem:[#allocation5 + $0x2db0] sm:$0xff]  ;;  %v1530_v53 = vld [vmem:[#allocation5 + $0x2ce0] sm:$0xff] }
 0x2f2   :  { %8753 = vmatprep.subr.bf16.mxu1 %v8752_v58  ;;  %v1451_v58 = vld [vmem:[#allocation5 + $0x2a68] sm:$0xff]  ;;  %v8772_v14 = vpack.c.bf16 %v1499_v56, %v1498_v4  ;;  %v1554_v4 = vld [vmem:[#allocation5 + $0x2da0] sm:$0xff] }
 0x2f3   :  { %8723 = vmatpush3.bf16.msra.mxu0 %v8722_v2  ;;  %v8742_v21 = vpack.c.bf16 %v1451_v58, %v1450_v63  ;;  %v1555_v56 = vld [vmem:[#allocation5 + $0x2da8] sm:$0xff]  ;;  %v8788_v63 = vpack.c.bf16 %v1523_v0, %v1522_v61  ;;  %v1506_v58 = vld [vmem:[#allocation5 + $0x2c20] sm:$0xff] }
 0x2f4   :  { %8725 = vmatprep.subr.bf16.mxu0 %v8724_v9  ;;  %v1501_v9 = vld [vmem:[#allocation5 + $0x2bf8] sm:$0xff]  ;;  %v1539_v16 = vld [vmem:[#allocation5 + $0x2d28] sm:$0xff] }
 0x2f5   :  { %8755 = vmatpush3.bf16.msra.mxu1 %v8754_v20  ;;  %v1500_v20 = vld [vmem:[#allocation5 + $0x2bf0] sm:$0xff]  ;;  %v1531_v54 = vld [vmem:[#allocation5 + $0x2ce8] sm:$0xff] }
 0x2f6   :  { %8757 = vmatprep.subr.bf16.mxu1 %v8756_v24  ;;  %v92_v24 = vld [vmem:[#allocation2 + $0xb0] sm:$0xff] }
 0x2f7   :  { %8727 = vmatpush3.bf16.msra.mxu0 %v8726_v11  ;;  %v1484_v11 = vld [vmem:[#allocation5 + $0x2b70] sm:$0xff]  ;;  %v2035_v40 = vcombine.high %v92_v24, %v92_v24  ;;  %v9473_v48 = vrot.slane %v92_v24, %v9174_v13  ;;  %v1541_v24 = vld [vmem:[#allocation5 + $0x2d38] sm:$0xff] }
 0x2f8   :  { %8729 = vmatprep.subr.bf16.mxu0 %v8728_v34  ;;  %v8776_v34 = vpack.c.bf16 %v1501_v9, %v1500_v20  ;;  %v8778_v44 = vpack.c.bf16 %v1485_v22, %v1484_v11  ;;  %v1508_v9 = vld [vmem:[#allocation5 + $0x2c30] sm:$0xff]  ;;  %v1511_v22 = vld [vmem:[#allocation5 + $0x2c48] sm:$0xff] }
 0x2f9   :  { %8759 = vmatpush3.bf16.msra.mxu1 %v8758_v18  ;;  %v9476_v59 = vrot.slane %v2035_v40, %v9174_v13  ;;  %v2050_v45 = vcombine.high %v9473_v48, %v9473_v48  ;;  %v1529_v40 = vld [vmem:[#allocation5 + $0x2cd8] sm:$0xff] }
 0x2fa   :  { %8761 = vmatprep.subr.bf16.mxu1 %v8760_v37  ;;  %v1550_v37 = vld [vmem:[#allocation5 + $0x2d80] sm:$0xff] }
 0x2fb   :  { %8731 = vmatpush3.bf16.msra.mxu0 %v8730_v27  ;;  %v8780_v27 = vpack.c.bf16 %v1519_v36, %v1518_v23  ;;  %v1542_v23 = vld [vmem:[#allocation5 + $0x2d40] sm:$0xff] }
 0x2fc   :  { %8733 = vmatprep.subr.bf16.mxu0 %v8732_v29  ;;  %v1503_v29 = vld [vmem:[#allocation5 + $0x2c08] sm:$0xff] }
 0x2fd   :  { %8763 = vmatpush3.bf16.msra.mxu1 %v8762_v28  ;;  %v1502_v28 = vld [vmem:[#allocation5 + $0x2c00] sm:$0xff] }
 0x2fe   :  { %8765 = vmatprep.subr.bf16.mxu1 %v8764_v47  ;;  %v1521_v47 = vld [vmem:[#allocation5 + $0x2c98] sm:$0xff]  ;;  %v8782_v55 = vpack.c.bf16 %v1503_v29, %v1502_v28 }
 0x2ff   :  { %8735 = vmatpush3.bf16.msra.mxu0 %v8734_v35  ;;  %v8814_v35 = vpack.c.bf16 %v1535_v38, %v1534_v46  ;;  %v1512_v46 = vld [vmem:[#allocation5 + $0x2c50] sm:$0xff] }
 0x300   :  { %8737 = vmatprep.subr.bf16.mxu0 %v8736_v43  ;;  %v1504_v43 = vld [vmem:[#allocation5 + $0x2c10] sm:$0xff] }
 0x301   :  { %8767 = vmatpush3.bf16.msra.mxu1 %v8766_v41  ;;  %v6652_v6 = vpop.f32.mrb[28].mxu0  ;;  %v8784_v41 = vpack.c.bf16 %v1521_v47, %v1520_v42  ;;  %v1544_v38 = vld [vmem:[#allocation5 + $0x2d50] sm:$0xff]  ;;  %v1545_v47 = vld [vmem:[#allocation5 + $0x2d58] sm:$0xff] }
 0x302   :  { %8769 = vmatprep.subr.bf16.mxu1 %v8768_v51  ;;  %v6653_v1 = vpop.f32.mrb[29].mxu0  ;;  %v1537_v51 = vld [vmem:[#allocation5 + $0x2d18] sm:$0xff] }
 0x303   :  { %v6687_v2 = vpop.f32.mrb[28].mxu1  ;;  %v6654_v10 = vadd.f32 %v6653_v1, %v6652_v6  ;;  %8739 = vmatpush3.bf16.msra.mxu0 %v8738_v57  ;;  %v2051_v57 = vcombine.high %v9476_v59, %v9476_v59  ;;  %v1538_v6 = vld [vmem:[#allocation5 + $0x2d20] sm:$0xff]  ;;  %v1557_v1 = vld [vmem:[#allocation5 + $0x2db8] sm:$0xff] }
 0x304   :  { %v6688_v26 = vpop.f32.mrb[29].mxu1  ;;  %8741 = vmatprep.subr.bf16.mxu0 %v8740_v5  ;;  %v8818_v5 = vpack.c.bf16 %v1537_v51, %v1536_v49  ;;  %v1514_v49 = vld [vmem:[#allocation5 + $0x2c60] sm:$0xff] }
 0x305   :  { %v6689_v25 = vadd.f32 %v6688_v26, %v6687_v2  ;;  %8771 = vmatpush3.bf16.msra.mxu1 %v8770_v33  ;;  %v4192_v18 = vadd.f32 %v6654_v10, %v9455_v31  ;;  %v8812_v31 = vpack.c.bf16 %v1551_v39, %v1550_v37  ;;  %v8786_v33 = vpack.c.bf16 %v1505_v60, %v1504_v43  ;;  %v1509_v10 = vld [vmem:[#allocation5 + $0x2c38] sm:$0xff]  ;;  %v1540_v26 = vld [vmem:[#allocation5 + $0x2d30] sm:$0xff]  ;;  %v1543_v37 = vld [vmem:[#allocation5 + $0x2d48] sm:$0xff] }
 0x306   :  { %8773 = vmatprep.subr.bf16.mxu1 %v8772_v14  ;;  %v8820_v14 = vpack.c.bf16 %v1555_v56, %v1554_v4  ;;  %v8790_v2 = vpack.c.bf16 %v1507_v8, %v1506_v58  ;;  %v8794_v17 = vpack.c.bf16 %v1509_v10, %v1508_v9  ;;  %v8826_v11 = vpack.c.bf16 %v1541_v24, %v1540_v26  ;;  %v1528_v39 = vld [vmem:[#allocation5 + $0x2cd0] sm:$0xff]  ;;  %v1546_v51 = vld [vmem:[#allocation5 + $0x2d60] sm:$0xff]  ;;  %v1533_v56 = vld [vmem:[#allocation5 + $0x2cf8] sm:$0xff] }
 0x307   :  { %v9470_v15 = vadd.f32 %v6689_v25, %v4192_v18  ;;  %8743 = vmatpush3.bf16.msra.mxu0 %v8742_v21  ;;  %v8824_v21 = vpack.c.bf16 %v1557_v1, %v1556_v12  ;;  %v1526_v25 = vld [vmem:[#allocation5 + $0x2cc0] sm:$0xff]  ;;  %v8830_v28 = vpack.c.bf16 %v1543_v37, %v1542_v23  ;;  %v8800_v29 = vpack.c.bf16 %v1529_v40, %v1528_v39  ;;  %v1532_v4 = vld [vmem:[#allocation5 + $0x2cf0] sm:$0xff]  ;;  %v1517_v1 = vld [vmem:[#allocation5 + $0x2c78] sm:$0xff] }
 0x308   :  { %8745 = vmatprep.subr.bf16.mxu0 %v8744_v30  ;;  %v1558_v30 = vld [vmem:[#allocation5 + $0x2dc0] sm:$0xff]  ;;  %v8834_v43 = vpack.c.bf16 %v1545_v47, %v1544_v38  ;;  %v8804_v60 = vpack.c.bf16 %v1531_v54, %v1530_v53  ;;  %v1516_v12 = vld [vmem:[#allocation5 + $0x2c70] sm:$0xff]  ;;  %v1549_v9 = vld [vmem:[#allocation5 + $0x2d78] sm:$0xff] }
 0x309   :  { %8775 = vmatpush3.bf16.msra.mxu1 %v8774_v7  ;;  %v1527_v7 = vld [vmem:[#allocation5 + $0x2cc8] sm:$0xff]  ;;  %v8828_v36 = vpack.c.bf16 %v1559_v32, %v1558_v30  ;;  %v1582_v10 = vld [vmem:[#allocation5 + $0x2e80] sm:$0xff]  ;;  %v8810_v30 = vpack.c.bf16 %v1517_v1, %v1516_v12  ;;  %v1584_v23 = vld [vmem:[#allocation5 + $0x2e90] sm:$0xff] }
 0x30a   :  { %8777 = vmatprep.subr.bf16.mxu1 %v8776_v34  ;;  %v8796_v18 = vpack.c.bf16 %v1527_v7, %v1526_v25  ;;  %v1510_v34 = vld [vmem:[#allocation5 + $0x2c40] sm:$0xff]  ;;  %v1583_v26 = vld [vmem:[#allocation5 + $0x2e88] sm:$0xff]  ;;  %v1616_v39 = vld [vmem:[#allocation5 + $0x2f90] sm:$0xff] }
 0x30b   :  { %8747 = vmatpush3.bf16.msra.mxu0 %v8746_v52  ;;  %v1560_v52 = vld [vmem:[#allocation5 + $0x2dd0] sm:$0xff]  ;;  %v1615_v24 = vld [vmem:[#allocation5 + $0x2f88] sm:$0xff]  ;;  %v1617_v40 = vld [vmem:[#allocation5 + $0x2f98] sm:$0xff] }
 0x30c   :  { %8781 = vmatprep.subr.bf16.mxu0 %v8780_v27  ;;  %v8798_v27 = vpack.c.bf16 %v1511_v22, %v1510_v34  ;;  %v1598_v34 = vld [vmem:[#allocation5 + $0x2f00] sm:$0xff]  ;;  %v1599_v22 = vld [vmem:[#allocation5 + $0x2f08] sm:$0xff]  ;;  %v8880_v38 = vpack.c.bf16 %v1617_v40, %v1616_v39 }
 0x30d   :  { %8779 = vmatpush3.bf16.msra.mxu1 %v8778_v44  ;;  %v1561_v44 = vld [vmem:[#allocation5 + $0x2dd8] sm:$0xff]  ;;  %v1586_v47 = vld [vmem:[#allocation5 + $0x2ea0] sm:$0xff]  ;;  %v1587_v53 = vld [vmem:[#allocation5 + $0x2ea8] sm:$0xff] }
 0x30e   :  { %8813 = vmatprep.subr.bf16.mxu1 %v8812_v31  ;;  %5170 = vmatmul.mubr.f32.vlgmr.msra.gmra.mrb[42].mxu0 %v9458_v62  ;;  %v1524_v62 = vld [vmem:[#allocation5 + $0x2cb0] sm:$0xff]  ;;  %v1513_v31 = vld [vmem:[#allocation5 + $0x2c58] sm:$0xff]  ;;  %v8832_v42 = vpack.c.bf16 %v1561_v44, %v1560_v52  ;;  %v1595_v39 = vld [vmem:[#allocation5 + $0x2ee8] sm:$0xff] }
 0x30f   :  { %8783 = vmatpush3.bf16.msra.mxu0 %v8782_v55  ;;  %5309 = vmatprep.mubr.f32.mxu0 %v2050_v45  ;;  %v8792_v20 = vpack.c.bf16 %v1525_v19, %v1524_v62  ;;  %v1562_v55 = vld [vmem:[#allocation5 + $0x2de0] sm:$0xff]  ;;  %v1547_v45 = vld [vmem:[#allocation5 + $0x2d68] sm:$0xff]  ;;  %v8808_v19 = vpack.c.bf16 %v1533_v56, %v1532_v4  ;;  %v1620_v4 = vld [vmem:[#allocation5 + $0x2fb0] sm:$0xff] }
 0x310   :  { %5240 = vmatmul.mubr.f32.vlgmr.msra.gmra.mrb[42].mxu1 %v9461_v3  ;;  %8785 = vmatprep.subr.bf16.mxu0 %v8784_v41  ;;  %v8822_v3 = vpack.c.bf16 %v1539_v16, %v1538_v6  ;;  %v8802_v41 = vpack.c.bf16 %v1513_v31, %v1512_v46  ;;  %v8838_v62 = vpack.c.bf16 %v1547_v45, %v1546_v51  ;;  %v1569_v46 = vld [vmem:[#allocation5 + $0x2e18] sm:$0xff]  ;;  %v1600_v31 = vld [vmem:[#allocation5 + $0x2f10] sm:$0xff]  ;;  %v1602_v51 = vld [vmem:[#allocation5 + $0x2f20] sm:$0xff] }
 0x311   :  { %8815 = vmatpush3.bf16.msra.mxu1 %v8814_v35  ;;  %5379 = vmatprep.mubr.f32.mxu1 %v2051_v57  ;;  %v1563_v35 = vld [vmem:[#allocation5 + $0x2de8] sm:$0xff]  ;;  %v1589_v45 = vld [vmem:[#allocation5 + $0x2eb8] sm:$0xff]  ;;  %v1626_v40 = vld [vmem:[#allocation5 + $0x2fe0] sm:$0xff] }
 0x312   :  { %8817 = vmatprep.subr.bf16.mxu1 %v8816_v50  ;;  %v1515_v50 = vld [vmem:[#allocation5 + $0x2c68] sm:$0xff]  ;;  %v8836_v0 = vpack.c.bf16 %v1563_v35, %v1562_v55  ;;  %v1621_v56 = vld [vmem:[#allocation5 + $0x2fb8] sm:$0xff] }
 0x313   :  { %8787 = vmatpush3.bf16.msra.mxu0 %v8786_v33  ;;  %v8806_v6 = vpack.c.bf16 %v1515_v50, %v1514_v49  ;;  %v1619_v55 = vld [vmem:[#allocation5 + $0x2fa8] sm:$0xff]  ;;  %v1570_v49 = vld [vmem:[#allocation5 + $0x2e20] sm:$0xff] }
 0x314   :  { %8789 = vmatprep.subr.bf16.mxu0 %v8788_v63  ;;  %v1565_v63 = vld [vmem:[#allocation5 + $0x2df8] sm:$0xff]  ;;  %v1571_v50 = vld [vmem:[#allocation5 + $0x2e28] sm:$0xff] }
 0x315   :  { %8819 = vmatpush3.bf16.msra.mxu1 %v8818_v5  ;;  %v1564_v5 = vld [vmem:[#allocation5 + $0x2df0] sm:$0xff] }
 0x316   :  { %8821 = vmatprep.subr.bf16.mxu1 %v8820_v14  ;;  %v93_v14 = vld [vmem:[#allocation2 + $0xb8] sm:$0xff] }
 0x317   :  { %8791 = vmatpush3.bf16.msra.mxu0 %v8790_v2  ;;  %v1548_v2 = vld [vmem:[#allocation5 + $0x2d70] sm:$0xff]  ;;  %v2052_v25 = vcombine.high %v93_v14, %v93_v14  ;;  %v9488_v37 = vrot.slane %v93_v14, %v9174_v13  ;;  %v1590_v14 = vld [vmem:[#allocation5 + $0x2ec0] sm:$0xff] }
 0x318   :  { %8793 = vmatprep.subr.bf16.mxu0 %v8792_v20  ;;  %v8840_v20 = vpack.c.bf16 %v1565_v63, %v1564_v5  ;;  %v8842_v32 = vpack.c.bf16 %v1549_v9, %v1548_v2  ;;  %v1572_v5 = vld [vmem:[#allocation5 + $0x2e30] sm:$0xff]  ;;  %v1573_v63 = vld [vmem:[#allocation5 + $0x2e38] sm:$0xff]  ;;  %v1606_v9 = vld [vmem:[#allocation5 + $0x2f40] sm:$0xff] }
 0x319   :  { %8823 = vmatpush3.bf16.msra.mxu1 %v8822_v3  ;;  %v9491_v52 = vrot.slane %v2052_v25, %v9174_v13  ;;  %v2067_v54 = vcombine.high %v9488_v37, %v9488_v37  ;;  %v1618_v13 = vld [vmem:[#allocation5 + $0x2fa0] sm:$0xff]  ;;  %v8858_v12 = vpack.c.bf16 %v1573_v63, %v1572_v5  ;;  %v1624_v25 = vld [vmem:[#allocation5 + $0x2fd0] sm:$0xff] }
 0x31a   :  { %8825 = vmatprep.subr.bf16.mxu1 %v8824_v21  ;;  %v1614_v21 = vld [vmem:[#allocation5 + $0x2f80] sm:$0xff] }
 0x31b   :  { %8795 = vmatpush3.bf16.msra.mxu0 %v8794_v17  ;;  %v8844_v17 = vpack.c.bf16 %v1583_v26, %v1582_v10  ;;  %v2068_v35 = vcombine.high %v9491_v52, %v9491_v52  ;;  %v1607_v26 = vld [vmem:[#allocation5 + $0x2f48] sm:$0xff] }
 0x31c   :  { %8797 = vmatprep.subr.bf16.mxu0 %v8796_v18  ;;  %v1567_v18 = vld [vmem:[#allocation5 + $0x2e08] sm:$0xff] }
 0x31d   :  { %8827 = vmatpush3.bf16.msra.mxu1 %v8826_v11  ;;  %v1566_v11 = vld [vmem:[#allocation5 + $0x2e00] sm:$0xff] }
 0x31e   :  { %8829 = vmatprep.subr.bf16.mxu1 %v8828_v36  ;;  %v1585_v36 = vld [vmem:[#allocation5 + $0x2e98] sm:$0xff]  ;;  %v8846_v44 = vpack.c.bf16 %v1567_v18, %v1566_v11  ;;  %v1576_v18 = vld [vmem:[#allocation5 + $0x2e50] sm:$0xff] }
 0x31f   :  { %8799 = vmatpush3.bf16.msra.mxu0 %v8798_v27  ;;  %v8878_v27 = vpack.c.bf16 %v1599_v22, %v1598_v34  ;;  %v1577_v34 = vld [vmem:[#allocation5 + $0x2e58] sm:$0xff] }
 0x320   :  { %8801 = vmatprep.subr.bf16.mxu0 %v8800_v29  ;;  %v1568_v29 = vld [vmem:[#allocation5 + $0x2e10] sm:$0xff] }
 0x321   :  { %8831 = vmatpush3.bf16.msra.mxu1 %v8830_v28  ;;  %v6722_v61 = vpop.f32.mrb[30].mxu0  ;;  %v8848_v28 = vpack.c.bf16 %v1585_v36, %v1584_v23  ;;  %v1609_v23 = vld [vmem:[#allocation5 + $0x2f58] sm:$0xff]  ;;  %v1594_v36 = vld [vmem:[#allocation5 + $0x2ee0] sm:$0xff] }
 0x322   :  { %8833 = vmatprep.subr.bf16.mxu1 %v8832_v42  ;;  %v6723_v57 = vpop.f32.mrb[31].mxu0  ;;  %v1601_v42 = vld [vmem:[#allocation5 + $0x2f18] sm:$0xff] }
 0x323   :  { %v6757_v33 = vpop.f32.mrb[30].mxu1  ;;  %v6724_v58 = vadd.f32 %v6723_v57, %v6722_v61  ;;  %8803 = vmatpush3.bf16.msra.mxu0 %v8802_v41  ;;  %v8850_v41 = vpack.c.bf16 %v1569_v46, %v1568_v29  ;;  %v8884_v61 = vpack.c.bf16 %v1619_v55, %v1618_v13  ;;  %v8854_v57 = vpack.c.bf16 %v1571_v50, %v1570_v49  ;;  %v1578_v46 = vld [vmem:[#allocation5 + $0x2e60] sm:$0xff]  ;;  %v1597_v13 = vld [vmem:[#allocation5 + $0x2ef8] sm:$0xff] }
 0x324   :  { %v6758_v8 = vpop.f32.mrb[31].mxu1  ;;  %8805 = vmatprep.subr.bf16.mxu0 %v8804_v60  ;;  %v8852_v60 = vpack.c.bf16 %v1587_v53, %v1586_v47  ;;  %v8868_v29 = vpack.c.bf16 %v1595_v39, %v1594_v36  ;;  %v1611_v53 = vld [vmem:[#allocation5 + $0x2f68] sm:$0xff] }
 0x325   :  { %v6759_v16 = vadd.f32 %v6758_v8, %v6757_v33  ;;  %8835 = vmatpush3.bf16.msra.mxu1 %v8834_v43  ;;  %v4332_v3 = vadd.f32 %v6724_v58, %v9470_v15  ;;  %v8876_v15 = vpack.c.bf16 %v1615_v24, %v1614_v21  ;;  %v8882_v43 = vpack.c.bf16 %v1601_v42, %v1600_v31  ;;  %v1604_v58 = vld [vmem:[#allocation5 + $0x2f30] sm:$0xff]  ;;  %v1593_v24 = vld [vmem:[#allocation5 + $0x2ed8] sm:$0xff]  ;;  %v1579_v31 = vld [vmem:[#allocation5 + $0x2e68] sm:$0xff] }
 0x326   :  { %8837 = vmatprep.subr.bf16.mxu1 %v8836_v0  ;;  %v1603_v0 = vld [vmem:[#allocation5 + $0x2f28] sm:$0xff]  ;;  %v8888_v8 = vpack.c.bf16 %v1621_v56, %v1620_v4  ;;  %v1592_v21 = vld [vmem:[#allocation5 + $0x2ed0] sm:$0xff]  ;;  %v8870_v50 = vpack.c.bf16 %v1579_v31, %v1578_v46 }
 0x327   :  { %v9485_v7 = vadd.f32 %v6759_v16, %v4332_v3  ;;  %8807 = vmatpush3.bf16.msra.mxu0 %v8806_v6  ;;  %v1605_v6 = vld [vmem:[#allocation5 + $0x2f38] sm:$0xff]  ;;  %v1591_v16 = vld [vmem:[#allocation5 + $0x2ec8] sm:$0xff]  ;;  %v1574_v3 = vld [vmem:[#allocation5 + $0x2e40] sm:$0xff]  ;;  %v8864_v11 = vpack.c.bf16 %v1593_v24, %v1592_v21  ;;  %v9092_v24 = vmov 0.0|0.0  }
 0x328   :  { %8809 = vmatprep.subr.bf16.mxu0 %v8808_v19  ;;  %v1623_v19 = vld [vmem:[#allocation5 + $0x2fc8] sm:$0xff]  ;;  %v8890_v1 = vpack.c.bf16 %v1605_v6, %v1604_v58  ;;  %v8860_v2 = vpack.c.bf16 %v1591_v16, %v1590_v14  ;;  %v5528_v21 = vld [vmem:[%s9565_s3 + $0x10] sm:$0xff] }
 0x329   :  { %8839 = vmatpush3.bf16.msra.mxu1 %v8838_v62  ;;  %v1622_v62 = vld [vmem:[#allocation5 + $0x2fc0] sm:$0xff]  ;;  %v5535_v36 = vld [vmem:[%s9565_s3 + $0x48] sm:$0xff] }
 0x32a   :  { %8841 = vmatprep.subr.bf16.mxu1 %v8840_v20  ;;  %v1575_v20 = vld [vmem:[#allocation5 + $0x2e48] sm:$0xff]  ;;  %v8892_v10 = vpack.c.bf16 %v1623_v19, %v1622_v62 }
 0x32b   :  { %8811 = vmatpush3.bf16.msra.mxu0 %v8810_v30  ;;  %v1625_v30 = vld [vmem:[#allocation5 + $0x2fd8] sm:$0xff]  ;;  %v5539_v46 = vld [vmem:[%s9565_s3 + $0x68] sm:$0xff] }
 0x32c   :  { %8845 = vmatprep.subr.bf16.mxu0 %v8844_v17  ;;  %v8894_v17 = vpack.c.bf16 %v1607_v26, %v1606_v9  ;;  %v8896_v22 = vpack.c.bf16 %v1625_v30, %v1624_v25  ;;  %v5529_v30 = vld [vmem:[%s9565_s3 + $0x18] sm:$0xff] }
 0x32d   :  { %8843 = vmatpush3.bf16.msra.mxu1 %v8842_v32  ;;  %v8862_v32 = vpack.c.bf16 %v1575_v20, %v1574_v3 }
 0x32e   :  { %8877 = vmatprep.subr.bf16.mxu1 %v8876_v15  ;;  %5310 = vmatmul.mubr.f32.vlgmr.msra.gmra.mrb[44].mxu0 %v9473_v48  ;;  %v1588_v48 = vld [vmem:[#allocation5 + $0x2eb0] sm:$0xff] }
 0x32f   :  { %8847 = vmatpush3.bf16.msra.mxu0 %v8846_v44  ;;  %5449 = vmatprep.mubr.f32.mxu0 %v2067_v54  ;;  %v8856_v33 = vpack.c.bf16 %v1589_v45, %v1588_v48  ;;  %v1608_v15 = vld [vmem:[#allocation5 + $0x2f50] sm:$0xff]  ;;  %v1627_v44 = vld [vmem:[#allocation5 + $0x2fe8] sm:$0xff]  ;;  %v1581_v45 = vld [vmem:[#allocation5 + $0x2e78] sm:$0xff] }
 0x330   :  { %5380 = vmatmul.mubr.f32.vlgmr.msra.gmra.mrb[44].mxu1 %v9476_v59  ;;  %8849 = vmatprep.subr.bf16.mxu0 %v8848_v28  ;;  %v8886_v59 = vpack.c.bf16 %v1603_v0, %v1602_v51  ;;  %v8898_v28 = vpack.c.bf16 %v1609_v23, %v1608_v15  ;;  %v8900_v47 = vpack.c.bf16 %v1627_v44, %v1626_v40  ;;  %v1596_v54 = vld [vmem:[#allocation5 + $0x2ef0] sm:$0xff]  ;;  %v5533_v15 = vld [vmem:[%s9565_s3 + $0x38] sm:$0xff]  ;;  %v5534_v23 = vld [vmem:[%s9565_s3 + $0x40] sm:$0xff] }
 0x331   :  { %8879 = vmatpush3.bf16.msra.mxu1 %v8878_v27  ;;  %5519 = vmatprep.mubr.f32.mxu1 %v2068_v35  ;;  %v8866_v27 = vpack.c.bf16 %v1577_v34, %v1576_v18  ;;  %v8872_v0 = vpack.c.bf16 %v1597_v13, %v1596_v54  ;;  %v1580_v48 = vld [vmem:[#allocation5 + $0x2e70] sm:$0xff]  ;;  %v8921_v39 = vpack.c.bf16 %v5535_v36, %v5534_v23  ;;  %v5537_v44 = vld [vmem:[%s9565_s3 + $0x58] sm:$0xff] }
 0x332   :  { %8881 = vmatprep.subr.bf16.mxu1 %v8880_v38  ;;  %v1610_v38 = vld [vmem:[#allocation5 + $0x2f60] sm:$0xff]  ;;  %v8874_v5 = vpack.c.bf16 %v1581_v45, %v1580_v48  ;;  %v5532_v34 = vld [vmem:[%s9565_s3 + $0x30] sm:$0xff] }
 0x333   :  { %8851 = vmatpush3.bf16.msra.mxu0 %v8850_v41  ;;  %v1628_v41 = vld [vmem:[#allocation5 + $0x2ff0] sm:$0xff] }
 0x334   :  { %8853 = vmatprep.subr.bf16.mxu0 %v8852_v60  ;;  %v5536_v40 = vld [vmem:[%s9565_s3 + $0x50] sm:$0xff] }
 0x335   :  { %8883 = vmatpush3.bf16.msra.mxu1 %v8882_v43  ;;  %v1629_v43 = vld [vmem:[#allocation5 + $0x2ff8] sm:$0xff] }
 0x336   :  { %8885 = vmatprep.subr.bf16.mxu1 %v8884_v61  ;;  %v8902_v61 = vpack.c.bf16 %v1611_v53, %v1610_v38  ;;  %v8904_v56 = vpack.c.bf16 %v1629_v43, %v1628_v41 }
 0x337   :  { %8855 = vmatpush3.bf16.msra.mxu0 %v8854_v57  ;;  %v1612_v57 = vld [vmem:[#allocation5 + $0x2f70] sm:$0xff] }
 0x338   :  { %8857 = vmatprep.subr.bf16.mxu0 %v8856_v33 }
 0x339   :  { %8887 = vmatpush3.bf16.msra.mxu1 %v8886_v59  ;;  %v1613_v59 = vld [vmem:[#allocation5 + $0x2f78] sm:$0xff] }
 0x33a   :  { %8889 = vmatprep.subr.bf16.mxu1 %v8888_v8  ;;  %v8906_v63 = vpack.c.bf16 %v1613_v59, %v1612_v57 }
 0x33b   :  { %8859 = vmatpush3.bf16.msra.mxu0 %v8858_v12 }
 0x33c   :  { %8861 = vmatprep.subr.bf16.mxu0 %v8860_v2 }
 0x33d   :  { %8891 = vmatpush3.bf16.msra.mxu1 %v8890_v1 }
 0x33e   :  { %8893 = vmatprep.subr.bf16.mxu1 %v8892_v10 }
 0x33f   :  { %8863 = vmatpush3.bf16.msra.mxu0 %v8862_v32  ;;  %v8912_v32 = vpack.c.bf16 %v5529_v30, %v5528_v21 }
 0x340   :  { %8865 = vmatprep.subr.bf16.mxu0 %v8864_v11  ;;  %v5531_v11 = vld [vmem:[%s9565_s3 + $0x28] sm:$0xff] }
 0x341   :  { %8895 = vmatpush3.bf16.msra.mxu1 %v8894_v17  ;;  %v6792_v42 = vpop.f32.mrb[32].mxu0  ;;  %v5530_v17 = vld [vmem:[%s9565_s3 + $0x20] sm:$0xff] }
 0x342   :  { %8897 = vmatprep.subr.bf16.mxu1 %v8896_v22  ;;  %v6793_v55 = vpop.f32.mrb[33].mxu0  ;;  %v8915_v18 = vpack.c.bf16 %v5531_v11, %v5530_v17  ;;  %v8918_v22 = vpack.c.bf16 %v5533_v15, %v5532_v34 }
 0x343   :  { %v6827_v35 = vpop.f32.mrb[32].mxu1  ;;  %v6794_v60 = vadd.f32 %v6793_v55, %v6792_v42  ;;  %8867 = vmatpush3.bf16.msra.mxu0 %v8866_v27  ;;  %v8924_v27 = vpack.c.bf16 %v5537_v44, %v5536_v40  ;;  %v5540_v55 = vld [vmem:[%s9565_s3 + $0x70] sm:$0xff] }
 0x344   :  { %v6828_v49 = vpop.f32.mrb[33].mxu1  ;;  %8869 = vmatprep.subr.bf16.mxu0 %v8868_v29  ;;  %v5538_v29 = vld [vmem:[%s9565_s3 + $0x60] sm:$0xff] }
 0x345   :  { %v6829_v51 = vadd.f32 %v6828_v49, %v6827_v35  ;;  %8899 = vmatpush3.bf16.msra.mxu1 %v8898_v28  ;;  %v4472_v4 = vadd.f32 %v6794_v60, %v9485_v7  ;;  %v8927_v42 = vpack.c.bf16 %v5539_v46, %v5538_v29  ;;  %v5541_v35 = vld [vmem:[%s9565_s3 + $0x78] sm:$0xff]  ;;  %v9094_v60 = vmov 0.0  }
 0x346   :  { %8901 = vmatprep.subr.bf16.mxu1 %v8900_v47  ;;  %v8930_v41 = vpack.c.bf16 %v5541_v35, %v5540_v55 }
 0x347   :  { %v4542_v33 = vadd.f32 %v6829_v51, %v4472_v4  ;;  %8871 = vmatpush3.bf16.msra.mxu0 %v8870_v50 }
 0x348   :  { %8873 = vmatprep.subr.bf16.mxu0 %v8872_v0 }
 0x349   :  { %8903 = vmatpush3.bf16.msra.mxu1 %v8902_v61 }
 0x34a   :  { %8905 = vmatprep.subr.bf16.mxu1 %v8904_v56 }
 0x34b   :  { %8875 = vmatpush3.bf16.msra.mxu0 %v8874_v5 }
 0x34c   :  { %8908 = vmatprep.subr.bf16.mxu0 %v9092_v24 }
 0x34d   :  { %8907 = vmatpush3.bf16.msra.mxu1 %v8906_v63 }
 0x34e   :  { %5450 = vmatmul.mubr.f32.vlgmr.msra.gmra.mrb[46].mxu0 %v9488_v37  ;;  %v5526_v37 = vld [vmem:[%s9565_s3] sm:$0xff] }
 0x34f   :  { %7369 = vmatprep.mubr.msk.f32.mxu0 %vm9093_vm0, %v9094_v60 }
 0x350   :  { %5520 = vmatmul.mubr.f32.vlgmr.msra.gmra.mrb[46].mxu1 %v9491_v52  ;;  %v5527_v52 = vld [vmem:[%s9565_s3 + $0x8] sm:$0xff]  ;;  %s9095_s3 = smov [#allocation10]  }
 0x351   :  { %v8909_v25 = vpack.c.bf16 %v5527_v52, %v5526_v37  ;;  %s5627_s18 = sshll.u32 %s9095_s3, 4  ;;  %s5628_s18 = int_to_ptr.vmem [resolvable:$true] %s5627_s18 }
 0x352   :  { %s9055_s19 = scalar_lea.vmem %s5628_s18, 32  ;;  %p9060_p5 = scmp.lt.s32.totalorder %s5628_s18, %s5628_s18 }
 0x353   :  { %8910 = vmatpush3.bf16.msra.mxu0 %v8909_v25  ;;  %p9056_p4 = scmp.ne.s32.totalorder %s5628_s18, %s9055_s19  ;;  %p9061_p6 = scmp.lt.s32.totalorder %s9055_s19, %s9055_s19 }
 0x354   :  { %8911 = vmatprep.subr.bf16.mxu0 %v9092_v24 }
 0x355   :  { %p9062_p7 = por %p9061_p6, %p9060_p5 }
 0x357   :  { %8913 = vmatpush3.bf16.msra.mxu0 %v8912_v32  ;;  %p9063_p8 = pnand %p9062_p7, %p9056_p4 }
 0x358   :  { %8914 = vmatprep.subr.bf16.mxu0 %v9092_v24 }
 0x35b   :  { %8916 = vmatpush3.bf16.msra.mxu0 %v8915_v18 }
 0x35c   :  { %8917 = vmatprep.subr.bf16.mxu0 %v9092_v24 }
 0x35f   :  { %8919 = vmatpush3.bf16.msra.mxu0 %v8918_v22 }
 0x360   :  { %8920 = vmatprep.subr.bf16.mxu0 %v9092_v24 }
 0x361   :  { %v6862_v58 = vpop.f32.mrb[34].mxu0 }
 0x362   :  { %v6863_v8 = vpop.f32.mrb[35].mxu0 }
 0x363   :  { %v6897_v7 = vpop.f32.mrb[34].mxu1  ;;  %v6864_v6 = vadd.f32 %v6863_v8, %v6862_v58  ;;  %8922 = vmatpush3.bf16.msra.mxu0 %v8921_v39 }
 0x364   :  { %v6898_v14 = vpop.f32.mrb[35].mxu1  ;;  %8923 = vmatprep.subr.bf16.mxu0 %v9092_v24 }
 0x365   :  { %v6899_v16 = vadd.f32 %v6898_v14, %v6897_v7  ;;  %v4612_v62 = vadd.f32 %v6864_v6, %v4542_v33 }
 0x367   :  { %v4682_v19 = vadd.f32 %v6899_v16, %v4612_v62  ;;  %8925 = vmatpush3.bf16.msra.mxu0 %v8924_v27 }
 0x368   :  { %8926 = vmatprep.subr.bf16.mxu0 %v9092_v24 }
 0x36b   :  { %8928 = vmatpush3.bf16.msra.mxu0 %v8927_v42 }
 0x36c   :  { %8929 = vmatprep.subr.bf16.mxu0 %v9092_v24  ;;  %v5639_v24 = vld [vmem:[#allocation8] ss:$0 sm:$0xff] }
 0x36f   :  { %8931 = vmatpush3.bf16.msra.mxu0 %v8930_v41 }
 0x381   :  { %v6932_v12 = vpop.f32.mrb[36].mxu0 }
 0x382   :  { %v6933_v1 = vpop.f32.mrb[37].mxu0 }
 0x383   :  { %v6967_v2 = vpop.f32.mrb[36].mxu1  ;;  %v6934_v3 = vadd.f32 %v6933_v1, %v6932_v12 }
 0x384   :  { %v6968_v20 = vpop.f32.mrb[37].mxu1 }
 0x385   :  { %v6969_v9 = vadd.f32 %v6968_v20, %v6967_v2  ;;  %v4752_v10 = vadd.f32 %v6934_v3, %v4682_v19 }
 0x387   :  { %v4822_v26 = vadd.f32 %v6969_v9, %v4752_v10 }
 0x3a1   :  { %v7002_v28 = vpop.f32.mrb[38].mxu0 }
 0x3a2   :  { %v7003_v31 = vpop.f32.mrb[39].mxu0 }
 0x3a3   :  { %v7037_v38 = vpop.f32.mrb[38].mxu1  ;;  %v7004_v47 = vadd.f32 %v7003_v31, %v7002_v28 }
 0x3a4   :  { %v7038_v53 = vpop.f32.mrb[39].mxu1 }
 0x3a5   :  { %v7039_v54 = vadd.f32 %v7038_v53, %v7037_v38  ;;  %v4892_v13 = vadd.f32 %v7004_v47, %v4822_v26 }
 0x3a7   :  { %v4962_v43 = vadd.f32 %v7039_v54, %v4892_v13 }
 0x3c1   :  { %v7072_v49 = vpop.f32.mrb[40].mxu0 }
 0x3c2   :  { %v7073_v50 = vpop.f32.mrb[41].mxu0 }
 0x3c3   :  { %v7107_v51 = vpop.f32.mrb[40].mxu1  ;;  %v7074_v61 = vadd.f32 %v7073_v50, %v7072_v49 }
 0x3c4   :  { %v7108_v0 = vpop.f32.mrb[41].mxu1 }
 0x3c5   :  { %v7109_v48 = vadd.f32 %v7108_v0, %v7107_v51  ;;  %v5032_v45 = vadd.f32 %v7074_v61, %v4962_v43 }
 0x3c7   :  { %v5102_v4 = vadd.f32 %v7109_v48, %v5032_v45 }
 0x3e1   :  { %v7142_v56 = vpop.f32.mrb[42].mxu0 }
 0x3e2   :  { %v7143_v57 = vpop.f32.mrb[43].mxu0 }
 0x3e3   :  { %v7177_v59 = vpop.f32.mrb[42].mxu1  ;;  %v7144_v33 = vadd.f32 %v7143_v57, %v7142_v56 }
 0x3e4   :  { %v7178_v5 = vpop.f32.mrb[43].mxu1 }
 0x3e5   :  { %v7179_v63 = vadd.f32 %v7178_v5, %v7177_v59  ;;  %v5172_v58 = vadd.f32 %v7144_v33, %v5102_v4 }
 0x3e7   :  { %v5242_v8 = vadd.f32 %v7179_v63, %v5172_v58 }
 0x401   :  { %v7212_v7 = vpop.f32.mrb[44].mxu0 }
 0x402   :  { %v7213_v6 = vpop.f32.mrb[45].mxu0 }
 0x403   :  { %v7247_v14 = vpop.f32.mrb[44].mxu1  ;;  %v7214_v16 = vadd.f32 %v7213_v6, %v7212_v7 }
 0x404   :  { %v7248_v62 = vpop.f32.mrb[45].mxu1 }
 0x405   :  { %v7249_v19 = vadd.f32 %v7248_v62, %v7247_v14  ;;  %v5312_v12 = vadd.f32 %v7214_v16, %v5242_v8 }
 0x407   :  { %v5382_v1 = vadd.f32 %v7249_v19, %v5312_v12 }
 0x421   :  { %v7282_v2 = vpop.f32.mrb[46].mxu0 }
 0x422   :  { %v7283_v3 = vpop.f32.mrb[47].mxu0 }
 0x423   :  { %v7317_v20 = vpop.f32.mrb[46].mxu1  ;;  %v7284_v9 = vadd.f32 %v7283_v3, %v7282_v2 }
 0x424   :  { %v7318_v10 = vpop.f32.mrb[47].mxu1 }
 0x425   :  { %v7319_v26 = vadd.f32 %v7318_v10, %v7317_v20  ;;  %v5452_v37 = vadd.f32 %v7284_v9, %v5382_v1 }
 0x427   :  { %v5522_v52 = vadd.f32 %v7319_v26, %v5452_v37 }
 0x429   :  { %v5525_v21 = vmax.f32 %v5522_v52, 0.0 }
 0x42b   :  { %7370 = vmatmul.mubr.f32.vlgmr.msra.gmra.mrb[48].mxu0 %v5525_v21 }
 0x4fe   :  { %v5615_v25 = vpop.f32.mrb[48].mxu0 }
 0x4ff   :  { %v5616_v30 = vadd.f32 %v5639_v24, %v5615_v25  ;;  %v7371_v32 = vpop.f32.mrb[49].mxu0 }
 0x501   :  { %5620 = vst.msk [vmem:[#allocation10] sm:$0x3] %vm5619_vm1, %v5616_v30 }
 0x502   :  { %9066 = shalt.err (!%p9063_p8)
}
 0x503   :  { %s9067_s22 = scalar_lea.hbm %s9567_s5, 32 }
 0x504   :  { %p9068_p9 = scmp.ne.s32.totalorder %s9567_s5, %s9067_s22  ;;  %p9071_p10 = scmp.lt.u32.totalorder %s9067_s22, %s9567_s5 }
 0x506   :  { %p9073_p11 = pnand %p9071_p10, %p9068_p9 }
 0x508   :  { %9076 = shalt.err (!%p9073_p11)
}
 0x509   :  { %5630 = dma.vmem_to_hbm [thread:$0]  %s5628_s18, 32, %s9567_s5, [#allocation4]  }
 0x50a   :  { %9083 = dma.done.wait [#allocation4], 32  }
 0x50b   :  { %9084 = vsyncadd [#allocation4], 4294967264 }
 0x50c   :  { %5634 = vsyncpa [#allocation3], 1 }
 0x50d   :  { %5635 = vsyncpa [#allocation6], 1 }
 0x50e   :  { %5636 = vsyncpa [#allocation9], 1 }
 0x50f   :  { %5637 = vsyncpa [#allocation4], 1 }

// kernel: tpu_custom_call.1
= control target key start
LH: loop header
LB: loop body
LE: loop exit
PB: predicated region body
PF: predicated region fallthrough
CT: control target
= control target key end

     0   :  { %10 = vsyncpa [#allocation3], 0  ;;  %s9562_s0 = inlined_call_operand.hbm [shape: f32[2,12288], index: 0, kind: input, shape index: {}]   ;;  %s9563_s1 = inlined_call_operand.hbm [shape: f32[12288,128], index: 1, kind: input, shape index: {}]   ;;  %s9564_s2 = inlined_call_operand.hbm [shape: f32[1,128], index: 2, kind: input, shape index: {}]   ;;  %s9565_s3 = inlined_call_operand.vmem [shape: f32[128,6], index: 3, kind: input, shape index: {}]   ;;  %s9566_s4 = inlined_call_operand.hbm [shape: f32[1,6], index: 4, kind: input, shape index: {}]   ;;  %s9567_s5 = inlined_call_operand.hbm [shape: f32[2,6], index: 5, kind: output, shape index: {}]  }
   0x1   :  { %11 = vsyncpa [#allocation6], 0 }
   0x2   :  { %12 = vsyncpa [#allocation9], 0 }
   0x3   :  { %13 = vsyncpa [#allocation4], 0  ;;  %s9085_s18 = smov [#allocation5]   ;;  %s8967_s22 = scalar_lea.hbm %s9563_s1, 196608 }
   0x4   :  { %s29_s19 = sshll.u32 %s9085_s18, 4  ;;  %p8968_p0 = scmp.ne.s32.totalorder %s9563_s1, %s8967_s22  ;;  %s30_s19 = int_to_ptr.vmem [resolvable:$true] %s29_s19 }
   0x5   :  { %p8971_p1 = scmp.lt.u32.totalorder %s8967_s22, %s9563_s1 }
   0x7   :  { %p8973_p2 = pnand %p8971_p1, %p8968_p0 }
   0x9   :  { %8976 = shalt.err (!%p8973_p2)
}
   0xa   :  { %s8977_s27 = scalar_lea.vmem %s30_s19, 196608  ;;  %p8982_p4 = scmp.lt.s32.totalorder %s30_s19, %s30_s19 }
   0xb   :  { %p8978_p3 = scmp.ne.s32.totalorder %s30_s19, %s8977_s27  ;;  %p8983_p5 = scmp.lt.s32.totalorder %s8977_s27, %s8977_s27 }
   0xd   :  { %p8984_p6 = por %p8983_p5, %p8982_p4 }
   0xf   :  { %p8985_p7 = pnand %p8984_p6, %p8978_p3 }
  0x11   :  { %8988 = shalt.err (!%p8985_p7)
}
  0x12   :  { %s9086_s28 = smov 128   ;;  %s9087_s29 = smov 8  }
  0x13   :  { %35 = dma.hbm_to_vmem [thread:$0]  %s9563_s1, 196608, %s30_s19, [#allocation6], %s9086_s28, %s9086_s28, %s9087_s29  }
  0x14   :  { %s9088_s7 = smov [#allocation2]   ;;  %s9089_s9 = smov [#allocation7]  }
  0x15   :  { %s20_s8 = sshll.u32 %s9088_s7, 4  ;;  %s42_s10 = sshll.u32 %s9089_s9, 4  ;;  %s21_s8 = int_to_ptr.vmem [resolvable:$true] %s20_s8  ;;  %s43_s10 = int_to_ptr.vmem [resolvable:$true] %s42_s10 }
  0x16   :  { %s8989_s13 = scalar_lea.hbm %s9562_s0, 3072 }
  0x17   :  { %p8990_p8 = scmp.ne.s32.totalorder %s9562_s0, %s8989_s13  ;;  %p8993_p9 = scmp.lt.u32.totalorder %s8989_s13, %s9562_s0 }
  0x19   :  { %p8995_p10 = pnand %p8993_p9, %p8990_p8 }
  0x1b   :  { %8998 = shalt.err (!%p8995_p10)
}
  0x1c   :  { %s8999_s1 = scalar_lea.vmem %s21_s8, 3072  ;;  %p9004_p12 = scmp.lt.s32.totalorder %s21_s8, %s21_s8 }
  0x1d   :  { %p9000_p11 = scmp.ne.s32.totalorder %s21_s8, %s8999_s1  ;;  %p9005_p13 = scmp.lt.s32.totalorder %s8999_s1, %s8999_s1 }
  0x1f   :  { %p9006_p0 = por %p9005_p13, %p9004_p12 }
  0x21   :  { %p9007_p1 = pnand %p9006_p0, %p9000_p11 }
  0x23   :  { %9010 = shalt.err (!%p9007_p1)
}
  0x24   :  { %23 = dma.hbm_to_vmem [thread:$0]  %s9562_s0, 3072, %s21_s8, [#allocation3]  }
  0x25   :  { %s9011_s22 = scalar_lea.hbm %s9564_s2, 16 }
  0x26   :  { %p9012_p2 = scmp.ne.s32.totalorder %s9564_s2, %s9011_s22  ;;  %p9015_p3 = scmp.lt.u32.totalorder %s9011_s22, %s9564_s2 }
  0x28   :  { %p9017_p4 = pnand %p9015_p3, %p9012_p2 }
  0x2a   :  { %9020 = shalt.err (!%p9017_p4)
}
  0x2b   :  { %s9021_s27 = scalar_lea.vmem %s43_s10, 16  ;;  %s9025_s28 = scalar_lea.vmem %s43_s10, 32 }
  0x2c   :  { %p9022_p5 = scmp.ne.s32.totalorder %s43_s10, %s9021_s27  ;;  %p9026_p6 = scmp.lt.s32.totalorder %s43_s10, %s43_s10 }
  0x2d   :  { %p9027_p7 = scmp.lt.s32.totalorder %s9025_s28, %s9021_s27 }
  0x2f   :  { %p9028_p8 = por %p9027_p7, %p9026_p6 }
  0x31   :  { %p9029_p9 = pnand %p9028_p8, %p9022_p5 }
  0x33   :  { %9032 = shalt.err (!%p9029_p9)
}
  0x34   :  { %45 = dma.hbm_to_vmem [thread:$0]  %s9564_s2, 16, %s43_s10, [#allocation6]  }
  0x35   :  { %s9090_s30 = smov [#allocation8]   ;;  %s9033_s9 = scalar_lea.hbm %s9566_s4, 16 }
  0x36   :  { %s54_s6 = sshll.u32 %s9090_s30, 4  ;;  %p9034_p10 = scmp.ne.s32.totalorder %s9566_s4, %s9033_s9  ;;  %s55_s6 = int_to_ptr.vmem [resolvable:$true] %s54_s6 }
  0x37   :  { %p9037_p11 = scmp.lt.u32.totalorder %s9033_s9, %s9566_s4 }
  0x39   :  { %p9039_p12 = pnand %p9037_p11, %p9034_p10 }
  0x3b   :  { %9042 = shalt.err (!%p9039_p12)
}
  0x3c   :  { %s9043_s15 = scalar_lea.vmem %s55_s6, 16  ;;  %s9047_s2 = scalar_lea.vmem %s55_s6, 32 }
  0x3d   :  { %p9044_p13 = scmp.ne.s32.totalorder %s55_s6, %s9043_s15  ;;  %p9048_p0 = scmp.lt.s32.totalorder %s55_s6, %s55_s6 }
  0x3e   :  { %p9049_p1 = scmp.lt.s32.totalorder %s9047_s2, %s9043_s15 }
  0x40   :  { %p9050_p2 = por %p9049_p1, %p9048_p0 }
  0x42   :  { %p9051_p3 = pnand %p9050_p2, %p9044_p13 }
  0x44   :  { %9054 = shalt.err (!%p9051_p3)
}
  0x45   :  { %57 = dma.hbm_to_vmem [thread:$0]  %s9566_s4, 16, %s55_s6, [#allocation9]  }
  0x46   :  { %9077 = dma.done.wait [#allocation3], 3072  }
  0x47   :  { %9078 = vsyncadd [#allocation3], 4294964224 }
  0x48   :  { %9079 = dma.done.wait [#allocation6], 196624  }
  0x49   :  { %9080 = vsyncadd [#allocation6], 4294770672 }
  0x4a   :  { %9081 = dma.done.wait [#allocation9], 16  }
  0x4b   :  { %9082 = vsyncadd [#allocation9], 4294967280  ;;  %v110_v0 = vld [vmem:[#allocation5 + $0x80] sm:$0xff]  ;;  %v111_v1 = vld [vmem:[#allocation5 + $0x88] sm:$0xff]  ;;  %v9091_v47 = vmov 1983009808   ;;  %v1665_v49 = vlaneseq }
  0x4c   :  { %v94_v2 = vld [vmem:[#allocation5] sm:$0xff]  ;;  %v7372_v3 = vpack.c.bf16 %v111_v1, %v110_v0  ;;  %v95_v4 = vld [vmem:[#allocation5 + $0x8] sm:$0xff]  ;;  %v112_v11 = vld [vmem:[#allocation5 + $0x90] sm:$0xff]  ;;  %v1663_v48 = vunpack.c.l.s4 %v9091_v47  ;;  %vm9093_vm0 = vmmov 0   ;;  %vm5619_vm1 = vcmask 41984  }
  0x4d   :  { %v142_v5 = vld [vmem:[#allocation5 + $0x180] sm:$0xff]  ;;  %v143_v6 = vld [vmem:[#allocation5 + $0x188] sm:$0xff]  ;;  %v7374_v7 = vpack.c.bf16 %v95_v4, %v94_v2  ;;  %v113_v13 = vld [vmem:[#allocation5 + $0x98] sm:$0xff]  ;;  %v1666_v0 = vshrl.u32 %v1665_v49, 7 }
  0x4e   :  { %v7404_v8 = vpack.c.bf16 %v143_v6, %v142_v5  ;;  %v126_v9 = vld [vmem:[#allocation5 + $0x100] sm:$0xff]  ;;  %v127_v10 = vld [vmem:[#allocation5 + $0x108] sm:$0xff]  ;;  %7373 = vmatprep.subr.bf16.mxu0 %v7372_v3  ;;  %v96_v14 = vld [vmem:[#allocation5 + $0x10] sm:$0xff]  ;;  %v7376_v16 = vpack.c.bf16 %v113_v13, %v112_v11  ;;  %v1664_v63 = vunpack.c.0.s8 %v1663_v48 }
  0x4f   :  { %v7406_v12 = vpack.c.bf16 %v127_v10, %v126_v9  ;;  %v97_v15 = vld [vmem:[#allocation5 + $0x18] sm:$0xff]  ;;  %7375 = vmatpush3.bf16.msra.mxu0 %v7374_v7  ;;  %v144_v18 = vld [vmem:[#allocation5 + $0x190] sm:$0xff]  ;;  %v114_v23 = vld [vmem:[#allocation5 + $0xa0] sm:$0xff] }
  0x50   :  { %7405 = vmatprep.subr.bf16.mxu1 %v7404_v8  ;;  %v7378_v17 = vpack.c.bf16 %v97_v15, %v96_v14  ;;  %v145_v19 = vld [vmem:[#allocation5 + $0x198] sm:$0xff]  ;;  %v128_v20 = vld [vmem:[#allocation5 + $0x110] sm:$0xff]  ;;  %v115_v24 = vld [vmem:[#allocation5 + $0xa8] sm:$0xff]  ;;  %7377 = vmatprep.subr.bf16.mxu0 %v7376_v16  ;;  %v9174_v13 = vsub.s32 %v1664_v63, %v1666_v0 }
  0x51   :  { %7407 = vmatpush3.bf16.msra.mxu1 %v7406_v12  ;;  %v7408_v21 = vpack.c.bf16 %v145_v19, %v144_v18  ;;  %v129_v22 = vld [vmem:[#allocation5 + $0x118] sm:$0xff]  ;;  %v7380_v26 = vpack.c.bf16 %v115_v24, %v114_v23  ;;  %v98_v27 = vld [vmem:[#allocation5 + $0x20] sm:$0xff]  ;;  %v99_v28 = vld [vmem:[#allocation5 + $0x28] sm:$0xff] }
  0x52   :  { %v7410_v25 = vpack.c.bf16 %v129_v22, %v128_v20  ;;  %v146_v29 = vld [vmem:[#allocation5 + $0x1a0] sm:$0xff]  ;;  %v147_v30 = vld [vmem:[#allocation5 + $0x1a8] sm:$0xff]  ;;  %v7382_v33 = vpack.c.bf16 %v99_v28, %v98_v27  ;;  %v116_v35 = vld [vmem:[#allocation5 + $0xb0] sm:$0xff] }
  0x53   :  { %7409 = vmatprep.subr.bf16.mxu1 %v7408_v21  ;;  %v130_v31 = vld [vmem:[#allocation5 + $0x120] sm:$0xff]  ;;  %v131_v32 = vld [vmem:[#allocation5 + $0x128] sm:$0xff]  ;;  %7379 = vmatpush3.bf16.msra.mxu0 %v7378_v17  ;;  %v7412_v34 = vpack.c.bf16 %v147_v30, %v146_v29  ;;  %v117_v36 = vld [vmem:[#allocation5 + $0xb8] sm:$0xff] }
  0x54   :  { %v100_v37 = vld [vmem:[#allocation5 + $0x30] sm:$0xff]  ;;  %7381 = vmatprep.subr.bf16.mxu0 %v7380_v26  ;;  %v7414_v38 = vpack.c.bf16 %v131_v32, %v130_v31  ;;  %v7384_v39 = vpack.c.bf16 %v117_v36, %v116_v35  ;;  %v101_v40 = vld [vmem:[#allocation5 + $0x38] sm:$0xff]  ;;  %v118_v46 = vld [vmem:[#allocation5 + $0xc0] sm:$0xff] }
  0x55   :  { %7411 = vmatpush3.bf16.msra.mxu1 %v7410_v25  ;;  %v148_v41 = vld [vmem:[#allocation5 + $0x1b0] sm:$0xff]  ;;  %v149_v42 = vld [vmem:[#allocation5 + $0x1b8] sm:$0xff]  ;;  %v119_v50 = vld [vmem:[#allocation5 + $0xc8] sm:$0xff]  ;;  %v7386_v51 = vpack.c.bf16 %v101_v40, %v100_v37 }
  0x56   :  { %7413 = vmatprep.subr.bf16.mxu1 %v7412_v34  ;;  %v7416_v43 = vpack.c.bf16 %v149_v42, %v148_v41  ;;  %v132_v44 = vld [vmem:[#allocation5 + $0x130] sm:$0xff]  ;;  %v133_v45 = vld [vmem:[#allocation5 + $0x138] sm:$0xff]  ;;  %v150_v52 = vld [vmem:[#allocation5 + $0x1c0] sm:$0xff]  ;;  %v7388_v55 = vpack.c.bf16 %v119_v50, %v118_v46 }
  0x57   :  { %7383 = vmatpush3.bf16.msra.mxu0 %v7382_v33  ;;  %v151_v53 = vld [vmem:[#allocation5 + $0x1c8] sm:$0xff]  ;;  %v7418_v54 = vpack.c.bf16 %v133_v45, %v132_v44  ;;  %v102_v56 = vld [vmem:[#allocation5 + $0x40] sm:$0xff]  ;;  %v120_v61 = vld [vmem:[#allocation5 + $0xd0] sm:$0xff] }
  0x58   :  { %7385 = vmatprep.subr.bf16.mxu0 %v7384_v39  ;;  %v103_v57 = vld [vmem:[#allocation5 + $0x48] sm:$0xff]  ;;  %v134_v58 = vld [vmem:[#allocation5 + $0x140] sm:$0xff]  ;;  %v7420_v59 = vpack.c.bf16 %v151_v53, %v150_v52  ;;  %v121_v62 = vld [vmem:[#allocation5 + $0xd8] sm:$0xff] }
  0x59   :  { %7415 = vmatpush3.bf16.msra.mxu1 %v7414_v38  ;;  %v135_v60 = vld [vmem:[#allocation5 + $0x148] sm:$0xff]  ;;  %v152_v1 = vld [vmem:[#allocation5 + $0x1d0] sm:$0xff]  ;;  %v153_v2 = vld [vmem:[#allocation5 + $0x1d8] sm:$0xff]  ;;  %v7390_v3 = vpack.c.bf16 %v103_v57, %v102_v56  ;;  %v7392_v5 = vpack.c.bf16 %v121_v62, %v120_v61 }
  0x5a   :  { %7417 = vmatprep.subr.bf16.mxu1 %v7416_v43  ;;  %v7422_v4 = vpack.c.bf16 %v135_v60, %v134_v58  ;;  %v104_v6 = vld [vmem:[#allocation5 + $0x50] sm:$0xff]  ;;  %v105_v7 = vld [vmem:[#allocation5 + $0x58] sm:$0xff]  ;;  %v7424_v9 = vpack.c.bf16 %v153_v2, %v152_v1  ;;  %v122_v11 = vld [vmem:[#allocation5 + $0xe0] sm:$0xff] }
  0x5b   :  { %7387 = vmatpush3.bf16.msra.mxu0 %v7386_v51  ;;  %v136_v8 = vld [vmem:[#allocation5 + $0x150] sm:$0xff]  ;;  %v137_v10 = vld [vmem:[#allocation5 + $0x158] sm:$0xff]  ;;  %v123_v12 = vld [vmem:[#allocation5 + $0xe8] sm:$0xff]  ;;  %v7394_v16 = vpack.c.bf16 %v105_v7, %v104_v6 }
  0x5c   :  { %7389 = vmatprep.subr.bf16.mxu0 %v7388_v55  ;;  %v154_v14 = vld [vmem:[#allocation5 + $0x1e0] sm:$0xff]  ;;  %v155_v15 = vld [vmem:[#allocation5 + $0x1e8] sm:$0xff]  ;;  %v7426_v18 = vpack.c.bf16 %v137_v10, %v136_v8  ;;  %v7396_v19 = vpack.c.bf16 %v123_v12, %v122_v11  ;;  %v124_v25 = vld [vmem:[#allocation5 + $0xf0] sm:$0xff] }
  0x5d   :  { %7419 = vmatpush3.bf16.msra.mxu1 %v7418_v54  ;;  %v106_v17 = vld [vmem:[#allocation5 + $0x60] sm:$0xff]  ;;  %v107_v20 = vld [vmem:[#allocation5 + $0x68] sm:$0xff]  ;;  %v7428_v23 = vpack.c.bf16 %v155_v15, %v154_v14  ;;  %v125_v26 = vld [vmem:[#allocation5 + $0xf8] sm:$0xff] }
  0x5e   :  { %7421 = vmatprep.subr.bf16.mxu1 %v7420_v59  ;;  %v138_v21 = vld [vmem:[#allocation5 + $0x160] sm:$0xff]  ;;  %v139_v24 = vld [vmem:[#allocation5 + $0x168] sm:$0xff]  ;;  %v156_v29 = vld [vmem:[#allocation5 + $0x1f0] sm:$0xff]  ;;  %v7398_v31 = vpack.c.bf16 %v107_v20, %v106_v17  ;;  %v7400_v35 = vpack.c.bf16 %v125_v26, %v124_v25 }
  0x5f   :  { %7391 = vmatpush3.bf16.msra.mxu0 %v7390_v3  ;;  %v70_v22 = vld [vmem:[#allocation2] sm:$0xff]  ;;  %v157_v30 = vld [vmem:[#allocation5 + $0x1f8] sm:$0xff]  ;;  %v7430_v34 = vpack.c.bf16 %v139_v24, %v138_v21  ;;  %v108_v36 = vld [vmem:[#allocation5 + $0x70] sm:$0xff] }
  0x60   :  { %7393 = vmatprep.subr.bf16.mxu0 %v7392_v5  ;;  %v1668_v27 = vrot.slane %v70_v22, %v9174_v13  ;;  %v1661_v28 = vcombine.high %v70_v22, %v70_v22  ;;  %v109_v37 = vld [vmem:[#allocation5 + $0x78] sm:$0xff]  ;;  %v140_v38 = vld [vmem:[#allocation5 + $0x170] sm:$0xff]  ;;  %v7432_v39 = vpack.c.bf16 %v157_v30, %v156_v29  ;;  %v174_v41 = vld [vmem:[#allocation5 + $0x280] sm:$0xff] }
  0x61   :  { %7423 = vmatpush3.bf16.msra.mxu1 %v7422_v4  ;;  %v141_v40 = vld [vmem:[#allocation5 + $0x178] sm:$0xff]  ;;  %v175_v42 = vld [vmem:[#allocation5 + $0x288] sm:$0xff]  ;;  %v206_v44 = vld [vmem:[#allocation5 + $0x380] sm:$0xff]  ;;  %v7402_v46 = vpack.c.bf16 %v109_v37, %v108_v36 }
  0x62   :  { %7425 = vmatprep.subr.bf16.mxu1 %v7424_v9  ;;  %v1676_v32 = vcombine.high %v1668_v27, %v1668_v27  ;;  %v1675_v33 = vrot.slane %v1661_v28, %v9174_v13  ;;  %v207_v45 = vld [vmem:[#allocation5 + $0x388] sm:$0xff]  ;;  %v7434_v47 = vpack.c.bf16 %v141_v40, %v140_v38  ;;  %v7436_v48 = vpack.c.bf16 %v175_v42, %v174_v41  ;;  %v158_v49 = vld [vmem:[#allocation5 + $0x200] sm:$0xff]  ;;  %v176_v54 = vld [vmem:[#allocation5 + $0x290] sm:$0xff] }
  0x63   :  { %7395 = vmatpush3.bf16.msra.mxu0 %v7394_v16  ;;  %v159_v50 = vld [vmem:[#allocation5 + $0x208] sm:$0xff]  ;;  %v190_v51 = vld [vmem:[#allocation5 + $0x300] sm:$0xff]  ;;  %v7468_v52 = vpack.c.bf16 %v207_v45, %v206_v44  ;;  %v177_v55 = vld [vmem:[#allocation5 + $0x298] sm:$0xff] }
  0x64   :  { %7397 = vmatprep.subr.bf16.mxu0 %v7396_v19  ;;  %2229 = vmatprep.mubr.f32.mxu0 %v1676_v32  ;;  %v1677_v43 = vcombine.high %v1675_v33, %v1675_v33  ;;  %v191_v53 = vld [vmem:[#allocation5 + $0x308] sm:$0xff]  ;;  %v208_v56 = vld [vmem:[#allocation5 + $0x390] sm:$0xff]  ;;  %v209_v57 = vld [vmem:[#allocation5 + $0x398] sm:$0xff]  ;;  %v7438_v58 = vpack.c.bf16 %v159_v50, %v158_v49  ;;  %v7440_v60 = vpack.c.bf16 %v177_v55, %v176_v54 }
  0x65   :  { %7427 = vmatpush3.bf16.msra.mxu1 %v7426_v18  ;;  %v7470_v59 = vpack.c.bf16 %v191_v53, %v190_v51  ;;  %v160_v61 = vld [vmem:[#allocation5 + $0x210] sm:$0xff]  ;;  %v161_v62 = vld [vmem:[#allocation5 + $0x218] sm:$0xff]  ;;  %v7472_v0 = vpack.c.bf16 %v209_v57, %v208_v56  ;;  %v178_v2 = vld [vmem:[#allocation5 + $0x2a0] sm:$0xff] }
  0x66   :  { %7429 = vmatprep.subr.bf16.mxu1 %v7428_v23  ;;  %2299 = vmatprep.mubr.f32.mxu1 %v1677_v43  ;;  %v192_v63 = vld [vmem:[#allocation5 + $0x310] sm:$0xff]  ;;  %v193_v1 = vld [vmem:[#allocation5 + $0x318] sm:$0xff]  ;;  %v179_v3 = vld [vmem:[#allocation5 + $0x2a8] sm:$0xff]  ;;  %v7442_v6 = vpack.c.bf16 %v161_v62, %v160_v61 }
  0x67   :  { %7399 = vmatpush3.bf16.msra.mxu0 %v7398_v31  ;;  %v210_v4 = vld [vmem:[#allocation5 + $0x3a0] sm:$0xff]  ;;  %v211_v5 = vld [vmem:[#allocation5 + $0x3a8] sm:$0xff]  ;;  %v7474_v7 = vpack.c.bf16 %v193_v1, %v192_v63  ;;  %v7444_v8 = vpack.c.bf16 %v179_v3, %v178_v2  ;;  %v180_v15 = vld [vmem:[#allocation5 + $0x2b0] sm:$0xff] }
  0x68   :  { %7401 = vmatprep.subr.bf16.mxu0 %v7400_v35  ;;  %v162_v9 = vld [vmem:[#allocation5 + $0x220] sm:$0xff]  ;;  %v163_v10 = vld [vmem:[#allocation5 + $0x228] sm:$0xff]  ;;  %v7476_v12 = vpack.c.bf16 %v211_v5, %v210_v4  ;;  %v181_v16 = vld [vmem:[#allocation5 + $0x2b8] sm:$0xff] }
  0x69   :  { %7431 = vmatpush3.bf16.msra.mxu1 %v7430_v34  ;;  %v194_v11 = vld [vmem:[#allocation5 + $0x320] sm:$0xff]  ;;  %v195_v14 = vld [vmem:[#allocation5 + $0x328] sm:$0xff]  ;;  %v212_v17 = vld [vmem:[#allocation5 + $0x3b0] sm:$0xff]  ;;  %v7446_v19 = vpack.c.bf16 %v163_v10, %v162_v9  ;;  %v7448_v21 = vpack.c.bf16 %v181_v16, %v180_v15 }
  0x6a   :  { %7433 = vmatprep.subr.bf16.mxu1 %v7432_v39  ;;  %v213_v18 = vld [vmem:[#allocation5 + $0x3b8] sm:$0xff]  ;;  %v7478_v20 = vpack.c.bf16 %v195_v14, %v194_v11  ;;  %v164_v22 = vld [vmem:[#allocation5 + $0x230] sm:$0xff]  ;;  %v183_v28 = vld [vmem:[#allocation5 + $0x2c8] sm:$0xff] }
  0x6b   :  { %7403 = vmatpush3.bf16.msra.mxu0 %v7402_v46  ;;  %v165_v23 = vld [vmem:[#allocation5 + $0x238] sm:$0xff]  ;;  %v196_v24 = vld [vmem:[#allocation5 + $0x330] sm:$0xff]  ;;  %v7480_v25 = vpack.c.bf16 %v213_v18, %v212_v17  ;;  %v214_v29 = vld [vmem:[#allocation5 + $0x3c0] sm:$0xff] }
  0x6c   :  { %7437 = vmatprep.subr.bf16.mxu0 %v7436_v48  ;;  %v197_v26 = vld [vmem:[#allocation5 + $0x338] sm:$0xff]  ;;  %v215_v30 = vld [vmem:[#allocation5 + $0x3c8] sm:$0xff]  ;;  %v7450_v32 = vpack.c.bf16 %v165_v23, %v164_v22  ;;  %v166_v37 = vld [vmem:[#allocation5 + $0x240] sm:$0xff] }
  0x6d   :  { %7435 = vmatpush3.bf16.msra.mxu1 %v7434_v47  ;;  %v71_v31 = vld [vmem:[#allocation2 + $0x8] sm:$0xff]  ;;  %v7482_v35 = vpack.c.bf16 %v197_v26, %v196_v24  ;;  %v198_v39 = vld [vmem:[#allocation5 + $0x340] sm:$0xff]  ;;  %v7484_v40 = vpack.c.bf16 %v215_v30, %v214_v29  ;;  %v184_v42 = vld [vmem:[#allocation5 + $0x2d0] sm:$0xff] }
  0x6e   :  { %7469 = vmatprep.subr.bf16.mxu1 %v7468_v52  ;;  %2230 = vmatmul.mubr.f32.vlgmr.msra.gmra.mrb[0].mxu0 %v1668_v27  ;;  %v182_v27 = vld [vmem:[#allocation5 + $0x2c0] sm:$0xff]  ;;  %v1678_v34 = vcombine.high %v71_v31, %v71_v31  ;;  %v167_v38 = vld [vmem:[#allocation5 + $0x248] sm:$0xff]  ;;  %v185_v43 = vld [vmem:[#allocation5 + $0x2d8] sm:$0xff] }
  0x6f   :  { %7439 = vmatpush3.bf16.msra.mxu0 %v7438_v58  ;;  %v7452_v36 = vpack.c.bf16 %v183_v28, %v182_v27  ;;  %v199_v41 = vld [vmem:[#allocation5 + $0x348] sm:$0xff]  ;;  %v216_v46 = vld [vmem:[#allocation5 + $0x3d0] sm:$0xff]  ;;  %v217_v47 = vld [vmem:[#allocation5 + $0x3d8] sm:$0xff]  ;;  %v7454_v48 = vpack.c.bf16 %v167_v38, %v166_v37  ;;  %v7456_v51 = vpack.c.bf16 %v185_v43, %v184_v42 }
  0x70   :  { %2300 = vmatmul.mubr.f32.vlgmr.msra.gmra.mrb[0].mxu1 %v1675_v33  ;;  %7441 = vmatprep.subr.bf16.mxu0 %v7440_v60  ;;  %v9179_v33 = vrot.slane %v71_v31, %v9174_v13  ;;  %v9184_v45 = vrot.slane %v1678_v34, %v9174_v13  ;;  %v7486_v50 = vpack.c.bf16 %v199_v41, %v198_v39  ;;  %v168_v52 = vld [vmem:[#allocation5 + $0x250] sm:$0xff]  ;;  %v169_v53 = vld [vmem:[#allocation5 + $0x258] sm:$0xff]  ;;  %v186_v57 = vld [vmem:[#allocation5 + $0x2e0] sm:$0xff] }
  0x71   :  { %7471 = vmatpush3.bf16.msra.mxu1 %v7470_v59  ;;  %v200_v54 = vld [vmem:[#allocation5 + $0x350] sm:$0xff]  ;;  %v7488_v55 = vpack.c.bf16 %v217_v47, %v216_v46  ;;  %v201_v56 = vld [vmem:[#allocation5 + $0x358] sm:$0xff]  ;;  %v187_v58 = vld [vmem:[#allocation5 + $0x2e8] sm:$0xff]  ;;  %v7458_v61 = vpack.c.bf16 %v169_v53, %v168_v52 }
  0x72   :  { %7473 = vmatprep.subr.bf16.mxu1 %v7472_v0  ;;  %v1693_v44 = vcombine.high %v9179_v33, %v9179_v33  ;;  %v1694_v49 = vcombine.high %v9184_v45, %v9184_v45  ;;  %v218_v59 = vld [vmem:[#allocation5 + $0x3e0] sm:$0xff]  ;;  %v219_v60 = vld [vmem:[#allocation5 + $0x3e8] sm:$0xff]  ;;  %v7490_v62 = vpack.c.bf16 %v201_v56, %v200_v54  ;;  %v7460_v63 = vpack.c.bf16 %v187_v58, %v186_v57  ;;  %v188_v5 = vld [vmem:[#allocation5 + $0x2f0] sm:$0xff] }
  0x73   :  { %7443 = vmatpush3.bf16.msra.mxu0 %v7442_v6  ;;  %v170_v0 = vld [vmem:[#allocation5 + $0x260] sm:$0xff]  ;;  %v171_v1 = vld [vmem:[#allocation5 + $0x268] sm:$0xff]  ;;  %v7492_v3 = vpack.c.bf16 %v219_v60, %v218_v59  ;;  %v189_v6 = vld [vmem:[#allocation5 + $0x2f8] sm:$0xff] }
  0x74   :  { %7445 = vmatprep.subr.bf16.mxu0 %v7444_v8  ;;  %2369 = vmatprep.mubr.f32.mxu0 %v1693_v44  ;;  %v202_v2 = vld [vmem:[#allocation5 + $0x360] sm:$0xff]  ;;  %v203_v4 = vld [vmem:[#allocation5 + $0x368] sm:$0xff]  ;;  %v221_v8 = vld [vmem:[#allocation5 + $0x3f8] sm:$0xff]  ;;  %v7462_v9 = vpack.c.bf16 %v171_v1, %v170_v0  ;;  %v7464_v11 = vpack.c.bf16 %v189_v6, %v188_v5 }
  0x75   :  { %7475 = vmatpush3.bf16.msra.mxu1 %v7474_v7  ;;  %2439 = vmatprep.mubr.f32.mxu1 %v1694_v49  ;;  %v220_v7 = vld [vmem:[#allocation5 + $0x3f0] sm:$0xff]  ;;  %v7494_v10 = vpack.c.bf16 %v203_v4, %v202_v2  ;;  %v173_v14 = vld [vmem:[#allocation5 + $0x278] sm:$0xff]  ;;  %v238_v18 = vld [vmem:[#allocation5 + $0x480] sm:$0xff] }
  0x76   :  { %7477 = vmatprep.subr.bf16.mxu1 %v7476_v12  ;;  %v172_v12 = vld [vmem:[#allocation5 + $0x270] sm:$0xff]  ;;  %v7496_v16 = vpack.c.bf16 %v221_v8, %v220_v7  ;;  %v205_v17 = vld [vmem:[#allocation5 + $0x378] sm:$0xff]  ;;  %v222_v23 = vld [vmem:[#allocation5 + $0x400] sm:$0xff] }
  0x77   :  { %7447 = vmatpush3.bf16.msra.mxu0 %v7446_v19  ;;  %v204_v15 = vld [vmem:[#allocation5 + $0x370] sm:$0xff]  ;;  %v239_v19 = vld [vmem:[#allocation5 + $0x488] sm:$0xff]  ;;  %v7466_v22 = vpack.c.bf16 %v173_v14, %v172_v12  ;;  %v254_v27 = vld [vmem:[#allocation5 + $0x500] sm:$0xff] }
  0x78   :  { %7449 = vmatprep.subr.bf16.mxu0 %v7448_v21  ;;  %v271_v21 = vld [vmem:[#allocation5 + $0x588] sm:$0xff]  ;;  %v7498_v24 = vpack.c.bf16 %v205_v17, %v204_v15  ;;  %v240_v30 = vld [vmem:[#allocation5 + $0x490] sm:$0xff]  ;;  %v241_v31 = vld [vmem:[#allocation5 + $0x498] sm:$0xff] }
  0x79   :  { %7479 = vmatpush3.bf16.msra.mxu1 %v7478_v20  ;;  %v270_v20 = vld [vmem:[#allocation5 + $0x580] sm:$0xff]  ;;  %v223_v26 = vld [vmem:[#allocation5 + $0x408] sm:$0xff]  ;;  %v273_v34 = vld [vmem:[#allocation5 + $0x598] sm:$0xff]  ;;  %v7504_v38 = vpack.c.bf16 %v241_v31, %v240_v30 }
  0x7a   :  { %7481 = vmatprep.subr.bf16.mxu1 %v7480_v25  ;;  %v7500_v25 = vpack.c.bf16 %v239_v19, %v238_v18  ;;  %v255_v28 = vld [vmem:[#allocation5 + $0x508] sm:$0xff]  ;;  %v7532_v29 = vpack.c.bf16 %v271_v21, %v270_v20  ;;  %v72_v37 = vld [vmem:[#allocation2 + $0x10] sm:$0xff]  ;;  %v257_v46 = vld [vmem:[#allocation5 + $0x518] sm:$0xff] }
  0x7b   :  { %7451 = vmatpush3.bf16.msra.mxu0 %v7450_v32  ;;  %v272_v32 = vld [vmem:[#allocation5 + $0x590] sm:$0xff]  ;;  %v9189_v42 = vrot.slane %v72_v37, %v9174_v13  ;;  %v1695_v43 = vcombine.high %v72_v37, %v72_v37  ;;  %v242_v47 = vld [vmem:[#allocation5 + $0x4a0] sm:$0xff]  ;;  %v227_v57 = vld [vmem:[#allocation5 + $0x428] sm:$0xff] }
  0x7c   :  { %7453 = vmatprep.subr.bf16.mxu0 %v7452_v36  ;;  %v7534_v36 = vpack.c.bf16 %v255_v28, %v254_v27  ;;  %v224_v39 = vld [vmem:[#allocation5 + $0x410] sm:$0xff]  ;;  %v7536_v44 = vpack.c.bf16 %v273_v34, %v272_v32  ;;  %v274_v49 = vld [vmem:[#allocation5 + $0x5a0] sm:$0xff]  ;;  %v259_v60 = vld [vmem:[#allocation5 + $0x528] sm:$0xff] }
  0x7d   :  { %7483 = vmatpush3.bf16.msra.mxu1 %v7482_v35  ;;  %v7502_v35 = vpack.c.bf16 %v223_v26, %v222_v23  ;;  %v256_v41 = vld [vmem:[#allocation5 + $0x510] sm:$0xff]  ;;  %v9195_v52 = vrot.slane %v1695_v43, %v9174_v13  ;;  %v226_v56 = vld [vmem:[#allocation5 + $0x420] sm:$0xff]  ;;  %v277_v0 = vld [vmem:[#allocation5 + $0x5b8] sm:$0xff] }
  0x7e   :  { %7485 = vmatprep.subr.bf16.mxu1 %v7484_v40  ;;  %v225_v40 = vld [vmem:[#allocation5 + $0x418] sm:$0xff]  ;;  %v7538_v54 = vpack.c.bf16 %v257_v46, %v256_v41  ;;  %v258_v58 = vld [vmem:[#allocation5 + $0x520] sm:$0xff]  ;;  %v260_v5 = vld [vmem:[#allocation5 + $0x530] sm:$0xff] }
  0x7f   :  { %7455 = vmatpush3.bf16.msra.mxu0 %v7454_v48  ;;  %v243_v48 = vld [vmem:[#allocation5 + $0x4a8] sm:$0xff]  ;;  %v7506_v53 = vpack.c.bf16 %v225_v40, %v224_v39  ;;  %v7542_v1 = vpack.c.bf16 %v259_v60, %v258_v58  ;;  %v229_v4 = vld [vmem:[#allocation5 + $0x438] sm:$0xff]  ;;  %v246_v8 = vld [vmem:[#allocation5 + $0x4c0] sm:$0xff] }
  0x80   :  { %7457 = vmatprep.subr.bf16.mxu0 %v7456_v51  ;;  %v1710_v51 = vcombine.high %v9189_v42, %v9189_v42  ;;  %v261_v7 = vld [vmem:[#allocation5 + $0x538] sm:$0xff]  ;;  %v231_v17 = vld [vmem:[#allocation5 + $0x448] sm:$0xff]  ;;  %v262_v18 = vld [vmem:[#allocation5 + $0x540] sm:$0xff] }
  0x81   :  { %7487 = vmatpush3.bf16.msra.mxu1 %v7486_v50  ;;  %v275_v50 = vld [vmem:[#allocation5 + $0x5a8] sm:$0xff]  ;;  %v7546_v14 = vpack.c.bf16 %v261_v7, %v260_v5  ;;  %v248_v21 = vld [vmem:[#allocation5 + $0x4d0] sm:$0xff]  ;;  %v265_v32 = vld [vmem:[#allocation5 + $0x558] sm:$0xff] }
  0x82   :  { %7489 = vmatprep.subr.bf16.mxu1 %v7488_v55  ;;  %v7508_v55 = vpack.c.bf16 %v243_v48, %v242_v47  ;;  %v7540_v59 = vpack.c.bf16 %v275_v50, %v274_v49  ;;  %v263_v20 = vld [vmem:[#allocation5 + $0x548] sm:$0xff]  ;;  %v280_v23 = vld [vmem:[#allocation5 + $0x5d0] sm:$0xff]  ;;  %v250_v34 = vld [vmem:[#allocation5 + $0x4e0] sm:$0xff] }
  0x83   :  { %7459 = vmatpush3.bf16.msra.mxu0 %v7458_v61  ;;  %v244_v61 = vld [vmem:[#allocation5 + $0x4b0] sm:$0xff]  ;;  %v7550_v26 = vpack.c.bf16 %v263_v20, %v262_v18  ;;  %v283_v37 = vld [vmem:[#allocation5 + $0x5e8] sm:$0xff]  ;;  %v234_v41 = vld [vmem:[#allocation5 + $0x460] sm:$0xff] }
  0x84   :  { %7461 = vmatprep.subr.bf16.mxu0 %v7460_v63  ;;  %v276_v63 = vld [vmem:[#allocation5 + $0x5b0] sm:$0xff]  ;;  %v235_v43 = vld [vmem:[#allocation5 + $0x468] sm:$0xff]  ;;  %v253_v49 = vld [vmem:[#allocation5 + $0x4f8] sm:$0xff] }
  0x85   :  { %7491 = vmatpush3.bf16.msra.mxu1 %v7490_v62  ;;  %v245_v62 = vld [vmem:[#allocation5 + $0x4b8] sm:$0xff]  ;;  %v7544_v6 = vpack.c.bf16 %v277_v0, %v276_v63  ;;  %v232_v28 = vld [vmem:[#allocation5 + $0x450] sm:$0xff]  ;;  %v267_v47 = vld [vmem:[#allocation5 + $0x568] sm:$0xff] }
  0x86   :  { %7493 = vmatprep.subr.bf16.mxu1 %v7492_v3  ;;  %v7512_v2 = vpack.c.bf16 %v245_v62, %v244_v61  ;;  %v228_v3 = vld [vmem:[#allocation5 + $0x430] sm:$0xff]  ;;  %v237_v58 = vld [vmem:[#allocation5 + $0x478] sm:$0xff]  ;;  %v302_v61 = vld [vmem:[#allocation5 + $0x680] sm:$0xff] }
  0x87   :  { %7463 = vmatpush3.bf16.msra.mxu0 %v7462_v9  ;;  %v247_v9 = vld [vmem:[#allocation5 + $0x4c8] sm:$0xff]  ;;  %v7514_v12 = vpack.c.bf16 %v229_v4, %v228_v3  ;;  %v264_v30 = vld [vmem:[#allocation5 + $0x550] sm:$0xff]  ;;  %v269_v60 = vld [vmem:[#allocation5 + $0x578] sm:$0xff] }
  0x88   :  { %7465 = vmatprep.subr.bf16.mxu0 %v7464_v11  ;;  %v279_v11 = vld [vmem:[#allocation5 + $0x5c8] sm:$0xff]  ;;  %v7516_v15 = vpack.c.bf16 %v247_v9, %v246_v8  ;;  %v7554_v39 = vpack.c.bf16 %v265_v32, %v264_v30  ;;  %v252_v48 = vld [vmem:[#allocation5 + $0x4f0] sm:$0xff]  ;;  %v334_v63 = vld [vmem:[#allocation5 + $0x780] sm:$0xff] }
  0x89   :  { %7495 = vmatpush3.bf16.msra.mxu1 %v7494_v10  ;;  %v278_v10 = vld [vmem:[#allocation5 + $0x5c0] sm:$0xff]  ;;  %v284_v50 = vld [vmem:[#allocation5 + $0x5f0] sm:$0xff]  ;;  %v303_v62 = vld [vmem:[#allocation5 + $0x688] sm:$0xff] }
  0x8a   :  { %7497 = vmatprep.subr.bf16.mxu1 %v7496_v16  ;;  %v230_v16 = vld [vmem:[#allocation5 + $0x440] sm:$0xff]  ;;  %v7548_v19 = vpack.c.bf16 %v279_v11, %v278_v10  ;;  %v335_v0 = vld [vmem:[#allocation5 + $0x788] sm:$0xff]  ;;  %v7564_v3 = vpack.c.bf16 %v303_v62, %v302_v61  ;;  %v304_v9 = vld [vmem:[#allocation5 + $0x690] sm:$0xff] }
  0x8b   :  { %7467 = vmatpush3.bf16.msra.mxu0 %v7466_v22  ;;  %v249_v22 = vld [vmem:[#allocation5 + $0x4d8] sm:$0xff]  ;;  %v286_v4 = vld [vmem:[#allocation5 + $0x600] sm:$0xff]  ;;  %v287_v5 = vld [vmem:[#allocation5 + $0x608] sm:$0xff]  ;;  %v7596_v7 = vpack.c.bf16 %v335_v0, %v334_v63 }
  0x8c   :  { %7501 = vmatprep.subr.bf16.mxu0 %v7500_v25  ;;  %v7518_v25 = vpack.c.bf16 %v231_v17, %v230_v16  ;;  %v7520_v27 = vpack.c.bf16 %v249_v22, %v248_v21  ;;  %v319_v8 = vld [vmem:[#allocation5 + $0x708] sm:$0xff]  ;;  %v305_v10 = vld [vmem:[#allocation5 + $0x698] sm:$0xff]  ;;  %v7566_v16 = vpack.c.bf16 %v287_v5, %v286_v4  ;;  %v320_v21 = vld [vmem:[#allocation5 + $0x710] sm:$0xff] }
  0x8d   :  { %7499 = vmatpush3.bf16.msra.mxu1 %v7498_v24  ;;  %v281_v24 = vld [vmem:[#allocation5 + $0x5d8] sm:$0xff]  ;;  %v7568_v18 = vpack.c.bf16 %v305_v10, %v304_v9  ;;  %v327_v62 = vld [vmem:[#allocation5 + $0x748] sm:$0xff]  ;;  %v312_v63 = vld [vmem:[#allocation5 + $0x6d0] sm:$0xff] }
  0x8e   :  { %7533 = vmatprep.subr.bf16.mxu1 %v7532_v29  ;;  %2370 = vmatmul.mubr.f32.vlgmr.msra.gmra.mrb[2].mxu0 %v9179_v33  ;;  %v1711_v33 = vcombine.high %v9195_v52, %v9195_v52  ;;  %v233_v29 = vld [vmem:[#allocation5 + $0x458] sm:$0xff]  ;;  %v7552_v31 = vpack.c.bf16 %v281_v24, %v280_v23  ;;  %v306_v24 = vld [vmem:[#allocation5 + $0x6a0] sm:$0xff]  ;;  %v296_v5 = vld [vmem:[#allocation5 + $0x650] sm:$0xff] }
  0x8f   :  { %7503 = vmatpush3.bf16.msra.mxu0 %v7502_v35  ;;  %2509 = vmatprep.mubr.f32.mxu0 %v1710_v51  ;;  %v251_v35 = vld [vmem:[#allocation5 + $0x4e8] sm:$0xff]  ;;  %v285_v51 = vld [vmem:[#allocation5 + $0x5f8] sm:$0xff]  ;;  %v314_v10 = vld [vmem:[#allocation5 + $0x6e0] sm:$0xff] }
  0x90   :  { %2440 = vmatmul.mubr.f32.vlgmr.msra.gmra.mrb[2].mxu1 %v9184_v45  ;;  %7505 = vmatprep.subr.bf16.mxu0 %v7504_v38  ;;  %v7510_v45 = vpack.c.bf16 %v227_v57, %v226_v56  ;;  %v7522_v38 = vpack.c.bf16 %v233_v29, %v232_v28  ;;  %v7524_v40 = vpack.c.bf16 %v251_v35, %v250_v34  ;;  %v236_v57 = vld [vmem:[#allocation5 + $0x470] sm:$0xff]  ;;  %v289_v20 = vld [vmem:[#allocation5 + $0x618] sm:$0xff]  ;;  %v339_v28 = vld [vmem:[#allocation5 + $0x7a8] sm:$0xff] }
  0x91   :  { %7535 = vmatpush3.bf16.msra.mxu1 %v7534_v36  ;;  %2579 = vmatprep.mubr.f32.mxu1 %v1711_v33  ;;  %v282_v36 = vld [vmem:[#allocation5 + $0x5e0] sm:$0xff]  ;;  %v7528_v56 = vpack.c.bf16 %v253_v49, %v252_v48  ;;  %v268_v33 = vld [vmem:[#allocation5 + $0x570] sm:$0xff]  ;;  %v321_v23 = vld [vmem:[#allocation5 + $0x718] sm:$0xff] }
  0x92   :  { %7537 = vmatprep.subr.bf16.mxu1 %v7536_v44  ;;  %v266_v44 = vld [vmem:[#allocation5 + $0x560] sm:$0xff]  ;;  %v7556_v46 = vpack.c.bf16 %v283_v37, %v282_v36  ;;  %v291_v35 = vld [vmem:[#allocation5 + $0x628] sm:$0xff]  ;;  %v324_v48 = vld [vmem:[#allocation5 + $0x730] sm:$0xff] }
  0x93   :  { %7507 = vmatpush3.bf16.msra.mxu0 %v7506_v53  ;;  %v7526_v53 = vpack.c.bf16 %v235_v43, %v234_v41  ;;  %v290_v34 = vld [vmem:[#allocation5 + $0x620] sm:$0xff]  ;;  %v341_v41 = vld [vmem:[#allocation5 + $0x7b8] sm:$0xff] }
  0x94   :  { %7509 = vmatprep.subr.bf16.mxu0 %v7508_v55  ;;  %v7558_v55 = vpack.c.bf16 %v267_v47, %v266_v44  ;;  %v322_v36 = vld [vmem:[#allocation5 + $0x720] sm:$0xff]  ;;  %v7574_v43 = vpack.c.bf16 %v291_v35, %v290_v34  ;;  %v293_v47 = vld [vmem:[#allocation5 + $0x638] sm:$0xff]  ;;  %v300_v34 = vld [vmem:[#allocation5 + $0x670] sm:$0xff] }
  0x95   :  { %7539 = vmatpush3.bf16.msra.mxu1 %v7538_v54  ;;  %v73_v54 = vld [vmem:[#allocation2 + $0x18] sm:$0xff] }
  0x96   :  { %7541 = vmatprep.subr.bf16.mxu1 %v7540_v59  ;;  %v7560_v59 = vpack.c.bf16 %v285_v51, %v284_v50  ;;  %v9201_v11 = vrot.slane %v73_v54, %v9174_v13  ;;  %v325_v50 = vld [vmem:[#allocation5 + $0x738] sm:$0xff]  ;;  %v310_v51 = vld [vmem:[#allocation5 + $0x6c0] sm:$0xff] }
  0x97   :  { %7511 = vmatpush3.bf16.msra.mxu0 %v7510_v45  ;;  %v1712_v45 = vcombine.high %v73_v54, %v73_v54  ;;  %v342_v54 = vld [vmem:[#allocation5 + $0x7c0] sm:$0xff]  ;;  %v313_v0 = vld [vmem:[#allocation5 + $0x6d8] sm:$0xff] }
  0x98   :  { %7513 = vmatprep.subr.bf16.mxu0 %v7512_v2  ;;  %v7562_v2 = vpack.c.bf16 %v269_v60, %v268_v33  ;;  %v294_v33 = vld [vmem:[#allocation5 + $0x640] sm:$0xff]  ;;  %v7584_v4 = vpack.c.bf16 %v313_v0, %v312_v63  ;;  %v329_v9 = vld [vmem:[#allocation5 + $0x758] sm:$0xff]  ;;  %v384_v63 = vld [vmem:[#allocation5 + $0x910] sm:$0xff] }
  0x99   :  { %7543 = vmatpush3.bf16.msra.mxu1 %v7542_v1  ;;  %v7530_v1 = vpack.c.bf16 %v237_v58, %v236_v57  ;;  %v7610_v57 = vpack.c.bf16 %v325_v50, %v324_v48  ;;  %v326_v60 = vld [vmem:[#allocation5 + $0x740] sm:$0xff]  ;;  %v301_v35 = vld [vmem:[#allocation5 + $0x678] sm:$0xff]  ;;  %v351_v48 = vld [vmem:[#allocation5 + $0x808] sm:$0xff] }
  0x9a   :  { %7545 = vmatprep.subr.bf16.mxu1 %v7544_v6  ;;  %v318_v6 = vld [vmem:[#allocation5 + $0x700] sm:$0xff] }
  0x9b   :  { %7515 = vmatpush3.bf16.msra.mxu0 %v7514_v12  ;;  %v336_v12 = vld [vmem:[#allocation5 + $0x790] sm:$0xff]  ;;  %v7598_v17 = vpack.c.bf16 %v319_v8, %v318_v6  ;;  %v297_v6 = vld [vmem:[#allocation5 + $0x658] sm:$0xff] }
  0x9c   :  { %7517 = vmatprep.subr.bf16.mxu0 %v7516_v15  ;;  %v9204_v15 = vrot.slane %v1712_v45, %v9174_v13  ;;  %v344_v45 = vld [vmem:[#allocation5 + $0x7d0] sm:$0xff] }
  0x9d   :  { %7547 = vmatpush3.bf16.msra.mxu1 %v7546_v14  ;;  %v337_v14 = vld [vmem:[#allocation5 + $0x798] sm:$0xff] }
  0x9e   :  { %7549 = vmatprep.subr.bf16.mxu1 %v7548_v19  ;;  %v288_v19 = vld [vmem:[#allocation5 + $0x610] sm:$0xff]  ;;  %v7600_v22 = vpack.c.bf16 %v337_v14, %v336_v12  ;;  %v1728_v29 = vcombine.high %v9204_v15, %v9204_v15  ;;  %v315_v12 = vld [vmem:[#allocation5 + $0x6e8] sm:$0xff]  ;;  %v346_v14 = vld [vmem:[#allocation5 + $0x7e0] sm:$0xff] }
  0x9f   :  { %7519 = vmatpush3.bf16.msra.mxu0 %v7518_v25  ;;  %v307_v25 = vld [vmem:[#allocation5 + $0x6a8] sm:$0xff]  ;;  %v7570_v30 = vpack.c.bf16 %v289_v20, %v288_v19  ;;  %v7588_v19 = vpack.c.bf16 %v315_v12, %v314_v10  ;;  %v298_v20 = vld [vmem:[#allocation5 + $0x660] sm:$0xff] }
  0xa0   :  { %7521 = vmatprep.subr.bf16.mxu0 %v7520_v27  ;;  %v338_v27 = vld [vmem:[#allocation5 + $0x7a0] sm:$0xff]  ;;  %v7572_v32 = vpack.c.bf16 %v307_v25, %v306_v24  ;;  %v331_v24 = vld [vmem:[#allocation5 + $0x768] sm:$0xff]  ;;  %v316_v25 = vld [vmem:[#allocation5 + $0x6f0] sm:$0xff] }
  0xa1   :  { %7551 = vmatpush3.bf16.msra.mxu1 %v7550_v26  ;;  %v1727_v26 = vcombine.high %v9201_v11, %v9201_v11  ;;  %v7604_v37 = vpack.c.bf16 %v339_v28, %v338_v27  ;;  %v348_v27 = vld [vmem:[#allocation5 + $0x7f0] sm:$0xff]  ;;  %v349_v28 = vld [vmem:[#allocation5 + $0x7f8] sm:$0xff]  ;;  %v354_v10 = vld [vmem:[#allocation5 + $0x820] sm:$0xff] }
  0xa2   :  { %7553 = vmatprep.subr.bf16.mxu1 %v7552_v31  ;;  %v7602_v31 = vpack.c.bf16 %v321_v23, %v320_v21  ;;  %v299_v21 = vld [vmem:[#allocation5 + $0x668] sm:$0xff] }
  0xa3   :  { %7523 = vmatpush3.bf16.msra.mxu0 %v7522_v38  ;;  %v323_v38 = vld [vmem:[#allocation5 + $0x728] sm:$0xff] }
  0xa4   :  { %7525 = vmatprep.subr.bf16.mxu0 %v7524_v40  ;;  %v340_v40 = vld [vmem:[#allocation5 + $0x7b0] sm:$0xff]  ;;  %v355_v12 = vld [vmem:[#allocation5 + $0x828] sm:$0xff] }
  0xa5   :  { %7555 = vmatpush3.bf16.msra.mxu1 %v7554_v39  ;;  %v309_v39 = vld [vmem:[#allocation5 + $0x6b8] sm:$0xff]  ;;  %v7608_v49 = vpack.c.bf16 %v341_v41, %v340_v40  ;;  %v398_v40 = vld [vmem:[#allocation5 + $0x980] sm:$0xff]  ;;  %v399_v41 = vld [vmem:[#allocation5 + $0x988] sm:$0xff] }
  0xa6   :  { %7557 = vmatprep.subr.bf16.mxu1 %v7556_v46  ;;  %v292_v46 = vld [vmem:[#allocation5 + $0x630] sm:$0xff]  ;;  %v7660_v50 = vpack.c.bf16 %v399_v41, %v398_v40  ;;  %v377_v41 = vld [vmem:[#allocation5 + $0x8d8] sm:$0xff] }
  0xa7   :  { %7527 = vmatpush3.bf16.msra.mxu0 %v7526_v53  ;;  %v311_v53 = vld [vmem:[#allocation5 + $0x6c8] sm:$0xff]  ;;  %v376_v40 = vld [vmem:[#allocation5 + $0x8d0] sm:$0xff] }
  0xa8   :  { %7529 = vmatprep.subr.bf16.mxu0 %v7528_v56  ;;  %v7578_v56 = vpack.c.bf16 %v293_v47, %v292_v46  ;;  %v7580_v58 = vpack.c.bf16 %v311_v53, %v310_v51  ;;  %v350_v47 = vld [vmem:[#allocation5 + $0x800] sm:$0xff]  ;;  %v383_v51 = vld [vmem:[#allocation5 + $0x908] sm:$0xff]  ;;  %v368_v53 = vld [vmem:[#allocation5 + $0x890] sm:$0xff] }
  0xa9   :  { %7559 = vmatpush3.bf16.msra.mxu1 %v7558_v55  ;;  %v343_v55 = vld [vmem:[#allocation5 + $0x7c8] sm:$0xff] }
  0xaa   :  { %7561 = vmatprep.subr.bf16.mxu1 %v7560_v59  ;;  %v295_v59 = vld [vmem:[#allocation5 + $0x648] sm:$0xff]  ;;  %v7612_v61 = vpack.c.bf16 %v343_v55, %v342_v54  ;;  %v369_v54 = vld [vmem:[#allocation5 + $0x898] sm:$0xff] }
  0xab   :  { %7531 = vmatpush3.bf16.msra.mxu0 %v7530_v1  ;;  %v345_v1 = vld [vmem:[#allocation5 + $0x7d8] sm:$0xff] }
  0xac   :  { %7565 = vmatprep.subr.bf16.mxu0 %v7564_v3  ;;  %v7614_v3 = vpack.c.bf16 %v327_v62, %v326_v60  ;;  %v7616_v8 = vpack.c.bf16 %v345_v1, %v344_v45  ;;  %v7632_v60 = vpack.c.bf16 %v369_v54, %v368_v53  ;;  %v353_v62 = vld [vmem:[#allocation5 + $0x818] sm:$0xff]  ;;  %v370_v1 = vld [vmem:[#allocation5 + $0x8a0] sm:$0xff] }
  0xad   :  { %7563 = vmatpush3.bf16.msra.mxu1 %v7562_v2  ;;  %v7582_v2 = vpack.c.bf16 %v295_v59, %v294_v33  ;;  %v7630_v33 = vpack.c.bf16 %v351_v48, %v350_v47  ;;  %v385_v45 = vld [vmem:[#allocation5 + $0x918] sm:$0xff]  ;;  %v7648_v47 = vpack.c.bf16 %v377_v41, %v376_v40  ;;  %v360_v48 = vld [vmem:[#allocation5 + $0x850] sm:$0xff]  ;;  %v378_v54 = vld [vmem:[#allocation5 + $0x8e0] sm:$0xff] }
  0xae   :  { %7597 = vmatprep.subr.bf16.mxu1 %v7596_v7  ;;  %2510 = vmatmul.mubr.f32.vlgmr.msra.gmra.mrb[4].mxu0 %v9189_v42  ;;  %v308_v42 = vld [vmem:[#allocation5 + $0x6b0] sm:$0xff]  ;;  %v393_v53 = vld [vmem:[#allocation5 + $0x958] sm:$0xff] }
  0xaf   :  { %7567 = vmatpush3.bf16.msra.mxu0 %v7566_v16  ;;  %2649 = vmatprep.mubr.f32.mxu0 %v1727_v26  ;;  %v7576_v44 = vpack.c.bf16 %v309_v39, %v308_v42  ;;  %v328_v7 = vld [vmem:[#allocation5 + $0x750] sm:$0xff]  ;;  %v347_v16 = vld [vmem:[#allocation5 + $0x7e8] sm:$0xff]  ;;  %v317_v26 = vld [vmem:[#allocation5 + $0x6f8] sm:$0xff] }
  0xb0   :  { %2580 = vmatmul.mubr.f32.vlgmr.msra.gmra.mrb[4].mxu1 %v9195_v52  ;;  %7569 = vmatprep.subr.bf16.mxu0 %v7568_v18  ;;  %v7606_v52 = vpack.c.bf16 %v323_v38, %v322_v36  ;;  %v7618_v18 = vpack.c.bf16 %v329_v9, %v328_v7  ;;  %v7620_v23 = vpack.c.bf16 %v347_v16, %v346_v14  ;;  %v332_v36 = vld [vmem:[#allocation5 + $0x770] sm:$0xff]  ;;  %v333_v38 = vld [vmem:[#allocation5 + $0x778] sm:$0xff]  ;;  %v366_v42 = vld [vmem:[#allocation5 + $0x880] sm:$0xff] }
  0xb1   :  { %7599 = vmatpush3.bf16.msra.mxu1 %v7598_v17  ;;  %2719 = vmatprep.mubr.f32.mxu1 %v1728_v29  ;;  %v7586_v17 = vpack.c.bf16 %v297_v6, %v296_v5  ;;  %v7590_v29 = vpack.c.bf16 %v299_v21, %v298_v20  ;;  %v367_v39 = vld [vmem:[#allocation5 + $0x888] sm:$0xff]  ;;  %v386_v14 = vld [vmem:[#allocation5 + $0x920] sm:$0xff]  ;;  %v405_v20 = vld [vmem:[#allocation5 + $0x9b8] sm:$0xff]  ;;  %v7638_v21 = vpack.c.bf16 %v355_v12, %v354_v10 }
  0xb2   :  { %7601 = vmatprep.subr.bf16.mxu1 %v7600_v22  ;;  %v330_v22 = vld [vmem:[#allocation5 + $0x760] sm:$0xff]  ;;  %v7628_v46 = vpack.c.bf16 %v367_v39, %v366_v42  ;;  %v403_v5 = vld [vmem:[#allocation5 + $0x9a8] sm:$0xff]  ;;  %v364_v10 = vld [vmem:[#allocation5 + $0x870] sm:$0xff] }
  0xb3   :  { %7571 = vmatpush3.bf16.msra.mxu0 %v7570_v30  ;;  %v74_v30 = vld [vmem:[#allocation2 + $0x20] sm:$0xff]  ;;  %v391_v39 = vld [vmem:[#allocation5 + $0x948] sm:$0xff]  ;;  %v365_v12 = vld [vmem:[#allocation5 + $0x878] sm:$0xff] }
  0xb4   :  { %7573 = vmatprep.subr.bf16.mxu0 %v7572_v32  ;;  %v7592_v32 = vpack.c.bf16 %v317_v26, %v316_v25  ;;  %v9213_v55 = vrot.slane %v74_v30, %v9174_v13  ;;  %v388_v25 = vld [vmem:[#allocation5 + $0x930] sm:$0xff] }
  0xb5   :  { %7603 = vmatpush3.bf16.msra.mxu1 %v7602_v31  ;;  %v7622_v31 = vpack.c.bf16 %v331_v24, %v330_v22  ;;  %v357_v24 = vld [vmem:[#allocation5 + $0x838] sm:$0xff]  ;;  %v448_v40 = vld [vmem:[#allocation5 + $0xb10] sm:$0xff] }
  0xb6   :  { %7605 = vmatprep.subr.bf16.mxu1 %v7604_v37  ;;  %v7624_v37 = vpack.c.bf16 %v349_v28, %v348_v27  ;;  %v389_v27 = vld [vmem:[#allocation5 + $0x938] sm:$0xff]  ;;  %v374_v28 = vld [vmem:[#allocation5 + $0x8c0] sm:$0xff] }
  0xb7   :  { %7575 = vmatpush3.bf16.msra.mxu0 %v7574_v43  ;;  %v1729_v43 = vcombine.high %v74_v30, %v74_v30  ;;  %v406_v30 = vld [vmem:[#allocation5 + $0x9c0] sm:$0xff] }
  0xb8   :  { %7577 = vmatprep.subr.bf16.mxu0 %v7576_v44  ;;  %v7626_v44 = vpack.c.bf16 %v333_v38, %v332_v36  ;;  %v358_v36 = vld [vmem:[#allocation5 + $0x840] sm:$0xff] }
  0xb9   :  { %7607 = vmatpush3.bf16.msra.mxu1 %v7606_v52  ;;  %v7594_v52 = vpack.c.bf16 %v301_v35, %v300_v34  ;;  %v7674_v34 = vpack.c.bf16 %v389_v27, %v388_v25  ;;  %v390_v38 = vld [vmem:[#allocation5 + $0x940] sm:$0xff]  ;;  %v415_v25 = vld [vmem:[#allocation5 + $0xa08] sm:$0xff] }
  0xba   :  { %7609 = vmatprep.subr.bf16.mxu1 %v7608_v49  ;;  %v382_v49 = vld [vmem:[#allocation5 + $0x900] sm:$0xff] }
  0xbb   :  { %7579 = vmatpush3.bf16.msra.mxu0 %v7578_v56  ;;  %v400_v56 = vld [vmem:[#allocation5 + $0x990] sm:$0xff]  ;;  %v7662_v59 = vpack.c.bf16 %v383_v51, %v382_v49  ;;  %v361_v49 = vld [vmem:[#allocation5 + $0x858] sm:$0xff] }
  0xbc   :  { %7581 = vmatprep.subr.bf16.mxu0 %v7580_v58  ;;  %v9216_v58 = vrot.slane %v1729_v43, %v9174_v13  ;;  %v408_v43 = vld [vmem:[#allocation5 + $0x9d0] sm:$0xff] }
  0xbd   :  { %7611 = vmatpush3.bf16.msra.mxu1 %v7610_v57  ;;  %v401_v57 = vld [vmem:[#allocation5 + $0x998] sm:$0xff] }
  0xbe   :  { %7613 = vmatprep.subr.bf16.mxu1 %v7612_v61  ;;  %v352_v61 = vld [vmem:[#allocation5 + $0x810] sm:$0xff]  ;;  %v7664_v0 = vpack.c.bf16 %v401_v57, %v400_v56  ;;  %v1745_v6 = vcombine.high %v9216_v58, %v9216_v58  ;;  %v379_v56 = vld [vmem:[#allocation5 + $0x8e8] sm:$0xff]  ;;  %v410_v57 = vld [vmem:[#allocation5 + $0x9e0] sm:$0xff] }
  0xbf   :  { %7583 = vmatpush3.bf16.msra.mxu0 %v7582_v2  ;;  %v371_v2 = vld [vmem:[#allocation5 + $0x8a8] sm:$0xff]  ;;  %v7634_v7 = vpack.c.bf16 %v353_v62, %v352_v61  ;;  %v7652_v61 = vpack.c.bf16 %v379_v56, %v378_v54  ;;  %v362_v62 = vld [vmem:[#allocation5 + $0x860] sm:$0xff] }
  0xc0   :  { %7585 = vmatprep.subr.bf16.mxu0 %v7584_v4  ;;  %v402_v4 = vld [vmem:[#allocation5 + $0x9a0] sm:$0xff]  ;;  %v7636_v9 = vpack.c.bf16 %v371_v2, %v370_v1  ;;  %v395_v1 = vld [vmem:[#allocation5 + $0x968] sm:$0xff]  ;;  %v380_v2 = vld [vmem:[#allocation5 + $0x8f0] sm:$0xff] }
  0xc1   :  { %7615 = vmatpush3.bf16.msra.mxu1 %v7614_v3  ;;  %v1744_v3 = vcombine.high %v9213_v55, %v9213_v55  ;;  %v7668_v16 = vpack.c.bf16 %v403_v5, %v402_v4  ;;  %v412_v4 = vld [vmem:[#allocation5 + $0x9f0] sm:$0xff]  ;;  %v413_v5 = vld [vmem:[#allocation5 + $0x9f8] sm:$0xff]  ;;  %v418_v54 = vld [vmem:[#allocation5 + $0xa20] sm:$0xff] }
  0xc2   :  { %7617 = vmatprep.subr.bf16.mxu1 %v7616_v8  ;;  %v7666_v8 = vpack.c.bf16 %v385_v45, %v384_v63  ;;  %v363_v63 = vld [vmem:[#allocation5 + $0x868] sm:$0xff] }
  0xc3   :  { %7587 = vmatpush3.bf16.msra.mxu0 %v7586_v17  ;;  %v387_v17 = vld [vmem:[#allocation5 + $0x928] sm:$0xff] }
  0xc4   :  { %7589 = vmatprep.subr.bf16.mxu0 %v7588_v19  ;;  %v404_v19 = vld [vmem:[#allocation5 + $0x9b0] sm:$0xff]  ;;  %v419_v56 = vld [vmem:[#allocation5 + $0xa28] sm:$0xff] }
  0xc5   :  { %7619 = vmatpush3.bf16.msra.mxu1 %v7618_v18  ;;  %v373_v18 = vld [vmem:[#allocation5 + $0x8b8] sm:$0xff]  ;;  %v7672_v26 = vpack.c.bf16 %v405_v20, %v404_v19  ;;  %v462_v19 = vld [vmem:[#allocation5 + $0xb80] sm:$0xff]  ;;  %v463_v20 = vld [vmem:[#allocation5 + $0xb88] sm:$0xff] }
  0xc6   :  { %7621 = vmatprep.subr.bf16.mxu1 %v7620_v23  ;;  %v356_v23 = vld [vmem:[#allocation5 + $0x830] sm:$0xff]  ;;  %v7724_v27 = vpack.c.bf16 %v463_v20, %v462_v19  ;;  %v441_v20 = vld [vmem:[#allocation5 + $0xad8] sm:$0xff] }
  0xc7   :  { %7591 = vmatpush3.bf16.msra.mxu0 %v7590_v29  ;;  %v375_v29 = vld [vmem:[#allocation5 + $0x8c8] sm:$0xff]  ;;  %v440_v19 = vld [vmem:[#allocation5 + $0xad0] sm:$0xff] }
  0xc8   :  { %7593 = vmatprep.subr.bf16.mxu0 %v7592_v32  ;;  %v7642_v32 = vpack.c.bf16 %v357_v24, %v356_v23  ;;  %v7644_v35 = vpack.c.bf16 %v375_v29, %v374_v28  ;;  %v414_v24 = vld [vmem:[#allocation5 + $0xa00] sm:$0xff]  ;;  %v447_v28 = vld [vmem:[#allocation5 + $0xb08] sm:$0xff]  ;;  %v432_v29 = vld [vmem:[#allocation5 + $0xa90] sm:$0xff] }
  0xc9   :  { %7623 = vmatpush3.bf16.msra.mxu1 %v7622_v31  ;;  %v407_v31 = vld [vmem:[#allocation5 + $0x9c8] sm:$0xff] }
  0xca   :  { %7625 = vmatprep.subr.bf16.mxu1 %v7624_v37  ;;  %v359_v37 = vld [vmem:[#allocation5 + $0x848] sm:$0xff]  ;;  %v7676_v42 = vpack.c.bf16 %v407_v31, %v406_v30  ;;  %v433_v30 = vld [vmem:[#allocation5 + $0xa98] sm:$0xff] }
  0xcb   :  { %7595 = vmatpush3.bf16.msra.mxu0 %v7594_v52  ;;  %v409_v52 = vld [vmem:[#allocation5 + $0x9d8] sm:$0xff] }
  0xcc   :  { %7629 = vmatprep.subr.bf16.mxu0 %v7628_v46  ;;  %v7678_v46 = vpack.c.bf16 %v391_v39, %v390_v38  ;;  %v7680_v51 = vpack.c.bf16 %v409_v52, %v408_v43  ;;  %v7696_v38 = vpack.c.bf16 %v433_v30, %v432_v29  ;;  %v417_v39 = vld [vmem:[#allocation5 + $0xa18] sm:$0xff]  ;;  %v434_v52 = vld [vmem:[#allocation5 + $0xaa0] sm:$0xff] }
  0xcd   :  { %7627 = vmatpush3.bf16.msra.mxu1 %v7626_v44  ;;  %v7646_v44 = vpack.c.bf16 %v359_v37, %v358_v36  ;;  %v7694_v36 = vpack.c.bf16 %v415_v25, %v414_v24  ;;  %v449_v43 = vld [vmem:[#allocation5 + $0xb18] sm:$0xff]  ;;  %v7712_v24 = vpack.c.bf16 %v441_v20, %v440_v19  ;;  %v424_v25 = vld [vmem:[#allocation5 + $0xa50] sm:$0xff]  ;;  %v442_v30 = vld [vmem:[#allocation5 + $0xae0] sm:$0xff] }
  0xce   :  { %7661 = vmatprep.subr.bf16.mxu1 %v7660_v50  ;;  %2650 = vmatmul.mubr.f32.vlgmr.msra.gmra.mrb[6].mxu0 %v9201_v11  ;;  %v372_v11 = vld [vmem:[#allocation5 + $0x8b0] sm:$0xff]  ;;  %v457_v29 = vld [vmem:[#allocation5 + $0xb58] sm:$0xff] }
  0xcf   :  { %7631 = vmatpush3.bf16.msra.mxu0 %v7630_v33  ;;  %2789 = vmatprep.mubr.f32.mxu0 %v1744_v3  ;;  %v7640_v22 = vpack.c.bf16 %v373_v18, %v372_v11  ;;  %v392_v50 = vld [vmem:[#allocation5 + $0x950] sm:$0xff]  ;;  %v411_v33 = vld [vmem:[#allocation5 + $0x9e8] sm:$0xff]  ;;  %v381_v3 = vld [vmem:[#allocation5 + $0x8f8] sm:$0xff] }
  0xd0   :  { %2720 = vmatmul.mubr.f32.vlgmr.msra.gmra.mrb[6].mxu1 %v9204_v15  ;;  %7633 = vmatprep.subr.bf16.mxu0 %v7632_v60  ;;  %v7670_v15 = vpack.c.bf16 %v387_v17, %v386_v14  ;;  %v7682_v60 = vpack.c.bf16 %v393_v53, %v392_v50  ;;  %v7684_v45 = vpack.c.bf16 %v411_v33, %v410_v57  ;;  %v396_v14 = vld [vmem:[#allocation5 + $0x970] sm:$0xff]  ;;  %v397_v17 = vld [vmem:[#allocation5 + $0x978] sm:$0xff]  ;;  %v430_v11 = vld [vmem:[#allocation5 + $0xa80] sm:$0xff] }
  0xd1   :  { %7663 = vmatpush3.bf16.msra.mxu1 %v7662_v59  ;;  %2859 = vmatprep.mubr.f32.mxu1 %v1745_v6  ;;  %v7650_v59 = vpack.c.bf16 %v361_v49, %v360_v48  ;;  %v7654_v6 = vpack.c.bf16 %v363_v63, %v362_v62  ;;  %v431_v18 = vld [vmem:[#allocation5 + $0xa88] sm:$0xff]  ;;  %v450_v57 = vld [vmem:[#allocation5 + $0xb20] sm:$0xff]  ;;  %v469_v62 = vld [vmem:[#allocation5 + $0xbb8] sm:$0xff]  ;;  %v7702_v63 = vpack.c.bf16 %v419_v56, %v418_v54 }
  0xd2   :  { %7665 = vmatprep.subr.bf16.mxu1 %v7664_v0  ;;  %v394_v0 = vld [vmem:[#allocation5 + $0x960] sm:$0xff]  ;;  %v7692_v23 = vpack.c.bf16 %v431_v18, %v430_v11  ;;  %v467_v48 = vld [vmem:[#allocation5 + $0xba8] sm:$0xff]  ;;  %v428_v54 = vld [vmem:[#allocation5 + $0xa70] sm:$0xff] }
  0xd3   :  { %7635 = vmatpush3.bf16.msra.mxu0 %v7634_v7  ;;  %v75_v7 = vld [vmem:[#allocation2 + $0x28] sm:$0xff]  ;;  %v429_v56 = vld [vmem:[#allocation5 + $0xa78] sm:$0xff]  ;;  %v512_v19 = vld [vmem:[#allocation5 + $0xd10] sm:$0xff] }
  0xd4   :  { %7637 = vmatprep.subr.bf16.mxu0 %v7636_v9  ;;  %v7656_v9 = vpack.c.bf16 %v381_v3, %v380_v2  ;;  %v9225_v31 = vrot.slane %v75_v7, %v9174_v13  ;;  %v452_v2 = vld [vmem:[#allocation5 + $0xb30] sm:$0xff]  ;;  %v455_v18 = vld [vmem:[#allocation5 + $0xb48] sm:$0xff] }
  0xd5   :  { %7667 = vmatpush3.bf16.msra.mxu1 %v7666_v8  ;;  %v7686_v8 = vpack.c.bf16 %v395_v1, %v394_v0  ;;  %v421_v1 = vld [vmem:[#allocation5 + $0xa38] sm:$0xff] }
  0xd6   :  { %7669 = vmatprep.subr.bf16.mxu1 %v7668_v16  ;;  %v7688_v16 = vpack.c.bf16 %v413_v5, %v412_v4  ;;  %v453_v4 = vld [vmem:[#allocation5 + $0xb38] sm:$0xff]  ;;  %v438_v5 = vld [vmem:[#allocation5 + $0xac0] sm:$0xff] }
  0xd7   :  { %7639 = vmatpush3.bf16.msra.mxu0 %v7638_v21  ;;  %v1746_v21 = vcombine.high %v75_v7, %v75_v7  ;;  %v470_v7 = vld [vmem:[#allocation5 + $0xbc0] sm:$0xff] }
  0xd8   :  { %7641 = vmatprep.subr.bf16.mxu0 %v7640_v22  ;;  %v7690_v22 = vpack.c.bf16 %v397_v17, %v396_v14  ;;  %v422_v14 = vld [vmem:[#allocation5 + $0xa40] sm:$0xff] }
  0xd9   :  { %7671 = vmatpush3.bf16.msra.mxu1 %v7670_v15  ;;  %v7658_v15 = vpack.c.bf16 %v365_v12, %v364_v10  ;;  %v7738_v10 = vpack.c.bf16 %v453_v4, %v452_v2  ;;  %v454_v17 = vld [vmem:[#allocation5 + $0xb40] sm:$0xff]  ;;  %v479_v2 = vld [vmem:[#allocation5 + $0xc08] sm:$0xff] }
  0xda   :  { %7673 = vmatprep.subr.bf16.mxu1 %v7672_v26  ;;  %v446_v26 = vld [vmem:[#allocation5 + $0xb00] sm:$0xff] }
  0xdb   :  { %7643 = vmatpush3.bf16.msra.mxu0 %v7642_v32  ;;  %v464_v32 = vld [vmem:[#allocation5 + $0xb90] sm:$0xff]  ;;  %v7726_v37 = vpack.c.bf16 %v447_v28, %v446_v26  ;;  %v425_v26 = vld [vmem:[#allocation5 + $0xa58] sm:$0xff] }
  0xdc   :  { %7645 = vmatprep.subr.bf16.mxu0 %v7644_v35  ;;  %v9228_v35 = vrot.slane %v1746_v21, %v9174_v13  ;;  %v472_v21 = vld [vmem:[#allocation5 + $0xbd0] sm:$0xff] }
  0xdd   :  { %7675 = vmatpush3.bf16.msra.mxu1 %v7674_v34  ;;  %v465_v34 = vld [vmem:[#allocation5 + $0xb98] sm:$0xff] }
  0xde   :  { %7677 = vmatprep.subr.bf16.mxu1 %v7676_v42  ;;  %v416_v42 = vld [vmem:[#allocation5 + $0xa10] sm:$0xff]  ;;  %v7728_v41 = vpack.c.bf16 %v465_v34, %v464_v32  ;;  %v1762_v49 = vcombine.high %v9228_v35, %v9228_v35  ;;  %v443_v32 = vld [vmem:[#allocation5 + $0xae8] sm:$0xff]  ;;  %v474_v34 = vld [vmem:[#allocation5 + $0xbe0] sm:$0xff] }
  0xdf   :  { %7647 = vmatpush3.bf16.msra.mxu0 %v7646_v44  ;;  %v435_v44 = vld [vmem:[#allocation5 + $0xaa8] sm:$0xff]  ;;  %v7698_v50 = vpack.c.bf16 %v417_v39, %v416_v42  ;;  %v7716_v42 = vpack.c.bf16 %v443_v32, %v442_v30  ;;  %v426_v39 = vld [vmem:[#allocation5 + $0xa60] sm:$0xff] }
  0xe0   :  { %7649 = vmatprep.subr.bf16.mxu0 %v7648_v47  ;;  %v466_v47 = vld [vmem:[#allocation5 + $0xba0] sm:$0xff]  ;;  %v7700_v53 = vpack.c.bf16 %v435_v44, %v434_v52  ;;  %v459_v52 = vld [vmem:[#allocation5 + $0xb68] sm:$0xff]  ;;  %v444_v44 = vld [vmem:[#allocation5 + $0xaf0] sm:$0xff] }
  0xe1   :  { %7679 = vmatpush3.bf16.msra.mxu1 %v7678_v46  ;;  %v1761_v46 = vcombine.high %v9225_v31, %v9225_v31  ;;  %v7732_v33 = vpack.c.bf16 %v467_v48, %v466_v47  ;;  %v476_v47 = vld [vmem:[#allocation5 + $0xbf0] sm:$0xff]  ;;  %v477_v48 = vld [vmem:[#allocation5 + $0xbf8] sm:$0xff]  ;;  %v482_v30 = vld [vmem:[#allocation5 + $0xc20] sm:$0xff] }
  0xe2   :  { %7681 = vmatprep.subr.bf16.mxu1 %v7680_v51  ;;  %v7730_v51 = vpack.c.bf16 %v449_v43, %v448_v40  ;;  %v427_v40 = vld [vmem:[#allocation5 + $0xa68] sm:$0xff] }
  0xe3   :  { %7651 = vmatpush3.bf16.msra.mxu0 %v7650_v59  ;;  %v451_v59 = vld [vmem:[#allocation5 + $0xb28] sm:$0xff] }
  0xe4   :  { %7653 = vmatprep.subr.bf16.mxu0 %v7652_v61  ;;  %v468_v61 = vld [vmem:[#allocation5 + $0xbb0] sm:$0xff]  ;;  %v483_v32 = vld [vmem:[#allocation5 + $0xc28] sm:$0xff] }
  0xe5   :  { %7683 = vmatpush3.bf16.msra.mxu1 %v7682_v60  ;;  %v437_v60 = vld [vmem:[#allocation5 + $0xab8] sm:$0xff]  ;;  %v7736_v3 = vpack.c.bf16 %v469_v62, %v468_v61  ;;  %v526_v61 = vld [vmem:[#allocation5 + $0xd80] sm:$0xff]  ;;  %v527_v62 = vld [vmem:[#allocation5 + $0xd88] sm:$0xff] }
  0xe6   :  { %7685 = vmatprep.subr.bf16.mxu1 %v7684_v45  ;;  %v420_v45 = vld [vmem:[#allocation5 + $0xa30] sm:$0xff]  ;;  %v7788_v4 = vpack.c.bf16 %v527_v62, %v526_v61  ;;  %v505_v62 = vld [vmem:[#allocation5 + $0xcd8] sm:$0xff] }
  0xe7   :  { %7655 = vmatpush3.bf16.msra.mxu0 %v7654_v6  ;;  %v439_v6 = vld [vmem:[#allocation5 + $0xac8] sm:$0xff]  ;;  %v504_v61 = vld [vmem:[#allocation5 + $0xcd0] sm:$0xff] }
  0xe8   :  { %7657 = vmatprep.subr.bf16.mxu0 %v7656_v9  ;;  %v7706_v9 = vpack.c.bf16 %v421_v1, %v420_v45  ;;  %v7708_v12 = vpack.c.bf16 %v439_v6, %v438_v5  ;;  %v478_v1 = vld [vmem:[#allocation5 + $0xc00] sm:$0xff]  ;;  %v511_v5 = vld [vmem:[#allocation5 + $0xd08] sm:$0xff]  ;;  %v496_v6 = vld [vmem:[#allocation5 + $0xc90] sm:$0xff] }
  0xe9   :  { %7687 = vmatpush3.bf16.msra.mxu1 %v7686_v8  ;;  %v471_v8 = vld [vmem:[#allocation5 + $0xbc8] sm:$0xff] }
  0xea   :  { %7689 = vmatprep.subr.bf16.mxu1 %v7688_v16  ;;  %v423_v16 = vld [vmem:[#allocation5 + $0xa48] sm:$0xff]  ;;  %v7740_v11 = vpack.c.bf16 %v471_v8, %v470_v7  ;;  %v497_v7 = vld [vmem:[#allocation5 + $0xc98] sm:$0xff] }
  0xeb   :  { %7659 = vmatpush3.bf16.msra.mxu0 %v7658_v15  ;;  %v473_v15 = vld [vmem:[#allocation5 + $0xbd8] sm:$0xff] }
  0xec   :  { %7693 = vmatprep.subr.bf16.mxu0 %v7692_v23  ;;  %v7742_v23 = vpack.c.bf16 %v455_v18, %v454_v17  ;;  %v7744_v28 = vpack.c.bf16 %v473_v15, %v472_v21  ;;  %v7760_v17 = vpack.c.bf16 %v497_v7, %v496_v6  ;;  %v481_v18 = vld [vmem:[#allocation5 + $0xc18] sm:$0xff]  ;;  %v498_v15 = vld [vmem:[#allocation5 + $0xca0] sm:$0xff] }
  0xed   :  { %7691 = vmatpush3.bf16.msra.mxu1 %v7690_v22  ;;  %v7710_v22 = vpack.c.bf16 %v423_v16, %v422_v14  ;;  %v7758_v14 = vpack.c.bf16 %v479_v2, %v478_v1  ;;  %v513_v21 = vld [vmem:[#allocation5 + $0xd18] sm:$0xff]  ;;  %v7776_v1 = vpack.c.bf16 %v505_v62, %v504_v61  ;;  %v488_v2 = vld [vmem:[#allocation5 + $0xc50] sm:$0xff]  ;;  %v506_v7 = vld [vmem:[#allocation5 + $0xce0] sm:$0xff] }
  0xee   :  { %7725 = vmatprep.subr.bf16.mxu1 %v7724_v27  ;;  %2790 = vmatmul.mubr.f32.vlgmr.msra.gmra.mrb[8].mxu0 %v9213_v55  ;;  %v436_v55 = vld [vmem:[#allocation5 + $0xab0] sm:$0xff]  ;;  %v521_v6 = vld [vmem:[#allocation5 + $0xd58] sm:$0xff] }
  0xef   :  { %7695 = vmatpush3.bf16.msra.mxu0 %v7694_v36  ;;  %2929 = vmatprep.mubr.f32.mxu0 %v1761_v46  ;;  %v7704_v0 = vpack.c.bf16 %v437_v60, %v436_v55  ;;  %v456_v27 = vld [vmem:[#allocation5 + $0xb50] sm:$0xff]  ;;  %v475_v36 = vld [vmem:[#allocation5 + $0xbe8] sm:$0xff]  ;;  %v445_v46 = vld [vmem:[#allocation5 + $0xaf8] sm:$0xff] }
  0xf0   :  { %2860 = vmatmul.mubr.f32.vlgmr.msra.gmra.mrb[8].mxu1 %v9216_v58  ;;  %7697 = vmatprep.subr.bf16.mxu0 %v7696_v38  ;;  %v7734_v58 = vpack.c.bf16 %v451_v59, %v450_v57  ;;  %v7746_v38 = vpack.c.bf16 %v457_v29, %v456_v27  ;;  %v7748_v43 = vpack.c.bf16 %v475_v36, %v474_v34  ;;  %v460_v57 = vld [vmem:[#allocation5 + $0xb70] sm:$0xff]  ;;  %v461_v59 = vld [vmem:[#allocation5 + $0xb78] sm:$0xff]  ;;  %v494_v55 = vld [vmem:[#allocation5 + $0xc80] sm:$0xff] }
  0xf1   :  { %7727 = vmatpush3.bf16.msra.mxu1 %v7726_v37  ;;  %2999 = vmatprep.mubr.f32.mxu1 %v1762_v49  ;;  %v7714_v37 = vpack.c.bf16 %v425_v26, %v424_v25  ;;  %v7718_v49 = vpack.c.bf16 %v427_v40, %v426_v39  ;;  %v495_v60 = vld [vmem:[#allocation5 + $0xc88] sm:$0xff]  ;;  %v514_v34 = vld [vmem:[#allocation5 + $0xd20] sm:$0xff]  ;;  %v533_v39 = vld [vmem:[#allocation5 + $0xdb8] sm:$0xff]  ;;  %v7766_v40 = vpack.c.bf16 %v483_v32, %v482_v30 }
  0xf2   :  { %7729 = vmatprep.subr.bf16.mxu1 %v7728_v41  ;;  %v458_v41 = vld [vmem:[#allocation5 + $0xb60] sm:$0xff]  ;;  %v7756_v45 = vpack.c.bf16 %v495_v60, %v494_v55  ;;  %v531_v25 = vld [vmem:[#allocation5 + $0xda8] sm:$0xff]  ;;  %v492_v30 = vld [vmem:[#allocation5 + $0xc70] sm:$0xff] }
  0xf3   :  { %7699 = vmatpush3.bf16.msra.mxu0 %v7698_v50  ;;  %v76_v50 = vld [vmem:[#allocation2 + $0x30] sm:$0xff]  ;;  %v519_v60 = vld [vmem:[#allocation5 + $0xd48] sm:$0xff]  ;;  %v493_v32 = vld [vmem:[#allocation5 + $0xc78] sm:$0xff] }
  0xf4   :  { %7701 = vmatprep.subr.bf16.mxu0 %v7700_v53  ;;  %v7720_v53 = vpack.c.bf16 %v445_v46, %v444_v44  ;;  %v9237_v8 = vrot.slane %v76_v50, %v9174_v13  ;;  %v516_v44 = vld [vmem:[#allocation5 + $0xd30] sm:$0xff] }
  0xf5   :  { %7731 = vmatpush3.bf16.msra.mxu1 %v7730_v51  ;;  %v7750_v51 = vpack.c.bf16 %v459_v52, %v458_v41  ;;  %v485_v52 = vld [vmem:[#allocation5 + $0xc38] sm:$0xff]  ;;  %v576_v61 = vld [vmem:[#allocation5 + $0xf10] sm:$0xff] }
  0xf6   :  { %7733 = vmatprep.subr.bf16.mxu1 %v7732_v33  ;;  %v7752_v33 = vpack.c.bf16 %v477_v48, %v476_v47  ;;  %v517_v47 = vld [vmem:[#allocation5 + $0xd38] sm:$0xff]  ;;  %v502_v48 = vld [vmem:[#allocation5 + $0xcc0] sm:$0xff] }
  0xf7   :  { %7703 = vmatpush3.bf16.msra.mxu0 %v7702_v63  ;;  %v1763_v63 = vcombine.high %v76_v50, %v76_v50  ;;  %v534_v50 = vld [vmem:[#allocation5 + $0xdc0] sm:$0xff] }
  0xf8   :  { %7705 = vmatprep.subr.bf16.mxu0 %v7704_v0  ;;  %v7754_v0 = vpack.c.bf16 %v461_v59, %v460_v57  ;;  %v486_v57 = vld [vmem:[#allocation5 + $0xc40] sm:$0xff] }
  0xf9   :  { %7735 = vmatpush3.bf16.msra.mxu1 %v7734_v58  ;;  %v7722_v58 = vpack.c.bf16 %v429_v56, %v428_v54  ;;  %v7802_v54 = vpack.c.bf16 %v517_v47, %v516_v44  ;;  %v518_v59 = vld [vmem:[#allocation5 + $0xd40] sm:$0xff]  ;;  %v543_v44 = vld [vmem:[#allocation5 + $0xe08] sm:$0xff] }
  0xfa   :  { %7737 = vmatprep.subr.bf16.mxu1 %v7736_v3  ;;  %v510_v3 = vld [vmem:[#allocation5 + $0xd00] sm:$0xff] }
  0xfb   :  { %7707 = vmatpush3.bf16.msra.mxu0 %v7706_v9  ;;  %v528_v9 = vld [vmem:[#allocation5 + $0xd90] sm:$0xff]  ;;  %v7790_v16 = vpack.c.bf16 %v511_v5, %v510_v3  ;;  %v489_v3 = vld [vmem:[#allocation5 + $0xc58] sm:$0xff] }
  0xfc   :  { %7709 = vmatprep.subr.bf16.mxu0 %v7708_v12  ;;  %v9240_v12 = vrot.slane %v1763_v63, %v9174_v13  ;;  %v536_v63 = vld [vmem:[#allocation5 + $0xdd0] sm:$0xff] }
  0xfd   :  { %7739 = vmatpush3.bf16.msra.mxu1 %v7738_v10  ;;  %v529_v10 = vld [vmem:[#allocation5 + $0xd98] sm:$0xff] }
  0xfe   :  { %7741 = vmatprep.subr.bf16.mxu1 %v7740_v11  ;;  %v480_v11 = vld [vmem:[#allocation5 + $0xc10] sm:$0xff]  ;;  %v7792_v20 = vpack.c.bf16 %v529_v10, %v528_v9  ;;  %v1779_v26 = vcombine.high %v9240_v12, %v9240_v12  ;;  %v507_v9 = vld [vmem:[#allocation5 + $0xce8] sm:$0xff]  ;;  %v538_v10 = vld [vmem:[#allocation5 + $0xde0] sm:$0xff] }
  0xff   :  { %7711 = vmatpush3.bf16.msra.mxu0 %v7710_v22  ;;  %v499_v22 = vld [vmem:[#allocation5 + $0xca8] sm:$0xff]  ;;  %v7762_v27 = vpack.c.bf16 %v481_v18, %v480_v11  ;;  %v7780_v11 = vpack.c.bf16 %v507_v9, %v506_v7  ;;  %v490_v18 = vld [vmem:[#allocation5 + $0xc60] sm:$0xff] }
 0x100   :  { %7713 = vmatprep.subr.bf16.mxu0 %v7712_v24  ;;  %v530_v24 = vld [vmem:[#allocation5 + $0xda0] sm:$0xff]  ;;  %v7764_v29 = vpack.c.bf16 %v499_v22, %v498_v15  ;;  %v523_v15 = vld [vmem:[#allocation5 + $0xd68] sm:$0xff]  ;;  %v508_v22 = vld [vmem:[#allocation5 + $0xcf0] sm:$0xff] }
 0x101   :  { %7743 = vmatpush3.bf16.msra.mxu1 %v7742_v23  ;;  %v1778_v23 = vcombine.high %v9237_v8, %v9237_v8  ;;  %v7796_v36 = vpack.c.bf16 %v531_v25, %v530_v24  ;;  %v540_v24 = vld [vmem:[#allocation5 + $0xdf0] sm:$0xff]  ;;  %v541_v25 = vld [vmem:[#allocation5 + $0xdf8] sm:$0xff]  ;;  %v546_v7 = vld [vmem:[#allocation5 + $0xe20] sm:$0xff] }
 0x102   :  { %7745 = vmatprep.subr.bf16.mxu1 %v7744_v28  ;;  %v7794_v28 = vpack.c.bf16 %v513_v21, %v512_v19  ;;  %v491_v19 = vld [vmem:[#allocation5 + $0xc68] sm:$0xff] }
 0x103   :  { %7715 = vmatpush3.bf16.msra.mxu0 %v7714_v37  ;;  %v515_v37 = vld [vmem:[#allocation5 + $0xd28] sm:$0xff] }
 0x104   :  { %7717 = vmatprep.subr.bf16.mxu0 %v7716_v42  ;;  %v532_v42 = vld [vmem:[#allocation5 + $0xdb0] sm:$0xff]  ;;  %v547_v9 = vld [vmem:[#allocation5 + $0xe28] sm:$0xff] }
 0x105   :  { %7747 = vmatpush3.bf16.msra.mxu1 %v7746_v38  ;;  %v501_v38 = vld [vmem:[#allocation5 + $0xcb8] sm:$0xff]  ;;  %v7800_v46 = vpack.c.bf16 %v533_v39, %v532_v42  ;;  %v590_v42 = vld [vmem:[#allocation5 + $0xf80] sm:$0xff]  ;;  %v591_v39 = vld [vmem:[#allocation5 + $0xf88] sm:$0xff] }
 0x106   :  { %7749 = vmatprep.subr.bf16.mxu1 %v7748_v43  ;;  %v484_v43 = vld [vmem:[#allocation5 + $0xc30] sm:$0xff]  ;;  %v7852_v47 = vpack.c.bf16 %v591_v39, %v590_v42  ;;  %v569_v39 = vld [vmem:[#allocation5 + $0xed8] sm:$0xff] }
 0x107   :  { %7719 = vmatpush3.bf16.msra.mxu0 %v7718_v49  ;;  %v503_v49 = vld [vmem:[#allocation5 + $0xcc8] sm:$0xff]  ;;  %v568_v42 = vld [vmem:[#allocation5 + $0xed0] sm:$0xff] }
 0x108   :  { %7721 = vmatprep.subr.bf16.mxu0 %v7720_v53  ;;  %v7770_v53 = vpack.c.bf16 %v485_v52, %v484_v43  ;;  %v7772_v56 = vpack.c.bf16 %v503_v49, %v502_v48  ;;  %v542_v52 = vld [vmem:[#allocation5 + $0xe00] sm:$0xff]  ;;  %v575_v48 = vld [vmem:[#allocation5 + $0xf08] sm:$0xff]  ;;  %v560_v49 = vld [vmem:[#allocation5 + $0xe90] sm:$0xff] }
 0x109   :  { %7751 = vmatpush3.bf16.msra.mxu1 %v7750_v51  ;;  %v535_v51 = vld [vmem:[#allocation5 + $0xdc8] sm:$0xff] }
 0x10a   :  { %7753 = vmatprep.subr.bf16.mxu1 %v7752_v33  ;;  %v487_v33 = vld [vmem:[#allocation5 + $0xc48] sm:$0xff]  ;;  %v7804_v55 = vpack.c.bf16 %v535_v51, %v534_v50  ;;  %v561_v50 = vld [vmem:[#allocation5 + $0xe98] sm:$0xff] }
 0x10b   :  { %7723 = vmatpush3.bf16.msra.mxu0 %v7722_v58  ;;  %v537_v58 = vld [vmem:[#allocation5 + $0xdd8] sm:$0xff] }
 0x10c   :  { %7757 = vmatprep.subr.bf16.mxu0 %v7756_v45  ;;  %v7806_v45 = vpack.c.bf16 %v519_v60, %v518_v59  ;;  %v7808_v5 = vpack.c.bf16 %v537_v58, %v536_v63  ;;  %v7824_v59 = vpack.c.bf16 %v561_v50, %v560_v49  ;;  %v545_v60 = vld [vmem:[#allocation5 + $0xe18] sm:$0xff]  ;;  %v562_v58 = vld [vmem:[#allocation5 + $0xea0] sm:$0xff] }
 0x10d   :  { %7755 = vmatpush3.bf16.msra.mxu1 %v7754_v0  ;;  %v7774_v0 = vpack.c.bf16 %v487_v33, %v486_v57  ;;  %v7822_v57 = vpack.c.bf16 %v543_v44, %v542_v52  ;;  %v577_v63 = vld [vmem:[#allocation5 + $0xf18] sm:$0xff]  ;;  %v7840_v52 = vpack.c.bf16 %v569_v39, %v568_v42  ;;  %v552_v44 = vld [vmem:[#allocation5 + $0xe50] sm:$0xff]  ;;  %v570_v50 = vld [vmem:[#allocation5 + $0xee0] sm:$0xff] }
 0x10e   :  { %7789 = vmatprep.subr.bf16.mxu1 %v7788_v4  ;;  %2930 = vmatmul.mubr.f32.vlgmr.msra.gmra.mrb[10].mxu0 %v9225_v31  ;;  %v500_v31 = vld [vmem:[#allocation5 + $0xcb0] sm:$0xff]  ;;  %v585_v49 = vld [vmem:[#allocation5 + $0xf58] sm:$0xff] }
 0x10f   :  { %7759 = vmatpush3.bf16.msra.mxu0 %v7758_v14  ;;  %3069 = vmatprep.mubr.f32.mxu0 %v1778_v23  ;;  %v7768_v41 = vpack.c.bf16 %v501_v38, %v500_v31  ;;  %v520_v4 = vld [vmem:[#allocation5 + $0xd50] sm:$0xff]  ;;  %v539_v14 = vld [vmem:[#allocation5 + $0xde8] sm:$0xff]  ;;  %v509_v23 = vld [vmem:[#allocation5 + $0xcf8] sm:$0xff] }
 0x110   :  { %3000 = vmatmul.mubr.f32.vlgmr.msra.gmra.mrb[10].mxu1 %v9228_v35  ;;  %7761 = vmatprep.subr.bf16.mxu0 %v7760_v17  ;;  %v7798_v35 = vpack.c.bf16 %v515_v37, %v514_v34  ;;  %v7810_v17 = vpack.c.bf16 %v521_v6, %v520_v4  ;;  %v7812_v21 = vpack.c.bf16 %v539_v14, %v538_v10  ;;  %v524_v34 = vld [vmem:[#allocation5 + $0xd70] sm:$0xff]  ;;  %v525_v37 = vld [vmem:[#allocation5 + $0xd78] sm:$0xff]  ;;  %v558_v31 = vld [vmem:[#allocation5 + $0xe80] sm:$0xff] }
 0x111   :  { %7791 = vmatpush3.bf16.msra.mxu1 %v7790_v16  ;;  %3139 = vmatprep.mubr.f32.mxu1 %v1779_v26  ;;  %v7778_v16 = vpack.c.bf16 %v489_v3, %v488_v2  ;;  %v7782_v26 = vpack.c.bf16 %v491_v19, %v490_v18  ;;  %v559_v38 = vld [vmem:[#allocation5 + $0xe88] sm:$0xff]  ;;  %v578_v10 = vld [vmem:[#allocation5 + $0xf20] sm:$0xff]  ;;  %v597_v18 = vld [vmem:[#allocation5 + $0xfb8] sm:$0xff]  ;;  %v7830_v19 = vpack.c.bf16 %v547_v9, %v546_v7 }
 0x112   :  { %7793 = vmatprep.subr.bf16.mxu1 %v7792_v20  ;;  %v522_v20 = vld [vmem:[#allocation5 + $0xd60] sm:$0xff]  ;;  %v7820_v43 = vpack.c.bf16 %v559_v38, %v558_v31  ;;  %v595_v2 = vld [vmem:[#allocation5 + $0xfa8] sm:$0xff]  ;;  %v656_v39 = vld [vmem:[#allocation5 + $0x1190] sm:$0xff] }
 0x113   :  { %7763 = vmatpush3.bf16.msra.mxu0 %v7762_v27  ;;  %v77_v27 = vld [vmem:[#allocation2 + $0x38] sm:$0xff]  ;;  %v583_v38 = vld [vmem:[#allocation5 + $0xf48] sm:$0xff] }
 0x114   :  { %7765 = vmatprep.subr.bf16.mxu0 %v7764_v29  ;;  %v7784_v29 = vpack.c.bf16 %v509_v23, %v508_v22  ;;  %v9249_v51 = vrot.slane %v77_v27, %v9174_v13  ;;  %v580_v22 = vld [vmem:[#allocation5 + $0xf30] sm:$0xff] }
 0x115   :  { %7795 = vmatpush3.bf16.msra.mxu1 %v7794_v28  ;;  %v7814_v28 = vpack.c.bf16 %v523_v15, %v522_v20  ;;  %v549_v15 = vld [vmem:[#allocation5 + $0xe38] sm:$0xff] }
 0x116   :  { %7797 = vmatprep.subr.bf16.mxu1 %v7796_v36  ;;  %v7816_v36 = vpack.c.bf16 %v541_v25, %v540_v24  ;;  %v581_v24 = vld [vmem:[#allocation5 + $0xf38] sm:$0xff]  ;;  %v566_v25 = vld [vmem:[#allocation5 + $0xec0] sm:$0xff] }
 0x117   :  { %7767 = vmatpush3.bf16.msra.mxu0 %v7766_v40  ;;  %v1780_v40 = vcombine.high %v77_v27, %v77_v27  ;;  %v598_v27 = vld [vmem:[#allocation5 + $0xfc0] sm:$0xff] }
 0x118   :  { %7769 = vmatprep.subr.bf16.mxu0 %v7768_v41  ;;  %v7818_v41 = vpack.c.bf16 %v525_v37, %v524_v34  ;;  %v550_v34 = vld [vmem:[#allocation5 + $0xe40] sm:$0xff] }
 0x119   :  { %7799 = vmatpush3.bf16.msra.mxu1 %v7798_v35  ;;  %v7786_v35 = vpack.c.bf16 %v493_v32, %v492_v30  ;;  %v7866_v30 = vpack.c.bf16 %v581_v24, %v580_v22  ;;  %v582_v37 = vld [vmem:[#allocation5 + $0xf40] sm:$0xff]  ;;  %v623_v22 = vld [vmem:[#allocation5 + $0x1088] sm:$0xff] }
 0x11a   :  { %7801 = vmatprep.subr.bf16.mxu1 %v7800_v46  ;;  %v574_v46 = vld [vmem:[#allocation5 + $0xf00] sm:$0xff]  ;;  %v655_v24 = vld [vmem:[#allocation5 + $0x1188] sm:$0xff] }
 0x11b   :  { %7771 = vmatpush3.bf16.msra.mxu0 %v7770_v53  ;;  %v592_v53 = vld [vmem:[#allocation5 + $0xf90] sm:$0xff]  ;;  %v7854_v33 = vpack.c.bf16 %v575_v48, %v574_v46  ;;  %v553_v46 = vld [vmem:[#allocation5 + $0xe58] sm:$0xff] }
 0x11c   :  { %7773 = vmatprep.subr.bf16.mxu0 %v7772_v56  ;;  %v9252_v56 = vrot.slane %v1780_v40, %v9174_v13  ;;  %v600_v40 = vld [vmem:[#allocation5 + $0xfd0] sm:$0xff] }
 0x11d   :  { %7803 = vmatpush3.bf16.msra.mxu1 %v7802_v54  ;;  %v593_v54 = vld [vmem:[#allocation5 + $0xf98] sm:$0xff] }
 0x11e   :  { %7805 = vmatprep.subr.bf16.mxu1 %v7804_v55  ;;  %v544_v55 = vld [vmem:[#allocation5 + $0xe10] sm:$0xff]  ;;  %v7856_v62 = vpack.c.bf16 %v593_v54, %v592_v53  ;;  %v1796_v3 = vcombine.high %v9252_v56, %v9252_v56  ;;  %v571_v53 = vld [vmem:[#allocation5 + $0xee8] sm:$0xff]  ;;  %v602_v54 = vld [vmem:[#allocation5 + $0xfe0] sm:$0xff] }
 0x11f   :  { %7775 = vmatpush3.bf16.msra.mxu0 %v7774_v0  ;;  %v563_v0 = vld [vmem:[#allocation5 + $0xea8] sm:$0xff]  ;;  %v7826_v4 = vpack.c.bf16 %v545_v60, %v544_v55  ;;  %v7844_v55 = vpack.c.bf16 %v571_v53, %v570_v50  ;;  %v554_v60 = vld [vmem:[#allocation5 + $0xe60] sm:$0xff] }
 0x120   :  { %7777 = vmatprep.subr.bf16.mxu0 %v7776_v1  ;;  %v594_v1 = vld [vmem:[#allocation5 + $0xfa0] sm:$0xff]  ;;  %v7828_v6 = vpack.c.bf16 %v563_v0, %v562_v58  ;;  %v587_v0 = vld [vmem:[#allocation5 + $0xf68] sm:$0xff] }
 0x121   :  { %7807 = vmatpush3.bf16.msra.mxu1 %v7806_v45  ;;  %v1795_v45 = vcombine.high %v9249_v51, %v9249_v51  ;;  %v7860_v14 = vpack.c.bf16 %v595_v2, %v594_v1  ;;  %v573_v1 = vld [vmem:[#allocation5 + $0xef8] sm:$0xff]  ;;  %v5638_v2 = vld [vmem:[#allocation7] ss:$0 sm:$0xff]  ;;  %v627_v53 = vld [vmem:[#allocation5 + $0x10a8] sm:$0xff] }
 0x122   :  { %7809 = vmatprep.subr.bf16.mxu1 %v7808_v5  ;;  %v7858_v5 = vpack.c.bf16 %v577_v63, %v576_v61  ;;  %v555_v61 = vld [vmem:[#allocation5 + $0xe68] sm:$0xff]  ;;  %v626_v50 = vld [vmem:[#allocation5 + $0x10a0] sm:$0xff] }
 0x123   :  { %7779 = vmatpush3.bf16.msra.mxu0 %v7778_v16  ;;  %v579_v16 = vld [vmem:[#allocation5 + $0xf28] sm:$0xff] }
 0x124   :  { %7781 = vmatprep.subr.bf16.mxu0 %v7780_v11  ;;  %v596_v11 = vld [vmem:[#allocation5 + $0xfb0] sm:$0xff] }
 0x125   :  { %7811 = vmatpush3.bf16.msra.mxu1 %v7810_v17  ;;  %v565_v17 = vld [vmem:[#allocation5 + $0xeb8] sm:$0xff]  ;;  %v7864_v23 = vpack.c.bf16 %v597_v18, %v596_v11  ;;  %v556_v11 = vld [vmem:[#allocation5 + $0xe70] sm:$0xff] }
 0x126   :  { %7813 = vmatprep.subr.bf16.mxu1 %v7812_v21  ;;  %v548_v21 = vld [vmem:[#allocation5 + $0xe30] sm:$0xff]  ;;  %v557_v18 = vld [vmem:[#allocation5 + $0xe78] sm:$0xff] }
 0x127   :  { %7783 = vmatpush3.bf16.msra.mxu0 %v7782_v26  ;;  %v567_v26 = vld [vmem:[#allocation5 + $0xec8] sm:$0xff] }
 0x128   :  { %7785 = vmatprep.subr.bf16.mxu0 %v7784_v29  ;;  %v7834_v29 = vpack.c.bf16 %v549_v15, %v548_v21  ;;  %v7836_v32 = vpack.c.bf16 %v567_v26, %v566_v25  ;;  %v589_v21 = vld [vmem:[#allocation5 + $0xf78] sm:$0xff]  ;;  %v622_v15 = vld [vmem:[#allocation5 + $0x1080] sm:$0xff] }
 0x129   :  { %7815 = vmatpush3.bf16.msra.mxu1 %v7814_v28  ;;  %v599_v28 = vld [vmem:[#allocation5 + $0xfc8] sm:$0xff] }
 0x12a   :  { %7817 = vmatprep.subr.bf16.mxu1 %v7816_v36  ;;  %v551_v36 = vld [vmem:[#allocation5 + $0xe48] sm:$0xff]  ;;  %v7868_v31 = vpack.c.bf16 %v599_v28, %v598_v27  ;;  %v7850_v27 = vpack.c.bf16 %v557_v18, %v556_v11 }
 0x12b   :  { %7787 = vmatpush3.bf16.msra.mxu0 %v7786_v35  ;;  %v601_v35 = vld [vmem:[#allocation5 + $0xfd8] sm:$0xff]  ;;  %v663_v11 = vld [vmem:[#allocation5 + $0x11c8] sm:$0xff] }
 0x12c   :  { %7821 = vmatprep.subr.bf16.mxu0 %v7820_v43  ;;  %v7870_v43 = vpack.c.bf16 %v583_v38, %v582_v37  ;;  %v7872_v48 = vpack.c.bf16 %v601_v35, %v600_v40  ;;  %v639_v37 = vld [vmem:[#allocation5 + $0x1108] sm:$0xff]  ;;  %v625_v38 = vld [vmem:[#allocation5 + $0x1098] sm:$0xff] }
 0x12d   :  { %7819 = vmatpush3.bf16.msra.mxu1 %v7818_v41  ;;  %v7838_v41 = vpack.c.bf16 %v551_v36, %v550_v34  ;;  %v638_v34 = vld [vmem:[#allocation5 + $0x1100] sm:$0xff]  ;;  %v657_v40 = vld [vmem:[#allocation5 + $0x1198] sm:$0xff] }
 0x12e   :  { %7853 = vmatprep.subr.bf16.mxu1 %v7852_v47  ;;  %3070 = vmatmul.mubr.f32.vlgmr.msra.gmra.mrb[12].mxu0 %v9237_v8  ;;  %v564_v8 = vld [vmem:[#allocation5 + $0xeb0] sm:$0xff] }
 0x12f   :  { %7823 = vmatpush3.bf16.msra.mxu0 %v7822_v57  ;;  %3209 = vmatprep.mubr.f32.mxu0 %v1795_v45  ;;  %v7832_v20 = vpack.c.bf16 %v565_v17, %v564_v8  ;;  %v584_v47 = vld [vmem:[#allocation5 + $0xf50] sm:$0xff]  ;;  %v603_v57 = vld [vmem:[#allocation5 + $0xfe8] sm:$0xff] }
 0x130   :  { %3140 = vmatmul.mubr.f32.vlgmr.msra.gmra.mrb[12].mxu1 %v9240_v12  ;;  %7825 = vmatprep.subr.bf16.mxu0 %v7824_v59  ;;  %v7862_v12 = vpack.c.bf16 %v579_v16, %v578_v10  ;;  %v7874_v59 = vpack.c.bf16 %v585_v49, %v584_v47  ;;  %v7876_v58 = vpack.c.bf16 %v603_v57, %v602_v54  ;;  %v572_v45 = vld [vmem:[#allocation5 + $0xef0] sm:$0xff]  ;;  %v641_v49 = vld [vmem:[#allocation5 + $0x1118] sm:$0xff]  ;;  %v658_v57 = vld [vmem:[#allocation5 + $0x11a0] sm:$0xff] }
 0x131   :  { %7855 = vmatpush3.bf16.msra.mxu1 %v7854_v33  ;;  %3279 = vmatprep.mubr.f32.mxu1 %v1796_v3  ;;  %v7842_v33 = vpack.c.bf16 %v553_v46, %v552_v44  ;;  %v7846_v10 = vpack.c.bf16 %v555_v61, %v554_v60  ;;  %v7848_v17 = vpack.c.bf16 %v573_v1, %v572_v45  ;;  %v608_v44 = vld [vmem:[#allocation5 + $0x1010] sm:$0xff]  ;;  %v609_v46 = vld [vmem:[#allocation5 + $0x1018] sm:$0xff]  ;;  %v643_v45 = vld [vmem:[#allocation5 + $0x1128] sm:$0xff] }
 0x132   :  { %7857 = vmatprep.subr.bf16.mxu1 %v7856_v62  ;;  %v586_v62 = vld [vmem:[#allocation5 + $0xf60] sm:$0xff]  ;;  %v640_v47 = vld [vmem:[#allocation5 + $0x1110] sm:$0xff]  ;;  %v7892_v61 = vpack.c.bf16 %v627_v53, %v626_v50  ;;  %v629_v1 = vld [vmem:[#allocation5 + $0x10b8] sm:$0xff] }
 0x133   :  { %7827 = vmatpush3.bf16.msra.mxu0 %v7826_v4  ;;  %v7878_v8 = vpack.c.bf16 %v587_v0, %v586_v62  ;;  %v7922_v60 = vpack.c.bf16 %v641_v49, %v640_v47  ;;  %v610_v62 = vld [vmem:[#allocation5 + $0x1020] sm:$0xff] }
 0x134   :  { %7829 = vmatprep.subr.bf16.mxu0 %v7828_v6  ;;  %v605_v6 = vld [vmem:[#allocation5 + $0xff8] sm:$0xff]  ;;  %v618_v47 = vld [vmem:[#allocation5 + $0x1060] sm:$0xff] }
 0x135   :  { %7859 = vmatpush3.bf16.msra.mxu1 %v7858_v5  ;;  %v604_v5 = vld [vmem:[#allocation5 + $0xff0] sm:$0xff]  ;;  %v650_v49 = vld [vmem:[#allocation5 + $0x1160] sm:$0xff] }
 0x136   :  { %7861 = vmatprep.subr.bf16.mxu1 %v7860_v14  ;;  %v78_v14 = vld [vmem:[#allocation2 + $0x40] sm:$0xff] }
 0x137   :  { %7831 = vmatpush3.bf16.msra.mxu0 %v7830_v19  ;;  %v588_v19 = vld [vmem:[#allocation5 + $0xf70] sm:$0xff]  ;;  %v1797_v25 = vcombine.high %v78_v14, %v78_v14  ;;  %v9263_v42 = vrot.slane %v78_v14, %v9174_v13  ;;  %v645_v14 = vld [vmem:[#allocation5 + $0x1138] sm:$0xff] }
 0x138   :  { %7833 = vmatprep.subr.bf16.mxu0 %v7832_v20  ;;  %v7880_v20 = vpack.c.bf16 %v605_v6, %v604_v5  ;;  %v7882_v28 = vpack.c.bf16 %v589_v21, %v588_v19  ;;  %v612_v6 = vld [vmem:[#allocation5 + $0x1030] sm:$0xff]  ;;  %v615_v21 = vld [vmem:[#allocation5 + $0x1048] sm:$0xff] }
 0x139   :  { %7863 = vmatpush3.bf16.msra.mxu1 %v7862_v12  ;;  %v9266_v35 = vrot.slane %v1797_v25, %v9174_v13  ;;  %v1812_v54 = vcombine.high %v9263_v42, %v9263_v42  ;;  %v633_v25 = vld [vmem:[#allocation5 + $0x10d8] sm:$0xff] }
 0x13a   :  { %7865 = vmatprep.subr.bf16.mxu1 %v7864_v23  ;;  %v654_v23 = vld [vmem:[#allocation5 + $0x1180] sm:$0xff] }
 0x13b   :  { %7835 = vmatpush3.bf16.msra.mxu0 %v7834_v29  ;;  %v7884_v29 = vpack.c.bf16 %v623_v22, %v622_v15  ;;  %v7916_v36 = vpack.c.bf16 %v655_v24, %v654_v23  ;;  %v646_v15 = vld [vmem:[#allocation5 + $0x1140] sm:$0xff]  ;;  %v647_v23 = vld [vmem:[#allocation5 + $0x1148] sm:$0xff]  ;;  %v632_v24 = vld [vmem:[#allocation5 + $0x10d0] sm:$0xff] }
 0x13c   :  { %7837 = vmatprep.subr.bf16.mxu0 %v7836_v32  ;;  %v607_v32 = vld [vmem:[#allocation5 + $0x1008] sm:$0xff] }
 0x13d   :  { %7867 = vmatpush3.bf16.msra.mxu1 %v7866_v30  ;;  %v606_v30 = vld [vmem:[#allocation5 + $0x1000] sm:$0xff] }
 0x13e   :  { %7869 = vmatprep.subr.bf16.mxu1 %v7868_v31  ;;  %v624_v31 = vld [vmem:[#allocation5 + $0x1090] sm:$0xff] }
 0x13f   :  { %7839 = vmatpush3.bf16.msra.mxu0 %v7838_v41  ;;  %v7886_v41 = vpack.c.bf16 %v607_v32, %v606_v30  ;;  %v7934_v30 = vpack.c.bf16 %v647_v23, %v646_v15  ;;  %v7904_v32 = vpack.c.bf16 %v633_v25, %v632_v24  ;;  %v688_v15 = vld [vmem:[#allocation5 + $0x1290] sm:$0xff]  ;;  %v721_v25 = vld [vmem:[#allocation5 + $0x1398] sm:$0xff] }
 0x140   :  { %7841 = vmatprep.subr.bf16.mxu0 %v7840_v52  ;;  %v7888_v52 = vpack.c.bf16 %v625_v38, %v624_v31  ;;  %v649_v38 = vld [vmem:[#allocation5 + $0x1158] sm:$0xff]  ;;  %v720_v24 = vld [vmem:[#allocation5 + $0x1390] sm:$0xff] }
 0x141   :  { %7871 = vmatpush3.bf16.msra.mxu1 %v7870_v43  ;;  %v5672_v63 = vpop.f32.mrb[0].mxu0  ;;  %v7918_v43 = vpack.c.bf16 %v639_v37, %v638_v34  ;;  %v616_v34 = vld [vmem:[#allocation5 + $0x1050] sm:$0xff] }
 0x142   :  { %7873 = vmatprep.subr.bf16.mxu1 %v7872_v48  ;;  %v5673_v3 = vpop.f32.mrb[1].mxu0  ;;  %v7920_v48 = vpack.c.bf16 %v657_v40, %v656_v39  ;;  %v648_v37 = vld [vmem:[#allocation5 + $0x1150] sm:$0xff]  ;;  %v634_v39 = vld [vmem:[#allocation5 + $0x10e0] sm:$0xff]  ;;  %v635_v40 = vld [vmem:[#allocation5 + $0x10e8] sm:$0xff] }
 0x143   :  { %v5707_v4 = vpop.f32.mrb[0].mxu1  ;;  %v5674_v7 = vadd.f32 %v5673_v3, %v5672_v63  ;;  %7843 = vmatpush3.bf16.msra.mxu0 %v7842_v33  ;;  %v659_v33 = vld [vmem:[#allocation5 + $0x11a8] sm:$0xff]  ;;  %v661_v3 = vld [vmem:[#allocation5 + $0x11b8] sm:$0xff] }
 0x144   :  { %v5708_v9 = vpop.f32.mrb[1].mxu1  ;;  %7845 = vmatprep.subr.bf16.mxu0 %v7844_v55  ;;  %v7890_v55 = vpack.c.bf16 %v609_v46, %v608_v44  ;;  %v611_v63 = vld [vmem:[#allocation5 + $0x1028] sm:$0xff]  ;;  %v7924_v0 = vpack.c.bf16 %v659_v33, %v658_v57  ;;  %v7938_v44 = vpack.c.bf16 %v649_v38, %v648_v37  ;;  %v7908_v46 = vpack.c.bf16 %v635_v40, %v634_v39  ;;  %v636_v57 = vld [vmem:[#allocation5 + $0x10f0] sm:$0xff]  ;;  %v637_v33 = vld [vmem:[#allocation5 + $0x10f8] sm:$0xff] }
 0x145   :  { %v5709_v16 = vadd.f32 %v5708_v9, %v5707_v4  ;;  %7875 = vmatpush3.bf16.msra.mxu1 %v7874_v59  ;;  %v2232_v12 = vadd.f32 %v5674_v7, %v5638_v2  ;;  %v1813_v59 = vcombine.high %v9266_v35, %v9266_v35  ;;  %v660_v2 = vld [vmem:[#allocation5 + $0x11b0] sm:$0xff]  ;;  %v7894_v4 = vpack.c.bf16 %v611_v63, %v610_v62  ;;  %v613_v7 = vld [vmem:[#allocation5 + $0x1038] sm:$0xff]  ;;  %v690_v38 = vld [vmem:[#allocation5 + $0x12a0] sm:$0xff] }
 0x146   :  { %7877 = vmatprep.subr.bf16.mxu1 %v7876_v58  ;;  %v642_v58 = vld [vmem:[#allocation5 + $0x1120] sm:$0xff]  ;;  %v644_v9 = vld [vmem:[#allocation5 + $0x1130] sm:$0xff]  ;;  %v7898_v18 = vpack.c.bf16 %v613_v7, %v612_v6  ;;  %v653_v6 = vld [vmem:[#allocation5 + $0x1178] sm:$0xff]  ;;  %v7984_v37 = vpack.c.bf16 %v721_v25, %v720_v24 }
 0x147   :  { %v9260_v26 = vadd.f32 %v5709_v16, %v2232_v12  ;;  %7847 = vmatpush3.bf16.msra.mxu0 %v7846_v10  ;;  %v7928_v10 = vpack.c.bf16 %v661_v3, %v660_v2  ;;  %v630_v16 = vld [vmem:[#allocation5 + $0x10c0] sm:$0xff]  ;;  %v7930_v19 = vpack.c.bf16 %v645_v14, %v644_v9  ;;  %v620_v2 = vld [vmem:[#allocation5 + $0x1070] sm:$0xff]  ;;  %v621_v3 = vld [vmem:[#allocation5 + $0x1078] sm:$0xff] }
 0x148   :  { %7849 = vmatprep.subr.bf16.mxu0 %v7848_v17  ;;  %v662_v17 = vld [vmem:[#allocation5 + $0x11c0] sm:$0xff]  ;;  %v687_v9 = vld [vmem:[#allocation5 + $0x1288] sm:$0xff] }
 0x149   :  { %7879 = vmatpush3.bf16.msra.mxu1 %v7878_v8  ;;  %v631_v8 = vld [vmem:[#allocation5 + $0x10c8] sm:$0xff]  ;;  %v7932_v22 = vpack.c.bf16 %v663_v11, %v662_v17  ;;  %v686_v7 = vld [vmem:[#allocation5 + $0x1280] sm:$0xff]  ;;  %v7914_v17 = vpack.c.bf16 %v621_v3, %v620_v2 }
 0x14a   :  { %7881 = vmatprep.subr.bf16.mxu1 %v7880_v20  ;;  %v7900_v12 = vpack.c.bf16 %v631_v8, %v630_v16  ;;  %v614_v20 = vld [vmem:[#allocation5 + $0x1040] sm:$0xff]  ;;  %v719_v14 = vld [vmem:[#allocation5 + $0x1388] sm:$0xff] }
 0x14b   :  { %7851 = vmatpush3.bf16.msra.mxu0 %v7850_v27  ;;  %v664_v27 = vld [vmem:[#allocation5 + $0x11d0] sm:$0xff]  ;;  %v691_v39 = vld [vmem:[#allocation5 + $0x12a8] sm:$0xff]  ;;  %v698_v24 = vld [vmem:[#allocation5 + $0x12e0] sm:$0xff] }
 0x14c   :  { %7885 = vmatprep.subr.bf16.mxu0 %v7884_v29  ;;  %v7902_v29 = vpack.c.bf16 %v615_v21, %v614_v20  ;;  %v702_v20 = vld [vmem:[#allocation5 + $0x1300] sm:$0xff]  ;;  %v703_v21 = vld [vmem:[#allocation5 + $0x1308] sm:$0xff] }
 0x14d   :  { %7883 = vmatpush3.bf16.msra.mxu1 %v7882_v28  ;;  %v665_v28 = vld [vmem:[#allocation5 + $0x11d8] sm:$0xff]  ;;  %v727_v2 = vld [vmem:[#allocation5 + $0x13c8] sm:$0xff] }
 0x14e   :  { %7917 = vmatprep.subr.bf16.mxu1 %v7916_v36  ;;  %3210 = vmatmul.mubr.f32.vlgmr.msra.gmra.mrb[14].mxu0 %v9249_v51  ;;  %v628_v51 = vld [vmem:[#allocation5 + $0x10b0] sm:$0xff]  ;;  %v617_v36 = vld [vmem:[#allocation5 + $0x1058] sm:$0xff]  ;;  %v7936_v31 = vpack.c.bf16 %v665_v28, %v664_v27  ;;  %v699_v25 = vld [vmem:[#allocation5 + $0x12e8] sm:$0xff] }
 0x14f   :  { %7887 = vmatpush3.bf16.msra.mxu0 %v7886_v41  ;;  %3349 = vmatprep.mubr.f32.mxu0 %v1812_v54  ;;  %v7896_v5 = vpack.c.bf16 %v629_v1, %v628_v51  ;;  %v666_v41 = vld [vmem:[#allocation5 + $0x11e0] sm:$0xff]  ;;  %v651_v54 = vld [vmem:[#allocation5 + $0x1168] sm:$0xff]  ;;  %v7912_v1 = vpack.c.bf16 %v637_v33, %v636_v57  ;;  %v693_v57 = vld [vmem:[#allocation5 + $0x12b8] sm:$0xff] }
 0x150   :  { %3280 = vmatmul.mubr.f32.vlgmr.msra.gmra.mrb[14].mxu1 %v9252_v56  ;;  %7889 = vmatprep.subr.bf16.mxu0 %v7888_v52  ;;  %v7926_v56 = vpack.c.bf16 %v643_v45, %v642_v58  ;;  %v7906_v52 = vpack.c.bf16 %v617_v36, %v616_v34  ;;  %v7942_v51 = vpack.c.bf16 %v651_v54, %v650_v49  ;;  %v673_v34 = vld [vmem:[#allocation5 + $0x1218] sm:$0xff]  ;;  %v704_v36 = vld [vmem:[#allocation5 + $0x1310] sm:$0xff]  ;;  %v675_v49 = vld [vmem:[#allocation5 + $0x1228] sm:$0xff] }
 0x151   :  { %7919 = vmatpush3.bf16.msra.mxu1 %v7918_v43  ;;  %3419 = vmatprep.mubr.f32.mxu1 %v1813_v59  ;;  %v667_v43 = vld [vmem:[#allocation5 + $0x11e8] sm:$0xff]  ;;  %v724_v33 = vld [vmem:[#allocation5 + $0x13b0] sm:$0xff] }
 0x152   :  { %7921 = vmatprep.subr.bf16.mxu1 %v7920_v48  ;;  %v619_v48 = vld [vmem:[#allocation5 + $0x1068] sm:$0xff]  ;;  %v7940_v53 = vpack.c.bf16 %v667_v43, %v666_v41  ;;  %v722_v41 = vld [vmem:[#allocation5 + $0x13a0] sm:$0xff] }
 0x153   :  { %7891 = vmatpush3.bf16.msra.mxu0 %v7890_v55  ;;  %v7910_v58 = vpack.c.bf16 %v619_v48, %v618_v47  ;;  %v723_v43 = vld [vmem:[#allocation5 + $0x13a8] sm:$0xff]  ;;  %v7956_v47 = vpack.c.bf16 %v691_v39, %v690_v38  ;;  %v674_v48 = vld [vmem:[#allocation5 + $0x1220] sm:$0xff] }
 0x154   :  { %7893 = vmatprep.subr.bf16.mxu0 %v7892_v61  ;;  %v669_v61 = vld [vmem:[#allocation5 + $0x11f8] sm:$0xff]  ;;  %v707_v54 = vld [vmem:[#allocation5 + $0x1328] sm:$0xff] }
 0x155   :  { %7923 = vmatpush3.bf16.msra.mxu1 %v7922_v60  ;;  %v668_v60 = vld [vmem:[#allocation5 + $0x11f0] sm:$0xff] }
 0x156   :  { %7925 = vmatprep.subr.bf16.mxu1 %v7924_v0  ;;  %v79_v0 = vld [vmem:[#allocation2 + $0x48] sm:$0xff] }
 0x157   :  { %7895 = vmatpush3.bf16.msra.mxu0 %v7894_v4  ;;  %v652_v4 = vld [vmem:[#allocation5 + $0x1170] sm:$0xff]  ;;  %v1814_v16 = vcombine.high %v79_v0, %v79_v0  ;;  %v9278_v23 = vrot.slane %v79_v0, %v9174_v13  ;;  %v709_v0 = vld [vmem:[#allocation5 + $0x1338] sm:$0xff] }
 0x158   :  { %7897 = vmatprep.subr.bf16.mxu0 %v7896_v5  ;;  %v7944_v5 = vpack.c.bf16 %v669_v61, %v668_v60  ;;  %v7946_v11 = vpack.c.bf16 %v653_v6, %v652_v4  ;;  %v676_v61 = vld [vmem:[#allocation5 + $0x1230] sm:$0xff]  ;;  %v679_v6 = vld [vmem:[#allocation5 + $0x1248] sm:$0xff] }
 0x159   :  { %7927 = vmatpush3.bf16.msra.mxu1 %v7926_v56  ;;  %v9281_v27 = vrot.slane %v1814_v16, %v9174_v13  ;;  %v1829_v40 = vcombine.high %v9278_v23, %v9278_v23  ;;  %v697_v16 = vld [vmem:[#allocation5 + $0x12d8] sm:$0xff] }
 0x15a   :  { %7929 = vmatprep.subr.bf16.mxu1 %v7928_v10  ;;  %v718_v10 = vld [vmem:[#allocation5 + $0x1380] sm:$0xff] }
 0x15b   :  { %7899 = vmatpush3.bf16.msra.mxu0 %v7898_v18  ;;  %v7948_v18 = vpack.c.bf16 %v687_v9, %v686_v7  ;;  %v710_v7 = vld [vmem:[#allocation5 + $0x1340] sm:$0xff] }
 0x15c   :  { %7901 = vmatprep.subr.bf16.mxu0 %v7900_v12  ;;  %v671_v12 = vld [vmem:[#allocation5 + $0x1208] sm:$0xff] }
 0x15d   :  { %7931 = vmatpush3.bf16.msra.mxu1 %v7930_v19  ;;  %v670_v19 = vld [vmem:[#allocation5 + $0x1200] sm:$0xff] }
 0x15e   :  { %7933 = vmatprep.subr.bf16.mxu1 %v7932_v22  ;;  %v689_v22 = vld [vmem:[#allocation5 + $0x1298] sm:$0xff]  ;;  %v7950_v28 = vpack.c.bf16 %v671_v12, %v670_v19 }
 0x15f   :  { %7903 = vmatpush3.bf16.msra.mxu0 %v7902_v29  ;;  %v7982_v29 = vpack.c.bf16 %v703_v21, %v702_v20  ;;  %v680_v20 = vld [vmem:[#allocation5 + $0x1250] sm:$0xff] }
 0x160   :  { %7905 = vmatprep.subr.bf16.mxu0 %v7904_v32  ;;  %v672_v32 = vld [vmem:[#allocation5 + $0x1210] sm:$0xff] }
 0x161   :  { %7935 = vmatpush3.bf16.msra.mxu1 %v7934_v30  ;;  %v5742_v50 = vpop.f32.mrb[2].mxu0  ;;  %v7952_v30 = vpack.c.bf16 %v689_v22, %v688_v15  ;;  %v712_v21 = vld [vmem:[#allocation5 + $0x1350] sm:$0xff]  ;;  %v713_v22 = vld [vmem:[#allocation5 + $0x1358] sm:$0xff] }
 0x162   :  { %7937 = vmatprep.subr.bf16.mxu1 %v7936_v31  ;;  %v5743_v59 = vpop.f32.mrb[3].mxu0  ;;  %v705_v31 = vld [vmem:[#allocation5 + $0x1318] sm:$0xff] }
 0x163   :  { %v5777_v55 = vpop.f32.mrb[2].mxu1  ;;  %v5744_v62 = vadd.f32 %v5743_v59, %v5742_v50  ;;  %7907 = vmatpush3.bf16.msra.mxu0 %v7906_v52  ;;  %v1830_v52 = vcombine.high %v9281_v27, %v9281_v27  ;;  %v706_v50 = vld [vmem:[#allocation5 + $0x1320] sm:$0xff]  ;;  %v725_v59 = vld [vmem:[#allocation5 + $0x13b8] sm:$0xff] }
 0x164   :  { %v5778_v63 = vpop.f32.mrb[3].mxu1  ;;  %7909 = vmatprep.subr.bf16.mxu0 %v7908_v46  ;;  %v7986_v46 = vpack.c.bf16 %v705_v31, %v704_v36  ;;  %v682_v36 = vld [vmem:[#allocation5 + $0x1260] sm:$0xff] }
 0x165   :  { %v5779_v45 = vadd.f32 %v5778_v63, %v5777_v55  ;;  %7939 = vmatpush3.bf16.msra.mxu1 %v7938_v44  ;;  %v2372_v56 = vadd.f32 %v5744_v62, %v9260_v26  ;;  %v7980_v26 = vpack.c.bf16 %v719_v14, %v718_v10  ;;  %v7954_v44 = vpack.c.bf16 %v673_v34, %v672_v32  ;;  %v677_v62 = vld [vmem:[#allocation5 + $0x1238] sm:$0xff]  ;;  %v708_v63 = vld [vmem:[#allocation5 + $0x1330] sm:$0xff]  ;;  %v711_v10 = vld [vmem:[#allocation5 + $0x1348] sm:$0xff] }
 0x166   :  { %7941 = vmatprep.subr.bf16.mxu1 %v7940_v53  ;;  %v7988_v53 = vpack.c.bf16 %v723_v43, %v722_v41  ;;  %v7958_v55 = vpack.c.bf16 %v675_v49, %v674_v48  ;;  %v7962_v3 = vpack.c.bf16 %v677_v62, %v676_v61  ;;  %v7994_v4 = vpack.c.bf16 %v709_v0, %v708_v63  ;;  %v696_v14 = vld [vmem:[#allocation5 + $0x12d0] sm:$0xff]  ;;  %v714_v31 = vld [vmem:[#allocation5 + $0x1360] sm:$0xff]  ;;  %v701_v43 = vld [vmem:[#allocation5 + $0x12f8] sm:$0xff] }
 0x167   :  { %v9275_v8 = vadd.f32 %v5779_v45, %v2372_v56  ;;  %7911 = vmatpush3.bf16.msra.mxu0 %v7910_v58  ;;  %v7992_v58 = vpack.c.bf16 %v725_v59, %v724_v33  ;;  %v694_v45 = vld [vmem:[#allocation5 + $0x12c0] sm:$0xff]  ;;  %v7998_v19 = vpack.c.bf16 %v711_v10, %v710_v7  ;;  %v7968_v12 = vpack.c.bf16 %v697_v16, %v696_v14  ;;  %v700_v41 = vld [vmem:[#allocation5 + $0x12f0] sm:$0xff]  ;;  %v685_v59 = vld [vmem:[#allocation5 + $0x1278] sm:$0xff] }
 0x168   :  { %7913 = vmatprep.subr.bf16.mxu0 %v7912_v1  ;;  %v726_v1 = vld [vmem:[#allocation5 + $0x13c0] sm:$0xff]  ;;  %v8002_v32 = vpack.c.bf16 %v713_v22, %v712_v21  ;;  %v7972_v34 = vpack.c.bf16 %v699_v25, %v698_v24  ;;  %v684_v33 = vld [vmem:[#allocation5 + $0x1270] sm:$0xff]  ;;  %v717_v61 = vld [vmem:[#allocation5 + $0x1378] sm:$0xff] }
 0x169   :  { %7943 = vmatpush3.bf16.msra.mxu1 %v7942_v51  ;;  %v695_v51 = vld [vmem:[#allocation5 + $0x12c8] sm:$0xff]  ;;  %v7996_v9 = vpack.c.bf16 %v727_v2, %v726_v1  ;;  %v750_v62 = vld [vmem:[#allocation5 + $0x1480] sm:$0xff]  ;;  %v7978_v1 = vpack.c.bf16 %v685_v59, %v684_v33  ;;  %v752_v7 = vld [vmem:[#allocation5 + $0x1490] sm:$0xff] }
 0x16a   :  { %7945 = vmatprep.subr.bf16.mxu1 %v7944_v5  ;;  %v7964_v56 = vpack.c.bf16 %v695_v51, %v694_v45  ;;  %v678_v5 = vld [vmem:[#allocation5 + $0x1240] sm:$0xff]  ;;  %v751_v63 = vld [vmem:[#allocation5 + $0x1488] sm:$0xff]  ;;  %v784_v14 = vld [vmem:[#allocation5 + $0x1590] sm:$0xff] }
 0x16b   :  { %7915 = vmatpush3.bf16.msra.mxu0 %v7914_v17  ;;  %v728_v17 = vld [vmem:[#allocation5 + $0x13d0] sm:$0xff]  ;;  %v783_v0 = vld [vmem:[#allocation5 + $0x1588] sm:$0xff]  ;;  %v785_v16 = vld [vmem:[#allocation5 + $0x1598] sm:$0xff] }
 0x16c   :  { %7949 = vmatprep.subr.bf16.mxu0 %v7948_v18  ;;  %v7966_v18 = vpack.c.bf16 %v679_v6, %v678_v5  ;;  %v766_v5 = vld [vmem:[#allocation5 + $0x1500] sm:$0xff]  ;;  %v767_v6 = vld [vmem:[#allocation5 + $0x1508] sm:$0xff]  ;;  %v8048_v21 = vpack.c.bf16 %v785_v16, %v784_v14 }
 0x16d   :  { %7947 = vmatpush3.bf16.msra.mxu1 %v7946_v11  ;;  %v729_v11 = vld [vmem:[#allocation5 + $0x13d8] sm:$0xff]  ;;  %v754_v22 = vld [vmem:[#allocation5 + $0x14a0] sm:$0xff]  ;;  %v755_v24 = vld [vmem:[#allocation5 + $0x14a8] sm:$0xff] }
 0x16e   :  { %7981 = vmatprep.subr.bf16.mxu1 %v7980_v26  ;;  %3350 = vmatmul.mubr.f32.vlgmr.msra.gmra.mrb[16].mxu0 %v9263_v42  ;;  %v692_v42 = vld [vmem:[#allocation5 + $0x12b0] sm:$0xff]  ;;  %v681_v26 = vld [vmem:[#allocation5 + $0x1258] sm:$0xff]  ;;  %v8000_v15 = vpack.c.bf16 %v729_v11, %v728_v17  ;;  %v791_v33 = vld [vmem:[#allocation5 + $0x15c8] sm:$0xff] }
 0x16f   :  { %7951 = vmatpush3.bf16.msra.mxu0 %v7950_v28  ;;  %3489 = vmatprep.mubr.f32.mxu0 %v1829_v40  ;;  %v7960_v60 = vpack.c.bf16 %v693_v57, %v692_v42  ;;  %v730_v28 = vld [vmem:[#allocation5 + $0x13e0] sm:$0xff]  ;;  %v715_v40 = vld [vmem:[#allocation5 + $0x1368] sm:$0xff]  ;;  %v7976_v57 = vpack.c.bf16 %v701_v43, %v700_v41  ;;  %v757_v41 = vld [vmem:[#allocation5 + $0x14b8] sm:$0xff] }
 0x170   :  { %3420 = vmatmul.mubr.f32.vlgmr.msra.gmra.mrb[16].mxu1 %v9266_v35  ;;  %7953 = vmatprep.subr.bf16.mxu0 %v7952_v30  ;;  %v7990_v35 = vpack.c.bf16 %v707_v54, %v706_v50  ;;  %v7970_v30 = vpack.c.bf16 %v681_v26, %v680_v20  ;;  %v8006_v42 = vpack.c.bf16 %v715_v40, %v714_v31  ;;  %v737_v20 = vld [vmem:[#allocation5 + $0x1418] sm:$0xff]  ;;  %v768_v26 = vld [vmem:[#allocation5 + $0x1510] sm:$0xff]  ;;  %v739_v31 = vld [vmem:[#allocation5 + $0x1428] sm:$0xff] }
 0x171   :  { %7983 = vmatpush3.bf16.msra.mxu1 %v7982_v29  ;;  %3559 = vmatprep.mubr.f32.mxu1 %v1830_v52  ;;  %v731_v29 = vld [vmem:[#allocation5 + $0x13e8] sm:$0xff]  ;;  %v788_v43 = vld [vmem:[#allocation5 + $0x15b0] sm:$0xff]  ;;  %v762_v14 = vld [vmem:[#allocation5 + $0x14e0] sm:$0xff] }
 0x172   :  { %7985 = vmatprep.subr.bf16.mxu1 %v7984_v37  ;;  %v683_v37 = vld [vmem:[#allocation5 + $0x1268] sm:$0xff]  ;;  %v8004_v39 = vpack.c.bf16 %v731_v29, %v730_v28  ;;  %v786_v28 = vld [vmem:[#allocation5 + $0x15a0] sm:$0xff] }
 0x173   :  { %7955 = vmatpush3.bf16.msra.mxu0 %v7954_v44  ;;  %v7974_v50 = vpack.c.bf16 %v683_v37, %v682_v36  ;;  %v787_v29 = vld [vmem:[#allocation5 + $0x15a8] sm:$0xff]  ;;  %v8020_v36 = vpack.c.bf16 %v755_v24, %v754_v22  ;;  %v738_v37 = vld [vmem:[#allocation5 + $0x1420] sm:$0xff] }
 0x174   :  { %7957 = vmatprep.subr.bf16.mxu0 %v7956_v47  ;;  %v733_v47 = vld [vmem:[#allocation5 + $0x13f8] sm:$0xff]  ;;  %v771_v40 = vld [vmem:[#allocation5 + $0x1528] sm:$0xff] }
 0x175   :  { %7987 = vmatpush3.bf16.msra.mxu1 %v7986_v46  ;;  %v732_v46 = vld [vmem:[#allocation5 + $0x13f0] sm:$0xff]  ;;  %v763_v16 = vld [vmem:[#allocation5 + $0x14e8] sm:$0xff] }
 0x176   :  { %7989 = vmatprep.subr.bf16.mxu1 %v7988_v53  ;;  %v80_v53 = vld [vmem:[#allocation2 + $0x50] sm:$0xff] }
 0x177   :  { %7959 = vmatpush3.bf16.msra.mxu0 %v7958_v55  ;;  %v716_v55 = vld [vmem:[#allocation5 + $0x1370] sm:$0xff]  ;;  %v1831_v45 = vcombine.high %v80_v53, %v80_v53  ;;  %v9293_v10 = vrot.slane %v80_v53, %v9174_v13  ;;  %v773_v53 = vld [vmem:[#allocation5 + $0x1538] sm:$0xff] }
 0x178   :  { %7961 = vmatprep.subr.bf16.mxu0 %v7960_v60  ;;  %v8008_v60 = vpack.c.bf16 %v733_v47, %v732_v46  ;;  %v8010_v2 = vpack.c.bf16 %v717_v61, %v716_v55  ;;  %v740_v47 = vld [vmem:[#allocation5 + $0x1430] sm:$0xff]  ;;  %v743_v61 = vld [vmem:[#allocation5 + $0x1448] sm:$0xff] }
 0x179   :  { %7991 = vmatpush3.bf16.msra.mxu1 %v7990_v35  ;;  %v9296_v17 = vrot.slane %v1831_v45, %v9174_v13  ;;  %v1846_v25 = vcombine.high %v9293_v10, %v9293_v10  ;;  %v761_v45 = vld [vmem:[#allocation5 + $0x14d8] sm:$0xff] }
 0x17a   :  { %7993 = vmatprep.subr.bf16.mxu1 %v7992_v58  ;;  %v782_v58 = vld [vmem:[#allocation5 + $0x1580] sm:$0xff] }
 0x17b   :  { %7963 = vmatpush3.bf16.msra.mxu0 %v7962_v3  ;;  %v8012_v3 = vpack.c.bf16 %v751_v63, %v750_v62  ;;  %v774_v62 = vld [vmem:[#allocation5 + $0x1540] sm:$0xff] }
 0x17c   :  { %7965 = vmatprep.subr.bf16.mxu0 %v7964_v56  ;;  %v735_v56 = vld [vmem:[#allocation5 + $0x1408] sm:$0xff] }
 0x17d   :  { %7995 = vmatpush3.bf16.msra.mxu1 %v7994_v4  ;;  %v734_v4 = vld [vmem:[#allocation5 + $0x1400] sm:$0xff] }
 0x17e   :  { %7997 = vmatprep.subr.bf16.mxu1 %v7996_v9  ;;  %v753_v9 = vld [vmem:[#allocation5 + $0x1498] sm:$0xff]  ;;  %v8014_v11 = vpack.c.bf16 %v735_v56, %v734_v4 }
 0x17f   :  { %7967 = vmatpush3.bf16.msra.mxu0 %v7966_v18  ;;  %v8046_v18 = vpack.c.bf16 %v767_v6, %v766_v5  ;;  %v744_v5 = vld [vmem:[#allocation5 + $0x1450] sm:$0xff] }
 0x180   :  { %7969 = vmatprep.subr.bf16.mxu0 %v7968_v12  ;;  %v736_v12 = vld [vmem:[#allocation5 + $0x1410] sm:$0xff] }
 0x181   :  { %7999 = vmatpush3.bf16.msra.mxu1 %v7998_v19  ;;  %v5812_v38 = vpop.f32.mrb[4].mxu0  ;;  %v8016_v19 = vpack.c.bf16 %v753_v9, %v752_v7  ;;  %v776_v6 = vld [vmem:[#allocation5 + $0x1550] sm:$0xff]  ;;  %v777_v9 = vld [vmem:[#allocation5 + $0x1558] sm:$0xff] }
 0x182   :  { %8001 = vmatprep.subr.bf16.mxu1 %v8000_v15  ;;  %v5813_v52 = vpop.f32.mrb[5].mxu0  ;;  %v769_v15 = vld [vmem:[#allocation5 + $0x1518] sm:$0xff] }
 0x183   :  { %v5847_v44 = vpop.f32.mrb[4].mxu1  ;;  %v5814_v48 = vadd.f32 %v5813_v52, %v5812_v38  ;;  %7971 = vmatpush3.bf16.msra.mxu0 %v7970_v30  ;;  %v1847_v30 = vcombine.high %v9296_v17, %v9296_v17  ;;  %v770_v38 = vld [vmem:[#allocation5 + $0x1520] sm:$0xff]  ;;  %v789_v52 = vld [vmem:[#allocation5 + $0x15b8] sm:$0xff] }
 0x184   :  { %v5848_v49 = vpop.f32.mrb[5].mxu1  ;;  %7973 = vmatprep.subr.bf16.mxu0 %v7972_v34  ;;  %v8050_v34 = vpack.c.bf16 %v769_v15, %v768_v26  ;;  %v746_v26 = vld [vmem:[#allocation5 + $0x1460] sm:$0xff] }
 0x185   :  { %v5849_v54 = vadd.f32 %v5848_v49, %v5847_v44  ;;  %8003 = vmatpush3.bf16.msra.mxu1 %v8002_v32  ;;  %v2512_v35 = vadd.f32 %v5814_v48, %v9275_v8  ;;  %v8044_v8 = vpack.c.bf16 %v783_v0, %v782_v58  ;;  %v8018_v32 = vpack.c.bf16 %v737_v20, %v736_v12  ;;  %v741_v48 = vld [vmem:[#allocation5 + $0x1438] sm:$0xff]  ;;  %v772_v49 = vld [vmem:[#allocation5 + $0x1530] sm:$0xff]  ;;  %v775_v58 = vld [vmem:[#allocation5 + $0x1548] sm:$0xff] }
 0x186   :  { %8005 = vmatprep.subr.bf16.mxu1 %v8004_v39  ;;  %v8052_v39 = vpack.c.bf16 %v787_v29, %v786_v28  ;;  %v8022_v44 = vpack.c.bf16 %v739_v31, %v738_v37  ;;  %v8026_v59 = vpack.c.bf16 %v741_v48, %v740_v47  ;;  %v8058_v55 = vpack.c.bf16 %v773_v53, %v772_v49  ;;  %v760_v0 = vld [vmem:[#allocation5 + $0x14d0] sm:$0xff]  ;;  %v778_v15 = vld [vmem:[#allocation5 + $0x1560] sm:$0xff]  ;;  %v765_v29 = vld [vmem:[#allocation5 + $0x14f8] sm:$0xff] }
 0x187   :  { %v9290_v51 = vadd.f32 %v5849_v54, %v2512_v35  ;;  %7975 = vmatpush3.bf16.msra.mxu0 %v7974_v50  ;;  %v8056_v50 = vpack.c.bf16 %v789_v52, %v788_v43  ;;  %v758_v54 = vld [vmem:[#allocation5 + $0x14c0] sm:$0xff]  ;;  %v8062_v4 = vpack.c.bf16 %v775_v58, %v774_v62  ;;  %v8032_v56 = vpack.c.bf16 %v761_v45, %v760_v0  ;;  %v764_v28 = vld [vmem:[#allocation5 + $0x14f0] sm:$0xff]  ;;  %v749_v52 = vld [vmem:[#allocation5 + $0x1478] sm:$0xff] }
 0x188   :  { %7977 = vmatprep.subr.bf16.mxu0 %v7976_v57  ;;  %v790_v57 = vld [vmem:[#allocation5 + $0x15c0] sm:$0xff]  ;;  %v8066_v12 = vpack.c.bf16 %v777_v9, %v776_v6  ;;  %v8036_v20 = vpack.c.bf16 %v763_v16, %v762_v14  ;;  %v748_v43 = vld [vmem:[#allocation5 + $0x1470] sm:$0xff]  ;;  %v781_v47 = vld [vmem:[#allocation5 + $0x1578] sm:$0xff] }
 0x189   :  { %8007 = vmatpush3.bf16.msra.mxu1 %v8006_v42  ;;  %v759_v42 = vld [vmem:[#allocation5 + $0x14c8] sm:$0xff]  ;;  %v8060_v63 = vpack.c.bf16 %v791_v33, %v790_v57  ;;  %v814_v48 = vld [vmem:[#allocation5 + $0x1680] sm:$0xff]  ;;  %v8042_v57 = vpack.c.bf16 %v749_v52, %v748_v43  ;;  %v816_v62 = vld [vmem:[#allocation5 + $0x1690] sm:$0xff] }
 0x18a   :  { %8009 = vmatprep.subr.bf16.mxu1 %v8008_v60  ;;  %v8028_v35 = vpack.c.bf16 %v759_v42, %v758_v54  ;;  %v742_v60 = vld [vmem:[#allocation5 + $0x1440] sm:$0xff]  ;;  %v815_v49 = vld [vmem:[#allocation5 + $0x1688] sm:$0xff]  ;;  %v848_v0 = vld [vmem:[#allocation5 + $0x1790] sm:$0xff] }
 0x18b   :  { %7979 = vmatpush3.bf16.msra.mxu0 %v7978_v1  ;;  %v792_v1 = vld [vmem:[#allocation5 + $0x15d0] sm:$0xff]  ;;  %v847_v53 = vld [vmem:[#allocation5 + $0x1788] sm:$0xff]  ;;  %v849_v45 = vld [vmem:[#allocation5 + $0x1798] sm:$0xff] }
 0x18c   :  { %8013 = vmatprep.subr.bf16.mxu0 %v8012_v3  ;;  %v8030_v3 = vpack.c.bf16 %v743_v61, %v742_v60  ;;  %v830_v60 = vld [vmem:[#allocation5 + $0x1700] sm:$0xff]  ;;  %v831_v61 = vld [vmem:[#allocation5 + $0x1708] sm:$0xff]  ;;  %v8112_v6 = vpack.c.bf16 %v849_v45, %v848_v0 }
 0x18d   :  { %8011 = vmatpush3.bf16.msra.mxu1 %v8010_v2  ;;  %v793_v2 = vld [vmem:[#allocation5 + $0x15d8] sm:$0xff]  ;;  %v818_v9 = vld [vmem:[#allocation5 + $0x16a0] sm:$0xff]  ;;  %v819_v14 = vld [vmem:[#allocation5 + $0x16a8] sm:$0xff] }
 0x18e   :  { %8045 = vmatprep.subr.bf16.mxu1 %v8044_v8  ;;  %3490 = vmatmul.mubr.f32.vlgmr.msra.gmra.mrb[18].mxu0 %v9278_v23  ;;  %v756_v23 = vld [vmem:[#allocation5 + $0x14b0] sm:$0xff]  ;;  %v745_v8 = vld [vmem:[#allocation5 + $0x1458] sm:$0xff]  ;;  %v8064_v7 = vpack.c.bf16 %v793_v2, %v792_v1  ;;  %v855_v43 = vld [vmem:[#allocation5 + $0x17c8] sm:$0xff] }
 0x18f   :  { %8015 = vmatpush3.bf16.msra.mxu0 %v8014_v11  ;;  %3629 = vmatprep.mubr.f32.mxu0 %v1846_v25  ;;  %v8024_v46 = vpack.c.bf16 %v757_v41, %v756_v23  ;;  %v794_v11 = vld [vmem:[#allocation5 + $0x15e0] sm:$0xff]  ;;  %v779_v25 = vld [vmem:[#allocation5 + $0x1568] sm:$0xff]  ;;  %v8040_v41 = vpack.c.bf16 %v765_v29, %v764_v28  ;;  %v821_v28 = vld [vmem:[#allocation5 + $0x16b8] sm:$0xff] }
 0x190   :  { %3560 = vmatmul.mubr.f32.vlgmr.msra.gmra.mrb[18].mxu1 %v9281_v27  ;;  %8017 = vmatprep.subr.bf16.mxu0 %v8016_v19  ;;  %v8054_v27 = vpack.c.bf16 %v771_v40, %v770_v38  ;;  %v8034_v19 = vpack.c.bf16 %v745_v8, %v744_v5  ;;  %v8070_v23 = vpack.c.bf16 %v779_v25, %v778_v15  ;;  %v801_v5 = vld [vmem:[#allocation5 + $0x1618] sm:$0xff]  ;;  %v832_v8 = vld [vmem:[#allocation5 + $0x1710] sm:$0xff]  ;;  %v803_v15 = vld [vmem:[#allocation5 + $0x1628] sm:$0xff] }
 0x191   :  { %8047 = vmatpush3.bf16.msra.mxu1 %v8046_v18  ;;  %3699 = vmatprep.mubr.f32.mxu1 %v1847_v30  ;;  %v795_v18 = vld [vmem:[#allocation5 + $0x15e8] sm:$0xff]  ;;  %v852_v29 = vld [vmem:[#allocation5 + $0x17b0] sm:$0xff]  ;;  %v826_v0 = vld [vmem:[#allocation5 + $0x16e0] sm:$0xff] }
 0x192   :  { %8049 = vmatprep.subr.bf16.mxu1 %v8048_v21  ;;  %v747_v21 = vld [vmem:[#allocation5 + $0x1468] sm:$0xff]  ;;  %v8068_v24 = vpack.c.bf16 %v795_v18, %v794_v11  ;;  %v850_v11 = vld [vmem:[#allocation5 + $0x17a0] sm:$0xff] }
 0x193   :  { %8019 = vmatpush3.bf16.msra.mxu0 %v8018_v32  ;;  %v8038_v38 = vpack.c.bf16 %v747_v21, %v746_v26  ;;  %v851_v18 = vld [vmem:[#allocation5 + $0x17a8] sm:$0xff]  ;;  %v8084_v26 = vpack.c.bf16 %v819_v14, %v818_v9  ;;  %v802_v21 = vld [vmem:[#allocation5 + $0x1620] sm:$0xff] }
 0x194   :  { %8021 = vmatprep.subr.bf16.mxu0 %v8020_v36  ;;  %v797_v36 = vld [vmem:[#allocation5 + $0x15f8] sm:$0xff]  ;;  %v835_v25 = vld [vmem:[#allocation5 + $0x1728] sm:$0xff] }
 0x195   :  { %8051 = vmatpush3.bf16.msra.mxu1 %v8050_v34  ;;  %v796_v34 = vld [vmem:[#allocation5 + $0x15f0] sm:$0xff]  ;;  %v827_v45 = vld [vmem:[#allocation5 + $0x16e8] sm:$0xff] }
 0x196   :  { %8053 = vmatprep.subr.bf16.mxu1 %v8052_v39  ;;  %v81_v39 = vld [vmem:[#allocation2 + $0x58] sm:$0xff] }
 0x197   :  { %8023 = vmatpush3.bf16.msra.mxu0 %v8022_v44  ;;  %v780_v44 = vld [vmem:[#allocation5 + $0x1570] sm:$0xff]  ;;  %v1848_v54 = vcombine.high %v81_v39, %v81_v39  ;;  %v9308_v58 = vrot.slane %v81_v39, %v9174_v13  ;;  %v837_v39 = vld [vmem:[#allocation5 + $0x1738] sm:$0xff] }
 0x198   :  { %8025 = vmatprep.subr.bf16.mxu0 %v8024_v46  ;;  %v8072_v46 = vpack.c.bf16 %v797_v36, %v796_v34  ;;  %v8074_v33 = vpack.c.bf16 %v781_v47, %v780_v44  ;;  %v804_v36 = vld [vmem:[#allocation5 + $0x1630] sm:$0xff]  ;;  %v807_v47 = vld [vmem:[#allocation5 + $0x1648] sm:$0xff] }
 0x199   :  { %8055 = vmatpush3.bf16.msra.mxu1 %v8054_v27  ;;  %v9311_v1 = vrot.slane %v1848_v54, %v9174_v13  ;;  %v1863_v16 = vcombine.high %v9308_v58, %v9308_v58  ;;  %v825_v54 = vld [vmem:[#allocation5 + $0x16d8] sm:$0xff] }
 0x19a   :  { %8057 = vmatprep.subr.bf16.mxu1 %v8056_v50  ;;  %v846_v50 = vld [vmem:[#allocation5 + $0x1780] sm:$0xff] }
 0x19b   :  { %8027 = vmatpush3.bf16.msra.mxu0 %v8026_v59  ;;  %v8076_v59 = vpack.c.bf16 %v815_v49, %v814_v48  ;;  %v838_v48 = vld [vmem:[#allocation5 + $0x1740] sm:$0xff] }
 0x19c   :  { %8029 = vmatprep.subr.bf16.mxu0 %v8028_v35  ;;  %v799_v35 = vld [vmem:[#allocation5 + $0x1608] sm:$0xff] }
 0x19d   :  { %8059 = vmatpush3.bf16.msra.mxu1 %v8058_v55  ;;  %v798_v55 = vld [vmem:[#allocation5 + $0x1600] sm:$0xff] }
 0x19e   :  { %8061 = vmatprep.subr.bf16.mxu1 %v8060_v63  ;;  %v817_v63 = vld [vmem:[#allocation5 + $0x1698] sm:$0xff]  ;;  %v8078_v2 = vpack.c.bf16 %v799_v35, %v798_v55 }
 0x19f   :  { %8031 = vmatpush3.bf16.msra.mxu0 %v8030_v3  ;;  %v8110_v3 = vpack.c.bf16 %v831_v61, %v830_v60  ;;  %v808_v60 = vld [vmem:[#allocation5 + $0x1650] sm:$0xff] }
 0x1a0   :  { %8033 = vmatprep.subr.bf16.mxu0 %v8032_v56  ;;  %v800_v56 = vld [vmem:[#allocation5 + $0x1610] sm:$0xff] }
 0x1a1   :  { %8063 = vmatpush3.bf16.msra.mxu1 %v8062_v4  ;;  %v5882_v22 = vpop.f32.mrb[6].mxu0  ;;  %v8080_v4 = vpack.c.bf16 %v817_v63, %v816_v62  ;;  %v840_v61 = vld [vmem:[#allocation5 + $0x1750] sm:$0xff]  ;;  %v841_v63 = vld [vmem:[#allocation5 + $0x1758] sm:$0xff] }
 0x1a2   :  { %8065 = vmatprep.subr.bf16.mxu1 %v8064_v7  ;;  %v5883_v30 = vpop.f32.mrb[7].mxu0  ;;  %v833_v7 = vld [vmem:[#allocation5 + $0x1718] sm:$0xff] }
 0x1a3   :  { %v5917_v32 = vpop.f32.mrb[6].mxu1  ;;  %v5884_v37 = vadd.f32 %v5883_v30, %v5882_v22  ;;  %8035 = vmatpush3.bf16.msra.mxu0 %v8034_v19  ;;  %v1864_v19 = vcombine.high %v9311_v1, %v9311_v1  ;;  %v834_v22 = vld [vmem:[#allocation5 + $0x1720] sm:$0xff]  ;;  %v853_v30 = vld [vmem:[#allocation5 + $0x17b8] sm:$0xff] }
 0x1a4   :  { %v5918_v31 = vpop.f32.mrb[7].mxu1  ;;  %8037 = vmatprep.subr.bf16.mxu0 %v8036_v20  ;;  %v8114_v20 = vpack.c.bf16 %v833_v7, %v832_v8  ;;  %v810_v8 = vld [vmem:[#allocation5 + $0x1660] sm:$0xff] }
 0x1a5   :  { %v5919_v40 = vadd.f32 %v5918_v31, %v5917_v32  ;;  %8067 = vmatpush3.bf16.msra.mxu1 %v8066_v12  ;;  %v2652_v27 = vadd.f32 %v5884_v37, %v9290_v51  ;;  %v8108_v51 = vpack.c.bf16 %v847_v53, %v846_v50  ;;  %v8082_v12 = vpack.c.bf16 %v801_v5, %v800_v56  ;;  %v805_v37 = vld [vmem:[#allocation5 + $0x1638] sm:$0xff]  ;;  %v836_v31 = vld [vmem:[#allocation5 + $0x1730] sm:$0xff]  ;;  %v839_v50 = vld [vmem:[#allocation5 + $0x1748] sm:$0xff] }
 0x1a6   :  { %8069 = vmatprep.subr.bf16.mxu1 %v8068_v24  ;;  %v8116_v24 = vpack.c.bf16 %v851_v18, %v850_v11  ;;  %v8086_v32 = vpack.c.bf16 %v803_v15, %v802_v21  ;;  %v8090_v52 = vpack.c.bf16 %v805_v37, %v804_v36  ;;  %v8122_v44 = vpack.c.bf16 %v837_v39, %v836_v31  ;;  %v824_v53 = vld [vmem:[#allocation5 + $0x16d0] sm:$0xff]  ;;  %v842_v7 = vld [vmem:[#allocation5 + $0x1760] sm:$0xff]  ;;  %v829_v18 = vld [vmem:[#allocation5 + $0x16f8] sm:$0xff] }
 0x1a7   :  { %v9305_v42 = vadd.f32 %v5919_v40, %v2652_v27  ;;  %8039 = vmatpush3.bf16.msra.mxu0 %v8038_v38  ;;  %v8120_v38 = vpack.c.bf16 %v853_v30, %v852_v29  ;;  %v822_v40 = vld [vmem:[#allocation5 + $0x16c0] sm:$0xff]  ;;  %v8126_v55 = vpack.c.bf16 %v839_v50, %v838_v48  ;;  %v8096_v35 = vpack.c.bf16 %v825_v54, %v824_v53  ;;  %v828_v11 = vld [vmem:[#allocation5 + $0x16f0] sm:$0xff]  ;;  %v813_v30 = vld [vmem:[#allocation5 + $0x1678] sm:$0xff] }
 0x1a8   :  { %8041 = vmatprep.subr.bf16.mxu0 %v8040_v41  ;;  %v854_v41 = vld [vmem:[#allocation5 + $0x17c0] sm:$0xff]  ;;  %v8130_v56 = vpack.c.bf16 %v841_v63, %v840_v61  ;;  %v8100_v5 = vpack.c.bf16 %v827_v45, %v826_v0  ;;  %v812_v29 = vld [vmem:[#allocation5 + $0x1670] sm:$0xff]  ;;  %v845_v36 = vld [vmem:[#allocation5 + $0x1778] sm:$0xff] }
 0x1a9   :  { %8071 = vmatpush3.bf16.msra.mxu1 %v8070_v23  ;;  %v823_v23 = vld [vmem:[#allocation5 + $0x16c8] sm:$0xff]  ;;  %v8124_v49 = vpack.c.bf16 %v855_v43, %v854_v41  ;;  %v878_v37 = vld [vmem:[#allocation5 + $0x1880] sm:$0xff]  ;;  %v8106_v41 = vpack.c.bf16 %v813_v30, %v812_v29  ;;  %v880_v48 = vld [vmem:[#allocation5 + $0x1890] sm:$0xff] }
 0x1aa   :  { %8073 = vmatprep.subr.bf16.mxu1 %v8072_v46  ;;  %v8092_v27 = vpack.c.bf16 %v823_v23, %v822_v40  ;;  %v806_v46 = vld [vmem:[#allocation5 + $0x1640] sm:$0xff]  ;;  %v879_v31 = vld [vmem:[#allocation5 + $0x1888] sm:$0xff]  ;;  %v912_v53 = vld [vmem:[#allocation5 + $0x1990] sm:$0xff] }
 0x1ab   :  { %8043 = vmatpush3.bf16.msra.mxu0 %v8042_v57  ;;  %v856_v57 = vld [vmem:[#allocation5 + $0x17d0] sm:$0xff]  ;;  %v911_v39 = vld [vmem:[#allocation5 + $0x1988] sm:$0xff]  ;;  %v913_v54 = vld [vmem:[#allocation5 + $0x1998] sm:$0xff] }
 0x1ac   :  { %8077 = vmatprep.subr.bf16.mxu0 %v8076_v59  ;;  %v8094_v59 = vpack.c.bf16 %v807_v47, %v806_v46  ;;  %v894_v46 = vld [vmem:[#allocation5 + $0x1900] sm:$0xff]  ;;  %v895_v47 = vld [vmem:[#allocation5 + $0x1908] sm:$0xff]  ;;  %v8176_v61 = vpack.c.bf16 %v913_v54, %v912_v53 }
 0x1ad   :  { %8075 = vmatpush3.bf16.msra.mxu1 %v8074_v33  ;;  %v857_v33 = vld [vmem:[#allocation5 + $0x17d8] sm:$0xff]  ;;  %v882_v63 = vld [vmem:[#allocation5 + $0x18a0] sm:$0xff]  ;;  %v883_v0 = vld [vmem:[#allocation5 + $0x18a8] sm:$0xff] }
 0x1ae   :  { %8109 = vmatprep.subr.bf16.mxu1 %v8108_v51  ;;  %3630 = vmatmul.mubr.f32.vlgmr.msra.gmra.mrb[20].mxu0 %v9293_v10  ;;  %v820_v10 = vld [vmem:[#allocation5 + $0x16b0] sm:$0xff]  ;;  %v809_v51 = vld [vmem:[#allocation5 + $0x1658] sm:$0xff]  ;;  %v8128_v62 = vpack.c.bf16 %v857_v33, %v856_v57  ;;  %v919_v29 = vld [vmem:[#allocation5 + $0x19c8] sm:$0xff] }
 0x1af   :  { %8079 = vmatpush3.bf16.msra.mxu0 %v8078_v2  ;;  %3769 = vmatprep.mubr.f32.mxu0 %v1863_v16  ;;  %v8088_v34 = vpack.c.bf16 %v821_v28, %v820_v10  ;;  %v858_v2 = vld [vmem:[#allocation5 + $0x17e0] sm:$0xff]  ;;  %v843_v16 = vld [vmem:[#allocation5 + $0x1768] sm:$0xff]  ;;  %v8104_v28 = vpack.c.bf16 %v829_v18, %v828_v11  ;;  %v885_v11 = vld [vmem:[#allocation5 + $0x18b8] sm:$0xff] }
 0x1b0   :  { %3700 = vmatmul.mubr.f32.vlgmr.msra.gmra.mrb[20].mxu1 %v9296_v17  ;;  %8081 = vmatprep.subr.bf16.mxu0 %v8080_v4  ;;  %v8118_v17 = vpack.c.bf16 %v835_v25, %v834_v22  ;;  %v8098_v4 = vpack.c.bf16 %v809_v51, %v808_v60  ;;  %v8134_v10 = vpack.c.bf16 %v843_v16, %v842_v7  ;;  %v865_v60 = vld [vmem:[#allocation5 + $0x1818] sm:$0xff]  ;;  %v896_v51 = vld [vmem:[#allocation5 + $0x1910] sm:$0xff]  ;;  %v867_v7 = vld [vmem:[#allocation5 + $0x1828] sm:$0xff] }
 0x1b1   :  { %8111 = vmatpush3.bf16.msra.mxu1 %v8110_v3  ;;  %3839 = vmatprep.mubr.f32.mxu1 %v1864_v19  ;;  %v859_v3 = vld [vmem:[#allocation5 + $0x17e8] sm:$0xff]  ;;  %v916_v18 = vld [vmem:[#allocation5 + $0x19b0] sm:$0xff]  ;;  %v890_v53 = vld [vmem:[#allocation5 + $0x18e0] sm:$0xff] }
 0x1b2   :  { %8113 = vmatprep.subr.bf16.mxu1 %v8112_v6  ;;  %v811_v6 = vld [vmem:[#allocation5 + $0x1668] sm:$0xff]  ;;  %v8132_v14 = vpack.c.bf16 %v859_v3, %v858_v2  ;;  %v914_v2 = vld [vmem:[#allocation5 + $0x19a0] sm:$0xff] }
 0x1b3   :  { %8083 = vmatpush3.bf16.msra.mxu0 %v8082_v12  ;;  %v8102_v22 = vpack.c.bf16 %v811_v6, %v810_v8  ;;  %v915_v3 = vld [vmem:[#allocation5 + $0x19a8] sm:$0xff]  ;;  %v8148_v8 = vpack.c.bf16 %v883_v0, %v882_v63  ;;  %v866_v6 = vld [vmem:[#allocation5 + $0x1820] sm:$0xff] }
 0x1b4   :  { %8085 = vmatprep.subr.bf16.mxu0 %v8084_v26  ;;  %v861_v26 = vld [vmem:[#allocation5 + $0x17f8] sm:$0xff]  ;;  %v899_v16 = vld [vmem:[#allocation5 + $0x1928] sm:$0xff] }
 0x1b5   :  { %8115 = vmatpush3.bf16.msra.mxu1 %v8114_v20  ;;  %v860_v20 = vld [vmem:[#allocation5 + $0x17f0] sm:$0xff]  ;;  %v891_v54 = vld [vmem:[#allocation5 + $0x18e8] sm:$0xff] }
 0x1b6   :  { %8117 = vmatprep.subr.bf16.mxu1 %v8116_v24  ;;  %v82_v24 = vld [vmem:[#allocation2 + $0x60] sm:$0xff] }
 0x1b7   :  { %8087 = vmatpush3.bf16.msra.mxu0 %v8086_v32  ;;  %v844_v32 = vld [vmem:[#allocation5 + $0x1770] sm:$0xff]  ;;  %v1865_v40 = vcombine.high %v82_v24, %v82_v24  ;;  %v9323_v50 = vrot.slane %v82_v24, %v9174_v13  ;;  %v901_v24 = vld [vmem:[#allocation5 + $0x1938] sm:$0xff] }
 0x1b8   :  { %8089 = vmatprep.subr.bf16.mxu0 %v8088_v34  ;;  %v8136_v34 = vpack.c.bf16 %v861_v26, %v860_v20  ;;  %v8138_v43 = vpack.c.bf16 %v845_v36, %v844_v32  ;;  %v868_v26 = vld [vmem:[#allocation5 + $0x1830] sm:$0xff]  ;;  %v871_v36 = vld [vmem:[#allocation5 + $0x1848] sm:$0xff] }
 0x1b9   :  { %8119 = vmatpush3.bf16.msra.mxu1 %v8118_v17  ;;  %v9326_v57 = vrot.slane %v1865_v40, %v9174_v13  ;;  %v1880_v45 = vcombine.high %v9323_v50, %v9323_v50  ;;  %v889_v40 = vld [vmem:[#allocation5 + $0x18d8] sm:$0xff] }
 0x1ba   :  { %8121 = vmatprep.subr.bf16.mxu1 %v8120_v38  ;;  %v910_v38 = vld [vmem:[#allocation5 + $0x1980] sm:$0xff] }
 0x1bb   :  { %8091 = vmatpush3.bf16.msra.mxu0 %v8090_v52  ;;  %v8140_v52 = vpack.c.bf16 %v879_v31, %v878_v37  ;;  %v902_v37 = vld [vmem:[#allocation5 + $0x1940] sm:$0xff] }
 0x1bc   :  { %8093 = vmatprep.subr.bf16.mxu0 %v8092_v27  ;;  %v863_v27 = vld [vmem:[#allocation5 + $0x1808] sm:$0xff] }
 0x1bd   :  { %8123 = vmatpush3.bf16.msra.mxu1 %v8122_v44  ;;  %v862_v44 = vld [vmem:[#allocation5 + $0x1800] sm:$0xff] }
 0x1be   :  { %8125 = vmatprep.subr.bf16.mxu1 %v8124_v49  ;;  %v881_v49 = vld [vmem:[#allocation5 + $0x1898] sm:$0xff]  ;;  %v8142_v33 = vpack.c.bf16 %v863_v27, %v862_v44 }
 0x1bf   :  { %8095 = vmatpush3.bf16.msra.mxu0 %v8094_v59  ;;  %v8174_v59 = vpack.c.bf16 %v895_v47, %v894_v46  ;;  %v872_v46 = vld [vmem:[#allocation5 + $0x1850] sm:$0xff] }
 0x1c0   :  { %8097 = vmatprep.subr.bf16.mxu0 %v8096_v35  ;;  %v864_v35 = vld [vmem:[#allocation5 + $0x1810] sm:$0xff] }
 0x1c1   :  { %8127 = vmatpush3.bf16.msra.mxu1 %v8126_v55  ;;  %v5952_v9 = vpop.f32.mrb[8].mxu0  ;;  %v8144_v55 = vpack.c.bf16 %v881_v49, %v880_v48  ;;  %v904_v47 = vld [vmem:[#allocation5 + $0x1950] sm:$0xff]  ;;  %v905_v49 = vld [vmem:[#allocation5 + $0x1958] sm:$0xff] }
 0x1c2   :  { %8129 = vmatprep.subr.bf16.mxu1 %v8128_v62  ;;  %v5953_v19 = vpop.f32.mrb[9].mxu0  ;;  %v897_v62 = vld [vmem:[#allocation5 + $0x1918] sm:$0xff] }
 0x1c3   :  { %v5987_v12 = vpop.f32.mrb[8].mxu1  ;;  %v5954_v21 = vadd.f32 %v5953_v19, %v5952_v9  ;;  %8099 = vmatpush3.bf16.msra.mxu0 %v8098_v4  ;;  %v1881_v4 = vcombine.high %v9326_v57, %v9326_v57  ;;  %v898_v9 = vld [vmem:[#allocation5 + $0x1920] sm:$0xff]  ;;  %v917_v19 = vld [vmem:[#allocation5 + $0x19b8] sm:$0xff] }
 0x1c4   :  { %v5988_v15 = vpop.f32.mrb[9].mxu1  ;;  %8101 = vmatprep.subr.bf16.mxu0 %v8100_v5  ;;  %v8178_v5 = vpack.c.bf16 %v897_v62, %v896_v51  ;;  %v874_v51 = vld [vmem:[#allocation5 + $0x1860] sm:$0xff] }
 0x1c5   :  { %v5989_v25 = vadd.f32 %v5988_v15, %v5987_v12  ;;  %8131 = vmatpush3.bf16.msra.mxu1 %v8130_v56  ;;  %v2792_v17 = vadd.f32 %v5954_v21, %v9305_v42  ;;  %v8172_v42 = vpack.c.bf16 %v911_v39, %v910_v38  ;;  %v8146_v56 = vpack.c.bf16 %v865_v60, %v864_v35  ;;  %v869_v21 = vld [vmem:[#allocation5 + $0x1838] sm:$0xff]  ;;  %v900_v15 = vld [vmem:[#allocation5 + $0x1930] sm:$0xff]  ;;  %v903_v38 = vld [vmem:[#allocation5 + $0x1948] sm:$0xff] }
 0x1c6   :  { %8133 = vmatprep.subr.bf16.mxu1 %v8132_v14  ;;  %v8180_v14 = vpack.c.bf16 %v915_v3, %v914_v2  ;;  %v8150_v12 = vpack.c.bf16 %v867_v7, %v866_v6  ;;  %v8154_v30 = vpack.c.bf16 %v869_v21, %v868_v26  ;;  %v8186_v32 = vpack.c.bf16 %v901_v24, %v900_v15  ;;  %v888_v39 = vld [vmem:[#allocation5 + $0x18d0] sm:$0xff]  ;;  %v906_v62 = vld [vmem:[#allocation5 + $0x1960] sm:$0xff]  ;;  %v893_v3 = vld [vmem:[#allocation5 + $0x18f8] sm:$0xff] }
 0x1c7   :  { %v9320_v23 = vadd.f32 %v5989_v25, %v2792_v17  ;;  %8103 = vmatpush3.bf16.msra.mxu0 %v8102_v22  ;;  %v8184_v22 = vpack.c.bf16 %v917_v19, %v916_v18  ;;  %v886_v25 = vld [vmem:[#allocation5 + $0x18c0] sm:$0xff]  ;;  %v8190_v44 = vpack.c.bf16 %v903_v38, %v902_v37  ;;  %v8160_v27 = vpack.c.bf16 %v889_v40, %v888_v39  ;;  %v892_v2 = vld [vmem:[#allocation5 + $0x18f0] sm:$0xff]  ;;  %v877_v19 = vld [vmem:[#allocation5 + $0x1878] sm:$0xff] }
 0x1c8   :  { %8105 = vmatprep.subr.bf16.mxu0 %v8104_v28  ;;  %v918_v28 = vld [vmem:[#allocation5 + $0x19c0] sm:$0xff]  ;;  %v8194_v35 = vpack.c.bf16 %v905_v49, %v904_v47  ;;  %v8164_v60 = vpack.c.bf16 %v891_v54, %v890_v53  ;;  %v876_v18 = vld [vmem:[#allocation5 + $0x1870] sm:$0xff]  ;;  %v909_v26 = vld [vmem:[#allocation5 + $0x1978] sm:$0xff] }
 0x1c9   :  { %8135 = vmatpush3.bf16.msra.mxu1 %v8134_v10  ;;  %v887_v10 = vld [vmem:[#allocation5 + $0x18c8] sm:$0xff]  ;;  %v8188_v31 = vpack.c.bf16 %v919_v29, %v918_v28  ;;  %v942_v21 = vld [vmem:[#allocation5 + $0x1a80] sm:$0xff]  ;;  %v8170_v28 = vpack.c.bf16 %v877_v19, %v876_v18  ;;  %v944_v37 = vld [vmem:[#allocation5 + $0x1a90] sm:$0xff] }
 0x1ca   :  { %8137 = vmatprep.subr.bf16.mxu1 %v8136_v34  ;;  %v8156_v17 = vpack.c.bf16 %v887_v10, %v886_v25  ;;  %v870_v34 = vld [vmem:[#allocation5 + $0x1840] sm:$0xff]  ;;  %v943_v15 = vld [vmem:[#allocation5 + $0x1a88] sm:$0xff]  ;;  %v976_v39 = vld [vmem:[#allocation5 + $0x1b90] sm:$0xff] }
 0x1cb   :  { %8107 = vmatpush3.bf16.msra.mxu0 %v8106_v41  ;;  %v920_v41 = vld [vmem:[#allocation5 + $0x19d0] sm:$0xff]  ;;  %v975_v24 = vld [vmem:[#allocation5 + $0x1b88] sm:$0xff]  ;;  %v977_v40 = vld [vmem:[#allocation5 + $0x1b98] sm:$0xff] }
 0x1cc   :  { %8141 = vmatprep.subr.bf16.mxu0 %v8140_v52  ;;  %v8158_v52 = vpack.c.bf16 %v871_v36, %v870_v34  ;;  %v958_v34 = vld [vmem:[#allocation5 + $0x1b00] sm:$0xff]  ;;  %v959_v36 = vld [vmem:[#allocation5 + $0x1b08] sm:$0xff]  ;;  %v8240_v47 = vpack.c.bf16 %v977_v40, %v976_v39 }
 0x1cd   :  { %8139 = vmatpush3.bf16.msra.mxu1 %v8138_v43  ;;  %v921_v43 = vld [vmem:[#allocation5 + $0x19d8] sm:$0xff]  ;;  %v946_v49 = vld [vmem:[#allocation5 + $0x1aa0] sm:$0xff]  ;;  %v947_v53 = vld [vmem:[#allocation5 + $0x1aa8] sm:$0xff] }
 0x1ce   :  { %8173 = vmatprep.subr.bf16.mxu1 %v8172_v42  ;;  %3770 = vmatmul.mubr.f32.vlgmr.msra.gmra.mrb[22].mxu0 %v9308_v58  ;;  %v884_v58 = vld [vmem:[#allocation5 + $0x18b0] sm:$0xff]  ;;  %v873_v42 = vld [vmem:[#allocation5 + $0x1858] sm:$0xff]  ;;  %v8192_v48 = vpack.c.bf16 %v921_v43, %v920_v41  ;;  %v983_v18 = vld [vmem:[#allocation5 + $0x1bc8] sm:$0xff] }
 0x1cf   :  { %8143 = vmatpush3.bf16.msra.mxu0 %v8142_v33  ;;  %3909 = vmatprep.mubr.f32.mxu0 %v1880_v45  ;;  %v8152_v20 = vpack.c.bf16 %v885_v11, %v884_v58  ;;  %v922_v33 = vld [vmem:[#allocation5 + $0x19e0] sm:$0xff]  ;;  %v907_v45 = vld [vmem:[#allocation5 + $0x1968] sm:$0xff]  ;;  %v8168_v11 = vpack.c.bf16 %v893_v3, %v892_v2  ;;  %v949_v2 = vld [vmem:[#allocation5 + $0x1ab8] sm:$0xff] }
 0x1d0   :  { %3840 = vmatmul.mubr.f32.vlgmr.msra.gmra.mrb[22].mxu1 %v9311_v1  ;;  %8145 = vmatprep.subr.bf16.mxu0 %v8144_v55  ;;  %v8182_v1 = vpack.c.bf16 %v899_v16, %v898_v9  ;;  %v8162_v55 = vpack.c.bf16 %v873_v42, %v872_v46  ;;  %v8198_v58 = vpack.c.bf16 %v907_v45, %v906_v62  ;;  %v929_v46 = vld [vmem:[#allocation5 + $0x1a18] sm:$0xff]  ;;  %v960_v42 = vld [vmem:[#allocation5 + $0x1b10] sm:$0xff]  ;;  %v931_v62 = vld [vmem:[#allocation5 + $0x1a28] sm:$0xff] }
 0x1d1   :  { %8175 = vmatpush3.bf16.msra.mxu1 %v8174_v59  ;;  %3979 = vmatprep.mubr.f32.mxu1 %v1881_v4  ;;  %v923_v59 = vld [vmem:[#allocation5 + $0x19e8] sm:$0xff]  ;;  %v980_v3 = vld [vmem:[#allocation5 + $0x1bb0] sm:$0xff]  ;;  %v954_v39 = vld [vmem:[#allocation5 + $0x1ae0] sm:$0xff] }
 0x1d2   :  { %8177 = vmatprep.subr.bf16.mxu1 %v8176_v61  ;;  %v875_v61 = vld [vmem:[#allocation5 + $0x1868] sm:$0xff]  ;;  %v8196_v0 = vpack.c.bf16 %v923_v59, %v922_v33  ;;  %v978_v33 = vld [vmem:[#allocation5 + $0x1ba0] sm:$0xff] }
 0x1d3   :  { %8147 = vmatpush3.bf16.msra.mxu0 %v8146_v56  ;;  %v8166_v9 = vpack.c.bf16 %v875_v61, %v874_v51  ;;  %v979_v59 = vld [vmem:[#allocation5 + $0x1ba8] sm:$0xff]  ;;  %v8212_v51 = vpack.c.bf16 %v947_v53, %v946_v49  ;;  %v930_v61 = vld [vmem:[#allocation5 + $0x1a20] sm:$0xff] }
 0x1d4   :  { %8149 = vmatprep.subr.bf16.mxu0 %v8148_v8  ;;  %v925_v8 = vld [vmem:[#allocation5 + $0x19f8] sm:$0xff]  ;;  %v963_v45 = vld [vmem:[#allocation5 + $0x1b28] sm:$0xff] }
 0x1d5   :  { %8179 = vmatpush3.bf16.msra.mxu1 %v8178_v5  ;;  %v924_v5 = vld [vmem:[#allocation5 + $0x19f0] sm:$0xff]  ;;  %v955_v40 = vld [vmem:[#allocation5 + $0x1ae8] sm:$0xff] }
 0x1d6   :  { %8181 = vmatprep.subr.bf16.mxu1 %v8180_v14  ;;  %v83_v14 = vld [vmem:[#allocation2 + $0x68] sm:$0xff] }
 0x1d7   :  { %8151 = vmatpush3.bf16.msra.mxu0 %v8150_v12  ;;  %v908_v12 = vld [vmem:[#allocation5 + $0x1970] sm:$0xff]  ;;  %v1882_v25 = vcombine.high %v83_v14, %v83_v14  ;;  %v9338_v38 = vrot.slane %v83_v14, %v9174_v13  ;;  %v965_v14 = vld [vmem:[#allocation5 + $0x1b38] sm:$0xff] }
 0x1d8   :  { %8153 = vmatprep.subr.bf16.mxu0 %v8152_v20  ;;  %v8200_v20 = vpack.c.bf16 %v925_v8, %v924_v5  ;;  %v8202_v29 = vpack.c.bf16 %v909_v26, %v908_v12  ;;  %v932_v8 = vld [vmem:[#allocation5 + $0x1a30] sm:$0xff]  ;;  %v935_v26 = vld [vmem:[#allocation5 + $0x1a48] sm:$0xff] }
 0x1d9   :  { %8183 = vmatpush3.bf16.msra.mxu1 %v8182_v1  ;;  %v9341_v41 = vrot.slane %v1882_v25, %v9174_v13  ;;  %v1897_v54 = vcombine.high %v9338_v38, %v9338_v38  ;;  %v953_v25 = vld [vmem:[#allocation5 + $0x1ad8] sm:$0xff] }
 0x1da   :  { %8185 = vmatprep.subr.bf16.mxu1 %v8184_v22  ;;  %v974_v22 = vld [vmem:[#allocation5 + $0x1b80] sm:$0xff] }
 0x1db   :  { %8155 = vmatpush3.bf16.msra.mxu0 %v8154_v30  ;;  %v8204_v30 = vpack.c.bf16 %v943_v15, %v942_v21  ;;  %v966_v21 = vld [vmem:[#allocation5 + $0x1b40] sm:$0xff] }
 0x1dc   :  { %8157 = vmatprep.subr.bf16.mxu0 %v8156_v17  ;;  %v927_v17 = vld [vmem:[#allocation5 + $0x1a08] sm:$0xff] }
 0x1dd   :  { %8187 = vmatpush3.bf16.msra.mxu1 %v8186_v32  ;;  %v926_v32 = vld [vmem:[#allocation5 + $0x1a00] sm:$0xff] }
 0x1de   :  { %8189 = vmatprep.subr.bf16.mxu1 %v8188_v31  ;;  %v945_v31 = vld [vmem:[#allocation5 + $0x1a98] sm:$0xff]  ;;  %v8206_v43 = vpack.c.bf16 %v927_v17, %v926_v32 }
 0x1df   :  { %8159 = vmatpush3.bf16.msra.mxu0 %v8158_v52  ;;  %v8238_v52 = vpack.c.bf16 %v959_v36, %v958_v34  ;;  %v936_v34 = vld [vmem:[#allocation5 + $0x1a50] sm:$0xff] }
 0x1e0   :  { %8161 = vmatprep.subr.bf16.mxu0 %v8160_v27  ;;  %v928_v27 = vld [vmem:[#allocation5 + $0x1a10] sm:$0xff] }
 0x1e1   :  { %8191 = vmatpush3.bf16.msra.mxu1 %v8190_v44  ;;  %v6022_v63 = vpop.f32.mrb[10].mxu0  ;;  %v8208_v44 = vpack.c.bf16 %v945_v31, %v944_v37  ;;  %v968_v36 = vld [vmem:[#allocation5 + $0x1b50] sm:$0xff]  ;;  %v969_v31 = vld [vmem:[#allocation5 + $0x1b58] sm:$0xff] }
 0x1e2   :  { %8193 = vmatprep.subr.bf16.mxu1 %v8192_v48  ;;  %v6023_v4 = vpop.f32.mrb[11].mxu0  ;;  %v961_v48 = vld [vmem:[#allocation5 + $0x1b18] sm:$0xff] }
 0x1e3   :  { %v6057_v56 = vpop.f32.mrb[10].mxu1  ;;  %v6024_v6 = vadd.f32 %v6023_v4, %v6022_v63  ;;  %8163 = vmatpush3.bf16.msra.mxu0 %v8162_v55  ;;  %v1898_v55 = vcombine.high %v9341_v41, %v9341_v41  ;;  %v962_v63 = vld [vmem:[#allocation5 + $0x1b20] sm:$0xff]  ;;  %v981_v4 = vld [vmem:[#allocation5 + $0x1bb8] sm:$0xff] }
 0x1e4   :  { %v6058_v7 = vpop.f32.mrb[11].mxu1  ;;  %8165 = vmatprep.subr.bf16.mxu0 %v8164_v60  ;;  %v8242_v60 = vpack.c.bf16 %v961_v48, %v960_v42  ;;  %v938_v42 = vld [vmem:[#allocation5 + $0x1a60] sm:$0xff] }
 0x1e5   :  { %v6059_v16 = vadd.f32 %v6058_v7, %v6057_v56  ;;  %8195 = vmatpush3.bf16.msra.mxu1 %v8194_v35  ;;  %v2932_v1 = vadd.f32 %v6024_v6, %v9320_v23  ;;  %v8236_v23 = vpack.c.bf16 %v975_v24, %v974_v22  ;;  %v8210_v35 = vpack.c.bf16 %v929_v46, %v928_v27  ;;  %v933_v6 = vld [vmem:[#allocation5 + $0x1a38] sm:$0xff]  ;;  %v964_v7 = vld [vmem:[#allocation5 + $0x1b30] sm:$0xff]  ;;  %v967_v22 = vld [vmem:[#allocation5 + $0x1b48] sm:$0xff] }
 0x1e6   :  { %8197 = vmatprep.subr.bf16.mxu1 %v8196_v0  ;;  %v8244_v0 = vpack.c.bf16 %v979_v59, %v978_v33  ;;  %v8214_v56 = vpack.c.bf16 %v931_v62, %v930_v61  ;;  %v8218_v19 = vpack.c.bf16 %v933_v6, %v932_v8  ;;  %v8250_v12 = vpack.c.bf16 %v965_v14, %v964_v7  ;;  %v952_v24 = vld [vmem:[#allocation5 + $0x1ad0] sm:$0xff]  ;;  %v970_v48 = vld [vmem:[#allocation5 + $0x1b60] sm:$0xff]  ;;  %v957_v59 = vld [vmem:[#allocation5 + $0x1af8] sm:$0xff] }
 0x1e7   :  { %v9335_v10 = vadd.f32 %v6059_v16, %v2932_v1  ;;  %8167 = vmatpush3.bf16.msra.mxu0 %v8166_v9  ;;  %v8248_v9 = vpack.c.bf16 %v981_v4, %v980_v3  ;;  %v950_v16 = vld [vmem:[#allocation5 + $0x1ac0] sm:$0xff]  ;;  %v8254_v32 = vpack.c.bf16 %v967_v22, %v966_v21  ;;  %v8224_v17 = vpack.c.bf16 %v953_v25, %v952_v24  ;;  %v956_v33 = vld [vmem:[#allocation5 + $0x1af0] sm:$0xff]  ;;  %v941_v4 = vld [vmem:[#allocation5 + $0x1a78] sm:$0xff] }
 0x1e8   :  { %8169 = vmatprep.subr.bf16.mxu0 %v8168_v11  ;;  %v982_v11 = vld [vmem:[#allocation5 + $0x1bc0] sm:$0xff]  ;;  %v8258_v27 = vpack.c.bf16 %v969_v31, %v968_v36  ;;  %v8228_v46 = vpack.c.bf16 %v955_v40, %v954_v39  ;;  %v940_v3 = vld [vmem:[#allocation5 + $0x1a70] sm:$0xff]  ;;  %v973_v8 = vld [vmem:[#allocation5 + $0x1b78] sm:$0xff] }
 0x1e9   :  { %8199 = vmatpush3.bf16.msra.mxu1 %v8198_v58  ;;  %v951_v58 = vld [vmem:[#allocation5 + $0x1ac8] sm:$0xff]  ;;  %v8252_v15 = vpack.c.bf16 %v983_v18, %v982_v11  ;;  %v1006_v6 = vld [vmem:[#allocation5 + $0x1c80] sm:$0xff]  ;;  %v8234_v11 = vpack.c.bf16 %v941_v4, %v940_v3  ;;  %v1008_v21 = vld [vmem:[#allocation5 + $0x1c90] sm:$0xff] }
 0x1ea   :  { %8201 = vmatprep.subr.bf16.mxu1 %v8200_v20  ;;  %v8220_v1 = vpack.c.bf16 %v951_v58, %v950_v16  ;;  %v934_v20 = vld [vmem:[#allocation5 + $0x1a40] sm:$0xff]  ;;  %v1007_v7 = vld [vmem:[#allocation5 + $0x1c88] sm:$0xff]  ;;  %v1040_v24 = vld [vmem:[#allocation5 + $0x1d90] sm:$0xff] }
 0x1eb   :  { %8171 = vmatpush3.bf16.msra.mxu0 %v8170_v28  ;;  %v984_v28 = vld [vmem:[#allocation5 + $0x1bd0] sm:$0xff]  ;;  %v1039_v14 = vld [vmem:[#allocation5 + $0x1d88] sm:$0xff]  ;;  %v1041_v25 = vld [vmem:[#allocation5 + $0x1d98] sm:$0xff] }
 0x1ec   :  { %8205 = vmatprep.subr.bf16.mxu0 %v8204_v30  ;;  %v8222_v30 = vpack.c.bf16 %v935_v26, %v934_v20  ;;  %v1022_v20 = vld [vmem:[#allocation5 + $0x1d00] sm:$0xff]  ;;  %v1023_v26 = vld [vmem:[#allocation5 + $0x1d08] sm:$0xff]  ;;  %v8304_v36 = vpack.c.bf16 %v1041_v25, %v1040_v24 }
 0x1ed   :  { %8203 = vmatpush3.bf16.msra.mxu1 %v8202_v29  ;;  %v985_v29 = vld [vmem:[#allocation5 + $0x1bd8] sm:$0xff]  ;;  %v1010_v31 = vld [vmem:[#allocation5 + $0x1ca0] sm:$0xff]  ;;  %v1011_v39 = vld [vmem:[#allocation5 + $0x1ca8] sm:$0xff] }
 0x1ee   :  { %8237 = vmatprep.subr.bf16.mxu1 %v8236_v23  ;;  %3910 = vmatmul.mubr.f32.vlgmr.msra.gmra.mrb[24].mxu0 %v9323_v50  ;;  %v948_v50 = vld [vmem:[#allocation5 + $0x1ab0] sm:$0xff]  ;;  %v937_v23 = vld [vmem:[#allocation5 + $0x1a58] sm:$0xff]  ;;  %v8256_v37 = vpack.c.bf16 %v985_v29, %v984_v28  ;;  %v1047_v3 = vld [vmem:[#allocation5 + $0x1dc8] sm:$0xff] }
 0x1ef   :  { %8207 = vmatpush3.bf16.msra.mxu0 %v8206_v43  ;;  %4049 = vmatprep.mubr.f32.mxu0 %v1897_v54  ;;  %v8216_v5 = vpack.c.bf16 %v949_v2, %v948_v50  ;;  %v986_v43 = vld [vmem:[#allocation5 + $0x1be0] sm:$0xff]  ;;  %v971_v54 = vld [vmem:[#allocation5 + $0x1b68] sm:$0xff]  ;;  %v8232_v2 = vpack.c.bf16 %v957_v59, %v956_v33  ;;  %v1013_v33 = vld [vmem:[#allocation5 + $0x1cb8] sm:$0xff] }
 0x1f0   :  { %3980 = vmatmul.mubr.f32.vlgmr.msra.gmra.mrb[24].mxu1 %v9326_v57  ;;  %8209 = vmatprep.subr.bf16.mxu0 %v8208_v44  ;;  %v8246_v57 = vpack.c.bf16 %v963_v45, %v962_v63  ;;  %v8226_v44 = vpack.c.bf16 %v937_v23, %v936_v34  ;;  %v8262_v50 = vpack.c.bf16 %v971_v54, %v970_v48  ;;  %v993_v34 = vld [vmem:[#allocation5 + $0x1c18] sm:$0xff]  ;;  %v1024_v23 = vld [vmem:[#allocation5 + $0x1d10] sm:$0xff]  ;;  %v995_v48 = vld [vmem:[#allocation5 + $0x1c28] sm:$0xff] }
 0x1f1   :  { %8239 = vmatpush3.bf16.msra.mxu1 %v8238_v52  ;;  %4119 = vmatprep.mubr.f32.mxu1 %v1898_v55  ;;  %v987_v52 = vld [vmem:[#allocation5 + $0x1be8] sm:$0xff]  ;;  %v1044_v59 = vld [vmem:[#allocation5 + $0x1db0] sm:$0xff]  ;;  %v1018_v24 = vld [vmem:[#allocation5 + $0x1ce0] sm:$0xff] }
 0x1f2   :  { %8241 = vmatprep.subr.bf16.mxu1 %v8240_v47  ;;  %v939_v47 = vld [vmem:[#allocation5 + $0x1a68] sm:$0xff]  ;;  %v8260_v53 = vpack.c.bf16 %v987_v52, %v986_v43  ;;  %v1042_v43 = vld [vmem:[#allocation5 + $0x1da0] sm:$0xff] }
 0x1f3   :  { %8211 = vmatpush3.bf16.msra.mxu0 %v8210_v35  ;;  %v8230_v63 = vpack.c.bf16 %v939_v47, %v938_v42  ;;  %v1043_v52 = vld [vmem:[#allocation5 + $0x1da8] sm:$0xff]  ;;  %v8276_v42 = vpack.c.bf16 %v1011_v39, %v1010_v31  ;;  %v994_v47 = vld [vmem:[#allocation5 + $0x1c20] sm:$0xff] }
 0x1f4   :  { %8213 = vmatprep.subr.bf16.mxu0 %v8212_v51  ;;  %v989_v51 = vld [vmem:[#allocation5 + $0x1bf8] sm:$0xff]  ;;  %v1027_v54 = vld [vmem:[#allocation5 + $0x1d28] sm:$0xff] }
 0x1f5   :  { %8243 = vmatpush3.bf16.msra.mxu1 %v8242_v60  ;;  %v988_v60 = vld [vmem:[#allocation5 + $0x1bf0] sm:$0xff]  ;;  %v1019_v25 = vld [vmem:[#allocation5 + $0x1ce8] sm:$0xff] }
 0x1f6   :  { %8245 = vmatprep.subr.bf16.mxu1 %v8244_v0  ;;  %v84_v0 = vld [vmem:[#allocation2 + $0x70] sm:$0xff] }
 0x1f7   :  { %8215 = vmatpush3.bf16.msra.mxu0 %v8214_v56  ;;  %v972_v56 = vld [vmem:[#allocation5 + $0x1b70] sm:$0xff]  ;;  %v1899_v16 = vcombine.high %v84_v0, %v84_v0  ;;  %v9353_v22 = vrot.slane %v84_v0, %v9174_v13  ;;  %v1029_v0 = vld [vmem:[#allocation5 + $0x1d38] sm:$0xff] }
 0x1f8   :  { %8217 = vmatprep.subr.bf16.mxu0 %v8216_v5  ;;  %v8264_v5 = vpack.c.bf16 %v989_v51, %v988_v60  ;;  %v8266_v18 = vpack.c.bf16 %v973_v8, %v972_v56  ;;  %v996_v51 = vld [vmem:[#allocation5 + $0x1c30] sm:$0xff]  ;;  %v999_v8 = vld [vmem:[#allocation5 + $0x1c48] sm:$0xff] }
 0x1f9   :  { %8247 = vmatpush3.bf16.msra.mxu1 %v8246_v57  ;;  %v9356_v28 = vrot.slane %v1899_v16, %v9174_v13  ;;  %v1914_v40 = vcombine.high %v9353_v22, %v9353_v22  ;;  %v1017_v16 = vld [vmem:[#allocation5 + $0x1cd8] sm:$0xff] }
 0x1fa   :  { %8249 = vmatprep.subr.bf16.mxu1 %v8248_v9  ;;  %v1038_v9 = vld [vmem:[#allocation5 + $0x1d80] sm:$0xff] }
 0x1fb   :  { %8219 = vmatpush3.bf16.msra.mxu0 %v8218_v19  ;;  %v8268_v19 = vpack.c.bf16 %v1007_v7, %v1006_v6  ;;  %v1030_v6 = vld [vmem:[#allocation5 + $0x1d40] sm:$0xff] }
 0x1fc   :  { %8221 = vmatprep.subr.bf16.mxu0 %v8220_v1  ;;  %v991_v1 = vld [vmem:[#allocation5 + $0x1c08] sm:$0xff] }
 0x1fd   :  { %8251 = vmatpush3.bf16.msra.mxu1 %v8250_v12  ;;  %v990_v12 = vld [vmem:[#allocation5 + $0x1c00] sm:$0xff] }
 0x1fe   :  { %8253 = vmatprep.subr.bf16.mxu1 %v8252_v15  ;;  %v1009_v15 = vld [vmem:[#allocation5 + $0x1c98] sm:$0xff]  ;;  %v8270_v29 = vpack.c.bf16 %v991_v1, %v990_v12 }
 0x1ff   :  { %8223 = vmatpush3.bf16.msra.mxu0 %v8222_v30  ;;  %v8302_v30 = vpack.c.bf16 %v1023_v26, %v1022_v20  ;;  %v1000_v20 = vld [vmem:[#allocation5 + $0x1c50] sm:$0xff] }
 0x200   :  { %8225 = vmatprep.subr.bf16.mxu0 %v8224_v17  ;;  %v992_v17 = vld [vmem:[#allocation5 + $0x1c10] sm:$0xff] }
 0x201   :  { %8255 = vmatpush3.bf16.msra.mxu1 %v8254_v32  ;;  %v6092_v49 = vpop.f32.mrb[12].mxu0  ;;  %v8272_v32 = vpack.c.bf16 %v1009_v15, %v1008_v21  ;;  %v1032_v26 = vld [vmem:[#allocation5 + $0x1d50] sm:$0xff]  ;;  %v1033_v15 = vld [vmem:[#allocation5 + $0x1d58] sm:$0xff] }
 0x202   :  { %8257 = vmatprep.subr.bf16.mxu1 %v8256_v37  ;;  %v6093_v55 = vpop.f32.mrb[13].mxu0  ;;  %v1025_v37 = vld [vmem:[#allocation5 + $0x1d18] sm:$0xff] }
 0x203   :  { %v6127_v35 = vpop.f32.mrb[12].mxu1  ;;  %v6094_v61 = vadd.f32 %v6093_v55, %v6092_v49  ;;  %8227 = vmatpush3.bf16.msra.mxu0 %v8226_v44  ;;  %v1915_v44 = vcombine.high %v9356_v28, %v9356_v28  ;;  %v1026_v49 = vld [vmem:[#allocation5 + $0x1d20] sm:$0xff]  ;;  %v1045_v55 = vld [vmem:[#allocation5 + $0x1db8] sm:$0xff] }
 0x204   :  { %v6128_v62 = vpop.f32.mrb[13].mxu1  ;;  %8229 = vmatprep.subr.bf16.mxu0 %v8228_v46  ;;  %v8306_v46 = vpack.c.bf16 %v1025_v37, %v1024_v23  ;;  %v1002_v23 = vld [vmem:[#allocation5 + $0x1c60] sm:$0xff] }
 0x205   :  { %v6129_v45 = vadd.f32 %v6128_v62, %v6127_v35  ;;  %8259 = vmatpush3.bf16.msra.mxu1 %v8258_v27  ;;  %v3072_v57 = vadd.f32 %v6094_v61, %v9335_v10  ;;  %v8300_v10 = vpack.c.bf16 %v1039_v14, %v1038_v9  ;;  %v8274_v27 = vpack.c.bf16 %v993_v34, %v992_v17  ;;  %v997_v61 = vld [vmem:[#allocation5 + $0x1c38] sm:$0xff]  ;;  %v1028_v62 = vld [vmem:[#allocation5 + $0x1d30] sm:$0xff]  ;;  %v1031_v9 = vld [vmem:[#allocation5 + $0x1d48] sm:$0xff] }
 0x206   :  { %8261 = vmatprep.subr.bf16.mxu1 %v8260_v53  ;;  %v8308_v53 = vpack.c.bf16 %v1043_v52, %v1042_v43  ;;  %v8278_v35 = vpack.c.bf16 %v995_v48, %v994_v47  ;;  %v8282_v4 = vpack.c.bf16 %v997_v61, %v996_v51  ;;  %v8314_v56 = vpack.c.bf16 %v1029_v0, %v1028_v62  ;;  %v1016_v14 = vld [vmem:[#allocation5 + $0x1cd0] sm:$0xff]  ;;  %v1034_v37 = vld [vmem:[#allocation5 + $0x1d60] sm:$0xff]  ;;  %v1021_v52 = vld [vmem:[#allocation5 + $0x1cf8] sm:$0xff] }
 0x207   :  { %v9350_v58 = vadd.f32 %v6129_v45, %v3072_v57  ;;  %8231 = vmatpush3.bf16.msra.mxu0 %v8230_v63  ;;  %v8312_v63 = vpack.c.bf16 %v1045_v55, %v1044_v59  ;;  %v1014_v45 = vld [vmem:[#allocation5 + $0x1cc0] sm:$0xff]  ;;  %v8318_v12 = vpack.c.bf16 %v1031_v9, %v1030_v6  ;;  %v8288_v1 = vpack.c.bf16 %v1017_v16, %v1016_v14  ;;  %v1020_v43 = vld [vmem:[#allocation5 + $0x1cf0] sm:$0xff]  ;;  %v1005_v55 = vld [vmem:[#allocation5 + $0x1c78] sm:$0xff] }
 0x208   :  { %8233 = vmatprep.subr.bf16.mxu0 %v8232_v2  ;;  %v1046_v2 = vld [vmem:[#allocation5 + $0x1dc0] sm:$0xff]  ;;  %v8322_v17 = vpack.c.bf16 %v1033_v15, %v1032_v26  ;;  %v8292_v34 = vpack.c.bf16 %v1019_v25, %v1018_v24  ;;  %v1004_v59 = vld [vmem:[#allocation5 + $0x1c70] sm:$0xff]  ;;  %v1037_v51 = vld [vmem:[#allocation5 + $0x1d78] sm:$0xff] }
 0x209   :  { %8263 = vmatpush3.bf16.msra.mxu1 %v8262_v50  ;;  %v1015_v50 = vld [vmem:[#allocation5 + $0x1cc8] sm:$0xff]  ;;  %v8316_v7 = vpack.c.bf16 %v1047_v3, %v1046_v2  ;;  %v1070_v61 = vld [vmem:[#allocation5 + $0x1e80] sm:$0xff]  ;;  %v8298_v2 = vpack.c.bf16 %v1005_v55, %v1004_v59  ;;  %v1072_v6 = vld [vmem:[#allocation5 + $0x1e90] sm:$0xff] }
 0x20a   :  { %8265 = vmatprep.subr.bf16.mxu1 %v8264_v5  ;;  %v8284_v57 = vpack.c.bf16 %v1015_v50, %v1014_v45  ;;  %v998_v5 = vld [vmem:[#allocation5 + $0x1c40] sm:$0xff]  ;;  %v1071_v62 = vld [vmem:[#allocation5 + $0x1e88] sm:$0xff]  ;;  %v1104_v14 = vld [vmem:[#allocation5 + $0x1f90] sm:$0xff] }
 0x20b   :  { %8235 = vmatpush3.bf16.msra.mxu0 %v8234_v11  ;;  %v1048_v11 = vld [vmem:[#allocation5 + $0x1dd0] sm:$0xff]  ;;  %v1103_v0 = vld [vmem:[#allocation5 + $0x1f88] sm:$0xff]  ;;  %v1105_v16 = vld [vmem:[#allocation5 + $0x1f98] sm:$0xff] }
 0x20c   :  { %8269 = vmatprep.subr.bf16.mxu0 %v8268_v19  ;;  %v8286_v19 = vpack.c.bf16 %v999_v8, %v998_v5  ;;  %v1086_v5 = vld [vmem:[#allocation5 + $0x1f00] sm:$0xff]  ;;  %v1087_v8 = vld [vmem:[#allocation5 + $0x1f08] sm:$0xff]  ;;  %v8368_v26 = vpack.c.bf16 %v1105_v16, %v1104_v14 }
 0x20d   :  { %8267 = vmatpush3.bf16.msra.mxu1 %v8266_v18  ;;  %v1049_v18 = vld [vmem:[#allocation5 + $0x1dd8] sm:$0xff]  ;;  %v1074_v15 = vld [vmem:[#allocation5 + $0x1ea0] sm:$0xff]  ;;  %v1075_v24 = vld [vmem:[#allocation5 + $0x1ea8] sm:$0xff] }
 0x20e   :  { %8301 = vmatprep.subr.bf16.mxu1 %v8300_v10  ;;  %4050 = vmatmul.mubr.f32.vlgmr.msra.gmra.mrb[26].mxu0 %v9338_v38  ;;  %v1012_v38 = vld [vmem:[#allocation5 + $0x1cb0] sm:$0xff]  ;;  %v1001_v10 = vld [vmem:[#allocation5 + $0x1c58] sm:$0xff]  ;;  %v8320_v21 = vpack.c.bf16 %v1049_v18, %v1048_v11  ;;  %v1111_v59 = vld [vmem:[#allocation5 + $0x1fc8] sm:$0xff] }
 0x20f   :  { %8271 = vmatpush3.bf16.msra.mxu0 %v8270_v29  ;;  %4189 = vmatprep.mubr.f32.mxu0 %v1914_v40  ;;  %v8280_v60 = vpack.c.bf16 %v1013_v33, %v1012_v38  ;;  %v1050_v29 = vld [vmem:[#allocation5 + $0x1de0] sm:$0xff]  ;;  %v1035_v40 = vld [vmem:[#allocation5 + $0x1d68] sm:$0xff]  ;;  %v8296_v33 = vpack.c.bf16 %v1021_v52, %v1020_v43  ;;  %v1077_v43 = vld [vmem:[#allocation5 + $0x1eb8] sm:$0xff] }
 0x210   :  { %4120 = vmatmul.mubr.f32.vlgmr.msra.gmra.mrb[26].mxu1 %v9341_v41  ;;  %8273 = vmatprep.subr.bf16.mxu0 %v8272_v32  ;;  %v8310_v41 = vpack.c.bf16 %v1027_v54, %v1026_v49  ;;  %v8290_v32 = vpack.c.bf16 %v1001_v10, %v1000_v20  ;;  %v8326_v38 = vpack.c.bf16 %v1035_v40, %v1034_v37  ;;  %v1057_v20 = vld [vmem:[#allocation5 + $0x1e18] sm:$0xff]  ;;  %v1088_v10 = vld [vmem:[#allocation5 + $0x1f10] sm:$0xff]  ;;  %v1059_v37 = vld [vmem:[#allocation5 + $0x1e28] sm:$0xff] }
 0x211   :  { %8303 = vmatpush3.bf16.msra.mxu1 %v8302_v30  ;;  %4259 = vmatprep.mubr.f32.mxu1 %v1915_v44  ;;  %v1051_v30 = vld [vmem:[#allocation5 + $0x1de8] sm:$0xff]  ;;  %v1108_v52 = vld [vmem:[#allocation5 + $0x1fb0] sm:$0xff]  ;;  %v1082_v14 = vld [vmem:[#allocation5 + $0x1ee0] sm:$0xff] }
 0x212   :  { %8305 = vmatprep.subr.bf16.mxu1 %v8304_v36  ;;  %v1003_v36 = vld [vmem:[#allocation5 + $0x1c68] sm:$0xff]  ;;  %v8324_v39 = vpack.c.bf16 %v1051_v30, %v1050_v29  ;;  %v1106_v29 = vld [vmem:[#allocation5 + $0x1fa0] sm:$0xff] }
 0x213   :  { %8275 = vmatpush3.bf16.msra.mxu0 %v8274_v27  ;;  %v8294_v49 = vpack.c.bf16 %v1003_v36, %v1002_v23  ;;  %v1107_v30 = vld [vmem:[#allocation5 + $0x1fa8] sm:$0xff]  ;;  %v8340_v23 = vpack.c.bf16 %v1075_v24, %v1074_v15  ;;  %v1058_v36 = vld [vmem:[#allocation5 + $0x1e20] sm:$0xff] }
 0x214   :  { %8277 = vmatprep.subr.bf16.mxu0 %v8276_v42  ;;  %v1053_v42 = vld [vmem:[#allocation5 + $0x1df8] sm:$0xff]  ;;  %v1091_v40 = vld [vmem:[#allocation5 + $0x1f28] sm:$0xff] }
 0x215   :  { %8307 = vmatpush3.bf16.msra.mxu1 %v8306_v46  ;;  %v1052_v46 = vld [vmem:[#allocation5 + $0x1df0] sm:$0xff]  ;;  %v1083_v16 = vld [vmem:[#allocation5 + $0x1ee8] sm:$0xff] }
 0x216   :  { %8309 = vmatprep.subr.bf16.mxu1 %v8308_v53  ;;  %v85_v53 = vld [vmem:[#allocation2 + $0x78] sm:$0xff] }
 0x217   :  { %8279 = vmatpush3.bf16.msra.mxu0 %v8278_v35  ;;  %v1036_v35 = vld [vmem:[#allocation5 + $0x1d70] sm:$0xff]  ;;  %v1916_v45 = vcombine.high %v85_v53, %v85_v53  ;;  %v9368_v9 = vrot.slane %v85_v53, %v9174_v13  ;;  %v1093_v53 = vld [vmem:[#allocation5 + $0x1f38] sm:$0xff] }
 0x218   :  { %8281 = vmatprep.subr.bf16.mxu0 %v8280_v60  ;;  %v8328_v60 = vpack.c.bf16 %v1053_v42, %v1052_v46  ;;  %v8330_v3 = vpack.c.bf16 %v1037_v51, %v1036_v35  ;;  %v1060_v42 = vld [vmem:[#allocation5 + $0x1e30] sm:$0xff]  ;;  %v1063_v51 = vld [vmem:[#allocation5 + $0x1e48] sm:$0xff] }
 0x219   :  { %8311 = vmatpush3.bf16.msra.mxu1 %v8310_v41  ;;  %v9371_v11 = vrot.slane %v1916_v45, %v9174_v13  ;;  %v1931_v25 = vcombine.high %v9368_v9, %v9368_v9  ;;  %v1081_v45 = vld [vmem:[#allocation5 + $0x1ed8] sm:$0xff] }
 0x21a   :  { %8313 = vmatprep.subr.bf16.mxu1 %v8312_v63  ;;  %v1102_v63 = vld [vmem:[#allocation5 + $0x1f80] sm:$0xff] }
 0x21b   :  { %8283 = vmatpush3.bf16.msra.mxu0 %v8282_v4  ;;  %v8332_v4 = vpack.c.bf16 %v1071_v62, %v1070_v61  ;;  %v1094_v61 = vld [vmem:[#allocation5 + $0x1f40] sm:$0xff] }
 0x21c   :  { %8285 = vmatprep.subr.bf16.mxu0 %v8284_v57  ;;  %v1055_v57 = vld [vmem:[#allocation5 + $0x1e08] sm:$0xff] }
 0x21d   :  { %8315 = vmatpush3.bf16.msra.mxu1 %v8314_v56  ;;  %v1054_v56 = vld [vmem:[#allocation5 + $0x1e00] sm:$0xff] }
 0x21e   :  { %8317 = vmatprep.subr.bf16.mxu1 %v8316_v7  ;;  %v1073_v7 = vld [vmem:[#allocation5 + $0x1e98] sm:$0xff]  ;;  %v8334_v18 = vpack.c.bf16 %v1055_v57, %v1054_v56 }
 0x21f   :  { %8287 = vmatpush3.bf16.msra.mxu0 %v8286_v19  ;;  %v8366_v19 = vpack.c.bf16 %v1087_v8, %v1086_v5  ;;  %v1064_v5 = vld [vmem:[#allocation5 + $0x1e50] sm:$0xff] }
 0x220   :  { %8289 = vmatprep.subr.bf16.mxu0 %v8288_v1  ;;  %v1056_v1 = vld [vmem:[#allocation5 + $0x1e10] sm:$0xff] }
 0x221   :  { %8319 = vmatpush3.bf16.msra.mxu1 %v8318_v12  ;;  %v6162_v31 = vpop.f32.mrb[14].mxu0  ;;  %v8336_v12 = vpack.c.bf16 %v1073_v7, %v1072_v6  ;;  %v1096_v8 = vld [vmem:[#allocation5 + $0x1f50] sm:$0xff]  ;;  %v1097_v7 = vld [vmem:[#allocation5 + $0x1f58] sm:$0xff] }
 0x222   :  { %8321 = vmatprep.subr.bf16.mxu1 %v8320_v21  ;;  %v6163_v44 = vpop.f32.mrb[15].mxu0  ;;  %v1089_v21 = vld [vmem:[#allocation5 + $0x1f18] sm:$0xff] }
 0x223   :  { %v6197_v27 = vpop.f32.mrb[14].mxu1  ;;  %v6164_v47 = vadd.f32 %v6163_v44, %v6162_v31  ;;  %8291 = vmatpush3.bf16.msra.mxu0 %v8290_v32  ;;  %v1932_v32 = vcombine.high %v9371_v11, %v9371_v11  ;;  %v1090_v31 = vld [vmem:[#allocation5 + $0x1f20] sm:$0xff]  ;;  %v1109_v44 = vld [vmem:[#allocation5 + $0x1fb8] sm:$0xff] }
 0x224   :  { %v6198_v48 = vpop.f32.mrb[15].mxu1  ;;  %8293 = vmatprep.subr.bf16.mxu0 %v8292_v34  ;;  %v8370_v34 = vpack.c.bf16 %v1089_v21, %v1088_v10  ;;  %v1066_v10 = vld [vmem:[#allocation5 + $0x1e60] sm:$0xff] }
 0x225   :  { %v6199_v54 = vadd.f32 %v6198_v48, %v6197_v27  ;;  %8323 = vmatpush3.bf16.msra.mxu1 %v8322_v17  ;;  %v3212_v41 = vadd.f32 %v6164_v47, %v9350_v58  ;;  %v8364_v58 = vpack.c.bf16 %v1103_v0, %v1102_v63  ;;  %v8338_v17 = vpack.c.bf16 %v1057_v20, %v1056_v1  ;;  %v1061_v47 = vld [vmem:[#allocation5 + $0x1e38] sm:$0xff]  ;;  %v1092_v48 = vld [vmem:[#allocation5 + $0x1f30] sm:$0xff]  ;;  %v1095_v63 = vld [vmem:[#allocation5 + $0x1f48] sm:$0xff] }
 0x226   :  { %8325 = vmatprep.subr.bf16.mxu1 %v8324_v39  ;;  %v8372_v39 = vpack.c.bf16 %v1107_v30, %v1106_v29  ;;  %v8342_v27 = vpack.c.bf16 %v1059_v37, %v1058_v36  ;;  %v8346_v55 = vpack.c.bf16 %v1061_v47, %v1060_v42  ;;  %v8378_v35 = vpack.c.bf16 %v1093_v53, %v1092_v48  ;;  %v1080_v0 = vld [vmem:[#allocation5 + $0x1ed0] sm:$0xff]  ;;  %v1098_v21 = vld [vmem:[#allocation5 + $0x1f60] sm:$0xff]  ;;  %v1085_v30 = vld [vmem:[#allocation5 + $0x1ef8] sm:$0xff] }
 0x227   :  { %v9365_v50 = vadd.f32 %v6199_v54, %v3212_v41  ;;  %8295 = vmatpush3.bf16.msra.mxu0 %v8294_v49  ;;  %v8376_v49 = vpack.c.bf16 %v1109_v44, %v1108_v52  ;;  %v1078_v54 = vld [vmem:[#allocation5 + $0x1ec0] sm:$0xff]  ;;  %v8382_v56 = vpack.c.bf16 %v1095_v63, %v1094_v61  ;;  %v8352_v57 = vpack.c.bf16 %v1081_v45, %v1080_v0  ;;  %v1084_v29 = vld [vmem:[#allocation5 + $0x1ef0] sm:$0xff]  ;;  %v1069_v44 = vld [vmem:[#allocation5 + $0x1e78] sm:$0xff] }
 0x228   :  { %8297 = vmatprep.subr.bf16.mxu0 %v8296_v33  ;;  %v1110_v33 = vld [vmem:[#allocation5 + $0x1fc0] sm:$0xff]  ;;  %v8386_v1 = vpack.c.bf16 %v1097_v7, %v1096_v8  ;;  %v8356_v20 = vpack.c.bf16 %v1083_v16, %v1082_v14  ;;  %v1068_v52 = vld [vmem:[#allocation5 + $0x1e70] sm:$0xff]  ;;  %v1101_v42 = vld [vmem:[#allocation5 + $0x1f78] sm:$0xff] }
 0x229   :  { %8327 = vmatpush3.bf16.msra.mxu1 %v8326_v38  ;;  %v1079_v38 = vld [vmem:[#allocation5 + $0x1ec8] sm:$0xff]  ;;  %v8380_v62 = vpack.c.bf16 %v1111_v59, %v1110_v33  ;;  %v1134_v47 = vld [vmem:[#allocation5 + $0x2080] sm:$0xff]  ;;  %v8362_v33 = vpack.c.bf16 %v1069_v44, %v1068_v52  ;;  %v1136_v61 = vld [vmem:[#allocation5 + $0x2090] sm:$0xff] }
 0x22a   :  { %8329 = vmatprep.subr.bf16.mxu1 %v8328_v60  ;;  %v8348_v41 = vpack.c.bf16 %v1079_v38, %v1078_v54  ;;  %v1062_v60 = vld [vmem:[#allocation5 + $0x1e40] sm:$0xff]  ;;  %v1135_v48 = vld [vmem:[#allocation5 + $0x2088] sm:$0xff]  ;;  %v1168_v0 = vld [vmem:[#allocation5 + $0x2190] sm:$0xff] }
 0x22b   :  { %8299 = vmatpush3.bf16.msra.mxu0 %v8298_v2  ;;  %v1112_v2 = vld [vmem:[#allocation5 + $0x1fd0] sm:$0xff]  ;;  %v1167_v53 = vld [vmem:[#allocation5 + $0x2188] sm:$0xff]  ;;  %v1169_v45 = vld [vmem:[#allocation5 + $0x2198] sm:$0xff] }
 0x22c   :  { %8333 = vmatprep.subr.bf16.mxu0 %v8332_v4  ;;  %v8350_v4 = vpack.c.bf16 %v1063_v51, %v1062_v60  ;;  %v1150_v60 = vld [vmem:[#allocation5 + $0x2100] sm:$0xff]  ;;  %v1151_v51 = vld [vmem:[#allocation5 + $0x2108] sm:$0xff]  ;;  %v8432_v8 = vpack.c.bf16 %v1169_v45, %v1168_v0 }
 0x22d   :  { %8331 = vmatpush3.bf16.msra.mxu1 %v8330_v3  ;;  %v1113_v3 = vld [vmem:[#allocation5 + $0x1fd8] sm:$0xff]  ;;  %v1138_v7 = vld [vmem:[#allocation5 + $0x20a0] sm:$0xff]  ;;  %v1139_v14 = vld [vmem:[#allocation5 + $0x20a8] sm:$0xff] }
 0x22e   :  { %8365 = vmatprep.subr.bf16.mxu1 %v8364_v58  ;;  %4190 = vmatmul.mubr.f32.vlgmr.msra.gmra.mrb[28].mxu0 %v9353_v22  ;;  %v1076_v22 = vld [vmem:[#allocation5 + $0x1eb0] sm:$0xff]  ;;  %v1065_v58 = vld [vmem:[#allocation5 + $0x1e58] sm:$0xff]  ;;  %v8384_v6 = vpack.c.bf16 %v1113_v3, %v1112_v2  ;;  %v1175_v52 = vld [vmem:[#allocation5 + $0x21c8] sm:$0xff] }
 0x22f   :  { %8335 = vmatpush3.bf16.msra.mxu0 %v8334_v18  ;;  %4329 = vmatprep.mubr.f32.mxu0 %v1931_v25  ;;  %v8344_v46 = vpack.c.bf16 %v1077_v43, %v1076_v22  ;;  %v1114_v18 = vld [vmem:[#allocation5 + $0x1fe0] sm:$0xff]  ;;  %v1099_v25 = vld [vmem:[#allocation5 + $0x1f68] sm:$0xff]  ;;  %v8360_v43 = vpack.c.bf16 %v1085_v30, %v1084_v29  ;;  %v1141_v29 = vld [vmem:[#allocation5 + $0x20b8] sm:$0xff] }
 0x230   :  { %4260 = vmatmul.mubr.f32.vlgmr.msra.gmra.mrb[28].mxu1 %v9356_v28  ;;  %8337 = vmatprep.subr.bf16.mxu0 %v8336_v12  ;;  %v8374_v28 = vpack.c.bf16 %v1091_v40, %v1090_v31  ;;  %v8354_v12 = vpack.c.bf16 %v1065_v58, %v1064_v5  ;;  %v8390_v22 = vpack.c.bf16 %v1099_v25, %v1098_v21  ;;  %v1121_v5 = vld [vmem:[#allocation5 + $0x2018] sm:$0xff]  ;;  %v1152_v58 = vld [vmem:[#allocation5 + $0x2110] sm:$0xff]  ;;  %v1123_v21 = vld [vmem:[#allocation5 + $0x2028] sm:$0xff] }
 0x231   :  { %8367 = vmatpush3.bf16.msra.mxu1 %v8366_v19  ;;  %4399 = vmatprep.mubr.f32.mxu1 %v1932_v32  ;;  %v1115_v19 = vld [vmem:[#allocation5 + $0x1fe8] sm:$0xff]  ;;  %v1172_v30 = vld [vmem:[#allocation5 + $0x21b0] sm:$0xff]  ;;  %v1146_v0 = vld [vmem:[#allocation5 + $0x20e0] sm:$0xff] }
 0x232   :  { %8369 = vmatprep.subr.bf16.mxu1 %v8368_v26  ;;  %v1067_v26 = vld [vmem:[#allocation5 + $0x1e68] sm:$0xff]  ;;  %v8388_v24 = vpack.c.bf16 %v1115_v19, %v1114_v18  ;;  %v1170_v18 = vld [vmem:[#allocation5 + $0x21a0] sm:$0xff] }
 0x233   :  { %8339 = vmatpush3.bf16.msra.mxu0 %v8338_v17  ;;  %v8358_v31 = vpack.c.bf16 %v1067_v26, %v1066_v10  ;;  %v1171_v19 = vld [vmem:[#allocation5 + $0x21a8] sm:$0xff]  ;;  %v8404_v10 = vpack.c.bf16 %v1139_v14, %v1138_v7  ;;  %v1122_v26 = vld [vmem:[#allocation5 + $0x2020] sm:$0xff] }
 0x234   :  { %8341 = vmatprep.subr.bf16.mxu0 %v8340_v23  ;;  %v1117_v23 = vld [vmem:[#allocation5 + $0x1ff8] sm:$0xff]  ;;  %v1155_v25 = vld [vmem:[#allocation5 + $0x2128] sm:$0xff] }
 0x235   :  { %8371 = vmatpush3.bf16.msra.mxu1 %v8370_v34  ;;  %v1116_v34 = vld [vmem:[#allocation5 + $0x1ff0] sm:$0xff]  ;;  %v1147_v45 = vld [vmem:[#allocation5 + $0x20e8] sm:$0xff] }
 0x236   :  { %8373 = vmatprep.subr.bf16.mxu1 %v8372_v39  ;;  %v86_v39 = vld [vmem:[#allocation2 + $0x80] sm:$0xff] }
 0x237   :  { %8343 = vmatpush3.bf16.msra.mxu0 %v8342_v27  ;;  %v1100_v27 = vld [vmem:[#allocation5 + $0x1f70] sm:$0xff]  ;;  %v1933_v54 = vcombine.high %v86_v39, %v86_v39  ;;  %v9383_v63 = vrot.slane %v86_v39, %v9174_v13  ;;  %v1157_v39 = vld [vmem:[#allocation5 + $0x2138] sm:$0xff] }
 0x238   :  { %8345 = vmatprep.subr.bf16.mxu0 %v8344_v46  ;;  %v8392_v46 = vpack.c.bf16 %v1117_v23, %v1116_v34  ;;  %v8394_v59 = vpack.c.bf16 %v1101_v42, %v1100_v27  ;;  %v1124_v23 = vld [vmem:[#allocation5 + $0x2030] sm:$0xff]  ;;  %v1127_v42 = vld [vmem:[#allocation5 + $0x2048] sm:$0xff] }
 0x239   :  { %8375 = vmatpush3.bf16.msra.mxu1 %v8374_v28  ;;  %v9386_v2 = vrot.slane %v1933_v54, %v9174_v13  ;;  %v1948_v16 = vcombine.high %v9383_v63, %v9383_v63  ;;  %v1145_v54 = vld [vmem:[#allocation5 + $0x20d8] sm:$0xff] }
 0x23a   :  { %8377 = vmatprep.subr.bf16.mxu1 %v8376_v49  ;;  %v1166_v49 = vld [vmem:[#allocation5 + $0x2180] sm:$0xff] }
 0x23b   :  { %8347 = vmatpush3.bf16.msra.mxu0 %v8346_v55  ;;  %v8396_v55 = vpack.c.bf16 %v1135_v48, %v1134_v47  ;;  %v1158_v47 = vld [vmem:[#allocation5 + $0x2140] sm:$0xff] }
 0x23c   :  { %8349 = vmatprep.subr.bf16.mxu0 %v8348_v41  ;;  %v1119_v41 = vld [vmem:[#allocation5 + $0x2008] sm:$0xff] }
 0x23d   :  { %8379 = vmatpush3.bf16.msra.mxu1 %v8378_v35  ;;  %v1118_v35 = vld [vmem:[#allocation5 + $0x2000] sm:$0xff] }
 0x23e   :  { %8381 = vmatprep.subr.bf16.mxu1 %v8380_v62  ;;  %v1137_v62 = vld [vmem:[#allocation5 + $0x2098] sm:$0xff]  ;;  %v8398_v3 = vpack.c.bf16 %v1119_v41, %v1118_v35 }
 0x23f   :  { %8351 = vmatpush3.bf16.msra.mxu0 %v8350_v4  ;;  %v8430_v4 = vpack.c.bf16 %v1151_v51, %v1150_v60  ;;  %v1128_v60 = vld [vmem:[#allocation5 + $0x2050] sm:$0xff] }
 0x240   :  { %8353 = vmatprep.subr.bf16.mxu0 %v8352_v57  ;;  %v1120_v57 = vld [vmem:[#allocation5 + $0x2010] sm:$0xff] }
 0x241   :  { %8383 = vmatpush3.bf16.msra.mxu1 %v8382_v56  ;;  %v6232_v15 = vpop.f32.mrb[16].mxu0  ;;  %v8400_v56 = vpack.c.bf16 %v1137_v62, %v1136_v61  ;;  %v1160_v51 = vld [vmem:[#allocation5 + $0x2150] sm:$0xff]  ;;  %v1161_v62 = vld [vmem:[#allocation5 + $0x2158] sm:$0xff] }
 0x242   :  { %8385 = vmatprep.subr.bf16.mxu1 %v8384_v6  ;;  %v6233_v32 = vpop.f32.mrb[17].mxu0  ;;  %v1153_v6 = vld [vmem:[#allocation5 + $0x2118] sm:$0xff] }
 0x243   :  { %v6267_v17 = vpop.f32.mrb[16].mxu1  ;;  %v6234_v36 = vadd.f32 %v6233_v32, %v6232_v15  ;;  %8355 = vmatpush3.bf16.msra.mxu0 %v8354_v12  ;;  %v1949_v12 = vcombine.high %v9386_v2, %v9386_v2  ;;  %v1154_v15 = vld [vmem:[#allocation5 + $0x2120] sm:$0xff]  ;;  %v1173_v32 = vld [vmem:[#allocation5 + $0x21b8] sm:$0xff] }
 0x244   :  { %v6268_v37 = vpop.f32.mrb[17].mxu1  ;;  %8357 = vmatprep.subr.bf16.mxu0 %v8356_v20  ;;  %v8434_v20 = vpack.c.bf16 %v1153_v6, %v1152_v58  ;;  %v1130_v58 = vld [vmem:[#allocation5 + $0x2060] sm:$0xff] }
 0x245   :  { %v6269_v40 = vadd.f32 %v6268_v37, %v6267_v17  ;;  %8387 = vmatpush3.bf16.msra.mxu1 %v8386_v1  ;;  %v3352_v28 = vadd.f32 %v6234_v36, %v9365_v50  ;;  %v8428_v50 = vpack.c.bf16 %v1167_v53, %v1166_v49  ;;  %v8402_v1 = vpack.c.bf16 %v1121_v5, %v1120_v57  ;;  %v1125_v36 = vld [vmem:[#allocation5 + $0x2038] sm:$0xff]  ;;  %v1156_v37 = vld [vmem:[#allocation5 + $0x2130] sm:$0xff]  ;;  %v1159_v49 = vld [vmem:[#allocation5 + $0x2148] sm:$0xff] }
 0x246   :  { %8389 = vmatprep.subr.bf16.mxu1 %v8388_v24  ;;  %v8436_v24 = vpack.c.bf16 %v1171_v19, %v1170_v18  ;;  %v8406_v17 = vpack.c.bf16 %v1123_v21, %v1122_v26  ;;  %v8410_v44 = vpack.c.bf16 %v1125_v36, %v1124_v23  ;;  %v8442_v27 = vpack.c.bf16 %v1157_v39, %v1156_v37  ;;  %v1144_v53 = vld [vmem:[#allocation5 + $0x20d0] sm:$0xff]  ;;  %v1162_v6 = vld [vmem:[#allocation5 + $0x2160] sm:$0xff]  ;;  %v1149_v19 = vld [vmem:[#allocation5 + $0x20f8] sm:$0xff] }
 0x247   :  { %v9380_v38 = vadd.f32 %v6269_v40, %v3352_v28  ;;  %8359 = vmatpush3.bf16.msra.mxu0 %v8358_v31  ;;  %v8440_v31 = vpack.c.bf16 %v1173_v32, %v1172_v30  ;;  %v1142_v40 = vld [vmem:[#allocation5 + $0x20c0] sm:$0xff]  ;;  %v8446_v35 = vpack.c.bf16 %v1159_v49, %v1158_v47  ;;  %v8416_v41 = vpack.c.bf16 %v1145_v54, %v1144_v53  ;;  %v1148_v18 = vld [vmem:[#allocation5 + $0x20f0] sm:$0xff]  ;;  %v1133_v32 = vld [vmem:[#allocation5 + $0x2078] sm:$0xff] }
 0x248   :  { %8361 = vmatprep.subr.bf16.mxu0 %v8360_v43  ;;  %v1174_v43 = vld [vmem:[#allocation5 + $0x21c0] sm:$0xff]  ;;  %v8450_v57 = vpack.c.bf16 %v1161_v62, %v1160_v51  ;;  %v8420_v5 = vpack.c.bf16 %v1147_v45, %v1146_v0  ;;  %v1132_v30 = vld [vmem:[#allocation5 + $0x2070] sm:$0xff]  ;;  %v1165_v23 = vld [vmem:[#allocation5 + $0x2178] sm:$0xff] }
 0x249   :  { %8391 = vmatpush3.bf16.msra.mxu1 %v8390_v22  ;;  %v1143_v22 = vld [vmem:[#allocation5 + $0x20c8] sm:$0xff]  ;;  %v8444_v48 = vpack.c.bf16 %v1175_v52, %v1174_v43  ;;  %v1198_v36 = vld [vmem:[#allocation5 + $0x2280] sm:$0xff]  ;;  %v8426_v43 = vpack.c.bf16 %v1133_v32, %v1132_v30  ;;  %v1200_v47 = vld [vmem:[#allocation5 + $0x2290] sm:$0xff] }
 0x24a   :  { %8393 = vmatprep.subr.bf16.mxu1 %v8392_v46  ;;  %v8412_v28 = vpack.c.bf16 %v1143_v22, %v1142_v40  ;;  %v1126_v46 = vld [vmem:[#allocation5 + $0x2040] sm:$0xff]  ;;  %v1199_v37 = vld [vmem:[#allocation5 + $0x2288] sm:$0xff]  ;;  %v1232_v53 = vld [vmem:[#allocation5 + $0x2390] sm:$0xff] }
 0x24b   :  { %8363 = vmatpush3.bf16.msra.mxu0 %v8362_v33  ;;  %v1176_v33 = vld [vmem:[#allocation5 + $0x21d0] sm:$0xff]  ;;  %v1231_v39 = vld [vmem:[#allocation5 + $0x2388] sm:$0xff]  ;;  %v1233_v54 = vld [vmem:[#allocation5 + $0x2398] sm:$0xff] }
 0x24c   :  { %8397 = vmatprep.subr.bf16.mxu0 %v8396_v55  ;;  %v8414_v55 = vpack.c.bf16 %v1127_v42, %v1126_v46  ;;  %v1214_v46 = vld [vmem:[#allocation5 + $0x2300] sm:$0xff]  ;;  %v1215_v42 = vld [vmem:[#allocation5 + $0x2308] sm:$0xff]  ;;  %v8496_v51 = vpack.c.bf16 %v1233_v54, %v1232_v53 }
 0x24d   :  { %8395 = vmatpush3.bf16.msra.mxu1 %v8394_v59  ;;  %v1177_v59 = vld [vmem:[#allocation5 + $0x21d8] sm:$0xff]  ;;  %v1202_v62 = vld [vmem:[#allocation5 + $0x22a0] sm:$0xff]  ;;  %v1203_v0 = vld [vmem:[#allocation5 + $0x22a8] sm:$0xff] }
 0x24e   :  { %8429 = vmatprep.subr.bf16.mxu1 %v8428_v50  ;;  %4330 = vmatmul.mubr.f32.vlgmr.msra.gmra.mrb[30].mxu0 %v9368_v9  ;;  %v1140_v9 = vld [vmem:[#allocation5 + $0x20b0] sm:$0xff]  ;;  %v1129_v50 = vld [vmem:[#allocation5 + $0x2058] sm:$0xff]  ;;  %v8448_v61 = vpack.c.bf16 %v1177_v59, %v1176_v33  ;;  %v1239_v30 = vld [vmem:[#allocation5 + $0x23c8] sm:$0xff] }
 0x24f   :  { %8399 = vmatpush3.bf16.msra.mxu0 %v8398_v3  ;;  %4469 = vmatprep.mubr.f32.mxu0 %v1948_v16  ;;  %v8408_v34 = vpack.c.bf16 %v1141_v29, %v1140_v9  ;;  %v1178_v3 = vld [vmem:[#allocation5 + $0x21e0] sm:$0xff]  ;;  %v1163_v16 = vld [vmem:[#allocation5 + $0x2168] sm:$0xff]  ;;  %v8424_v29 = vpack.c.bf16 %v1149_v19, %v1148_v18  ;;  %v1205_v18 = vld [vmem:[#allocation5 + $0x22b8] sm:$0xff] }
 0x250   :  { %4400 = vmatmul.mubr.f32.vlgmr.msra.gmra.mrb[30].mxu1 %v9371_v11  ;;  %8401 = vmatprep.subr.bf16.mxu0 %v8400_v56  ;;  %v8438_v11 = vpack.c.bf16 %v1155_v25, %v1154_v15  ;;  %v8418_v56 = vpack.c.bf16 %v1129_v50, %v1128_v60  ;;  %v8454_v9 = vpack.c.bf16 %v1163_v16, %v1162_v6  ;;  %v1185_v60 = vld [vmem:[#allocation5 + $0x2218] sm:$0xff]  ;;  %v1216_v50 = vld [vmem:[#allocation5 + $0x2310] sm:$0xff]  ;;  %v1187_v6 = vld [vmem:[#allocation5 + $0x2228] sm:$0xff] }
 0x251   :  { %8431 = vmatpush3.bf16.msra.mxu1 %v8430_v4  ;;  %4539 = vmatprep.mubr.f32.mxu1 %v1949_v12  ;;  %v1179_v4 = vld [vmem:[#allocation5 + $0x21e8] sm:$0xff]  ;;  %v1236_v19 = vld [vmem:[#allocation5 + $0x23b0] sm:$0xff]  ;;  %v1210_v53 = vld [vmem:[#allocation5 + $0x22e0] sm:$0xff] }
 0x252   :  { %8433 = vmatprep.subr.bf16.mxu1 %v8432_v8  ;;  %v1131_v8 = vld [vmem:[#allocation5 + $0x2068] sm:$0xff]  ;;  %v8452_v14 = vpack.c.bf16 %v1179_v4, %v1178_v3  ;;  %v1234_v3 = vld [vmem:[#allocation5 + $0x23a0] sm:$0xff] }
 0x253   :  { %8403 = vmatpush3.bf16.msra.mxu0 %v8402_v1  ;;  %v8422_v15 = vpack.c.bf16 %v1131_v8, %v1130_v58  ;;  %v1235_v4 = vld [vmem:[#allocation5 + $0x23a8] sm:$0xff]  ;;  %v8468_v58 = vpack.c.bf16 %v1203_v0, %v1202_v62  ;;  %v1186_v8 = vld [vmem:[#allocation5 + $0x2220] sm:$0xff] }
 0x254   :  { %8405 = vmatprep.subr.bf16.mxu0 %v8404_v10  ;;  %v1181_v10 = vld [vmem:[#allocation5 + $0x21f8] sm:$0xff]  ;;  %v1219_v16 = vld [vmem:[#allocation5 + $0x2328] sm:$0xff] }
 0x255   :  { %8435 = vmatpush3.bf16.msra.mxu1 %v8434_v20  ;;  %v1180_v20 = vld [vmem:[#allocation5 + $0x21f0] sm:$0xff]  ;;  %v1211_v54 = vld [vmem:[#allocation5 + $0x22e8] sm:$0xff] }
 0x256   :  { %8437 = vmatprep.subr.bf16.mxu1 %v8436_v24  ;;  %v87_v24 = vld [vmem:[#allocation2 + $0x88] sm:$0xff] }
 0x257   :  { %8407 = vmatpush3.bf16.msra.mxu0 %v8406_v17  ;;  %v1164_v17 = vld [vmem:[#allocation5 + $0x2170] sm:$0xff]  ;;  %v1950_v40 = vcombine.high %v87_v24, %v87_v24  ;;  %v9398_v49 = vrot.slane %v87_v24, %v9174_v13  ;;  %v1221_v24 = vld [vmem:[#allocation5 + $0x2338] sm:$0xff] }
 0x258   :  { %8409 = vmatprep.subr.bf16.mxu0 %v8408_v34  ;;  %v8456_v34 = vpack.c.bf16 %v1181_v10, %v1180_v20  ;;  %v8458_v52 = vpack.c.bf16 %v1165_v23, %v1164_v17  ;;  %v1188_v10 = vld [vmem:[#allocation5 + $0x2230] sm:$0xff]  ;;  %v1191_v23 = vld [vmem:[#allocation5 + $0x2248] sm:$0xff] }
 0x259   :  { %8439 = vmatpush3.bf16.msra.mxu1 %v8438_v11  ;;  %v9401_v33 = vrot.slane %v1950_v40, %v9174_v13  ;;  %v1965_v45 = vcombine.high %v9398_v49, %v9398_v49  ;;  %v1209_v40 = vld [vmem:[#allocation5 + $0x22d8] sm:$0xff] }
 0x25a   :  { %8441 = vmatprep.subr.bf16.mxu1 %v8440_v31  ;;  %v1230_v31 = vld [vmem:[#allocation5 + $0x2380] sm:$0xff] }
 0x25b   :  { %8411 = vmatpush3.bf16.msra.mxu0 %v8410_v44  ;;  %v8460_v44 = vpack.c.bf16 %v1199_v37, %v1198_v36  ;;  %v1222_v36 = vld [vmem:[#allocation5 + $0x2340] sm:$0xff] }
 0x25c   :  { %8413 = vmatprep.subr.bf16.mxu0 %v8412_v28  ;;  %v1183_v28 = vld [vmem:[#allocation5 + $0x2208] sm:$0xff] }
 0x25d   :  { %8443 = vmatpush3.bf16.msra.mxu1 %v8442_v27  ;;  %v1182_v27 = vld [vmem:[#allocation5 + $0x2200] sm:$0xff] }
 0x25e   :  { %8445 = vmatprep.subr.bf16.mxu1 %v8444_v48  ;;  %v1201_v48 = vld [vmem:[#allocation5 + $0x2298] sm:$0xff]  ;;  %v8462_v59 = vpack.c.bf16 %v1183_v28, %v1182_v27 }
 0x25f   :  { %8415 = vmatpush3.bf16.msra.mxu0 %v8414_v55  ;;  %v8494_v55 = vpack.c.bf16 %v1215_v42, %v1214_v46  ;;  %v1192_v46 = vld [vmem:[#allocation5 + $0x2250] sm:$0xff] }
 0x260   :  { %8417 = vmatprep.subr.bf16.mxu0 %v8416_v41  ;;  %v1184_v41 = vld [vmem:[#allocation5 + $0x2210] sm:$0xff] }
 0x261   :  { %8447 = vmatpush3.bf16.msra.mxu1 %v8446_v35  ;;  %v6302_v7 = vpop.f32.mrb[18].mxu0  ;;  %v8464_v35 = vpack.c.bf16 %v1201_v48, %v1200_v47  ;;  %v1224_v42 = vld [vmem:[#allocation5 + $0x2350] sm:$0xff]  ;;  %v1225_v48 = vld [vmem:[#allocation5 + $0x2358] sm:$0xff] }
 0x262   :  { %8449 = vmatprep.subr.bf16.mxu1 %v8448_v61  ;;  %v6303_v12 = vpop.f32.mrb[19].mxu0  ;;  %v1217_v61 = vld [vmem:[#allocation5 + $0x2318] sm:$0xff] }
 0x263   :  { %v6337_v1 = vpop.f32.mrb[18].mxu1  ;;  %v6304_v26 = vadd.f32 %v6303_v12, %v6302_v7  ;;  %8419 = vmatpush3.bf16.msra.mxu0 %v8418_v56  ;;  %v1966_v56 = vcombine.high %v9401_v33, %v9401_v33  ;;  %v1218_v7 = vld [vmem:[#allocation5 + $0x2320] sm:$0xff]  ;;  %v1237_v12 = vld [vmem:[#allocation5 + $0x23b8] sm:$0xff] }
 0x264   :  { %v6338_v21 = vpop.f32.mrb[19].mxu1  ;;  %8421 = vmatprep.subr.bf16.mxu0 %v8420_v5  ;;  %v8498_v5 = vpack.c.bf16 %v1217_v61, %v1216_v50  ;;  %v1194_v50 = vld [vmem:[#allocation5 + $0x2260] sm:$0xff] }
 0x265   :  { %v6339_v25 = vadd.f32 %v6338_v21, %v6337_v1  ;;  %8451 = vmatpush3.bf16.msra.mxu1 %v8450_v57  ;;  %v3492_v11 = vadd.f32 %v6304_v26, %v9380_v38  ;;  %v8492_v38 = vpack.c.bf16 %v1231_v39, %v1230_v31  ;;  %v8466_v57 = vpack.c.bf16 %v1185_v60, %v1184_v41  ;;  %v1189_v26 = vld [vmem:[#allocation5 + $0x2238] sm:$0xff]  ;;  %v1220_v21 = vld [vmem:[#allocation5 + $0x2330] sm:$0xff]  ;;  %v1223_v31 = vld [vmem:[#allocation5 + $0x2348] sm:$0xff] }
 0x266   :  { %8453 = vmatprep.subr.bf16.mxu1 %v8452_v14  ;;  %v8500_v14 = vpack.c.bf16 %v1235_v4, %v1234_v3  ;;  %v8470_v1 = vpack.c.bf16 %v1187_v6, %v1186_v8  ;;  %v8474_v32 = vpack.c.bf16 %v1189_v26, %v1188_v10  ;;  %v8506_v17 = vpack.c.bf16 %v1221_v24, %v1220_v21  ;;  %v1208_v39 = vld [vmem:[#allocation5 + $0x22d0] sm:$0xff]  ;;  %v1226_v61 = vld [vmem:[#allocation5 + $0x2360] sm:$0xff]  ;;  %v1213_v4 = vld [vmem:[#allocation5 + $0x22f8] sm:$0xff] }
 0x267   :  { %v9395_v22 = vadd.f32 %v6339_v25, %v3492_v11  ;;  %8423 = vmatpush3.bf16.msra.mxu0 %v8422_v15  ;;  %v8504_v15 = vpack.c.bf16 %v1237_v12, %v1236_v19  ;;  %v1206_v25 = vld [vmem:[#allocation5 + $0x22c0] sm:$0xff]  ;;  %v8510_v27 = vpack.c.bf16 %v1223_v31, %v1222_v36  ;;  %v8480_v28 = vpack.c.bf16 %v1209_v40, %v1208_v39  ;;  %v1212_v3 = vld [vmem:[#allocation5 + $0x22f0] sm:$0xff]  ;;  %v1197_v12 = vld [vmem:[#allocation5 + $0x2278] sm:$0xff] }
 0x268   :  { %8425 = vmatprep.subr.bf16.mxu0 %v8424_v29  ;;  %v1238_v29 = vld [vmem:[#allocation5 + $0x23c0] sm:$0xff]  ;;  %v8514_v41 = vpack.c.bf16 %v1225_v48, %v1224_v42  ;;  %v8484_v60 = vpack.c.bf16 %v1211_v54, %v1210_v53  ;;  %v1196_v19 = vld [vmem:[#allocation5 + $0x2270] sm:$0xff]  ;;  %v1229_v10 = vld [vmem:[#allocation5 + $0x2378] sm:$0xff] }
 0x269   :  { %8455 = vmatpush3.bf16.msra.mxu1 %v8454_v9  ;;  %v1207_v9 = vld [vmem:[#allocation5 + $0x22c8] sm:$0xff]  ;;  %v8508_v37 = vpack.c.bf16 %v1239_v30, %v1238_v29  ;;  %v1262_v26 = vld [vmem:[#allocation5 + $0x2480] sm:$0xff]  ;;  %v8490_v29 = vpack.c.bf16 %v1197_v12, %v1196_v19  ;;  %v1264_v36 = vld [vmem:[#allocation5 + $0x2490] sm:$0xff] }
 0x26a   :  { %8457 = vmatprep.subr.bf16.mxu1 %v8456_v34  ;;  %v8476_v11 = vpack.c.bf16 %v1207_v9, %v1206_v25  ;;  %v1190_v34 = vld [vmem:[#allocation5 + $0x2240] sm:$0xff]  ;;  %v1263_v21 = vld [vmem:[#allocation5 + $0x2488] sm:$0xff]  ;;  %v1296_v39 = vld [vmem:[#allocation5 + $0x2590] sm:$0xff] }
 0x26b   :  { %8427 = vmatpush3.bf16.msra.mxu0 %v8426_v43  ;;  %v1240_v43 = vld [vmem:[#allocation5 + $0x23d0] sm:$0xff]  ;;  %v1295_v24 = vld [vmem:[#allocation5 + $0x2588] sm:$0xff]  ;;  %v1297_v40 = vld [vmem:[#allocation5 + $0x2598] sm:$0xff] }
 0x26c   :  { %8461 = vmatprep.subr.bf16.mxu0 %v8460_v44  ;;  %v8478_v44 = vpack.c.bf16 %v1191_v23, %v1190_v34  ;;  %v1278_v34 = vld [vmem:[#allocation5 + $0x2500] sm:$0xff]  ;;  %v1279_v23 = vld [vmem:[#allocation5 + $0x2508] sm:$0xff]  ;;  %v8560_v42 = vpack.c.bf16 %v1297_v40, %v1296_v39 }
 0x26d   :  { %8459 = vmatpush3.bf16.msra.mxu1 %v8458_v52  ;;  %v1241_v52 = vld [vmem:[#allocation5 + $0x23d8] sm:$0xff]  ;;  %v1266_v48 = vld [vmem:[#allocation5 + $0x24a0] sm:$0xff]  ;;  %v1267_v53 = vld [vmem:[#allocation5 + $0x24a8] sm:$0xff] }
 0x26e   :  { %8493 = vmatprep.subr.bf16.mxu1 %v8492_v38  ;;  %4470 = vmatmul.mubr.f32.vlgmr.msra.gmra.mrb[32].mxu0 %v9383_v63  ;;  %v1204_v63 = vld [vmem:[#allocation5 + $0x22b0] sm:$0xff]  ;;  %v1193_v38 = vld [vmem:[#allocation5 + $0x2258] sm:$0xff]  ;;  %v8512_v47 = vpack.c.bf16 %v1241_v52, %v1240_v43  ;;  %v1303_v19 = vld [vmem:[#allocation5 + $0x25c8] sm:$0xff] }
 0x26f   :  { %8463 = vmatpush3.bf16.msra.mxu0 %v8462_v59  ;;  %4609 = vmatprep.mubr.f32.mxu0 %v1965_v45  ;;  %v8472_v20 = vpack.c.bf16 %v1205_v18, %v1204_v63  ;;  %v1242_v59 = vld [vmem:[#allocation5 + $0x23e0] sm:$0xff]  ;;  %v1227_v45 = vld [vmem:[#allocation5 + $0x2368] sm:$0xff]  ;;  %v8488_v18 = vpack.c.bf16 %v1213_v4, %v1212_v3  ;;  %v1269_v3 = vld [vmem:[#allocation5 + $0x24b8] sm:$0xff] }
 0x270   :  { %4540 = vmatmul.mubr.f32.vlgmr.msra.gmra.mrb[32].mxu1 %v9386_v2  ;;  %8465 = vmatprep.subr.bf16.mxu0 %v8464_v35  ;;  %v8502_v2 = vpack.c.bf16 %v1219_v16, %v1218_v7  ;;  %v8482_v35 = vpack.c.bf16 %v1193_v38, %v1192_v46  ;;  %v8518_v63 = vpack.c.bf16 %v1227_v45, %v1226_v61  ;;  %v1249_v46 = vld [vmem:[#allocation5 + $0x2418] sm:$0xff]  ;;  %v1280_v38 = vld [vmem:[#allocation5 + $0x2510] sm:$0xff]  ;;  %v1251_v61 = vld [vmem:[#allocation5 + $0x2428] sm:$0xff] }
 0x271   :  { %8495 = vmatpush3.bf16.msra.mxu1 %v8494_v55  ;;  %4679 = vmatprep.mubr.f32.mxu1 %v1966_v56  ;;  %v1243_v55 = vld [vmem:[#allocation5 + $0x23e8] sm:$0xff]  ;;  %v1300_v4 = vld [vmem:[#allocation5 + $0x25b0] sm:$0xff]  ;;  %v1274_v39 = vld [vmem:[#allocation5 + $0x24e0] sm:$0xff] }
 0x272   :  { %8497 = vmatprep.subr.bf16.mxu1 %v8496_v51  ;;  %v1195_v51 = vld [vmem:[#allocation5 + $0x2268] sm:$0xff]  ;;  %v8516_v0 = vpack.c.bf16 %v1243_v55, %v1242_v59  ;;  %v1298_v59 = vld [vmem:[#allocation5 + $0x25a0] sm:$0xff] }
 0x273   :  { %8467 = vmatpush3.bf16.msra.mxu0 %v8466_v57  ;;  %v8486_v7 = vpack.c.bf16 %v1195_v51, %v1194_v50  ;;  %v1299_v55 = vld [vmem:[#allocation5 + $0x25a8] sm:$0xff]  ;;  %v8532_v50 = vpack.c.bf16 %v1267_v53, %v1266_v48  ;;  %v1250_v51 = vld [vmem:[#allocation5 + $0x2420] sm:$0xff] }
 0x274   :  { %8469 = vmatprep.subr.bf16.mxu0 %v8468_v58  ;;  %v1245_v58 = vld [vmem:[#allocation5 + $0x23f8] sm:$0xff]  ;;  %v1283_v45 = vld [vmem:[#allocation5 + $0x2528] sm:$0xff] }
 0x275   :  { %8499 = vmatpush3.bf16.msra.mxu1 %v8498_v5  ;;  %v1244_v5 = vld [vmem:[#allocation5 + $0x23f0] sm:$0xff]  ;;  %v1275_v40 = vld [vmem:[#allocation5 + $0x24e8] sm:$0xff] }
 0x276   :  { %8501 = vmatprep.subr.bf16.mxu1 %v8500_v14  ;;  %v88_v14 = vld [vmem:[#allocation2 + $0x90] sm:$0xff] }
 0x277   :  { %8471 = vmatpush3.bf16.msra.mxu0 %v8470_v1  ;;  %v1228_v1 = vld [vmem:[#allocation5 + $0x2370] sm:$0xff]  ;;  %v1967_v25 = vcombine.high %v88_v14, %v88_v14  ;;  %v9413_v31 = vrot.slane %v88_v14, %v9174_v13  ;;  %v1285_v14 = vld [vmem:[#allocation5 + $0x2538] sm:$0xff] }
 0x278   :  { %8473 = vmatprep.subr.bf16.mxu0 %v8472_v20  ;;  %v8520_v20 = vpack.c.bf16 %v1245_v58, %v1244_v5  ;;  %v8522_v30 = vpack.c.bf16 %v1229_v10, %v1228_v1  ;;  %v1252_v58 = vld [vmem:[#allocation5 + $0x2430] sm:$0xff]  ;;  %v1255_v10 = vld [vmem:[#allocation5 + $0x2448] sm:$0xff] }
 0x279   :  { %8503 = vmatpush3.bf16.msra.mxu1 %v8502_v2  ;;  %v9416_v43 = vrot.slane %v1967_v25, %v9174_v13  ;;  %v1982_v54 = vcombine.high %v9413_v31, %v9413_v31  ;;  %v1273_v25 = vld [vmem:[#allocation5 + $0x24d8] sm:$0xff] }
 0x27a   :  { %8505 = vmatprep.subr.bf16.mxu1 %v8504_v15  ;;  %v1294_v15 = vld [vmem:[#allocation5 + $0x2580] sm:$0xff] }
 0x27b   :  { %8475 = vmatpush3.bf16.msra.mxu0 %v8474_v32  ;;  %v8524_v32 = vpack.c.bf16 %v1263_v21, %v1262_v26  ;;  %v1286_v26 = vld [vmem:[#allocation5 + $0x2540] sm:$0xff] }
 0x27c   :  { %8477 = vmatprep.subr.bf16.mxu0 %v8476_v11  ;;  %v1247_v11 = vld [vmem:[#allocation5 + $0x2408] sm:$0xff] }
 0x27d   :  { %8507 = vmatpush3.bf16.msra.mxu1 %v8506_v17  ;;  %v1246_v17 = vld [vmem:[#allocation5 + $0x2400] sm:$0xff] }
 0x27e   :  { %8509 = vmatprep.subr.bf16.mxu1 %v8508_v37  ;;  %v1265_v37 = vld [vmem:[#allocation5 + $0x2498] sm:$0xff]  ;;  %v8526_v52 = vpack.c.bf16 %v1247_v11, %v1246_v17 }
 0x27f   :  { %8479 = vmatpush3.bf16.msra.mxu0 %v8478_v44  ;;  %v8558_v44 = vpack.c.bf16 %v1279_v23, %v1278_v34  ;;  %v1256_v34 = vld [vmem:[#allocation5 + $0x2450] sm:$0xff] }
 0x280   :  { %8481 = vmatprep.subr.bf16.mxu0 %v8480_v28  ;;  %v1248_v28 = vld [vmem:[#allocation5 + $0x2410] sm:$0xff] }
 0x281   :  { %8511 = vmatpush3.bf16.msra.mxu1 %v8510_v27  ;;  %v6372_v62 = vpop.f32.mrb[20].mxu0  ;;  %v8528_v27 = vpack.c.bf16 %v1265_v37, %v1264_v36  ;;  %v1288_v23 = vld [vmem:[#allocation5 + $0x2550] sm:$0xff]  ;;  %v1289_v37 = vld [vmem:[#allocation5 + $0x2558] sm:$0xff] }
 0x282   :  { %8513 = vmatprep.subr.bf16.mxu1 %v8512_v47  ;;  %v6373_v56 = vpop.f32.mrb[21].mxu0  ;;  %v1281_v47 = vld [vmem:[#allocation5 + $0x2518] sm:$0xff] }
 0x283   :  { %v6407_v57 = vpop.f32.mrb[20].mxu1  ;;  %v6374_v8 = vadd.f32 %v6373_v56, %v6372_v62  ;;  %8483 = vmatpush3.bf16.msra.mxu0 %v8482_v35  ;;  %v1983_v35 = vcombine.high %v9416_v43, %v9416_v43  ;;  %v1282_v62 = vld [vmem:[#allocation5 + $0x2520] sm:$0xff]  ;;  %v1301_v56 = vld [vmem:[#allocation5 + $0x25b8] sm:$0xff] }
 0x284   :  { %v6408_v6 = vpop.f32.mrb[21].mxu1  ;;  %8485 = vmatprep.subr.bf16.mxu0 %v8484_v60  ;;  %v8562_v60 = vpack.c.bf16 %v1281_v47, %v1280_v38  ;;  %v1258_v38 = vld [vmem:[#allocation5 + $0x2460] sm:$0xff] }
 0x285   :  { %v6409_v16 = vadd.f32 %v6408_v6, %v6407_v57  ;;  %8515 = vmatpush3.bf16.msra.mxu1 %v8514_v41  ;;  %v3632_v2 = vadd.f32 %v6374_v8, %v9395_v22  ;;  %v8556_v22 = vpack.c.bf16 %v1295_v24, %v1294_v15  ;;  %v8530_v41 = vpack.c.bf16 %v1249_v46, %v1248_v28  ;;  %v1253_v8 = vld [vmem:[#allocation5 + $0x2438] sm:$0xff]  ;;  %v1284_v6 = vld [vmem:[#allocation5 + $0x2530] sm:$0xff]  ;;  %v1287_v15 = vld [vmem:[#allocation5 + $0x2548] sm:$0xff] }
 0x286   :  { %8517 = vmatprep.subr.bf16.mxu1 %v8516_v0  ;;  %v8564_v0 = vpack.c.bf16 %v1299_v55, %v1298_v59  ;;  %v8534_v57 = vpack.c.bf16 %v1251_v61, %v1250_v51  ;;  %v8538_v12 = vpack.c.bf16 %v1253_v8, %v1252_v58  ;;  %v8570_v1 = vpack.c.bf16 %v1285_v14, %v1284_v6  ;;  %v1272_v24 = vld [vmem:[#allocation5 + $0x24d0] sm:$0xff]  ;;  %v1290_v47 = vld [vmem:[#allocation5 + $0x2560] sm:$0xff]  ;;  %v1277_v55 = vld [vmem:[#allocation5 + $0x24f8] sm:$0xff] }
 0x287   :  { %v9410_v9 = vadd.f32 %v6409_v16, %v3632_v2  ;;  %8487 = vmatpush3.bf16.msra.mxu0 %v8486_v7  ;;  %v8568_v7 = vpack.c.bf16 %v1301_v56, %v1300_v4  ;;  %v1270_v16 = vld [vmem:[#allocation5 + $0x24c0] sm:$0xff]  ;;  %v8574_v17 = vpack.c.bf16 %v1287_v15, %v1286_v26  ;;  %v8544_v11 = vpack.c.bf16 %v1273_v25, %v1272_v24  ;;  %v1276_v59 = vld [vmem:[#allocation5 + $0x24f0] sm:$0xff]  ;;  %v1261_v56 = vld [vmem:[#allocation5 + $0x2478] sm:$0xff] }
 0x288   :  { %8489 = vmatprep.subr.bf16.mxu0 %v8488_v18  ;;  %v1302_v18 = vld [vmem:[#allocation5 + $0x25c0] sm:$0xff]  ;;  %v8578_v28 = vpack.c.bf16 %v1289_v37, %v1288_v23  ;;  %v8548_v46 = vpack.c.bf16 %v1275_v40, %v1274_v39  ;;  %v1260_v4 = vld [vmem:[#allocation5 + $0x2470] sm:$0xff]  ;;  %v1293_v58 = vld [vmem:[#allocation5 + $0x2578] sm:$0xff] }
 0x289   :  { %8519 = vmatpush3.bf16.msra.mxu1 %v8518_v63  ;;  %v1271_v63 = vld [vmem:[#allocation5 + $0x24c8] sm:$0xff]  ;;  %v8572_v21 = vpack.c.bf16 %v1303_v19, %v1302_v18  ;;  %v1326_v8 = vld [vmem:[#allocation5 + $0x2680] sm:$0xff]  ;;  %v8554_v18 = vpack.c.bf16 %v1261_v56, %v1260_v4  ;;  %v1328_v26 = vld [vmem:[#allocation5 + $0x2690] sm:$0xff] }
 0x28a   :  { %8521 = vmatprep.subr.bf16.mxu1 %v8520_v20  ;;  %v8540_v2 = vpack.c.bf16 %v1271_v63, %v1270_v16  ;;  %v1254_v20 = vld [vmem:[#allocation5 + $0x2440] sm:$0xff]  ;;  %v1327_v6 = vld [vmem:[#allocation5 + $0x2688] sm:$0xff]  ;;  %v1360_v24 = vld [vmem:[#allocation5 + $0x2790] sm:$0xff] }
 0x28b   :  { %8491 = vmatpush3.bf16.msra.mxu0 %v8490_v29  ;;  %v1304_v29 = vld [vmem:[#allocation5 + $0x25d0] sm:$0xff]  ;;  %v1359_v14 = vld [vmem:[#allocation5 + $0x2788] sm:$0xff]  ;;  %v1361_v25 = vld [vmem:[#allocation5 + $0x2798] sm:$0xff] }
 0x28c   :  { %8525 = vmatprep.subr.bf16.mxu0 %v8524_v32  ;;  %v8542_v32 = vpack.c.bf16 %v1255_v10, %v1254_v20  ;;  %v1342_v20 = vld [vmem:[#allocation5 + $0x2700] sm:$0xff]  ;;  %v1343_v10 = vld [vmem:[#allocation5 + $0x2708] sm:$0xff]  ;;  %v8624_v23 = vpack.c.bf16 %v1361_v25, %v1360_v24 }
 0x28d   :  { %8523 = vmatpush3.bf16.msra.mxu1 %v8522_v30  ;;  %v1305_v30 = vld [vmem:[#allocation5 + $0x25d8] sm:$0xff]  ;;  %v1330_v37 = vld [vmem:[#allocation5 + $0x26a0] sm:$0xff]  ;;  %v1331_v39 = vld [vmem:[#allocation5 + $0x26a8] sm:$0xff] }
 0x28e   :  { %8557 = vmatprep.subr.bf16.mxu1 %v8556_v22  ;;  %4610 = vmatmul.mubr.f32.vlgmr.msra.gmra.mrb[34].mxu0 %v9398_v49  ;;  %v1268_v49 = vld [vmem:[#allocation5 + $0x24b0] sm:$0xff]  ;;  %v1257_v22 = vld [vmem:[#allocation5 + $0x2458] sm:$0xff]  ;;  %v8576_v36 = vpack.c.bf16 %v1305_v30, %v1304_v29  ;;  %v1367_v4 = vld [vmem:[#allocation5 + $0x27c8] sm:$0xff] }
 0x28f   :  { %8527 = vmatpush3.bf16.msra.mxu0 %v8526_v52  ;;  %4749 = vmatprep.mubr.f32.mxu0 %v1982_v54  ;;  %v8536_v5 = vpack.c.bf16 %v1269_v3, %v1268_v49  ;;  %v1306_v52 = vld [vmem:[#allocation5 + $0x25e0] sm:$0xff]  ;;  %v1291_v54 = vld [vmem:[#allocation5 + $0x2568] sm:$0xff]  ;;  %v8552_v3 = vpack.c.bf16 %v1277_v55, %v1276_v59  ;;  %v1333_v59 = vld [vmem:[#allocation5 + $0x26b8] sm:$0xff] }
 0x290   :  { %4680 = vmatmul.mubr.f32.vlgmr.msra.gmra.mrb[34].mxu1 %v9401_v33  ;;  %8529 = vmatprep.subr.bf16.mxu0 %v8528_v27  ;;  %v8566_v33 = vpack.c.bf16 %v1283_v45, %v1282_v62  ;;  %v8546_v27 = vpack.c.bf16 %v1257_v22, %v1256_v34  ;;  %v8582_v49 = vpack.c.bf16 %v1291_v54, %v1290_v47  ;;  %v1313_v34 = vld [vmem:[#allocation5 + $0x2618] sm:$0xff]  ;;  %v1344_v22 = vld [vmem:[#allocation5 + $0x2710] sm:$0xff]  ;;  %v1315_v47 = vld [vmem:[#allocation5 + $0x2628] sm:$0xff] }
 0x291   :  { %8559 = vmatpush3.bf16.msra.mxu1 %v8558_v44  ;;  %4819 = vmatprep.mubr.f32.mxu1 %v1983_v35  ;;  %v1307_v44 = vld [vmem:[#allocation5 + $0x25e8] sm:$0xff]  ;;  %v1364_v55 = vld [vmem:[#allocation5 + $0x27b0] sm:$0xff]  ;;  %v1338_v24 = vld [vmem:[#allocation5 + $0x26e0] sm:$0xff] }
 0x292   :  { %8561 = vmatprep.subr.bf16.mxu1 %v8560_v42  ;;  %v1259_v42 = vld [vmem:[#allocation5 + $0x2468] sm:$0xff]  ;;  %v8580_v53 = vpack.c.bf16 %v1307_v44, %v1306_v52  ;;  %v1362_v52 = vld [vmem:[#allocation5 + $0x27a0] sm:$0xff] }
 0x293   :  { %8531 = vmatpush3.bf16.msra.mxu0 %v8530_v41  ;;  %v8550_v62 = vpack.c.bf16 %v1259_v42, %v1258_v38  ;;  %v1363_v44 = vld [vmem:[#allocation5 + $0x27a8] sm:$0xff]  ;;  %v8596_v38 = vpack.c.bf16 %v1331_v39, %v1330_v37  ;;  %v1314_v42 = vld [vmem:[#allocation5 + $0x2620] sm:$0xff] }
 0x294   :  { %8533 = vmatprep.subr.bf16.mxu0 %v8532_v50  ;;  %v1309_v50 = vld [vmem:[#allocation5 + $0x25f8] sm:$0xff]  ;;  %v1347_v54 = vld [vmem:[#allocation5 + $0x2728] sm:$0xff] }
 0x295   :  { %8563 = vmatpush3.bf16.msra.mxu1 %v8562_v60  ;;  %v1308_v60 = vld [vmem:[#allocation5 + $0x25f0] sm:$0xff]  ;;  %v1339_v25 = vld [vmem:[#allocation5 + $0x26e8] sm:$0xff] }
 0x296   :  { %8565 = vmatprep.subr.bf16.mxu1 %v8564_v0  ;;  %v89_v0 = vld [vmem:[#allocation2 + $0x98] sm:$0xff] }
 0x297   :  { %8535 = vmatpush3.bf16.msra.mxu0 %v8534_v57  ;;  %v1292_v57 = vld [vmem:[#allocation5 + $0x2570] sm:$0xff]  ;;  %v1984_v16 = vcombine.high %v89_v0, %v89_v0  ;;  %v9428_v15 = vrot.slane %v89_v0, %v9174_v13  ;;  %v1349_v0 = vld [vmem:[#allocation5 + $0x2738] sm:$0xff] }
 0x298   :  { %8537 = vmatprep.subr.bf16.mxu0 %v8536_v5  ;;  %v8584_v5 = vpack.c.bf16 %v1309_v50, %v1308_v60  ;;  %v8586_v19 = vpack.c.bf16 %v1293_v58, %v1292_v57  ;;  %v1316_v50 = vld [vmem:[#allocation5 + $0x2630] sm:$0xff]  ;;  %v1319_v58 = vld [vmem:[#allocation5 + $0x2648] sm:$0xff] }
 0x299   :  { %8567 = vmatpush3.bf16.msra.mxu1 %v8566_v33  ;;  %v9431_v29 = vrot.slane %v1984_v16, %v9174_v13  ;;  %v1999_v40 = vcombine.high %v9428_v15, %v9428_v15  ;;  %v1337_v16 = vld [vmem:[#allocation5 + $0x26d8] sm:$0xff] }
 0x29a   :  { %8569 = vmatprep.subr.bf16.mxu1 %v8568_v7  ;;  %v1358_v7 = vld [vmem:[#allocation5 + $0x2780] sm:$0xff] }
 0x29b   :  { %8539 = vmatpush3.bf16.msra.mxu0 %v8538_v12  ;;  %v8588_v12 = vpack.c.bf16 %v1327_v6, %v1326_v8  ;;  %v1350_v8 = vld [vmem:[#allocation5 + $0x2740] sm:$0xff] }
 0x29c   :  { %8541 = vmatprep.subr.bf16.mxu0 %v8540_v2  ;;  %v1311_v2 = vld [vmem:[#allocation5 + $0x2608] sm:$0xff] }
 0x29d   :  { %8571 = vmatpush3.bf16.msra.mxu1 %v8570_v1  ;;  %v1310_v1 = vld [vmem:[#allocation5 + $0x2600] sm:$0xff] }
 0x29e   :  { %8573 = vmatprep.subr.bf16.mxu1 %v8572_v21  ;;  %v1329_v21 = vld [vmem:[#allocation5 + $0x2698] sm:$0xff]  ;;  %v8590_v30 = vpack.c.bf16 %v1311_v2, %v1310_v1 }
 0x29f   :  { %8543 = vmatpush3.bf16.msra.mxu0 %v8542_v32  ;;  %v8622_v32 = vpack.c.bf16 %v1343_v10, %v1342_v20  ;;  %v1320_v20 = vld [vmem:[#allocation5 + $0x2650] sm:$0xff] }
 0x2a0   :  { %8545 = vmatprep.subr.bf16.mxu0 %v8544_v11  ;;  %v1312_v11 = vld [vmem:[#allocation5 + $0x2610] sm:$0xff] }
 0x2a1   :  { %8575 = vmatpush3.bf16.msra.mxu1 %v8574_v17  ;;  %v6442_v48 = vpop.f32.mrb[22].mxu0  ;;  %v8592_v17 = vpack.c.bf16 %v1329_v21, %v1328_v26  ;;  %v1352_v10 = vld [vmem:[#allocation5 + $0x2750] sm:$0xff]  ;;  %v1353_v21 = vld [vmem:[#allocation5 + $0x2758] sm:$0xff] }
 0x2a2   :  { %8577 = vmatprep.subr.bf16.mxu1 %v8576_v36  ;;  %v6443_v35 = vpop.f32.mrb[23].mxu0  ;;  %v1345_v36 = vld [vmem:[#allocation5 + $0x2718] sm:$0xff] }
 0x2a3   :  { %v6477_v41 = vpop.f32.mrb[22].mxu1  ;;  %v6444_v51 = vadd.f32 %v6443_v35, %v6442_v48  ;;  %8547 = vmatpush3.bf16.msra.mxu0 %v8546_v27  ;;  %v2000_v27 = vcombine.high %v9431_v29, %v9431_v29  ;;  %v1346_v48 = vld [vmem:[#allocation5 + $0x2720] sm:$0xff]  ;;  %v1365_v35 = vld [vmem:[#allocation5 + $0x27b8] sm:$0xff] }
 0x2a4   :  { %v6478_v61 = vpop.f32.mrb[23].mxu1  ;;  %8549 = vmatprep.subr.bf16.mxu0 %v8548_v46  ;;  %v8626_v46 = vpack.c.bf16 %v1345_v36, %v1344_v22  ;;  %v1322_v22 = vld [vmem:[#allocation5 + $0x2660] sm:$0xff] }
 0x2a5   :  { %v6479_v45 = vadd.f32 %v6478_v61, %v6477_v41  ;;  %8579 = vmatpush3.bf16.msra.mxu1 %v8578_v28  ;;  %v3772_v33 = vadd.f32 %v6444_v51, %v9410_v9  ;;  %v8620_v9 = vpack.c.bf16 %v1359_v14, %v1358_v7  ;;  %v8594_v28 = vpack.c.bf16 %v1313_v34, %v1312_v11  ;;  %v1317_v51 = vld [vmem:[#allocation5 + $0x2638] sm:$0xff]  ;;  %v1348_v61 = vld [vmem:[#allocation5 + $0x2730] sm:$0xff]  ;;  %v1351_v7 = vld [vmem:[#allocation5 + $0x2748] sm:$0xff] }
 0x2a6   :  { %8581 = vmatprep.subr.bf16.mxu1 %v8580_v53  ;;  %v8628_v53 = vpack.c.bf16 %v1363_v44, %v1362_v52  ;;  %v8598_v41 = vpack.c.bf16 %v1315_v47, %v1314_v42  ;;  %v8602_v56 = vpack.c.bf16 %v1317_v51, %v1316_v50  ;;  %v8634_v57 = vpack.c.bf16 %v1349_v0, %v1348_v61  ;;  %v1336_v14 = vld [vmem:[#allocation5 + $0x26d0] sm:$0xff]  ;;  %v1354_v36 = vld [vmem:[#allocation5 + $0x2760] sm:$0xff]  ;;  %v1341_v44 = vld [vmem:[#allocation5 + $0x26f8] sm:$0xff] }
 0x2a7   :  { %v9425_v63 = vadd.f32 %v6479_v45, %v3772_v33  ;;  %8551 = vmatpush3.bf16.msra.mxu0 %v8550_v62  ;;  %v8632_v62 = vpack.c.bf16 %v1365_v35, %v1364_v55  ;;  %v1334_v45 = vld [vmem:[#allocation5 + $0x26c0] sm:$0xff]  ;;  %v8638_v1 = vpack.c.bf16 %v1351_v7, %v1350_v8  ;;  %v8608_v2 = vpack.c.bf16 %v1337_v16, %v1336_v14  ;;  %v1340_v52 = vld [vmem:[#allocation5 + $0x26f0] sm:$0xff]  ;;  %v1325_v35 = vld [vmem:[#allocation5 + $0x2678] sm:$0xff] }
 0x2a8   :  { %8553 = vmatprep.subr.bf16.mxu0 %v8552_v3  ;;  %v1366_v3 = vld [vmem:[#allocation5 + $0x27c0] sm:$0xff]  ;;  %v8642_v11 = vpack.c.bf16 %v1353_v21, %v1352_v10  ;;  %v8612_v34 = vpack.c.bf16 %v1339_v25, %v1338_v24  ;;  %v1324_v55 = vld [vmem:[#allocation5 + $0x2670] sm:$0xff]  ;;  %v1357_v50 = vld [vmem:[#allocation5 + $0x2778] sm:$0xff] }
 0x2a9   :  { %8583 = vmatpush3.bf16.msra.mxu1 %v8582_v49  ;;  %v1335_v49 = vld [vmem:[#allocation5 + $0x26c8] sm:$0xff]  ;;  %v8636_v6 = vpack.c.bf16 %v1367_v4, %v1366_v3  ;;  %v1390_v51 = vld [vmem:[#allocation5 + $0x2880] sm:$0xff]  ;;  %v8618_v3 = vpack.c.bf16 %v1325_v35, %v1324_v55  ;;  %v1392_v8 = vld [vmem:[#allocation5 + $0x2890] sm:$0xff] }
 0x2aa   :  { %8585 = vmatprep.subr.bf16.mxu1 %v8584_v5  ;;  %v8604_v33 = vpack.c.bf16 %v1335_v49, %v1334_v45  ;;  %v1318_v5 = vld [vmem:[#allocation5 + $0x2640] sm:$0xff]  ;;  %v1391_v61 = vld [vmem:[#allocation5 + $0x2888] sm:$0xff]  ;;  %v1424_v14 = vld [vmem:[#allocation5 + $0x2990] sm:$0xff] }
 0x2ab   :  { %8555 = vmatpush3.bf16.msra.mxu0 %v8554_v18  ;;  %v1368_v18 = vld [vmem:[#allocation5 + $0x27d0] sm:$0xff]  ;;  %v1423_v0 = vld [vmem:[#allocation5 + $0x2988] sm:$0xff]  ;;  %v1425_v16 = vld [vmem:[#allocation5 + $0x2998] sm:$0xff] }
 0x2ac   :  { %8589 = vmatprep.subr.bf16.mxu0 %v8588_v12  ;;  %v8606_v12 = vpack.c.bf16 %v1319_v58, %v1318_v5  ;;  %v1406_v5 = vld [vmem:[#allocation5 + $0x2900] sm:$0xff]  ;;  %v1407_v58 = vld [vmem:[#allocation5 + $0x2908] sm:$0xff]  ;;  %v8688_v10 = vpack.c.bf16 %v1425_v16, %v1424_v14 }
 0x2ad   :  { %8587 = vmatpush3.bf16.msra.mxu1 %v8586_v19  ;;  %v1369_v19 = vld [vmem:[#allocation5 + $0x27d8] sm:$0xff]  ;;  %v1394_v21 = vld [vmem:[#allocation5 + $0x28a0] sm:$0xff]  ;;  %v1395_v24 = vld [vmem:[#allocation5 + $0x28a8] sm:$0xff] }
 0x2ae   :  { %8621 = vmatprep.subr.bf16.mxu1 %v8620_v9  ;;  %4750 = vmatmul.mubr.f32.vlgmr.msra.gmra.mrb[36].mxu0 %v9413_v31  ;;  %v1332_v31 = vld [vmem:[#allocation5 + $0x26b0] sm:$0xff]  ;;  %v1321_v9 = vld [vmem:[#allocation5 + $0x2658] sm:$0xff]  ;;  %v8640_v26 = vpack.c.bf16 %v1369_v19, %v1368_v18  ;;  %v1431_v55 = vld [vmem:[#allocation5 + $0x29c8] sm:$0xff] }
 0x2af   :  { %8591 = vmatpush3.bf16.msra.mxu0 %v8590_v30  ;;  %4889 = vmatprep.mubr.f32.mxu0 %v1999_v40  ;;  %v8600_v60 = vpack.c.bf16 %v1333_v59, %v1332_v31  ;;  %v1370_v30 = vld [vmem:[#allocation5 + $0x27e0] sm:$0xff]  ;;  %v1355_v40 = vld [vmem:[#allocation5 + $0x2768] sm:$0xff]  ;;  %v8616_v59 = vpack.c.bf16 %v1341_v44, %v1340_v52  ;;  %v1397_v52 = vld [vmem:[#allocation5 + $0x28b8] sm:$0xff] }
 0x2b0   :  { %4820 = vmatmul.mubr.f32.vlgmr.msra.gmra.mrb[36].mxu1 %v9416_v43  ;;  %8593 = vmatprep.subr.bf16.mxu0 %v8592_v17  ;;  %v8630_v43 = vpack.c.bf16 %v1347_v54, %v1346_v48  ;;  %v8610_v17 = vpack.c.bf16 %v1321_v9, %v1320_v20  ;;  %v8646_v31 = vpack.c.bf16 %v1355_v40, %v1354_v36  ;;  %v1377_v20 = vld [vmem:[#allocation5 + $0x2818] sm:$0xff]  ;;  %v1408_v9 = vld [vmem:[#allocation5 + $0x2910] sm:$0xff]  ;;  %v1379_v36 = vld [vmem:[#allocation5 + $0x2828] sm:$0xff] }
 0x2b1   :  { %8623 = vmatpush3.bf16.msra.mxu1 %v8622_v32  ;;  %4959 = vmatprep.mubr.f32.mxu1 %v2000_v27  ;;  %v1371_v32 = vld [vmem:[#allocation5 + $0x27e8] sm:$0xff]  ;;  %v1428_v44 = vld [vmem:[#allocation5 + $0x29b0] sm:$0xff]  ;;  %v1402_v14 = vld [vmem:[#allocation5 + $0x28e0] sm:$0xff] }
 0x2b2   :  { %8625 = vmatprep.subr.bf16.mxu1 %v8624_v23  ;;  %v1323_v23 = vld [vmem:[#allocation5 + $0x2668] sm:$0xff]  ;;  %v8644_v39 = vpack.c.bf16 %v1371_v32, %v1370_v30  ;;  %v1426_v30 = vld [vmem:[#allocation5 + $0x29a0] sm:$0xff] }
 0x2b3   :  { %8595 = vmatpush3.bf16.msra.mxu0 %v8594_v28  ;;  %v8614_v48 = vpack.c.bf16 %v1323_v23, %v1322_v22  ;;  %v1427_v32 = vld [vmem:[#allocation5 + $0x29a8] sm:$0xff]  ;;  %v8660_v22 = vpack.c.bf16 %v1395_v24, %v1394_v21  ;;  %v1378_v23 = vld [vmem:[#allocation5 + $0x2820] sm:$0xff] }
 0x2b4   :  { %8597 = vmatprep.subr.bf16.mxu0 %v8596_v38  ;;  %v1373_v38 = vld [vmem:[#allocation5 + $0x27f8] sm:$0xff]  ;;  %v1411_v40 = vld [vmem:[#allocation5 + $0x2928] sm:$0xff] }
 0x2b5   :  { %8627 = vmatpush3.bf16.msra.mxu1 %v8626_v46  ;;  %v1372_v46 = vld [vmem:[#allocation5 + $0x27f0] sm:$0xff]  ;;  %v1403_v16 = vld [vmem:[#allocation5 + $0x28e8] sm:$0xff] }
 0x2b6   :  { %8629 = vmatprep.subr.bf16.mxu1 %v8628_v53  ;;  %v90_v53 = vld [vmem:[#allocation2 + $0xa0] sm:$0xff] }
 0x2b7   :  { %8599 = vmatpush3.bf16.msra.mxu0 %v8598_v41  ;;  %v1356_v41 = vld [vmem:[#allocation5 + $0x2770] sm:$0xff]  ;;  %v2001_v45 = vcombine.high %v90_v53, %v90_v53  ;;  %v9443_v7 = vrot.slane %v90_v53, %v9174_v13  ;;  %v1413_v53 = vld [vmem:[#allocation5 + $0x2938] sm:$0xff] }
 0x2b8   :  { %8601 = vmatprep.subr.bf16.mxu0 %v8600_v60  ;;  %v8648_v60 = vpack.c.bf16 %v1373_v38, %v1372_v46  ;;  %v8650_v4 = vpack.c.bf16 %v1357_v50, %v1356_v41  ;;  %v1380_v38 = vld [vmem:[#allocation5 + $0x2830] sm:$0xff]  ;;  %v1383_v50 = vld [vmem:[#allocation5 + $0x2848] sm:$0xff] }
 0x2b9   :  { %8631 = vmatpush3.bf16.msra.mxu1 %v8630_v43  ;;  %v9446_v18 = vrot.slane %v2001_v45, %v9174_v13  ;;  %v2016_v25 = vcombine.high %v9443_v7, %v9443_v7  ;;  %v1401_v45 = vld [vmem:[#allocation5 + $0x28d8] sm:$0xff] }
 0x2ba   :  { %8633 = vmatprep.subr.bf16.mxu1 %v8632_v62  ;;  %v1422_v62 = vld [vmem:[#allocation5 + $0x2980] sm:$0xff] }
 0x2bb   :  { %8603 = vmatpush3.bf16.msra.mxu0 %v8602_v56  ;;  %v8652_v56 = vpack.c.bf16 %v1391_v61, %v1390_v51  ;;  %v1414_v51 = vld [vmem:[#allocation5 + $0x2940] sm:$0xff] }
 0x2bc   :  { %8605 = vmatprep.subr.bf16.mxu0 %v8604_v33  ;;  %v1375_v33 = vld [vmem:[#allocation5 + $0x2808] sm:$0xff] }
 0x2bd   :  { %8635 = vmatpush3.bf16.msra.mxu1 %v8634_v57  ;;  %v1374_v57 = vld [vmem:[#allocation5 + $0x2800] sm:$0xff] }
 0x2be   :  { %8637 = vmatprep.subr.bf16.mxu1 %v8636_v6  ;;  %v1393_v6 = vld [vmem:[#allocation5 + $0x2898] sm:$0xff]  ;;  %v8654_v19 = vpack.c.bf16 %v1375_v33, %v1374_v57 }
 0x2bf   :  { %8607 = vmatpush3.bf16.msra.mxu0 %v8606_v12  ;;  %v8686_v12 = vpack.c.bf16 %v1407_v58, %v1406_v5  ;;  %v1384_v5 = vld [vmem:[#allocation5 + $0x2850] sm:$0xff] }
 0x2c0   :  { %8609 = vmatprep.subr.bf16.mxu0 %v8608_v2  ;;  %v1376_v2 = vld [vmem:[#allocation5 + $0x2810] sm:$0xff] }
 0x2c1   :  { %8639 = vmatpush3.bf16.msra.mxu1 %v8638_v1  ;;  %v6512_v37 = vpop.f32.mrb[24].mxu0  ;;  %v8656_v1 = vpack.c.bf16 %v1393_v6, %v1392_v8  ;;  %v1416_v58 = vld [vmem:[#allocation5 + $0x2950] sm:$0xff]  ;;  %v1417_v6 = vld [vmem:[#allocation5 + $0x2958] sm:$0xff] }
 0x2c2   :  { %8641 = vmatprep.subr.bf16.mxu1 %v8640_v26  ;;  %v6513_v27 = vpop.f32.mrb[25].mxu0  ;;  %v1409_v26 = vld [vmem:[#allocation5 + $0x2918] sm:$0xff] }
 0x2c3   :  { %v6547_v28 = vpop.f32.mrb[24].mxu1  ;;  %v6514_v42 = vadd.f32 %v6513_v27, %v6512_v37  ;;  %8611 = vmatpush3.bf16.msra.mxu0 %v8610_v17  ;;  %v2017_v17 = vcombine.high %v9446_v18, %v9446_v18  ;;  %v1410_v37 = vld [vmem:[#allocation5 + $0x2920] sm:$0xff]  ;;  %v1429_v27 = vld [vmem:[#allocation5 + $0x29b8] sm:$0xff] }
 0x2c4   :  { %v6548_v47 = vpop.f32.mrb[25].mxu1  ;;  %8613 = vmatprep.subr.bf16.mxu0 %v8612_v34  ;;  %v8690_v34 = vpack.c.bf16 %v1409_v26, %v1408_v9  ;;  %v1386_v9 = vld [vmem:[#allocation5 + $0x2860] sm:$0xff] }
 0x2c5   :  { %v6549_v54 = vadd.f32 %v6548_v47, %v6547_v28  ;;  %8643 = vmatpush3.bf16.msra.mxu1 %v8642_v11  ;;  %v3912_v43 = vadd.f32 %v6514_v42, %v9425_v63  ;;  %v8684_v63 = vpack.c.bf16 %v1423_v0, %v1422_v62  ;;  %v8658_v11 = vpack.c.bf16 %v1377_v20, %v1376_v2  ;;  %v1381_v42 = vld [vmem:[#allocation5 + $0x2838] sm:$0xff]  ;;  %v1412_v47 = vld [vmem:[#allocation5 + $0x2930] sm:$0xff]  ;;  %v1415_v62 = vld [vmem:[#allocation5 + $0x2948] sm:$0xff] }
 0x2c6   :  { %8645 = vmatprep.subr.bf16.mxu1 %v8644_v39  ;;  %v8692_v39 = vpack.c.bf16 %v1427_v32, %v1426_v30  ;;  %v8662_v28 = vpack.c.bf16 %v1379_v36, %v1378_v23  ;;  %v8666_v35 = vpack.c.bf16 %v1381_v42, %v1380_v38  ;;  %v8698_v41 = vpack.c.bf16 %v1413_v53, %v1412_v47  ;;  %v1400_v0 = vld [vmem:[#allocation5 + $0x28d0] sm:$0xff]  ;;  %v1418_v26 = vld [vmem:[#allocation5 + $0x2960] sm:$0xff]  ;;  %v1405_v32 = vld [vmem:[#allocation5 + $0x28f8] sm:$0xff] }
 0x2c7   :  { %v9440_v49 = vadd.f32 %v6549_v54, %v3912_v43  ;;  %8615 = vmatpush3.bf16.msra.mxu0 %v8614_v48  ;;  %v8696_v48 = vpack.c.bf16 %v1429_v27, %v1428_v44  ;;  %v1398_v54 = vld [vmem:[#allocation5 + $0x28c0] sm:$0xff]  ;;  %v8702_v57 = vpack.c.bf16 %v1415_v62, %v1414_v51  ;;  %v8672_v33 = vpack.c.bf16 %v1401_v45, %v1400_v0  ;;  %v1404_v30 = vld [vmem:[#allocation5 + $0x28f0] sm:$0xff]  ;;  %v1389_v27 = vld [vmem:[#allocation5 + $0x2878] sm:$0xff] }
 0x2c8   :  { %8617 = vmatprep.subr.bf16.mxu0 %v8616_v59  ;;  %v1430_v59 = vld [vmem:[#allocation5 + $0x29c0] sm:$0xff]  ;;  %v8706_v2 = vpack.c.bf16 %v1417_v6, %v1416_v58  ;;  %v8676_v20 = vpack.c.bf16 %v1403_v16, %v1402_v14  ;;  %v1388_v44 = vld [vmem:[#allocation5 + $0x2870] sm:$0xff]  ;;  %v1421_v38 = vld [vmem:[#allocation5 + $0x2978] sm:$0xff] }
 0x2c9   :  { %8647 = vmatpush3.bf16.msra.mxu1 %v8646_v31  ;;  %v1399_v31 = vld [vmem:[#allocation5 + $0x28c8] sm:$0xff]  ;;  %v8700_v61 = vpack.c.bf16 %v1431_v55, %v1430_v59  ;;  %v1454_v42 = vld [vmem:[#allocation5 + $0x2a80] sm:$0xff]  ;;  %v8682_v59 = vpack.c.bf16 %v1389_v27, %v1388_v44  ;;  %v1456_v51 = vld [vmem:[#allocation5 + $0x2a90] sm:$0xff] }
 0x2ca   :  { %8649 = vmatprep.subr.bf16.mxu1 %v8648_v60  ;;  %v8668_v43 = vpack.c.bf16 %v1399_v31, %v1398_v54  ;;  %v1382_v60 = vld [vmem:[#allocation5 + $0x2840] sm:$0xff]  ;;  %v1455_v47 = vld [vmem:[#allocation5 + $0x2a88] sm:$0xff]  ;;  %v1488_v0 = vld [vmem:[#allocation5 + $0x2b90] sm:$0xff] }
 0x2cb   :  { %8619 = vmatpush3.bf16.msra.mxu0 %v8618_v3  ;;  %v1432_v3 = vld [vmem:[#allocation5 + $0x29d0] sm:$0xff]  ;;  %v1487_v53 = vld [vmem:[#allocation5 + $0x2b88] sm:$0xff]  ;;  %v1489_v45 = vld [vmem:[#allocation5 + $0x2b98] sm:$0xff] }
 0x2cc   :  { %8653 = vmatprep.subr.bf16.mxu0 %v8652_v56  ;;  %v8670_v56 = vpack.c.bf16 %v1383_v50, %v1382_v60  ;;  %v1470_v60 = vld [vmem:[#allocation5 + $0x2b00] sm:$0xff]  ;;  %v1471_v50 = vld [vmem:[#allocation5 + $0x2b08] sm:$0xff]  ;;  %v8752_v58 = vpack.c.bf16 %v1489_v45, %v1488_v0 }
 0x2cd   :  { %8651 = vmatpush3.bf16.msra.mxu1 %v8650_v4  ;;  %v1433_v4 = vld [vmem:[#allocation5 + $0x29d8] sm:$0xff]  ;;  %v1458_v6 = vld [vmem:[#allocation5 + $0x2aa0] sm:$0xff]  ;;  %v1459_v14 = vld [vmem:[#allocation5 + $0x2aa8] sm:$0xff] }
 0x2ce   :  { %8685 = vmatprep.subr.bf16.mxu1 %v8684_v63  ;;  %4890 = vmatmul.mubr.f32.vlgmr.msra.gmra.mrb[38].mxu0 %v9428_v15  ;;  %v1396_v15 = vld [vmem:[#allocation5 + $0x28b0] sm:$0xff]  ;;  %v1385_v63 = vld [vmem:[#allocation5 + $0x2858] sm:$0xff]  ;;  %v8704_v8 = vpack.c.bf16 %v1433_v4, %v1432_v3  ;;  %v1495_v44 = vld [vmem:[#allocation5 + $0x2bc8] sm:$0xff] }
 0x2cf   :  { %8655 = vmatpush3.bf16.msra.mxu0 %v8654_v19  ;;  %5029 = vmatprep.mubr.f32.mxu0 %v2016_v25  ;;  %v8664_v46 = vpack.c.bf16 %v1397_v52, %v1396_v15  ;;  %v1434_v19 = vld [vmem:[#allocation5 + $0x29e0] sm:$0xff]  ;;  %v1419_v25 = vld [vmem:[#allocation5 + $0x2968] sm:$0xff]  ;;  %v8680_v52 = vpack.c.bf16 %v1405_v32, %v1404_v30  ;;  %v1461_v30 = vld [vmem:[#allocation5 + $0x2ab8] sm:$0xff] }
 0x2d0   :  { %4960 = vmatmul.mubr.f32.vlgmr.msra.gmra.mrb[38].mxu1 %v9431_v29  ;;  %8657 = vmatprep.subr.bf16.mxu0 %v8656_v1  ;;  %v8694_v29 = vpack.c.bf16 %v1411_v40, %v1410_v37  ;;  %v8674_v1 = vpack.c.bf16 %v1385_v63, %v1384_v5  ;;  %v8710_v15 = vpack.c.bf16 %v1419_v25, %v1418_v26  ;;  %v1441_v5 = vld [vmem:[#allocation5 + $0x2a18] sm:$0xff]  ;;  %v1472_v63 = vld [vmem:[#allocation5 + $0x2b10] sm:$0xff]  ;;  %v1443_v26 = vld [vmem:[#allocation5 + $0x2a28] sm:$0xff] }
 0x2d1   :  { %8687 = vmatpush3.bf16.msra.mxu1 %v8686_v12  ;;  %5099 = vmatprep.mubr.f32.mxu1 %v2017_v17  ;;  %v1435_v12 = vld [vmem:[#allocation5 + $0x29e8] sm:$0xff]  ;;  %v1492_v32 = vld [vmem:[#allocation5 + $0x2bb0] sm:$0xff]  ;;  %v1466_v0 = vld [vmem:[#allocation5 + $0x2ae0] sm:$0xff] }
 0x2d2   :  { %8689 = vmatprep.subr.bf16.mxu1 %v8688_v10  ;;  %v1387_v10 = vld [vmem:[#allocation5 + $0x2868] sm:$0xff]  ;;  %v8708_v24 = vpack.c.bf16 %v1435_v12, %v1434_v19  ;;  %v1490_v19 = vld [vmem:[#allocation5 + $0x2ba0] sm:$0xff] }
 0x2d3   :  { %8659 = vmatpush3.bf16.msra.mxu0 %v8658_v11  ;;  %v8678_v37 = vpack.c.bf16 %v1387_v10, %v1386_v9  ;;  %v1491_v12 = vld [vmem:[#allocation5 + $0x2ba8] sm:$0xff]  ;;  %v8724_v9 = vpack.c.bf16 %v1459_v14, %v1458_v6  ;;  %v1442_v10 = vld [vmem:[#allocation5 + $0x2a20] sm:$0xff] }
 0x2d4   :  { %8661 = vmatprep.subr.bf16.mxu0 %v8660_v22  ;;  %v1437_v22 = vld [vmem:[#allocation5 + $0x29f8] sm:$0xff]  ;;  %v1475_v25 = vld [vmem:[#allocation5 + $0x2b28] sm:$0xff] }
 0x2d5   :  { %8691 = vmatpush3.bf16.msra.mxu1 %v8690_v34  ;;  %v1436_v34 = vld [vmem:[#allocation5 + $0x29f0] sm:$0xff]  ;;  %v1467_v45 = vld [vmem:[#allocation5 + $0x2ae8] sm:$0xff] }
 0x2d6   :  { %8693 = vmatprep.subr.bf16.mxu1 %v8692_v39  ;;  %v91_v39 = vld [vmem:[#allocation2 + $0xa8] sm:$0xff] }
 0x2d7   :  { %8663 = vmatpush3.bf16.msra.mxu0 %v8662_v28  ;;  %v1420_v28 = vld [vmem:[#allocation5 + $0x2970] sm:$0xff]  ;;  %v2018_v54 = vcombine.high %v91_v39, %v91_v39  ;;  %v9458_v62 = vrot.slane %v91_v39, %v9174_v13  ;;  %v1477_v39 = vld [vmem:[#allocation5 + $0x2b38] sm:$0xff] }
 0x2d8   :  { %8665 = vmatprep.subr.bf16.mxu0 %v8664_v46  ;;  %v8712_v46 = vpack.c.bf16 %v1437_v22, %v1436_v34  ;;  %v8714_v55 = vpack.c.bf16 %v1421_v38, %v1420_v28  ;;  %v1444_v22 = vld [vmem:[#allocation5 + $0x2a30] sm:$0xff]  ;;  %v1447_v38 = vld [vmem:[#allocation5 + $0x2a48] sm:$0xff] }
 0x2d9   :  { %8695 = vmatpush3.bf16.msra.mxu1 %v8694_v29  ;;  %v9461_v3 = vrot.slane %v2018_v54, %v9174_v13  ;;  %v2033_v16 = vcombine.high %v9458_v62, %v9458_v62  ;;  %v1465_v54 = vld [vmem:[#allocation5 + $0x2ad8] sm:$0xff] }
 0x2da   :  { %8697 = vmatprep.subr.bf16.mxu1 %v8696_v48  ;;  %v1486_v48 = vld [vmem:[#allocation5 + $0x2b80] sm:$0xff] }
 0x2db   :  { %8667 = vmatpush3.bf16.msra.mxu0 %v8666_v35  ;;  %v8716_v35 = vpack.c.bf16 %v1455_v47, %v1454_v42  ;;  %v1478_v42 = vld [vmem:[#allocation5 + $0x2b40] sm:$0xff] }
 0x2dc   :  { %8669 = vmatprep.subr.bf16.mxu0 %v8668_v43  ;;  %v1439_v43 = vld [vmem:[#allocation5 + $0x2a08] sm:$0xff] }
 0x2dd   :  { %8699 = vmatpush3.bf16.msra.mxu1 %v8698_v41  ;;  %v1438_v41 = vld [vmem:[#allocation5 + $0x2a00] sm:$0xff] }
 0x2de   :  { %8701 = vmatprep.subr.bf16.mxu1 %v8700_v61  ;;  %v1457_v61 = vld [vmem:[#allocation5 + $0x2a98] sm:$0xff]  ;;  %v8718_v4 = vpack.c.bf16 %v1439_v43, %v1438_v41 }
 0x2df   :  { %8671 = vmatpush3.bf16.msra.mxu0 %v8670_v56  ;;  %v8750_v56 = vpack.c.bf16 %v1471_v50, %v1470_v60  ;;  %v1448_v60 = vld [vmem:[#allocation5 + $0x2a50] sm:$0xff] }
 0x2e0   :  { %8673 = vmatprep.subr.bf16.mxu0 %v8672_v33  ;;  %v1440_v33 = vld [vmem:[#allocation5 + $0x2a10] sm:$0xff] }
 0x2e1   :  { %8703 = vmatpush3.bf16.msra.mxu1 %v8702_v57  ;;  %v6582_v21 = vpop.f32.mrb[26].mxu0  ;;  %v8720_v57 = vpack.c.bf16 %v1457_v61, %v1456_v51  ;;  %v1480_v50 = vld [vmem:[#allocation5 + $0x2b50] sm:$0xff]  ;;  %v1481_v61 = vld [vmem:[#allocation5 + $0x2b58] sm:$0xff] }
 0x2e2   :  { %8705 = vmatprep.subr.bf16.mxu1 %v8704_v8  ;;  %v6583_v17 = vpop.f32.mrb[27].mxu0  ;;  %v1473_v8 = vld [vmem:[#allocation5 + $0x2b18] sm:$0xff] }
 0x2e3   :  { %v6617_v11 = vpop.f32.mrb[26].mxu1  ;;  %v6584_v23 = vadd.f32 %v6583_v17, %v6582_v21  ;;  %8675 = vmatpush3.bf16.msra.mxu0 %v8674_v1  ;;  %v2034_v1 = vcombine.high %v9461_v3, %v9461_v3  ;;  %v1474_v21 = vld [vmem:[#allocation5 + $0x2b20] sm:$0xff]  ;;  %v1493_v17 = vld [vmem:[#allocation5 + $0x2bb8] sm:$0xff] }
 0x2e4   :  { %v6618_v36 = vpop.f32.mrb[27].mxu1  ;;  %8677 = vmatprep.subr.bf16.mxu0 %v8676_v20  ;;  %v8754_v20 = vpack.c.bf16 %v1473_v8, %v1472_v63  ;;  %v1450_v63 = vld [vmem:[#allocation5 + $0x2a60] sm:$0xff] }
 0x2e5   :  { %v6619_v40 = vadd.f32 %v6618_v36, %v6617_v11  ;;  %8707 = vmatpush3.bf16.msra.mxu1 %v8706_v2  ;;  %v4052_v29 = vadd.f32 %v6584_v23, %v9440_v49  ;;  %v8748_v49 = vpack.c.bf16 %v1487_v53, %v1486_v48  ;;  %v8722_v2 = vpack.c.bf16 %v1441_v5, %v1440_v33  ;;  %v1445_v23 = vld [vmem:[#allocation5 + $0x2a38] sm:$0xff]  ;;  %v1476_v36 = vld [vmem:[#allocation5 + $0x2b30] sm:$0xff]  ;;  %v1479_v48 = vld [vmem:[#allocation5 + $0x2b48] sm:$0xff] }
 0x2e6   :  { %8709 = vmatprep.subr.bf16.mxu1 %v8708_v24  ;;  %v8756_v24 = vpack.c.bf16 %v1491_v12, %v1490_v19  ;;  %v8726_v11 = vpack.c.bf16 %v1443_v26, %v1442_v10  ;;  %v8730_v27 = vpack.c.bf16 %v1445_v23, %v1444_v22  ;;  %v8762_v28 = vpack.c.bf16 %v1477_v39, %v1476_v36  ;;  %v1464_v53 = vld [vmem:[#allocation5 + $0x2ad0] sm:$0xff]  ;;  %v1482_v8 = vld [vmem:[#allocation5 + $0x2b60] sm:$0xff]  ;;  %v1469_v12 = vld [vmem:[#allocation5 + $0x2af8] sm:$0xff] }
 0x2e7   :  { %v9455_v31 = vadd.f32 %v6619_v40, %v4052_v29  ;;  %8679 = vmatpush3.bf16.msra.mxu0 %v8678_v37  ;;  %v8760_v37 = vpack.c.bf16 %v1493_v17, %v1492_v32  ;;  %v1462_v40 = vld [vmem:[#allocation5 + $0x2ac0] sm:$0xff]  ;;  %v8766_v41 = vpack.c.bf16 %v1479_v48, %v1478_v42  ;;  %v8736_v43 = vpack.c.bf16 %v1465_v54, %v1464_v53  ;;  %v1468_v19 = vld [vmem:[#allocation5 + $0x2af0] sm:$0xff]  ;;  %v1453_v17 = vld [vmem:[#allocation5 + $0x2a78] sm:$0xff] }
 0x2e8   :  { %8681 = vmatprep.subr.bf16.mxu0 %v8680_v52  ;;  %v1494_v52 = vld [vmem:[#allocation5 + $0x2bc0] sm:$0xff]  ;;  %v8770_v33 = vpack.c.bf16 %v1481_v61, %v1480_v50  ;;  %v8740_v5 = vpack.c.bf16 %v1467_v45, %v1466_v0  ;;  %v1452_v32 = vld [vmem:[#allocation5 + $0x2a70] sm:$0xff]  ;;  %v1485_v22 = vld [vmem:[#allocation5 + $0x2b78] sm:$0xff] }
 0x2e9   :  { %8711 = vmatpush3.bf16.msra.mxu1 %v8710_v15  ;;  %v1463_v15 = vld [vmem:[#allocation5 + $0x2ac8] sm:$0xff]  ;;  %v8764_v47 = vpack.c.bf16 %v1495_v44, %v1494_v52  ;;  %v1518_v23 = vld [vmem:[#allocation5 + $0x2c80] sm:$0xff]  ;;  %v8746_v52 = vpack.c.bf16 %v1453_v17, %v1452_v32  ;;  %v1520_v42 = vld [vmem:[#allocation5 + $0x2c90] sm:$0xff] }
 0x2ea   :  { %8713 = vmatprep.subr.bf16.mxu1 %v8712_v46  ;;  %v8732_v29 = vpack.c.bf16 %v1463_v15, %v1462_v40  ;;  %v1446_v46 = vld [vmem:[#allocation5 + $0x2a40] sm:$0xff]  ;;  %v1519_v36 = vld [vmem:[#allocation5 + $0x2c88] sm:$0xff]  ;;  %v1552_v53 = vld [vmem:[#allocation5 + $0x2d90] sm:$0xff] }
 0x2eb   :  { %8683 = vmatpush3.bf16.msra.mxu0 %v8682_v59  ;;  %v1496_v59 = vld [vmem:[#allocation5 + $0x2bd0] sm:$0xff]  ;;  %v1551_v39 = vld [vmem:[#allocation5 + $0x2d88] sm:$0xff]  ;;  %v1553_v54 = vld [vmem:[#allocation5 + $0x2d98] sm:$0xff] }
 0x2ec   :  { %8717 = vmatprep.subr.bf16.mxu0 %v8716_v35  ;;  %v8734_v35 = vpack.c.bf16 %v1447_v38, %v1446_v46  ;;  %v1534_v46 = vld [vmem:[#allocation5 + $0x2d00] sm:$0xff]  ;;  %v1535_v38 = vld [vmem:[#allocation5 + $0x2d08] sm:$0xff]  ;;  %v8816_v50 = vpack.c.bf16 %v1553_v54, %v1552_v53 }
 0x2ed   :  { %8715 = vmatpush3.bf16.msra.mxu1 %v8714_v55  ;;  %v1497_v55 = vld [vmem:[#allocation5 + $0x2bd8] sm:$0xff]  ;;  %v1522_v61 = vld [vmem:[#allocation5 + $0x2ca0] sm:$0xff]  ;;  %v1523_v0 = vld [vmem:[#allocation5 + $0x2ca8] sm:$0xff] }
 0x2ee   :  { %8749 = vmatprep.subr.bf16.mxu1 %v8748_v49  ;;  %5030 = vmatmul.mubr.f32.vlgmr.msra.gmra.mrb[40].mxu0 %v9443_v7  ;;  %v1460_v7 = vld [vmem:[#allocation5 + $0x2ab0] sm:$0xff]  ;;  %v1449_v49 = vld [vmem:[#allocation5 + $0x2a58] sm:$0xff]  ;;  %v8768_v51 = vpack.c.bf16 %v1497_v55, %v1496_v59  ;;  %v1559_v32 = vld [vmem:[#allocation5 + $0x2dc8] sm:$0xff] }
 0x2ef   :  { %8719 = vmatpush3.bf16.msra.mxu0 %v8718_v4  ;;  %5169 = vmatprep.mubr.f32.mxu0 %v2033_v16  ;;  %v8728_v34 = vpack.c.bf16 %v1461_v30, %v1460_v7  ;;  %v1498_v4 = vld [vmem:[#allocation5 + $0x2be0] sm:$0xff]  ;;  %v1483_v16 = vld [vmem:[#allocation5 + $0x2b68] sm:$0xff]  ;;  %v8744_v30 = vpack.c.bf16 %v1469_v12, %v1468_v19  ;;  %v1525_v19 = vld [vmem:[#allocation5 + $0x2cb8] sm:$0xff] }
 0x2f0   :  { %5100 = vmatmul.mubr.f32.vlgmr.msra.gmra.mrb[40].mxu1 %v9446_v18  ;;  %8721 = vmatprep.subr.bf16.mxu0 %v8720_v57  ;;  %v8758_v18 = vpack.c.bf16 %v1475_v25, %v1474_v21  ;;  %v8738_v57 = vpack.c.bf16 %v1449_v49, %v1448_v60  ;;  %v8774_v7 = vpack.c.bf16 %v1483_v16, %v1482_v8  ;;  %v1505_v60 = vld [vmem:[#allocation5 + $0x2c18] sm:$0xff]  ;;  %v1536_v49 = vld [vmem:[#allocation5 + $0x2d10] sm:$0xff]  ;;  %v1507_v8 = vld [vmem:[#allocation5 + $0x2c28] sm:$0xff] }
 0x2f1   :  { %8751 = vmatpush3.bf16.msra.mxu1 %v8750_v56  ;;  %5239 = vmatprep.mubr.f32.mxu1 %v2034_v1  ;;  %v1499_v56 = vld [vmem:[#allocation5 + $0x2be8] sm:$0xff]  ;;  %v1556_v12 = vld [vmem:[#allocation5 + $0x2db0] sm:$0xff]  ;;  %v1530_v53 = vld [vmem:[#allocation5 + $0x2ce0] sm:$0xff] }
 0x2f2   :  { %8753 = vmatprep.subr.bf16.mxu1 %v8752_v58  ;;  %v1451_v58 = vld [vmem:[#allocation5 + $0x2a68] sm:$0xff]  ;;  %v8772_v14 = vpack.c.bf16 %v1499_v56, %v1498_v4  ;;  %v1554_v4 = vld [vmem:[#allocation5 + $0x2da0] sm:$0xff] }
 0x2f3   :  { %8723 = vmatpush3.bf16.msra.mxu0 %v8722_v2  ;;  %v8742_v21 = vpack.c.bf16 %v1451_v58, %v1450_v63  ;;  %v1555_v56 = vld [vmem:[#allocation5 + $0x2da8] sm:$0xff]  ;;  %v8788_v63 = vpack.c.bf16 %v1523_v0, %v1522_v61  ;;  %v1506_v58 = vld [vmem:[#allocation5 + $0x2c20] sm:$0xff] }
 0x2f4   :  { %8725 = vmatprep.subr.bf16.mxu0 %v8724_v9  ;;  %v1501_v9 = vld [vmem:[#allocation5 + $0x2bf8] sm:$0xff]  ;;  %v1539_v16 = vld [vmem:[#allocation5 + $0x2d28] sm:$0xff] }
 0x2f5   :  { %8755 = vmatpush3.bf16.msra.mxu1 %v8754_v20  ;;  %v1500_v20 = vld [vmem:[#allocation5 + $0x2bf0] sm:$0xff]  ;;  %v1531_v54 = vld [vmem:[#allocation5 + $0x2ce8] sm:$0xff] }
 0x2f6   :  { %8757 = vmatprep.subr.bf16.mxu1 %v8756_v24  ;;  %v92_v24 = vld [vmem:[#allocation2 + $0xb0] sm:$0xff] }
 0x2f7   :  { %8727 = vmatpush3.bf16.msra.mxu0 %v8726_v11  ;;  %v1484_v11 = vld [vmem:[#allocation5 + $0x2b70] sm:$0xff]  ;;  %v2035_v40 = vcombine.high %v92_v24, %v92_v24  ;;  %v9473_v48 = vrot.slane %v92_v24, %v9174_v13  ;;  %v1541_v24 = vld [vmem:[#allocation5 + $0x2d38] sm:$0xff] }
 0x2f8   :  { %8729 = vmatprep.subr.bf16.mxu0 %v8728_v34  ;;  %v8776_v34 = vpack.c.bf16 %v1501_v9, %v1500_v20  ;;  %v8778_v44 = vpack.c.bf16 %v1485_v22, %v1484_v11  ;;  %v1508_v9 = vld [vmem:[#allocation5 + $0x2c30] sm:$0xff]  ;;  %v1511_v22 = vld [vmem:[#allocation5 + $0x2c48] sm:$0xff] }
 0x2f9   :  { %8759 = vmatpush3.bf16.msra.mxu1 %v8758_v18  ;;  %v9476_v59 = vrot.slane %v2035_v40, %v9174_v13  ;;  %v2050_v45 = vcombine.high %v9473_v48, %v9473_v48  ;;  %v1529_v40 = vld [vmem:[#allocation5 + $0x2cd8] sm:$0xff] }
 0x2fa   :  { %8761 = vmatprep.subr.bf16.mxu1 %v8760_v37  ;;  %v1550_v37 = vld [vmem:[#allocation5 + $0x2d80] sm:$0xff] }
 0x2fb   :  { %8731 = vmatpush3.bf16.msra.mxu0 %v8730_v27  ;;  %v8780_v27 = vpack.c.bf16 %v1519_v36, %v1518_v23  ;;  %v1542_v23 = vld [vmem:[#allocation5 + $0x2d40] sm:$0xff] }
 0x2fc   :  { %8733 = vmatprep.subr.bf16.mxu0 %v8732_v29  ;;  %v1503_v29 = vld [vmem:[#allocation5 + $0x2c08] sm:$0xff] }
 0x2fd   :  { %8763 = vmatpush3.bf16.msra.mxu1 %v8762_v28  ;;  %v1502_v28 = vld [vmem:[#allocation5 + $0x2c00] sm:$0xff] }
 0x2fe   :  { %8765 = vmatprep.subr.bf16.mxu1 %v8764_v47  ;;  %v1521_v47 = vld [vmem:[#allocation5 + $0x2c98] sm:$0xff]  ;;  %v8782_v55 = vpack.c.bf16 %v1503_v29, %v1502_v28 }
 0x2ff   :  { %8735 = vmatpush3.bf16.msra.mxu0 %v8734_v35  ;;  %v8814_v35 = vpack.c.bf16 %v1535_v38, %v1534_v46  ;;  %v1512_v46 = vld [vmem:[#allocation5 + $0x2c50] sm:$0xff] }
 0x300   :  { %8737 = vmatprep.subr.bf16.mxu0 %v8736_v43  ;;  %v1504_v43 = vld [vmem:[#allocation5 + $0x2c10] sm:$0xff] }
 0x301   :  { %8767 = vmatpush3.bf16.msra.mxu1 %v8766_v41  ;;  %v6652_v6 = vpop.f32.mrb[28].mxu0  ;;  %v8784_v41 = vpack.c.bf16 %v1521_v47, %v1520_v42  ;;  %v1544_v38 = vld [vmem:[#allocation5 + $0x2d50] sm:$0xff]  ;;  %v1545_v47 = vld [vmem:[#allocation5 + $0x2d58] sm:$0xff] }
 0x302   :  { %8769 = vmatprep.subr.bf16.mxu1 %v8768_v51  ;;  %v6653_v1 = vpop.f32.mrb[29].mxu0  ;;  %v1537_v51 = vld [vmem:[#allocation5 + $0x2d18] sm:$0xff] }
 0x303   :  { %v6687_v2 = vpop.f32.mrb[28].mxu1  ;;  %v6654_v10 = vadd.f32 %v6653_v1, %v6652_v6  ;;  %8739 = vmatpush3.bf16.msra.mxu0 %v8738_v57  ;;  %v2051_v57 = vcombine.high %v9476_v59, %v9476_v59  ;;  %v1538_v6 = vld [vmem:[#allocation5 + $0x2d20] sm:$0xff]  ;;  %v1557_v1 = vld [vmem:[#allocation5 + $0x2db8] sm:$0xff] }
 0x304   :  { %v6688_v26 = vpop.f32.mrb[29].mxu1  ;;  %8741 = vmatprep.subr.bf16.mxu0 %v8740_v5  ;;  %v8818_v5 = vpack.c.bf16 %v1537_v51, %v1536_v49  ;;  %v1514_v49 = vld [vmem:[#allocation5 + $0x2c60] sm:$0xff] }
 0x305   :  { %v6689_v25 = vadd.f32 %v6688_v26, %v6687_v2  ;;  %8771 = vmatpush3.bf16.msra.mxu1 %v8770_v33  ;;  %v4192_v18 = vadd.f32 %v6654_v10, %v9455_v31  ;;  %v8812_v31 = vpack.c.bf16 %v1551_v39, %v1550_v37  ;;  %v8786_v33 = vpack.c.bf16 %v1505_v60, %v1504_v43  ;;  %v1509_v10 = vld [vmem:[#allocation5 + $0x2c38] sm:$0xff]  ;;  %v1540_v26 = vld [vmem:[#allocation5 + $0x2d30] sm:$0xff]  ;;  %v1543_v37 = vld [vmem:[#allocation5 + $0x2d48] sm:$0xff] }
 0x306   :  { %8773 = vmatprep.subr.bf16.mxu1 %v8772_v14  ;;  %v8820_v14 = vpack.c.bf16 %v1555_v56, %v1554_v4  ;;  %v8790_v2 = vpack.c.bf16 %v1507_v8, %v1506_v58  ;;  %v8794_v17 = vpack.c.bf16 %v1509_v10, %v1508_v9  ;;  %v8826_v11 = vpack.c.bf16 %v1541_v24, %v1540_v26  ;;  %v1528_v39 = vld [vmem:[#allocation5 + $0x2cd0] sm:$0xff]  ;;  %v1546_v51 = vld [vmem:[#allocation5 + $0x2d60] sm:$0xff]  ;;  %v1533_v56 = vld [vmem:[#allocation5 + $0x2cf8] sm:$0xff] }
 0x307   :  { %v9470_v15 = vadd.f32 %v6689_v25, %v4192_v18  ;;  %8743 = vmatpush3.bf16.msra.mxu0 %v8742_v21  ;;  %v8824_v21 = vpack.c.bf16 %v1557_v1, %v1556_v12  ;;  %v1526_v25 = vld [vmem:[#allocation5 + $0x2cc0] sm:$0xff]  ;;  %v8830_v28 = vpack.c.bf16 %v1543_v37, %v1542_v23  ;;  %v8800_v29 = vpack.c.bf16 %v1529_v40, %v1528_v39  ;;  %v1532_v4 = vld [vmem:[#allocation5 + $0x2cf0] sm:$0xff]  ;;  %v1517_v1 = vld [vmem:[#allocation5 + $0x2c78] sm:$0xff] }
 0x308   :  { %8745 = vmatprep.subr.bf16.mxu0 %v8744_v30  ;;  %v1558_v30 = vld [vmem:[#allocation5 + $0x2dc0] sm:$0xff]  ;;  %v8834_v43 = vpack.c.bf16 %v1545_v47, %v1544_v38  ;;  %v8804_v60 = vpack.c.bf16 %v1531_v54, %v1530_v53  ;;  %v1516_v12 = vld [vmem:[#allocation5 + $0x2c70] sm:$0xff]  ;;  %v1549_v9 = vld [vmem:[#allocation5 + $0x2d78] sm:$0xff] }
 0x309   :  { %8775 = vmatpush3.bf16.msra.mxu1 %v8774_v7  ;;  %v1527_v7 = vld [vmem:[#allocation5 + $0x2cc8] sm:$0xff]  ;;  %v8828_v36 = vpack.c.bf16 %v1559_v32, %v1558_v30  ;;  %v1582_v10 = vld [vmem:[#allocation5 + $0x2e80] sm:$0xff]  ;;  %v8810_v30 = vpack.c.bf16 %v1517_v1, %v1516_v12  ;;  %v1584_v23 = vld [vmem:[#allocation5 + $0x2e90] sm:$0xff] }
 0x30a   :  { %8777 = vmatprep.subr.bf16.mxu1 %v8776_v34  ;;  %v8796_v18 = vpack.c.bf16 %v1527_v7, %v1526_v25  ;;  %v1510_v34 = vld [vmem:[#allocation5 + $0x2c40] sm:$0xff]  ;;  %v1583_v26 = vld [vmem:[#allocation5 + $0x2e88] sm:$0xff]  ;;  %v1616_v39 = vld [vmem:[#allocation5 + $0x2f90] sm:$0xff] }
 0x30b   :  { %8747 = vmatpush3.bf16.msra.mxu0 %v8746_v52  ;;  %v1560_v52 = vld [vmem:[#allocation5 + $0x2dd0] sm:$0xff]  ;;  %v1615_v24 = vld [vmem:[#allocation5 + $0x2f88] sm:$0xff]  ;;  %v1617_v40 = vld [vmem:[#allocation5 + $0x2f98] sm:$0xff] }
 0x30c   :  { %8781 = vmatprep.subr.bf16.mxu0 %v8780_v27  ;;  %v8798_v27 = vpack.c.bf16 %v1511_v22, %v1510_v34  ;;  %v1598_v34 = vld [vmem:[#allocation5 + $0x2f00] sm:$0xff]  ;;  %v1599_v22 = vld [vmem:[#allocation5 + $0x2f08] sm:$0xff]  ;;  %v8880_v38 = vpack.c.bf16 %v1617_v40, %v1616_v39 }
 0x30d   :  { %8779 = vmatpush3.bf16.msra.mxu1 %v8778_v44  ;;  %v1561_v44 = vld [vmem:[#allocation5 + $0x2dd8] sm:$0xff]  ;;  %v1586_v47 = vld [vmem:[#allocation5 + $0x2ea0] sm:$0xff]  ;;  %v1587_v53 = vld [vmem:[#allocation5 + $0x2ea8] sm:$0xff] }
 0x30e   :  { %8813 = vmatprep.subr.bf16.mxu1 %v8812_v31  ;;  %5170 = vmatmul.mubr.f32.vlgmr.msra.gmra.mrb[42].mxu0 %v9458_v62  ;;  %v1524_v62 = vld [vmem:[#allocation5 + $0x2cb0] sm:$0xff]  ;;  %v1513_v31 = vld [vmem:[#allocation5 + $0x2c58] sm:$0xff]  ;;  %v8832_v42 = vpack.c.bf16 %v1561_v44, %v1560_v52  ;;  %v1595_v39 = vld [vmem:[#allocation5 + $0x2ee8] sm:$0xff] }
 0x30f   :  { %8783 = vmatpush3.bf16.msra.mxu0 %v8782_v55  ;;  %5309 = vmatprep.mubr.f32.mxu0 %v2050_v45  ;;  %v8792_v20 = vpack.c.bf16 %v1525_v19, %v1524_v62  ;;  %v1562_v55 = vld [vmem:[#allocation5 + $0x2de0] sm:$0xff]  ;;  %v1547_v45 = vld [vmem:[#allocation5 + $0x2d68] sm:$0xff]  ;;  %v8808_v19 = vpack.c.bf16 %v1533_v56, %v1532_v4  ;;  %v1620_v4 = vld [vmem:[#allocation5 + $0x2fb0] sm:$0xff] }
 0x310   :  { %5240 = vmatmul.mubr.f32.vlgmr.msra.gmra.mrb[42].mxu1 %v9461_v3  ;;  %8785 = vmatprep.subr.bf16.mxu0 %v8784_v41  ;;  %v8822_v3 = vpack.c.bf16 %v1539_v16, %v1538_v6  ;;  %v8802_v41 = vpack.c.bf16 %v1513_v31, %v1512_v46  ;;  %v8838_v62 = vpack.c.bf16 %v1547_v45, %v1546_v51  ;;  %v1569_v46 = vld [vmem:[#allocation5 + $0x2e18] sm:$0xff]  ;;  %v1600_v31 = vld [vmem:[#allocation5 + $0x2f10] sm:$0xff]  ;;  %v1602_v51 = vld [vmem:[#allocation5 + $0x2f20] sm:$0xff] }
 0x311   :  { %8815 = vmatpush3.bf16.msra.mxu1 %v8814_v35  ;;  %5379 = vmatprep.mubr.f32.mxu1 %v2051_v57  ;;  %v1563_v35 = vld [vmem:[#allocation5 + $0x2de8] sm:$0xff]  ;;  %v1589_v45 = vld [vmem:[#allocation5 + $0x2eb8] sm:$0xff]  ;;  %v1626_v40 = vld [vmem:[#allocation5 + $0x2fe0] sm:$0xff] }
 0x312   :  { %8817 = vmatprep.subr.bf16.mxu1 %v8816_v50  ;;  %v1515_v50 = vld [vmem:[#allocation5 + $0x2c68] sm:$0xff]  ;;  %v8836_v0 = vpack.c.bf16 %v1563_v35, %v1562_v55  ;;  %v1621_v56 = vld [vmem:[#allocation5 + $0x2fb8] sm:$0xff] }
 0x313   :  { %8787 = vmatpush3.bf16.msra.mxu0 %v8786_v33  ;;  %v8806_v6 = vpack.c.bf16 %v1515_v50, %v1514_v49  ;;  %v1619_v55 = vld [vmem:[#allocation5 + $0x2fa8] sm:$0xff]  ;;  %v1570_v49 = vld [vmem:[#allocation5 + $0x2e20] sm:$0xff] }
 0x314   :  { %8789 = vmatprep.subr.bf16.mxu0 %v8788_v63  ;;  %v1565_v63 = vld [vmem:[#allocation5 + $0x2df8] sm:$0xff]  ;;  %v1571_v50 = vld [vmem:[#allocation5 + $0x2e28] sm:$0xff] }
 0x315   :  { %8819 = vmatpush3.bf16.msra.mxu1 %v8818_v5  ;;  %v1564_v5 = vld [vmem:[#allocation5 + $0x2df0] sm:$0xff] }
 0x316   :  { %8821 = vmatprep.subr.bf16.mxu1 %v8820_v14  ;;  %v93_v14 = vld [vmem:[#allocation2 + $0xb8] sm:$0xff] }
 0x317   :  { %8791 = vmatpush3.bf16.msra.mxu0 %v8790_v2  ;;  %v1548_v2 = vld [vmem:[#allocation5 + $0x2d70] sm:$0xff]  ;;  %v2052_v25 = vcombine.high %v93_v14, %v93_v14  ;;  %v9488_v37 = vrot.slane %v93_v14, %v9174_v13  ;;  %v1590_v14 = vld [vmem:[#allocation5 + $0x2ec0] sm:$0xff] }
 0x318   :  { %8793 = vmatprep.subr.bf16.mxu0 %v8792_v20  ;;  %v8840_v20 = vpack.c.bf16 %v1565_v63, %v1564_v5  ;;  %v8842_v32 = vpack.c.bf16 %v1549_v9, %v1548_v2  ;;  %v1572_v5 = vld [vmem:[#allocation5 + $0x2e30] sm:$0xff]  ;;  %v1573_v63 = vld [vmem:[#allocation5 + $0x2e38] sm:$0xff]  ;;  %v1606_v9 = vld [vmem:[#allocation5 + $0x2f40] sm:$0xff] }
 0x319   :  { %8823 = vmatpush3.bf16.msra.mxu1 %v8822_v3  ;;  %v9491_v52 = vrot.slane %v2052_v25, %v9174_v13  ;;  %v2067_v54 = vcombine.high %v9488_v37, %v9488_v37  ;;  %v1618_v13 = vld [vmem:[#allocation5 + $0x2fa0] sm:$0xff]  ;;  %v8858_v12 = vpack.c.bf16 %v1573_v63, %v1572_v5  ;;  %v1624_v25 = vld [vmem:[#allocation5 + $0x2fd0] sm:$0xff] }
 0x31a   :  { %8825 = vmatprep.subr.bf16.mxu1 %v8824_v21  ;;  %v1614_v21 = vld [vmem:[#allocation5 + $0x2f80] sm:$0xff] }
 0x31b   :  { %8795 = vmatpush3.bf16.msra.mxu0 %v8794_v17  ;;  %v8844_v17 = vpack.c.bf16 %v1583_v26, %v1582_v10  ;;  %v2068_v35 = vcombine.high %v9491_v52, %v9491_v52  ;;  %v1607_v26 = vld [vmem:[#allocation5 + $0x2f48] sm:$0xff] }
 0x31c   :  { %8797 = vmatprep.subr.bf16.mxu0 %v8796_v18  ;;  %v1567_v18 = vld [vmem:[#allocation5 + $0x2e08] sm:$0xff] }
 0x31d   :  { %8827 = vmatpush3.bf16.msra.mxu1 %v8826_v11  ;;  %v1566_v11 = vld [vmem:[#allocation5 + $0x2e00] sm:$0xff] }
 0x31e   :  { %8829 = vmatprep.subr.bf16.mxu1 %v8828_v36  ;;  %v1585_v36 = vld [vmem:[#allocation5 + $0x2e98] sm:$0xff]  ;;  %v8846_v44 = vpack.c.bf16 %v1567_v18, %v1566_v11  ;;  %v1576_v18 = vld [vmem:[#allocation5 + $0x2e50] sm:$0xff] }
 0x31f   :  { %8799 = vmatpush3.bf16.msra.mxu0 %v8798_v27  ;;  %v8878_v27 = vpack.c.bf16 %v1599_v22, %v1598_v34  ;;  %v1577_v34 = vld [vmem:[#allocation5 + $0x2e58] sm:$0xff] }
 0x320   :  { %8801 = vmatprep.subr.bf16.mxu0 %v8800_v29  ;;  %v1568_v29 = vld [vmem:[#allocation5 + $0x2e10] sm:$0xff] }
 0x321   :  { %8831 = vmatpush3.bf16.msra.mxu1 %v8830_v28  ;;  %v6722_v61 = vpop.f32.mrb[30].mxu0  ;;  %v8848_v28 = vpack.c.bf16 %v1585_v36, %v1584_v23  ;;  %v1609_v23 = vld [vmem:[#allocation5 + $0x2f58] sm:$0xff]  ;;  %v1594_v36 = vld [vmem:[#allocation5 + $0x2ee0] sm:$0xff] }
 0x322   :  { %8833 = vmatprep.subr.bf16.mxu1 %v8832_v42  ;;  %v6723_v57 = vpop.f32.mrb[31].mxu0  ;;  %v1601_v42 = vld [vmem:[#allocation5 + $0x2f18] sm:$0xff] }
 0x323   :  { %v6757_v33 = vpop.f32.mrb[30].mxu1  ;;  %v6724_v58 = vadd.f32 %v6723_v57, %v6722_v61  ;;  %8803 = vmatpush3.bf16.msra.mxu0 %v8802_v41  ;;  %v8850_v41 = vpack.c.bf16 %v1569_v46, %v1568_v29  ;;  %v8884_v61 = vpack.c.bf16 %v1619_v55, %v1618_v13  ;;  %v8854_v57 = vpack.c.bf16 %v1571_v50, %v1570_v49  ;;  %v1578_v46 = vld [vmem:[#allocation5 + $0x2e60] sm:$0xff]  ;;  %v1597_v13 = vld [vmem:[#allocation5 + $0x2ef8] sm:$0xff] }
 0x324   :  { %v6758_v8 = vpop.f32.mrb[31].mxu1  ;;  %8805 = vmatprep.subr.bf16.mxu0 %v8804_v60  ;;  %v8852_v60 = vpack.c.bf16 %v1587_v53, %v1586_v47  ;;  %v8868_v29 = vpack.c.bf16 %v1595_v39, %v1594_v36  ;;  %v1611_v53 = vld [vmem:[#allocation5 + $0x2f68] sm:$0xff] }
 0x325   :  { %v6759_v16 = vadd.f32 %v6758_v8, %v6757_v33  ;;  %8835 = vmatpush3.bf16.msra.mxu1 %v8834_v43  ;;  %v4332_v3 = vadd.f32 %v6724_v58, %v9470_v15  ;;  %v8876_v15 = vpack.c.bf16 %v1615_v24, %v1614_v21  ;;  %v8882_v43 = vpack.c.bf16 %v1601_v42, %v1600_v31  ;;  %v1604_v58 = vld [vmem:[#allocation5 + $0x2f30] sm:$0xff]  ;;  %v1593_v24 = vld [vmem:[#allocation5 + $0x2ed8] sm:$0xff]  ;;  %v1579_v31 = vld [vmem:[#allocation5 + $0x2e68] sm:$0xff] }
 0x326   :  { %8837 = vmatprep.subr.bf16.mxu1 %v8836_v0  ;;  %v1603_v0 = vld [vmem:[#allocation5 + $0x2f28] sm:$0xff]  ;;  %v8888_v8 = vpack.c.bf16 %v1621_v56, %v1620_v4  ;;  %v1592_v21 = vld [vmem:[#allocation5 + $0x2ed0] sm:$0xff]  ;;  %v8870_v50 = vpack.c.bf16 %v1579_v31, %v1578_v46 }
 0x327   :  { %v9485_v7 = vadd.f32 %v6759_v16, %v4332_v3  ;;  %8807 = vmatpush3.bf16.msra.mxu0 %v8806_v6  ;;  %v1605_v6 = vld [vmem:[#allocation5 + $0x2f38] sm:$0xff]  ;;  %v1591_v16 = vld [vmem:[#allocation5 + $0x2ec8] sm:$0xff]  ;;  %v1574_v3 = vld [vmem:[#allocation5 + $0x2e40] sm:$0xff]  ;;  %v8864_v11 = vpack.c.bf16 %v1593_v24, %v1592_v21  ;;  %v9092_v24 = vmov 0.0|0.0  }
 0x328   :  { %8809 = vmatprep.subr.bf16.mxu0 %v8808_v19  ;;  %v1623_v19 = vld [vmem:[#allocation5 + $0x2fc8] sm:$0xff]  ;;  %v8890_v1 = vpack.c.bf16 %v1605_v6, %v1604_v58  ;;  %v8860_v2 = vpack.c.bf16 %v1591_v16, %v1590_v14  ;;  %v5528_v21 = vld [vmem:[%s9565_s3 + $0x10] sm:$0xff] }
 0x329   :  { %8839 = vmatpush3.bf16.msra.mxu1 %v8838_v62  ;;  %v1622_v62 = vld [vmem:[#allocation5 + $0x2fc0] sm:$0xff]  ;;  %v5535_v36 = vld [vmem:[%s9565_s3 + $0x48] sm:$0xff] }
 0x32a   :  { %8841 = vmatprep.subr.bf16.mxu1 %v8840_v20  ;;  %v1575_v20 = vld [vmem:[#allocation5 + $0x2e48] sm:$0xff]  ;;  %v8892_v10 = vpack.c.bf16 %v1623_v19, %v1622_v62 }
 0x32b   :  { %8811 = vmatpush3.bf16.msra.mxu0 %v8810_v30  ;;  %v1625_v30 = vld [vmem:[#allocation5 + $0x2fd8] sm:$0xff]  ;;  %v5539_v46 = vld [vmem:[%s9565_s3 + $0x68] sm:$0xff] }
 0x32c   :  { %8845 = vmatprep.subr.bf16.mxu0 %v8844_v17  ;;  %v8894_v17 = vpack.c.bf16 %v1607_v26, %v1606_v9  ;;  %v8896_v22 = vpack.c.bf16 %v1625_v30, %v1624_v25  ;;  %v5529_v30 = vld [vmem:[%s9565_s3 + $0x18] sm:$0xff] }
 0x32d   :  { %8843 = vmatpush3.bf16.msra.mxu1 %v8842_v32  ;;  %v8862_v32 = vpack.c.bf16 %v1575_v20, %v1574_v3 }
 0x32e   :  { %8877 = vmatprep.subr.bf16.mxu1 %v8876_v15  ;;  %5310 = vmatmul.mubr.f32.vlgmr.msra.gmra.mrb[44].mxu0 %v9473_v48  ;;  %v1588_v48 = vld [vmem:[#allocation5 + $0x2eb0] sm:$0xff] }
 0x32f   :  { %8847 = vmatpush3.bf16.msra.mxu0 %v8846_v44  ;;  %5449 = vmatprep.mubr.f32.mxu0 %v2067_v54  ;;  %v8856_v33 = vpack.c.bf16 %v1589_v45, %v1588_v48  ;;  %v1608_v15 = vld [vmem:[#allocation5 + $0x2f50] sm:$0xff]  ;;  %v1627_v44 = vld [vmem:[#allocation5 + $0x2fe8] sm:$0xff]  ;;  %v1581_v45 = vld [vmem:[#allocation5 + $0x2e78] sm:$0xff] }
 0x330   :  { %5380 = vmatmul.mubr.f32.vlgmr.msra.gmra.mrb[44].mxu1 %v9476_v59  ;;  %8849 = vmatprep.subr.bf16.mxu0 %v8848_v28  ;;  %v8886_v59 = vpack.c.bf16 %v1603_v0, %v1602_v51  ;;  %v8898_v28 = vpack.c.bf16 %v1609_v23, %v1608_v15  ;;  %v8900_v47 = vpack.c.bf16 %v1627_v44, %v1626_v40  ;;  %v1596_v54 = vld [vmem:[#allocation5 + $0x2ef0] sm:$0xff]  ;;  %v5533_v15 = vld [vmem:[%s9565_s3 + $0x38] sm:$0xff]  ;;  %v5534_v23 = vld [vmem:[%s9565_s3 + $0x40] sm:$0xff] }
 0x331   :  { %8879 = vmatpush3.bf16.msra.mxu1 %v8878_v27  ;;  %5519 = vmatprep.mubr.f32.mxu1 %v2068_v35  ;;  %v8866_v27 = vpack.c.bf16 %v1577_v34, %v1576_v18  ;;  %v8872_v0 = vpack.c.bf16 %v1597_v13, %v1596_v54  ;;  %v1580_v48 = vld [vmem:[#allocation5 + $0x2e70] sm:$0xff]  ;;  %v8921_v39 = vpack.c.bf16 %v5535_v36, %v5534_v23  ;;  %v5537_v44 = vld [vmem:[%s9565_s3 + $0x58] sm:$0xff] }
 0x332   :  { %8881 = vmatprep.subr.bf16.mxu1 %v8880_v38  ;;  %v1610_v38 = vld [vmem:[#allocation5 + $0x2f60] sm:$0xff]  ;;  %v8874_v5 = vpack.c.bf16 %v1581_v45, %v1580_v48  ;;  %v5532_v34 = vld [vmem:[%s9565_s3 + $0x30] sm:$0xff] }
 0x333   :  { %8851 = vmatpush3.bf16.msra.mxu0 %v8850_v41  ;;  %v1628_v41 = vld [vmem:[#allocation5 + $0x2ff0] sm:$0xff] }
 0x334   :  { %8853 = vmatprep.subr.bf16.mxu0 %v8852_v60  ;;  %v5536_v40 = vld [vmem:[%s9565_s3 + $0x50] sm:$0xff] }
 0x335   :  { %8883 = vmatpush3.bf16.msra.mxu1 %v8882_v43  ;;  %v1629_v43 = vld [vmem:[#allocation5 + $0x2ff8] sm:$0xff] }
 0x336   :  { %8885 = vmatprep.subr.bf16.mxu1 %v8884_v61  ;;  %v8902_v61 = vpack.c.bf16 %v1611_v53, %v1610_v38  ;;  %v8904_v56 = vpack.c.bf16 %v1629_v43, %v1628_v41 }
 0x337   :  { %8855 = vmatpush3.bf16.msra.mxu0 %v8854_v57  ;;  %v1612_v57 = vld [vmem:[#allocation5 + $0x2f70] sm:$0xff] }
 0x338   :  { %8857 = vmatprep.subr.bf16.mxu0 %v8856_v33 }
 0x339   :  { %8887 = vmatpush3.bf16.msra.mxu1 %v8886_v59  ;;  %v1613_v59 = vld [vmem:[#allocation5 + $0x2f78] sm:$0xff] }
 0x33a   :  { %8889 = vmatprep.subr.bf16.mxu1 %v8888_v8  ;;  %v8906_v63 = vpack.c.bf16 %v1613_v59, %v1612_v57 }
 0x33b   :  { %8859 = vmatpush3.bf16.msra.mxu0 %v8858_v12 }
 0x33c   :  { %8861 = vmatprep.subr.bf16.mxu0 %v8860_v2 }
 0x33d   :  { %8891 = vmatpush3.bf16.msra.mxu1 %v8890_v1 }
 0x33e   :  { %8893 = vmatprep.subr.bf16.mxu1 %v8892_v10 }
 0x33f   :  { %8863 = vmatpush3.bf16.msra.mxu0 %v8862_v32  ;;  %v8912_v32 = vpack.c.bf16 %v5529_v30, %v5528_v21 }
 0x340   :  { %8865 = vmatprep.subr.bf16.mxu0 %v8864_v11  ;;  %v5531_v11 = vld [vmem:[%s9565_s3 + $0x28] sm:$0xff] }
 0x341   :  { %8895 = vmatpush3.bf16.msra.mxu1 %v8894_v17  ;;  %v6792_v42 = vpop.f32.mrb[32].mxu0  ;;  %v5530_v17 = vld [vmem:[%s9565_s3 + $0x20] sm:$0xff] }
 0x342   :  { %8897 = vmatprep.subr.bf16.mxu1 %v8896_v22  ;;  %v6793_v55 = vpop.f32.mrb[33].mxu0  ;;  %v8915_v18 = vpack.c.bf16 %v5531_v11, %v5530_v17  ;;  %v8918_v22 = vpack.c.bf16 %v5533_v15, %v5532_v34 }
 0x343   :  { %v6827_v35 = vpop.f32.mrb[32].mxu1  ;;  %v6794_v60 = vadd.f32 %v6793_v55, %v6792_v42  ;;  %8867 = vmatpush3.bf16.msra.mxu0 %v8866_v27  ;;  %v8924_v27 = vpack.c.bf16 %v5537_v44, %v5536_v40  ;;  %v5540_v55 = vld [vmem:[%s9565_s3 + $0x70] sm:$0xff] }
 0x344   :  { %v6828_v49 = vpop.f32.mrb[33].mxu1  ;;  %8869 = vmatprep.subr.bf16.mxu0 %v8868_v29  ;;  %v5538_v29 = vld [vmem:[%s9565_s3 + $0x60] sm:$0xff] }
 0x345   :  { %v6829_v51 = vadd.f32 %v6828_v49, %v6827_v35  ;;  %8899 = vmatpush3.bf16.msra.mxu1 %v8898_v28  ;;  %v4472_v4 = vadd.f32 %v6794_v60, %v9485_v7  ;;  %v8927_v42 = vpack.c.bf16 %v5539_v46, %v5538_v29  ;;  %v5541_v35 = vld [vmem:[%s9565_s3 + $0x78] sm:$0xff]  ;;  %v9094_v60 = vmov 0.0  }
 0x346   :  { %8901 = vmatprep.subr.bf16.mxu1 %v8900_v47  ;;  %v8930_v41 = vpack.c.bf16 %v5541_v35, %v5540_v55 }
 0x347   :  { %v4542_v33 = vadd.f32 %v6829_v51, %v4472_v4  ;;  %8871 = vmatpush3.bf16.msra.mxu0 %v8870_v50 }
 0x348   :  { %8873 = vmatprep.subr.bf16.mxu0 %v8872_v0 }
 0x349   :  { %8903 = vmatpush3.bf16.msra.mxu1 %v8902_v61 }
 0x34a   :  { %8905 = vmatprep.subr.bf16.mxu1 %v8904_v56 }
 0x34b   :  { %8875 = vmatpush3.bf16.msra.mxu0 %v8874_v5 }
 0x34c   :  { %8908 = vmatprep.subr.bf16.mxu0 %v9092_v24 }
 0x34d   :  { %8907 = vmatpush3.bf16.msra.mxu1 %v8906_v63 }
 0x34e   :  { %5450 = vmatmul.mubr.f32.vlgmr.msra.gmra.mrb[46].mxu0 %v9488_v37  ;;  %v5526_v37 = vld [vmem:[%s9565_s3] sm:$0xff] }
 0x34f   :  { %7369 = vmatprep.mubr.msk.f32.mxu0 %vm9093_vm0, %v9094_v60 }
 0x350   :  { %5520 = vmatmul.mubr.f32.vlgmr.msra.gmra.mrb[46].mxu1 %v9491_v52  ;;  %v5527_v52 = vld [vmem:[%s9565_s3 + $0x8] sm:$0xff]  ;;  %s9095_s3 = smov [#allocation10]  }
 0x351   :  { %v8909_v25 = vpack.c.bf16 %v5527_v52, %v5526_v37  ;;  %s5627_s18 = sshll.u32 %s9095_s3, 4  ;;  %s5628_s18 = int_to_ptr.vmem [resolvable:$true] %s5627_s18 }
 0x352   :  { %s9055_s19 = scalar_lea.vmem %s5628_s18, 32  ;;  %p9060_p5 = scmp.lt.s32.totalorder %s5628_s18, %s5628_s18 }
 0x353   :  { %8910 = vmatpush3.bf16.msra.mxu0 %v8909_v25  ;;  %p9056_p4 = scmp.ne.s32.totalorder %s5628_s18, %s9055_s19  ;;  %p9061_p6 = scmp.lt.s32.totalorder %s9055_s19, %s9055_s19 }
 0x354   :  { %8911 = vmatprep.subr.bf16.mxu0 %v9092_v24 }
 0x355   :  { %p9062_p7 = por %p9061_p6, %p9060_p5 }
 0x357   :  { %8913 = vmatpush3.bf16.msra.mxu0 %v8912_v32  ;;  %p9063_p8 = pnand %p9062_p7, %p9056_p4 }
 0x358   :  { %8914 = vmatprep.subr.bf16.mxu0 %v9092_v24 }
 0x35b   :  { %8916 = vmatpush3.bf16.msra.mxu0 %v8915_v18 }
 0x35c   :  { %8917 = vmatprep.subr.bf16.mxu0 %v9092_v24 }
 0x35f   :  { %8919 = vmatpush3.bf16.msra.mxu0 %v8918_v22 }
 0x360   :  { %8920 = vmatprep.subr.bf16.mxu0 %v9092_v24 }
 0x361   :  { %v6862_v58 = vpop.f32.mrb[34].mxu0 }
 0x362   :  { %v6863_v8 = vpop.f32.mrb[35].mxu0 }
 0x363   :  { %v6897_v7 = vpop.f32.mrb[34].mxu1  ;;  %v6864_v6 = vadd.f32 %v6863_v8, %v6862_v58  ;;  %8922 = vmatpush3.bf16.msra.mxu0 %v8921_v39 }
 0x364   :  { %v6898_v14 = vpop.f32.mrb[35].mxu1  ;;  %8923 = vmatprep.subr.bf16.mxu0 %v9092_v24 }
 0x365   :  { %v6899_v16 = vadd.f32 %v6898_v14, %v6897_v7  ;;  %v4612_v62 = vadd.f32 %v6864_v6, %v4542_v33 }
 0x367   :  { %v4682_v19 = vadd.f32 %v6899_v16, %v4612_v62  ;;  %8925 = vmatpush3.bf16.msra.mxu0 %v8924_v27 }
 0x368   :  { %8926 = vmatprep.subr.bf16.mxu0 %v9092_v24 }
 0x36b   :  { %8928 = vmatpush3.bf16.msra.mxu0 %v8927_v42 }
 0x36c   :  { %8929 = vmatprep.subr.bf16.mxu0 %v9092_v24  ;;  %v5639_v24 = vld [vmem:[#allocation8] ss:$0 sm:$0xff] }
 0x36f   :  { %8931 = vmatpush3.bf16.msra.mxu0 %v8930_v41 }
 0x381   :  { %v6932_v12 = vpop.f32.mrb[36].mxu0 }
 0x382   :  { %v6933_v1 = vpop.f32.mrb[37].mxu0 }
 0x383   :  { %v6967_v2 = vpop.f32.mrb[36].mxu1  ;;  %v6934_v3 = vadd.f32 %v6933_v1, %v6932_v12 }
 0x384   :  { %v6968_v20 = vpop.f32.mrb[37].mxu1 }
 0x385   :  { %v6969_v9 = vadd.f32 %v6968_v20, %v6967_v2  ;;  %v4752_v10 = vadd.f32 %v6934_v3, %v4682_v19 }
 0x387   :  { %v4822_v26 = vadd.f32 %v6969_v9, %v4752_v10 }
 0x3a1   :  { %v7002_v28 = vpop.f32.mrb[38].mxu0 }
 0x3a2   :  { %v7003_v31 = vpop.f32.mrb[39].mxu0 }
 0x3a3   :  { %v7037_v38 = vpop.f32.mrb[38].mxu1  ;;  %v7004_v47 = vadd.f32 %v7003_v31, %v7002_v28 }
 0x3a4   :  { %v7038_v53 = vpop.f32.mrb[39].mxu1 }
 0x3a5   :  { %v7039_v54 = vadd.f32 %v7038_v53, %v7037_v38  ;;  %v4892_v13 = vadd.f32 %v7004_v47, %v4822_v26 }
 0x3a7   :  { %v4962_v43 = vadd.f32 %v7039_v54, %v4892_v13 }
 0x3c1   :  { %v7072_v49 = vpop.f32.mrb[40].mxu0 }
 0x3c2   :  { %v7073_v50 = vpop.f32.mrb[41].mxu0 }
 0x3c3   :  { %v7107_v51 = vpop.f32.mrb[40].mxu1  ;;  %v7074_v61 = vadd.f32 %v7073_v50, %v7072_v49 }
 0x3c4   :  { %v7108_v0 = vpop.f32.mrb[41].mxu1 }
 0x3c5   :  { %v7109_v48 = vadd.f32 %v7108_v0, %v7107_v51  ;;  %v5032_v45 = vadd.f32 %v7074_v61, %v4962_v43 }
 0x3c7   :  { %v5102_v4 = vadd.f32 %v7109_v48, %v5032_v45 }
 0x3e1   :  { %v7142_v56 = vpop.f32.mrb[42].mxu0 }
 0x3e2   :  { %v7143_v57 = vpop.f32.mrb[43].mxu0 }
 0x3e3   :  { %v7177_v59 = vpop.f32.mrb[42].mxu1  ;;  %v7144_v33 = vadd.f32 %v7143_v57, %v7142_v56 }
 0x3e4   :  { %v7178_v5 = vpop.f32.mrb[43].mxu1 }
 0x3e5   :  { %v7179_v63 = vadd.f32 %v7178_v5, %v7177_v59  ;;  %v5172_v58 = vadd.f32 %v7144_v33, %v5102_v4 }
 0x3e7   :  { %v5242_v8 = vadd.f32 %v7179_v63, %v5172_v58 }
 0x401   :  { %v7212_v7 = vpop.f32.mrb[44].mxu0 }
 0x402   :  { %v7213_v6 = vpop.f32.mrb[45].mxu0 }
 0x403   :  { %v7247_v14 = vpop.f32.mrb[44].mxu1  ;;  %v7214_v16 = vadd.f32 %v7213_v6, %v7212_v7 }
 0x404   :  { %v7248_v62 = vpop.f32.mrb[45].mxu1 }
 0x405   :  { %v7249_v19 = vadd.f32 %v7248_v62, %v7247_v14  ;;  %v5312_v12 = vadd.f32 %v7214_v16, %v5242_v8 }
 0x407   :  { %v5382_v1 = vadd.f32 %v7249_v19, %v5312_v12 }
 0x421   :  { %v7282_v2 = vpop.f32.mrb[46].mxu0 }
 0x422   :  { %v7283_v3 = vpop.f32.mrb[47].mxu0 }
 0x423   :  { %v7317_v20 = vpop.f32.mrb[46].mxu1  ;;  %v7284_v9 = vadd.f32 %v7283_v3, %v7282_v2 }
 0x424   :  { %v7318_v10 = vpop.f32.mrb[47].mxu1 }
 0x425   :  { %v7319_v26 = vadd.f32 %v7318_v10, %v7317_v20  ;;  %v5452_v37 = vadd.f32 %v7284_v9, %v5382_v1 }
 0x427   :  { %v5522_v52 = vadd.f32 %v7319_v26, %v5452_v37 }
 0x429   :  { %v5525_v21 = vmax.f32 %v5522_v52, 0.0 }
 0x42b   :  { %7370 = vmatmul.mubr.f32.vlgmr.msra.gmra.mrb[48].mxu0 %v5525_v21 }
 0x4fe   :  { %v5615_v25 = vpop.f32.mrb[48].mxu0 }
 0x4ff   :  { %v5616_v30 = vadd.f32 %v5639_v24, %v5615_v25  ;;  %v7371_v32 = vpop.f32.mrb[49].mxu0 }
 0x501   :  { %5620 = vst.msk [vmem:[#allocation10] sm:$0x3] %vm5619_vm1, %v5616_v30 }
 0x502   :  { %9066 = shalt.err (!%p9063_p8)
}
 0x503   :  { %s9067_s22 = scalar_lea.hbm %s9567_s5, 32 }
 0x504   :  { %p9068_p9 = scmp.ne.s32.totalorder %s9567_s5, %s9067_s22  ;;  %p9071_p10 = scmp.lt.u32.totalorder %s9067_s22, %s9567_s5 }
 0x506   :  { %p9073_p11 = pnand %p9071_p10, %p9068_p9 }
 0x508   :  { %9076 = shalt.err (!%p9073_p11)
}
 0x509   :  { %5630 = dma.vmem_to_hbm [thread:$0]  %s5628_s18, 32, %s9567_s5, [#allocation4]  }
 0x50a   :  { %9083 = dma.done.wait [#allocation4], 32  }
 0x50b   :  { %9084 = vsyncadd [#allocation4], 4294967264 }
 0x50c   :  { %5634 = vsyncpa [#allocation3], 1 }
 0x50d   :  { %5635 = vsyncpa [#allocation6], 1 }
 0x50e   :  { %5636 = vsyncpa [#allocation9], 1 }
 0x50f   :  { %5637 = vsyncpa [#allocation4], 1 }

</bundles_post_ra>
